<compile_context>
chip_gen: v6e
topology: v6e:2x2x1
jax: 0.10.0
libtpu: 0.0.40
codegen_flags: <defaults>
</compile_context>

<pallas_src>
import functools
from functools import partial

import jax
import jax.numpy as jnp
from jax import lax
from jax.experimental import pallas as pl
from jax.experimental.pallas import tpu as pltpu


# --------------------------------------------------------------------------
# Fused forward kernel: one grid step processes a block of `nb` choice rows
# end-to-end (embedding LN -> encoder layers -> pooler -> folded head).
# --------------------------------------------------------------------------
def _forward_kernel(emb_ref, mask_ref,
                    eg_ref, eb_ref,
                    wq_ref, bq_ref, wk_ref, bk_ref, wv_ref, bv_ref,
                    wo_ref, bo_ref, l1g_ref, l1b_ref,
                    w1_ref, b1_ref, w2_ref, b2_ref, l2g_ref, l2b_ref,
                    pw_ref, pb_ref, hw_ref, cb_ref,
                    out_ref, *, heads, layers):
    nb, s, d = emb_ref.shape
    dh = d // heads
    scale = 1.0 / (dh ** 0.5)

    def layer_norm(x, g, b):
        mu = jnp.mean(x, axis=-1, keepdims=True)
        var = jnp.mean(jnp.square(x - mu), axis=-1, keepdims=True)
        return (x - mu) * lax.rsqrt(var + 1e-12) * g + b

    # ---- embedding LayerNorm ----
    x2 = layer_norm(emb_ref[...].reshape(nb * s, d), eg_ref[...], eb_ref[...])

    # ---- additive key-mask bias (nb, 1, s); broadcasts over the query axis ----
    mask_bias = (1.0 - mask_ref[...]) * -1e4

    # ---- BERT encoder layers (weights stacked on a leading layer axis) ----
    for l in range(layers):
        # Self-attention: per-head projections from host-pre-split weight
        # blocks -> every per-head tensor is an aligned matmul result, no
        # lane-offset slicing of activations and no lane concat at the end.
        attn_out = bo_ref[l]                                        # (1, d)
        for h in range(heads):
            q = (jnp.dot(x2, wq_ref[l, h], preferred_element_type=jnp.float32)
                 + bq_ref[l, h]).reshape(nb, s, dh)
            k = (jnp.dot(x2, wk_ref[l, h], preferred_element_type=jnp.float32)
                 + bk_ref[l, h]).reshape(nb, s, dh)
            v = (jnp.dot(x2, wv_ref[l, h], preferred_element_type=jnp.float32)
                 + bv_ref[l, h]).reshape(nb, s, dh)
            sc = jnp.einsum('bqd,bkd->bqk', q, k,
                            preferred_element_type=jnp.float32) * scale
            p = jax.nn.softmax(sc + mask_bias, axis=-1)
            ctx = jnp.einsum('bqk,bkd->bqd', p, v,
                             preferred_element_type=jnp.float32)
            # per-head output projection, accumulated (replaces lane concat)
            attn_out = attn_out + jnp.dot(ctx.reshape(nb * s, dh), wo_ref[l, h],
                                          preferred_element_type=jnp.float32)
        x2 = layer_norm(attn_out + x2, l1g_ref[l], l1b_ref[l])

        # feed-forward (tanh-gelu approximation; BERT erf-gelu differs < 1e-3)
        ff = jax.nn.gelu(
            jnp.dot(x2, w1_ref[l], preferred_element_type=jnp.float32)
            + b1_ref[l], approximate=True)
        ff = jnp.dot(ff, w2_ref[l], preferred_element_type=jnp.float32) + b2_ref[l]
        x2 = layer_norm(ff + x2, l2g_ref[l], l2b_ref[l])

    # ---- BERT pooler: tanh(W h_[CLS] + b) ----
    cls_tok = x2.reshape(nb, s, d)[:, 0, :]                         # (nb, d)
    pooled = jnp.tanh(
        jnp.dot(cls_tok, pw_ref[...], preferred_element_type=jnp.float32)
        + pb_ref[...])

    # ---- mha1 -> mha2 -> classifier, folded on the host into hw (1, d).
    # Softmax over a single key is exactly 1, so each MHA block is exactly
    # linear_v (bias-free, no out-proj) on a length-1 sequence — the fold is
    # exact.  Emit logits lane-major: (1, nb) so the store is not a 1-lane
    # masked vst.
    logits = (jnp.dot(hw_ref[...], pooled.T,
                      preferred_element_type=jnp.float32) + cb_ref[...])
    out_ref[...] = logits.reshape(1, 1, nb)


def _const_spec(arr):
    zero = (0,) * arr.ndim
    return pl.BlockSpec(arr.shape, lambda i, _z=zero: _z)


# --------------------------------------------------------------------------
# Parameter init (deterministic, synthetic "pretrained" weights, standard
# (in, out) Linear layout; host-side prep re-lays them out for the kernel).
# --------------------------------------------------------------------------
def init_params(key, *, vocab=100, max_pos=16, n_types=2, d=32, d_ff=64,
                layers=2):
    keys = iter(jax.random.split(key, 32))

    def nrm(shape, scale=0.02):
        return scale * jax.random.normal(next(keys), shape, dtype=jnp.float32)

    def zeros(*s):
        return jnp.zeros(s, jnp.float32)

    def ones(*s):
        return jnp.ones(s, jnp.float32)

    return {
        "word_emb": nrm((vocab, d)),
        "pos_emb": nrm((max_pos, d)),
        "tok_emb": nrm((n_types, d)),
        "emb_ln_g": ones(1, d), "emb_ln_b": zeros(1, d),
        "wq": nrm((layers, d, d)), "bq": zeros(layers, 1, d),
        "wk": nrm((layers, d, d)), "bk": zeros(layers, 1, d),
        "wv": nrm((layers, d, d)), "bv": zeros(layers, 1, d),
        "wo": nrm((layers, d, d)), "bo": zeros(layers, 1, d),
        "ln1_g": ones(layers, 1, d), "ln1_b": zeros(layers, 1, d),
        "w1": nrm((layers, d, d_ff)), "b1": zeros(layers, 1, d_ff),
        "w2": nrm((layers, d_ff, d)), "b2": zeros(layers, 1, d),
        "ln2_g": ones(layers, 1, d), "ln2_b": zeros(layers, 1, d),
        "pool_w": nrm((d, d)), "pool_b": zeros(1, d),
        # mha1/mha2: only V projections matter on a length-1 sequence (the
        # reference MultiHeadSelfAttention has bias-free q/k/v and no out-proj)
        "mha1_wv": nrm((d, d)), "mha2_wv": nrm((d, d)),
        "cls_w": nrm((d, 1)), "cls_b": zeros(1, 1),
    }


def _prep_weights(params, heads):
    """Host-side layout prep: per-head splits + exact folding of the tail."""
    L, d, _ = params["wq"].shape
    dh = d // heads

    def split_out(w):       # (L, d, d) -> (L, heads, d, dh): output cols / head
        return w.reshape(L, d, heads, dh).transpose(0, 2, 1, 3)

    def split_out_b(b):     # (L, 1, d) -> (L, heads, 1, dh)
        return b.reshape(L, heads, dh)[:, :, None, :]

    # Exact fold of mha1 -> mha2 -> classifier into a single (1, d) row vector.
    head_w = (params["mha1_wv"] @ params["mha2_wv"] @ params["cls_w"]).T

    return (
        params["emb_ln_g"], params["emb_ln_b"],
        split_out(params["wq"]), split_out_b(params["bq"]),
        split_out(params["wk"]), split_out_b(params["bk"]),
        split_out(params["wv"]), split_out_b(params["bv"]),
        params["wo"].reshape(L, heads, dh, d), params["bo"],
        params["ln1_g"], params["ln1_b"],
        params["w1"], params["b1"], params["w2"], params["b2"],
        params["ln2_g"], params["ln2_b"],
        params["pool_w"], params["pool_b"],
        head_w, params["cls_b"],
    )


# --------------------------------------------------------------------------
# Full forward pass (mirrors BertForMultipleChoiceMHA.forward)
# --------------------------------------------------------------------------
def duma_forward(params, input_ids, attention_mask, token_type_ids, *,
                 heads=4, n_blocks=1):
    b, c, s = input_ids.shape
    n = b * c
    assert n % n_blocks == 0
    nb = n // n_blocks
    d = params["word_emb"].shape[1]
    layers = params["wq"].shape[0]
    assert d % heads == 0

    ids = input_ids.reshape(n, s)
    tok = token_type_ids.reshape(n, s)
    mask = attention_mask.reshape(n, 1, s).astype(jnp.float32)

    # BERT embedding lookups: data-dependent gathers kept as XLA glue.
    emb = (jnp.take(params["word_emb"], ids, axis=0)
           + params["pos_emb"][:s][None, :, :]
           + jnp.take(params["tok_emb"], tok, axis=0))

    weights = _prep_weights(params, heads)
    w_specs = [_const_spec(w) for w in weights]

    out = pl.pallas_call(
        partial(_forward_kernel, heads=heads, layers=layers),
        out_shape=jax.ShapeDtypeStruct((n_blocks, 1, nb), jnp.float32),
        grid=(n_blocks,),
        in_specs=[pl.BlockSpec((nb, s, d), lambda i: (i, 0, 0)),
                  pl.BlockSpec((nb, 1, s), lambda i: (i, 0, 0))] + w_specs,
        out_specs=pl.BlockSpec((1, 1, nb), lambda i: (i, 0, 0)),
        compiler_params=pltpu.CompilerParams(
            dimension_semantics=("parallel",)),
    )(emb, mask, *weights)

    # logits.view(-1, 4) of the original module (block-major flatten == sample
    # order since samples are contiguous within a block).
    return out.reshape(-1, 4)


if __name__ == "__main__":
    key = jax.random.PRNGKey(0)
    pkey, dkey = jax.random.split(key)

    B, C, S = 2, 4, 8          # batch=2, num_choices=4, seq_len=8
    VOCAB, D, HEADS, D_FF, LAYERS = 100, 32, 4, 64, 2

    params = init_params(pkey, vocab=VOCAB, max_pos=16, d=D, d_ff=D_FF,
                         layers=LAYERS)

    input_ids = jax.random.randint(dkey, (B, C, S), 0, VOCAB, dtype=jnp.int32)
    attention_mask = jnp.ones((B, C, S), jnp.int32)
    token_type_ids = jnp.zeros((B, C, S), jnp.int32)

    fwd = jax.jit(functools.partial(duma_forward, heads=HEADS))
    out = fwd(params, input_ids, attention_mask, token_type_ids)
    out = jax.block_until_ready(out)
    assert out.shape == (B, 4) and out.dtype == jnp.float32
    print("KERNEL_OK")
</pallas_src>

<mosaic_0001>
module attributes {stable_mosaic.version = 11 : i64} {
  func.func @_forward_kernel(%arg0: i32, %arg1: memref<8x8x32xf32, #tpu.memory_space<vmem>>, %arg2: memref<8x1x8xf32, #tpu.memory_space<vmem>>, %arg3: memref<1x32xf32, #tpu.memory_space<vmem>>, %arg4: memref<1x32xf32, #tpu.memory_space<vmem>>, %arg5: memref<2x4x32x8xf32, #tpu.memory_space<vmem>>, %arg6: memref<2x4x1x8xf32, #tpu.memory_space<vmem>>, %arg7: memref<2x4x32x8xf32, #tpu.memory_space<vmem>>, %arg8: memref<2x4x1x8xf32, #tpu.memory_space<vmem>>, %arg9: memref<2x4x32x8xf32, #tpu.memory_space<vmem>>, %arg10: memref<2x4x1x8xf32, #tpu.memory_space<vmem>>, %arg11: memref<2x4x8x32xf32, #tpu.memory_space<vmem>>, %arg12: memref<2x1x32xf32, #tpu.memory_space<vmem>>, %arg13: memref<2x1x32xf32, #tpu.memory_space<vmem>>, %arg14: memref<2x1x32xf32, #tpu.memory_space<vmem>>, %arg15: memref<2x32x64xf32, #tpu.memory_space<vmem>>, %arg16: memref<2x1x64xf32, #tpu.memory_space<vmem>>, %arg17: memref<2x64x32xf32, #tpu.memory_space<vmem>>, %arg18: memref<2x1x32xf32, #tpu.memory_space<vmem>>, %arg19: memref<2x1x32xf32, #tpu.memory_space<vmem>>, %arg20: memref<2x1x32xf32, #tpu.memory_space<vmem>>, %arg21: memref<32x32xf32, #tpu.memory_space<vmem>>, %arg22: memref<1x32xf32, #tpu.memory_space<vmem>>, %arg23: memref<1x32xf32, #tpu.memory_space<vmem>>, %arg24: memref<1x1xf32, #tpu.memory_space<vmem>>, %arg25: memref<1x1x8xf32, #tpu.memory_space<vmem>>) attributes {dimension_semantics = [#tpu.dimension_semantics<parallel>], iteration_bounds = array<i64: 1>, scalar_prefetch = 0 : i64, scratch_operands = 0 : i64, tpu.core_type = #tpu.core_type<tc>, window_params = [{transform_indices = @transform_0, window_bounds = array<i64: 8, 8, 32>}, {transform_indices = @transform_1, window_bounds = array<i64: 8, 1, 8>}, {pipeline_mode = #tpu.pipeline_mode<synchronous>, transform_indices = @transform_2, window_bounds = array<i64: 1, 32>}, {pipeline_mode = #tpu.pipeline_mode<synchronous>, transform_indices = @transform_3, window_bounds = array<i64: 1, 32>}, {pipeline_mode = #tpu.pipeline_mode<synchronous>, transform_indices = @transform_4, window_bounds = array<i64: 2, 4, 32, 8>}, {pipeline_mode = #tpu.pipeline_mode<synchronous>, transform_indices = @transform_5, window_bounds = array<i64: 2, 4, 1, 8>}, {pipeline_mode = #tpu.pipeline_mode<synchronous>, transform_indices = @transform_6, window_bounds = array<i64: 2, 4, 32, 8>}, {pipeline_mode = #tpu.pipeline_mode<synchronous>, transform_indices = @transform_7, window_bounds = array<i64: 2, 4, 1, 8>}, {pipeline_mode = #tpu.pipeline_mode<synchronous>, transform_indices = @transform_8, window_bounds = array<i64: 2, 4, 32, 8>}, {pipeline_mode = #tpu.pipeline_mode<synchronous>, transform_indices = @transform_9, window_bounds = array<i64: 2, 4, 1, 8>}, {pipeline_mode = #tpu.pipeline_mode<synchronous>, transform_indices = @transform_10, window_bounds = array<i64: 2, 4, 8, 32>}, {pipeline_mode = #tpu.pipeline_mode<synchronous>, transform_indices = @transform_11, window_bounds = array<i64: 2, 1, 32>}, {pipeline_mode = #tpu.pipeline_mode<synchronous>, transform_indices = @transform_12, window_bounds = array<i64: 2, 1, 32>}, {pipeline_mode = #tpu.pipeline_mode<synchronous>, transform_indices = @transform_13, window_bounds = array<i64: 2, 1, 32>}, {pipeline_mode = #tpu.pipeline_mode<synchronous>, transform_indices = @transform_14, window_bounds = array<i64: 2, 32, 64>}, {pipeline_mode = #tpu.pipeline_mode<synchronous>, transform_indices = @transform_15, window_bounds = array<i64: 2, 1, 64>}, {pipeline_mode = #tpu.pipeline_mode<synchronous>, transform_indices = @transform_16, window_bounds = array<i64: 2, 64, 32>}, {pipeline_mode = #tpu.pipeline_mode<synchronous>, transform_indices = @transform_17, window_bounds = array<i64: 2, 1, 32>}, {pipeline_mode = #tpu.pipeline_mode<synchronous>, transform_indices = @transform_18, window_bounds = array<i64: 2, 1, 32>}, {pipeline_mode = #tpu.pipeline_mode<synchronous>, transform_indices = @transform_19, window_bounds = array<i64: 2, 1, 32>}, {pipeline_mode = #tpu.pipeline_mode<synchronous>, transform_indices = @transform_20, window_bounds = array<i64: 32, 32>}, {pipeline_mode = #tpu.pipeline_mode<synchronous>, transform_indices = @transform_21, window_bounds = array<i64: 1, 32>}, {pipeline_mode = #tpu.pipeline_mode<synchronous>, transform_indices = @transform_22, window_bounds = array<i64: 1, 32>}, {pipeline_mode = #tpu.pipeline_mode<synchronous>, transform_indices = @transform_23, window_bounds = array<i64: 1, 1>}, {transform_indices = @transform_24, window_bounds = array<i64: 1, 1, 8>}]} {
    %c0 = arith.constant 0 : index
    %c0_0 = arith.constant 0 : index
    %c0_1 = arith.constant 0 : index
    %0 = vector.load %arg1[%c0, %c0_0, %c0_1] : memref<8x8x32xf32, #tpu.memory_space<vmem>>, vector<8x8x32xf32>
    %1 = vector.shape_cast %0 : vector<8x8x32xf32> to vector<64x32xf32>
    %c0_2 = arith.constant 0 : index
    %c0_3 = arith.constant 0 : index
    %2 = vector.load %arg3[%c0_2, %c0_3] : memref<1x32xf32, #tpu.memory_space<vmem>>, vector<1x32xf32>
    %c0_4 = arith.constant 0 : index
    %c0_5 = arith.constant 0 : index
    %3 = vector.load %arg4[%c0_4, %c0_5] : memref<1x32xf32, #tpu.memory_space<vmem>>, vector<1x32xf32>
    %cst = arith.constant dense<0.000000e+00> : vector<64xf32>
    %4 = vector.multi_reduction <add>, %1, %cst [1] : vector<64x32xf32> to vector<64xf32>
    %5 = vector.shape_cast %4 : vector<64xf32> to vector<64x1xf32>
    %cst_6 = arith.constant 3.200000e+01 : f32
    %6 = vector.broadcast %cst_6 : f32 to vector<64x1xf32>
    %7 = arith.divf %5, %6 : vector<64x1xf32>
    %8 = vector.broadcast %7 : vector<64x1xf32> to vector<64x32xf32>
    %9 = arith.subf %1, %8 : vector<64x32xf32>
    %10 = arith.mulf %9, %9 : vector<64x32xf32>
    %cst_7 = arith.constant dense<0.000000e+00> : vector<64xf32>
    %11 = vector.multi_reduction <add>, %10, %cst_7 [1] : vector<64x32xf32> to vector<64xf32>
    %12 = vector.shape_cast %11 : vector<64xf32> to vector<64x1xf32>
    %cst_8 = arith.constant 3.200000e+01 : f32
    %13 = vector.broadcast %cst_8 : f32 to vector<64x1xf32>
    %14 = arith.divf %12, %13 : vector<64x1xf32>
    %15 = vector.broadcast %7 : vector<64x1xf32> to vector<64x32xf32>
    %16 = arith.subf %1, %15 : vector<64x32xf32>
    %cst_9 = arith.constant 9.99999996E-13 : f32
    %17 = vector.broadcast %cst_9 : f32 to vector<64x1xf32>
    %18 = arith.addf %14, %17 : vector<64x1xf32>
    %19 = math.rsqrt %18 : vector<64x1xf32>
    %20 = vector.broadcast %19 : vector<64x1xf32> to vector<64x32xf32>
    %21 = arith.mulf %16, %20 : vector<64x32xf32>
    %22 = vector.broadcast %2 : vector<1x32xf32> to vector<64x32xf32>
    %23 = arith.mulf %21, %22 : vector<64x32xf32>
    %24 = vector.broadcast %3 : vector<1x32xf32> to vector<64x32xf32>
    %25 = arith.addf %23, %24 : vector<64x32xf32>
    %c0_10 = arith.constant 0 : index
    %c0_11 = arith.constant 0 : index
    %c0_12 = arith.constant 0 : index
    %26 = vector.load %arg2[%c0_10, %c0_11, %c0_12] : memref<8x1x8xf32, #tpu.memory_space<vmem>>, vector<8x1x8xf32>
    %cst_13 = arith.constant 1.000000e+00 : f32
    %27 = vector.broadcast %cst_13 : f32 to vector<8x1x8xf32>
    %28 = arith.subf %27, %26 : vector<8x1x8xf32>
    %cst_14 = arith.constant -1.000000e+04 : f32
    %29 = vector.broadcast %cst_14 : f32 to vector<8x1x8xf32>
    %30 = arith.mulf %28, %29 : vector<8x1x8xf32>
    %c0_15 = arith.constant 0 : index
    %c0_16 = arith.constant 0 : index
    %c0_17 = arith.constant 0 : index
    %31 = vector.load %arg12[%c0_15, %c0_16, %c0_17] : memref<2x1x32xf32, #tpu.memory_space<vmem>>, vector<1x1x32xf32>
    %32 = vector.shape_cast %31 : vector<1x1x32xf32> to vector<1x32xf32>
    %c0_18 = arith.constant 0 : index
    %c0_19 = arith.constant 0 : index
    %c0_20 = arith.constant 0 : index
    %c0_21 = arith.constant 0 : index
    %33 = vector.load %arg5[%c0_18, %c0_19, %c0_20, %c0_21] : memref<2x4x32x8xf32, #tpu.memory_space<vmem>>, vector<1x1x32x8xf32>
    %34 = vector.shape_cast %33 : vector<1x1x32x8xf32> to vector<32x8xf32>
    %cst_22 = arith.constant dense<0.000000e+00> : vector<64x8xf32>
    %35 = tpu.matmul %25, %34, %cst_22 {dimension_numbers = #tpu.dot_dimension_numbers<[1], [0], [0], [1], [0, 0, 1, 1], [], []>} : vector<64x32xf32>, vector<32x8xf32>, vector<64x8xf32> -> vector<64x8xf32>
    %c0_23 = arith.constant 0 : index
    %c0_24 = arith.constant 0 : index
    %c0_25 = arith.constant 0 : index
    %c0_26 = arith.constant 0 : index
    %36 = vector.load %arg6[%c0_23, %c0_24, %c0_25, %c0_26] : memref<2x4x1x8xf32, #tpu.memory_space<vmem>>, vector<1x1x1x8xf32>
    %37 = vector.shape_cast %36 : vector<1x1x1x8xf32> to vector<1x8xf32>
    %38 = vector.broadcast %37 : vector<1x8xf32> to vector<64x8xf32>
    %39 = arith.addf %35, %38 : vector<64x8xf32>
    %40 = vector.shape_cast %39 : vector<64x8xf32> to vector<8x8x8xf32>
    %c0_27 = arith.constant 0 : index
    %c0_28 = arith.constant 0 : index
    %c0_29 = arith.constant 0 : index
    %c0_30 = arith.constant 0 : index
    %41 = vector.load %arg7[%c0_27, %c0_28, %c0_29, %c0_30] : memref<2x4x32x8xf32, #tpu.memory_space<vmem>>, vector<1x1x32x8xf32>
    %42 = vector.shape_cast %41 : vector<1x1x32x8xf32> to vector<32x8xf32>
    %cst_31 = arith.constant dense<0.000000e+00> : vector<64x8xf32>
    %43 = tpu.matmul %25, %42, %cst_31 {dimension_numbers = #tpu.dot_dimension_numbers<[1], [0], [0], [1], [0, 0, 1, 1], [], []>} : vector<64x32xf32>, vector<32x8xf32>, vector<64x8xf32> -> vector<64x8xf32>
    %c0_32 = arith.constant 0 : index
    %c0_33 = arith.constant 0 : index
    %c0_34 = arith.constant 0 : index
    %c0_35 = arith.constant 0 : index
    %44 = vector.load %arg8[%c0_32, %c0_33, %c0_34, %c0_35] : memref<2x4x1x8xf32, #tpu.memory_space<vmem>>, vector<1x1x1x8xf32>
    %45 = vector.shape_cast %44 : vector<1x1x1x8xf32> to vector<1x8xf32>
    %46 = vector.broadcast %45 : vector<1x8xf32> to vector<64x8xf32>
    %47 = arith.addf %43, %46 : vector<64x8xf32>
    %48 = vector.shape_cast %47 : vector<64x8xf32> to vector<8x8x8xf32>
    %c0_36 = arith.constant 0 : index
    %c0_37 = arith.constant 0 : index
    %c0_38 = arith.constant 0 : index
    %c0_39 = arith.constant 0 : index
    %49 = vector.load %arg9[%c0_36, %c0_37, %c0_38, %c0_39] : memref<2x4x32x8xf32, #tpu.memory_space<vmem>>, vector<1x1x32x8xf32>
    %50 = vector.shape_cast %49 : vector<1x1x32x8xf32> to vector<32x8xf32>
    %cst_40 = arith.constant dense<0.000000e+00> : vector<64x8xf32>
    %51 = tpu.matmul %25, %50, %cst_40 {dimension_numbers = #tpu.dot_dimension_numbers<[1], [0], [0], [1], [0, 0, 1, 1], [], []>} : vector<64x32xf32>, vector<32x8xf32>, vector<64x8xf32> -> vector<64x8xf32>
    %c0_41 = arith.constant 0 : index
    %c0_42 = arith.constant 0 : index
    %c0_43 = arith.constant 0 : index
    %c0_44 = arith.constant 0 : index
    %52 = vector.load %arg10[%c0_41, %c0_42, %c0_43, %c0_44] : memref<2x4x1x8xf32, #tpu.memory_space<vmem>>, vector<1x1x1x8xf32>
    %53 = vector.shape_cast %52 : vector<1x1x1x8xf32> to vector<1x8xf32>
    %54 = vector.broadcast %53 : vector<1x8xf32> to vector<64x8xf32>
    %55 = arith.addf %51, %54 : vector<64x8xf32>
    %56 = vector.shape_cast %55 : vector<64x8xf32> to vector<8x8x8xf32>
    "tpu.trace_start"() <{level = 10 : i32, message = "bqd,bkd->bqk"}> : () -> ()
    %cst_45 = arith.constant dense<0.000000e+00> : vector<8x8x8xf32>
    %57 = tpu.matmul %40, %48, %cst_45 {dimension_numbers = #tpu.dot_dimension_numbers<[2], [2], [1], [1], [0, 0, 0, 1, 1, 1], [0], [0]>} : vector<8x8x8xf32>, vector<8x8x8xf32>, vector<8x8x8xf32> -> vector<8x8x8xf32>
    "tpu.trace_stop"() : () -> ()
    %cst_46 = arith.constant 0.353553385 : f32
    %58 = vector.broadcast %cst_46 : f32 to vector<8x8x8xf32>
    %59 = arith.mulf %57, %58 : vector<8x8x8xf32>
    %60 = vector.broadcast %30 : vector<8x1x8xf32> to vector<8x8x8xf32>
    %61 = arith.addf %59, %60 : vector<8x8x8xf32>
    %cst_47 = arith.constant dense<0xFF800000> : vector<8x8xf32>
    %62 = vector.multi_reduction <maximumf>, %61, %cst_47 [2] : vector<8x8x8xf32> to vector<8x8xf32>
    %cst_48 = arith.constant 0xFF800000 : f32
    %63 = vector.broadcast %cst_48 : f32 to vector<8x8xf32>
    %64 = arith.maximumf %63, %62 : vector<8x8xf32>
    %65 = vector.shape_cast %64 : vector<8x8xf32> to vector<8x8x1xf32>
    %66 = vector.broadcast %65 : vector<8x8x1xf32> to vector<8x8x8xf32>
    %67 = arith.subf %61, %66 : vector<8x8x8xf32>
    %68 = math.exp %67 : vector<8x8x8xf32>
    %cst_49 = arith.constant dense<0.000000e+00> : vector<8x8xf32>
    %69 = vector.multi_reduction <add>, %68, %cst_49 [2] : vector<8x8x8xf32> to vector<8x8xf32>
    %70 = vector.shape_cast %69 : vector<8x8xf32> to vector<8x8x1xf32>
    %71 = vector.broadcast %70 : vector<8x8x1xf32> to vector<8x8x8xf32>
    %72 = arith.divf %68, %71 : vector<8x8x8xf32>
    "tpu.trace_start"() <{level = 10 : i32, message = "bqk,bkd->bqd"}> : () -> ()
    %cst_50 = arith.constant dense<0.000000e+00> : vector<8x8x8xf32>
    %73 = tpu.matmul %72, %56, %cst_50 {dimension_numbers = #tpu.dot_dimension_numbers<[2], [1], [1], [2], [0, 0, 0, 1, 1, 2], [0], [0]>} : vector<8x8x8xf32>, vector<8x8x8xf32>, vector<8x8x8xf32> -> vector<8x8x8xf32>
    "tpu.trace_stop"() : () -> ()
    %74 = vector.shape_cast %73 : vector<8x8x8xf32> to vector<64x8xf32>
    %c0_51 = arith.constant 0 : index
    %c0_52 = arith.constant 0 : index
    %c0_53 = arith.constant 0 : index
    %c0_54 = arith.constant 0 : index
    %75 = vector.load %arg11[%c0_51, %c0_52, %c0_53, %c0_54] : memref<2x4x8x32xf32, #tpu.memory_space<vmem>>, vector<1x1x8x32xf32>
    %76 = vector.shape_cast %75 : vector<1x1x8x32xf32> to vector<8x32xf32>
    %cst_55 = arith.constant dense<0.000000e+00> : vector<64x32xf32>
    %77 = tpu.matmul %74, %76, %cst_55 {dimension_numbers = #tpu.dot_dimension_numbers<[1], [0], [0], [1], [0, 0, 1, 1], [], []>} : vector<64x8xf32>, vector<8x32xf32>, vector<64x32xf32> -> vector<64x32xf32>
    %78 = vector.broadcast %32 : vector<1x32xf32> to vector<64x32xf32>
    %79 = arith.addf %78, %77 : vector<64x32xf32>
    %c0_56 = arith.constant 0 : index
    %c1 = arith.constant 1 : index
    %c0_57 = arith.constant 0 : index
    %c0_58 = arith.constant 0 : index
    %80 = vector.load %arg5[%c0_56, %c1, %c0_57, %c0_58] : memref<2x4x32x8xf32, #tpu.memory_space<vmem>>, vector<1x1x32x8xf32>
    %81 = vector.shape_cast %80 : vector<1x1x32x8xf32> to vector<32x8xf32>
    %cst_59 = arith.constant dense<0.000000e+00> : vector<64x8xf32>
    %82 = tpu.matmul %25, %81, %cst_59 {dimension_numbers = #tpu.dot_dimension_numbers<[1], [0], [0], [1], [0, 0, 1, 1], [], []>} : vector<64x32xf32>, vector<32x8xf32>, vector<64x8xf32> -> vector<64x8xf32>
    %c0_60 = arith.constant 0 : index
    %c1_61 = arith.constant 1 : index
    %c0_62 = arith.constant 0 : index
    %c0_63 = arith.constant 0 : index
    %83 = vector.load %arg6[%c0_60, %c1_61, %c0_62, %c0_63] : memref<2x4x1x8xf32, #tpu.memory_space<vmem>>, vector<1x1x1x8xf32>
    %84 = vector.shape_cast %83 : vector<1x1x1x8xf32> to vector<1x8xf32>
    %85 = vector.broadcast %84 : vector<1x8xf32> to vector<64x8xf32>
    %86 = arith.addf %82, %85 : vector<64x8xf32>
    %87 = vector.shape_cast %86 : vector<64x8xf32> to vector<8x8x8xf32>
    %c0_64 = arith.constant 0 : index
    %c1_65 = arith.constant 1 : index
    %c0_66 = arith.constant 0 : index
    %c0_67 = arith.constant 0 : index
    %88 = vector.load %arg7[%c0_64, %c1_65, %c0_66, %c0_67] : memref<2x4x32x8xf32, #tpu.memory_space<vmem>>, vector<1x1x32x8xf32>
    %89 = vector.shape_cast %88 : vector<1x1x32x8xf32> to vector<32x8xf32>
    %cst_68 = arith.constant dense<0.000000e+00> : vector<64x8xf32>
    %90 = tpu.matmul %25, %89, %cst_68 {dimension_numbers = #tpu.dot_dimension_numbers<[1], [0], [0], [1], [0, 0, 1, 1], [], []>} : vector<64x32xf32>, vector<32x8xf32>, vector<64x8xf32> -> vector<64x8xf32>
    %c0_69 = arith.constant 0 : index
    %c1_70 = arith.constant 1 : index
    %c0_71 = arith.constant 0 : index
    %c0_72 = arith.constant 0 : index
    %91 = vector.load %arg8[%c0_69, %c1_70, %c0_71, %c0_72] : memref<2x4x1x8xf32, #tpu.memory_space<vmem>>, vector<1x1x1x8xf32>
    %92 = vector.shape_cast %91 : vector<1x1x1x8xf32> to vector<1x8xf32>
    %93 = vector.broadcast %92 : vector<1x8xf32> to vector<64x8xf32>
    %94 = arith.addf %90, %93 : vector<64x8xf32>
    %95 = vector.shape_cast %94 : vector<64x8xf32> to vector<8x8x8xf32>
    %c0_73 = arith.constant 0 : index
    %c1_74 = arith.constant 1 : index
    %c0_75 = arith.constant 0 : index
    %c0_76 = arith.constant 0 : index
    %96 = vector.load %arg9[%c0_73, %c1_74, %c0_75, %c0_76] : memref<2x4x32x8xf32, #tpu.memory_space<vmem>>, vector<1x1x32x8xf32>
    %97 = vector.shape_cast %96 : vector<1x1x32x8xf32> to vector<32x8xf32>
    %cst_77 = arith.constant dense<0.000000e+00> : vector<64x8xf32>
    %98 = tpu.matmul %25, %97, %cst_77 {dimension_numbers = #tpu.dot_dimension_numbers<[1], [0], [0], [1], [0, 0, 1, 1], [], []>} : vector<64x32xf32>, vector<32x8xf32>, vector<64x8xf32> -> vector<64x8xf32>
    %c0_78 = arith.constant 0 : index
    %c1_79 = arith.constant 1 : index
    %c0_80 = arith.constant 0 : index
    %c0_81 = arith.constant 0 : index
    %99 = vector.load %arg10[%c0_78, %c1_79, %c0_80, %c0_81] : memref<2x4x1x8xf32, #tpu.memory_space<vmem>>, vector<1x1x1x8xf32>
    %100 = vector.shape_cast %99 : vector<1x1x1x8xf32> to vector<1x8xf32>
    %101 = vector.broadcast %100 : vector<1x8xf32> to vector<64x8xf32>
    %102 = arith.addf %98, %101 : vector<64x8xf32>
    %103 = vector.shape_cast %102 : vector<64x8xf32> to vector<8x8x8xf32>
    "tpu.trace_start"() <{level = 10 : i32, message = "bqd,bkd->bqk"}> : () -> ()
    %cst_82 = arith.constant dense<0.000000e+00> : vector<8x8x8xf32>
    %104 = tpu.matmul %87, %95, %cst_82 {dimension_numbers = #tpu.dot_dimension_numbers<[2], [2], [1], [1], [0, 0, 0, 1, 1, 1], [0], [0]>} : vector<8x8x8xf32>, vector<8x8x8xf32>, vector<8x8x8xf32> -> vector<8x8x8xf32>
    "tpu.trace_stop"() : () -> ()
    %cst_83 = arith.constant 0.353553385 : f32
    %105 = vector.broadcast %cst_83 : f32 to vector<8x8x8xf32>
    %106 = arith.mulf %104, %105 : vector<8x8x8xf32>
    %107 = vector.broadcast %30 : vector<8x1x8xf32> to vector<8x8x8xf32>
    %108 = arith.addf %106, %107 : vector<8x8x8xf32>
    %cst_84 = arith.constant dense<0xFF800000> : vector<8x8xf32>
    %109 = vector.multi_reduction <maximumf>, %108, %cst_84 [2] : vector<8x8x8xf32> to vector<8x8xf32>
    %cst_85 = arith.constant 0xFF800000 : f32
    %110 = vector.broadcast %cst_85 : f32 to vector<8x8xf32>
    %111 = arith.maximumf %110, %109 : vector<8x8xf32>
    %112 = vector.shape_cast %111 : vector<8x8xf32> to vector<8x8x1xf32>
    %113 = vector.broadcast %112 : vector<8x8x1xf32> to vector<8x8x8xf32>
    %114 = arith.subf %108, %113 : vector<8x8x8xf32>
    %115 = math.exp %114 : vector<8x8x8xf32>
    %cst_86 = arith.constant dense<0.000000e+00> : vector<8x8xf32>
    %116 = vector.multi_reduction <add>, %115, %cst_86 [2] : vector<8x8x8xf32> to vector<8x8xf32>
    %117 = vector.shape_cast %116 : vector<8x8xf32> to vector<8x8x1xf32>
    %118 = vector.broadcast %117 : vector<8x8x1xf32> to vector<8x8x8xf32>
    %119 = arith.divf %115, %118 : vector<8x8x8xf32>
    "tpu.trace_start"() <{level = 10 : i32, message = "bqk,bkd->bqd"}> : () -> ()
    %cst_87 = arith.constant dense<0.000000e+00> : vector<8x8x8xf32>
    %120 = tpu.matmul %119, %103, %cst_87 {dimension_numbers = #tpu.dot_dimension_numbers<[2], [1], [1], [2], [0, 0, 0, 1, 1, 2], [0], [0]>} : vector<8x8x8xf32>, vector<8x8x8xf32>, vector<8x8x8xf32> -> vector<8x8x8xf32>
    "tpu.trace_stop"() : () -> ()
    %121 = vector.shape_cast %120 : vector<8x8x8xf32> to vector<64x8xf32>
    %c0_88 = arith.constant 0 : index
    %c1_89 = arith.constant 1 : index
    %c0_90 = arith.constant 0 : index
    %c0_91 = arith.constant 0 : index
    %122 = vector.load %arg11[%c0_88, %c1_89, %c0_90, %c0_91] : memref<2x4x8x32xf32, #tpu.memory_space<vmem>>, vector<1x1x8x32xf32>
    %123 = vector.shape_cast %122 : vector<1x1x8x32xf32> to vector<8x32xf32>
    %cst_92 = arith.constant dense<0.000000e+00> : vector<64x32xf32>
    %124 = tpu.matmul %121, %123, %cst_92 {dimension_numbers = #tpu.dot_dimension_numbers<[1], [0], [0], [1], [0, 0, 1, 1], [], []>} : vector<64x8xf32>, vector<8x32xf32>, vector<64x32xf32> -> vector<64x32xf32>
    %125 = arith.addf %79, %124 : vector<64x32xf32>
    %c0_93 = arith.constant 0 : index
    %c2 = arith.constant 2 : index
    %c0_94 = arith.constant 0 : index
    %c0_95 = arith.constant 0 : index
    %126 = vector.load %arg5[%c0_93, %c2, %c0_94, %c0_95] : memref<2x4x32x8xf32, #tpu.memory_space<vmem>>, vector<1x1x32x8xf32>
    %127 = vector.shape_cast %126 : vector<1x1x32x8xf32> to vector<32x8xf32>
    %cst_96 = arith.constant dense<0.000000e+00> : vector<64x8xf32>
    %128 = tpu.matmul %25, %127, %cst_96 {dimension_numbers = #tpu.dot_dimension_numbers<[1], [0], [0], [1], [0, 0, 1, 1], [], []>} : vector<64x32xf32>, vector<32x8xf32>, vector<64x8xf32> -> vector<64x8xf32>
    %c0_97 = arith.constant 0 : index
    %c2_98 = arith.constant 2 : index
    %c0_99 = arith.constant 0 : index
    %c0_100 = arith.constant 0 : index
    %129 = vector.load %arg6[%c0_97, %c2_98, %c0_99, %c0_100] : memref<2x4x1x8xf32, #tpu.memory_space<vmem>>, vector<1x1x1x8xf32>
    %130 = vector.shape_cast %129 : vector<1x1x1x8xf32> to vector<1x8xf32>
    %131 = vector.broadcast %130 : vector<1x8xf32> to vector<64x8xf32>
    %132 = arith.addf %128, %131 : vector<64x8xf32>
    %133 = vector.shape_cast %132 : vector<64x8xf32> to vector<8x8x8xf32>
    %c0_101 = arith.constant 0 : index
    %c2_102 = arith.constant 2 : index
    %c0_103 = arith.constant 0 : index
    %c0_104 = arith.constant 0 : index
    %134 = vector.load %arg7[%c0_101, %c2_102, %c0_103, %c0_104] : memref<2x4x32x8xf32, #tpu.memory_space<vmem>>, vector<1x1x32x8xf32>
    %135 = vector.shape_cast %134 : vector<1x1x32x8xf32> to vector<32x8xf32>
    %cst_105 = arith.constant dense<0.000000e+00> : vector<64x8xf32>
    %136 = tpu.matmul %25, %135, %cst_105 {dimension_numbers = #tpu.dot_dimension_numbers<[1], [0], [0], [1], [0, 0, 1, 1], [], []>} : vector<64x32xf32>, vector<32x8xf32>, vector<64x8xf32> -> vector<64x8xf32>
    %c0_106 = arith.constant 0 : index
    %c2_107 = arith.constant 2 : index
    %c0_108 = arith.constant 0 : index
    %c0_109 = arith.constant 0 : index
    %137 = vector.load %arg8[%c0_106, %c2_107, %c0_108, %c0_109] : memref<2x4x1x8xf32, #tpu.memory_space<vmem>>, vector<1x1x1x8xf32>
    %138 = vector.shape_cast %137 : vector<1x1x1x8xf32> to vector<1x8xf32>
    %139 = vector.broadcast %138 : vector<1x8xf32> to vector<64x8xf32>
    %140 = arith.addf %136, %139 : vector<64x8xf32>
    %141 = vector.shape_cast %140 : vector<64x8xf32> to vector<8x8x8xf32>
    %c0_110 = arith.constant 0 : index
    %c2_111 = arith.constant 2 : index
    %c0_112 = arith.constant 0 : index
    %c0_113 = arith.constant 0 : index
    %142 = vector.load %arg9[%c0_110, %c2_111, %c0_112, %c0_113] : memref<2x4x32x8xf32, #tpu.memory_space<vmem>>, vector<1x1x32x8xf32>
    %143 = vector.shape_cast %142 : vector<1x1x32x8xf32> to vector<32x8xf32>
    %cst_114 = arith.constant dense<0.000000e+00> : vector<64x8xf32>
    %144 = tpu.matmul %25, %143, %cst_114 {dimension_numbers = #tpu.dot_dimension_numbers<[1], [0], [0], [1], [0, 0, 1, 1], [], []>} : vector<64x32xf32>, vector<32x8xf32>, vector<64x8xf32> -> vector<64x8xf32>
    %c0_115 = arith.constant 0 : index
    %c2_116 = arith.constant 2 : index
    %c0_117 = arith.constant 0 : index
    %c0_118 = arith.constant 0 : index
    %145 = vector.load %arg10[%c0_115, %c2_116, %c0_117, %c0_118] : memref<2x4x1x8xf32, #tpu.memory_space<vmem>>, vector<1x1x1x8xf32>
    %146 = vector.shape_cast %145 : vector<1x1x1x8xf32> to vector<1x8xf32>
    %147 = vector.broadcast %146 : vector<1x8xf32> to vector<64x8xf32>
    %148 = arith.addf %144, %147 : vector<64x8xf32>
    %149 = vector.shape_cast %148 : vector<64x8xf32> to vector<8x8x8xf32>
    "tpu.trace_start"() <{level = 10 : i32, message = "bqd,bkd->bqk"}> : () -> ()
    %cst_119 = arith.constant dense<0.000000e+00> : vector<8x8x8xf32>
    %150 = tpu.matmul %133, %141, %cst_119 {dimension_numbers = #tpu.dot_dimension_numbers<[2], [2], [1], [1], [0, 0, 0, 1, 1, 1], [0], [0]>} : vector<8x8x8xf32>, vector<8x8x8xf32>, vector<8x8x8xf32> -> vector<8x8x8xf32>
    "tpu.trace_stop"() : () -> ()
    %cst_120 = arith.constant 0.353553385 : f32
    %151 = vector.broadcast %cst_120 : f32 to vector<8x8x8xf32>
    %152 = arith.mulf %150, %151 : vector<8x8x8xf32>
    %153 = vector.broadcast %30 : vector<8x1x8xf32> to vector<8x8x8xf32>
    %154 = arith.addf %152, %153 : vector<8x8x8xf32>
    %cst_121 = arith.constant dense<0xFF800000> : vector<8x8xf32>
    %155 = vector.multi_reduction <maximumf>, %154, %cst_121 [2] : vector<8x8x8xf32> to vector<8x8xf32>
    %cst_122 = arith.constant 0xFF800000 : f32
    %156 = vector.broadcast %cst_122 : f32 to vector<8x8xf32>
    %157 = arith.maximumf %156, %155 : vector<8x8xf32>
    %158 = vector.shape_cast %157 : vector<8x8xf32> to vector<8x8x1xf32>
    %159 = vector.broadcast %158 : vector<8x8x1xf32> to vector<8x8x8xf32>
    %160 = arith.subf %154, %159 : vector<8x8x8xf32>
    %161 = math.exp %160 : vector<8x8x8xf32>
    %cst_123 = arith.constant dense<0.000000e+00> : vector<8x8xf32>
    %162 = vector.multi_reduction <add>, %161, %cst_123 [2] : vector<8x8x8xf32> to vector<8x8xf32>
    %163 = vector.shape_cast %162 : vector<8x8xf32> to vector<8x8x1xf32>
    %164 = vector.broadcast %163 : vector<8x8x1xf32> to vector<8x8x8xf32>
    %165 = arith.divf %161, %164 : vector<8x8x8xf32>
    "tpu.trace_start"() <{level = 10 : i32, message = "bqk,bkd->bqd"}> : () -> ()
    %cst_124 = arith.constant dense<0.000000e+00> : vector<8x8x8xf32>
    %166 = tpu.matmul %165, %149, %cst_124 {dimension_numbers = #tpu.dot_dimension_numbers<[2], [1], [1], [2], [0, 0, 0, 1, 1, 2], [0], [0]>} : vector<8x8x8xf32>, vector<8x8x8xf32>, vector<8x8x8xf32> -> vector<8x8x8xf32>
    "tpu.trace_stop"() : () -> ()
    %167 = vector.shape_cast %166 : vector<8x8x8xf32> to vector<64x8xf32>
    %c0_125 = arith.constant 0 : index
    %c2_126 = arith.constant 2 : index
    %c0_127 = arith.constant 0 : index
    %c0_128 = arith.constant 0 : index
    %168 = vector.load %arg11[%c0_125, %c2_126, %c0_127, %c0_128] : memref<2x4x8x32xf32, #tpu.memory_space<vmem>>, vector<1x1x8x32xf32>
    %169 = vector.shape_cast %168 : vector<1x1x8x32xf32> to vector<8x32xf32>
    %cst_129 = arith.constant dense<0.000000e+00> : vector<64x32xf32>
    %170 = tpu.matmul %167, %169, %cst_129 {dimension_numbers = #tpu.dot_dimension_numbers<[1], [0], [0], [1], [0, 0, 1, 1], [], []>} : vector<64x8xf32>, vector<8x32xf32>, vector<64x32xf32> -> vector<64x32xf32>
    %171 = arith.addf %125, %170 : vector<64x32xf32>
    %c0_130 = arith.constant 0 : index
    %c3 = arith.constant 3 : index
    %c0_131 = arith.constant 0 : index
    %c0_132 = arith.constant 0 : index
    %172 = vector.load %arg5[%c0_130, %c3, %c0_131, %c0_132] : memref<2x4x32x8xf32, #tpu.memory_space<vmem>>, vector<1x1x32x8xf32>
    %173 = vector.shape_cast %172 : vector<1x1x32x8xf32> to vector<32x8xf32>
    %cst_133 = arith.constant dense<0.000000e+00> : vector<64x8xf32>
    %174 = tpu.matmul %25, %173, %cst_133 {dimension_numbers = #tpu.dot_dimension_numbers<[1], [0], [0], [1], [0, 0, 1, 1], [], []>} : vector<64x32xf32>, vector<32x8xf32>, vector<64x8xf32> -> vector<64x8xf32>
    %c0_134 = arith.constant 0 : index
    %c3_135 = arith.constant 3 : index
    %c0_136 = arith.constant 0 : index
    %c0_137 = arith.constant 0 : index
    %175 = vector.load %arg6[%c0_134, %c3_135, %c0_136, %c0_137] : memref<2x4x1x8xf32, #tpu.memory_space<vmem>>, vector<1x1x1x8xf32>
    %176 = vector.shape_cast %175 : vector<1x1x1x8xf32> to vector<1x8xf32>
    %177 = vector.broadcast %176 : vector<1x8xf32> to vector<64x8xf32>
    %178 = arith.addf %174, %177 : vector<64x8xf32>
    %179 = vector.shape_cast %178 : vector<64x8xf32> to vector<8x8x8xf32>
    %c0_138 = arith.constant 0 : index
    %c3_139 = arith.constant 3 : index
    %c0_140 = arith.constant 0 : index
    %c0_141 = arith.constant 0 : index
    %180 = vector.load %arg7[%c0_138, %c3_139, %c0_140, %c0_141] : memref<2x4x32x8xf32, #tpu.memory_space<vmem>>, vector<1x1x32x8xf32>
    %181 = vector.shape_cast %180 : vector<1x1x32x8xf32> to vector<32x8xf32>
    %cst_142 = arith.constant dense<0.000000e+00> : vector<64x8xf32>
    %182 = tpu.matmul %25, %181, %cst_142 {dimension_numbers = #tpu.dot_dimension_numbers<[1], [0], [0], [1], [0, 0, 1, 1], [], []>} : vector<64x32xf32>, vector<32x8xf32>, vector<64x8xf32> -> vector<64x8xf32>
    %c0_143 = arith.constant 0 : index
    %c3_144 = arith.constant 3 : index
    %c0_145 = arith.constant 0 : index
    %c0_146 = arith.constant 0 : index
    %183 = vector.load %arg8[%c0_143, %c3_144, %c0_145, %c0_146] : memref<2x4x1x8xf32, #tpu.memory_space<vmem>>, vector<1x1x1x8xf32>
    %184 = vector.shape_cast %183 : vector<1x1x1x8xf32> to vector<1x8xf32>
    %185 = vector.broadcast %184 : vector<1x8xf32> to vector<64x8xf32>
    %186 = arith.addf %182, %185 : vector<64x8xf32>
    %187 = vector.shape_cast %186 : vector<64x8xf32> to vector<8x8x8xf32>
    %c0_147 = arith.constant 0 : index
    %c3_148 = arith.constant 3 : index
    %c0_149 = arith.constant 0 : index
    %c0_150 = arith.constant 0 : index
    %188 = vector.load %arg9[%c0_147, %c3_148, %c0_149, %c0_150] : memref<2x4x32x8xf32, #tpu.memory_space<vmem>>, vector<1x1x32x8xf32>
    %189 = vector.shape_cast %188 : vector<1x1x32x8xf32> to vector<32x8xf32>
    %cst_151 = arith.constant dense<0.000000e+00> : vector<64x8xf32>
    %190 = tpu.matmul %25, %189, %cst_151 {dimension_numbers = #tpu.dot_dimension_numbers<[1], [0], [0], [1], [0, 0, 1, 1], [], []>} : vector<64x32xf32>, vector<32x8xf32>, vector<64x8xf32> -> vector<64x8xf32>
    %c0_152 = arith.constant 0 : index
    %c3_153 = arith.constant 3 : index
    %c0_154 = arith.constant 0 : index
    %c0_155 = arith.constant 0 : index
    %191 = vector.load %arg10[%c0_152, %c3_153, %c0_154, %c0_155] : memref<2x4x1x8xf32, #tpu.memory_space<vmem>>, vector<1x1x1x8xf32>
    %192 = vector.shape_cast %191 : vector<1x1x1x8xf32> to vector<1x8xf32>
    %193 = vector.broadcast %192 : vector<1x8xf32> to vector<64x8xf32>
    %194 = arith.addf %190, %193 : vector<64x8xf32>
    %195 = vector.shape_cast %194 : vector<64x8xf32> to vector<8x8x8xf32>
    "tpu.trace_start"() <{level = 10 : i32, message = "bqd,bkd->bqk"}> : () -> ()
    %cst_156 = arith.constant dense<0.000000e+00> : vector<8x8x8xf32>
    %196 = tpu.matmul %179, %187, %cst_156 {dimension_numbers = #tpu.dot_dimension_numbers<[2], [2], [1], [1], [0, 0, 0, 1, 1, 1], [0], [0]>} : vector<8x8x8xf32>, vector<8x8x8xf32>, vector<8x8x8xf32> -> vector<8x8x8xf32>
    "tpu.trace_stop"() : () -> ()
    %cst_157 = arith.constant 0.353553385 : f32
    %197 = vector.broadcast %cst_157 : f32 to vector<8x8x8xf32>
    %198 = arith.mulf %196, %197 : vector<8x8x8xf32>
    %199 = vector.broadcast %30 : vector<8x1x8xf32> to vector<8x8x8xf32>
    %200 = arith.addf %198, %199 : vector<8x8x8xf32>
    %cst_158 = arith.constant dense<0xFF800000> : vector<8x8xf32>
    %201 = vector.multi_reduction <maximumf>, %200, %cst_158 [2] : vector<8x8x8xf32> to vector<8x8xf32>
    %cst_159 = arith.constant 0xFF800000 : f32
    %202 = vector.broadcast %cst_159 : f32 to vector<8x8xf32>
    %203 = arith.maximumf %202, %201 : vector<8x8xf32>
    %204 = vector.shape_cast %203 : vector<8x8xf32> to vector<8x8x1xf32>
    %205 = vector.broadcast %204 : vector<8x8x1xf32> to vector<8x8x8xf32>
    %206 = arith.subf %200, %205 : vector<8x8x8xf32>
    %207 = math.exp %206 : vector<8x8x8xf32>
    %cst_160 = arith.constant dense<0.000000e+00> : vector<8x8xf32>
    %208 = vector.multi_reduction <add>, %207, %cst_160 [2] : vector<8x8x8xf32> to vector<8x8xf32>
    %209 = vector.shape_cast %208 : vector<8x8xf32> to vector<8x8x1xf32>
    %210 = vector.broadcast %209 : vector<8x8x1xf32> to vector<8x8x8xf32>
    %211 = arith.divf %207, %210 : vector<8x8x8xf32>
    "tpu.trace_start"() <{level = 10 : i32, message = "bqk,bkd->bqd"}> : () -> ()
    %cst_161 = arith.constant dense<0.000000e+00> : vector<8x8x8xf32>
    %212 = tpu.matmul %211, %195, %cst_161 {dimension_numbers = #tpu.dot_dimension_numbers<[2], [1], [1], [2], [0, 0, 0, 1, 1, 2], [0], [0]>} : vector<8x8x8xf32>, vector<8x8x8xf32>, vector<8x8x8xf32> -> vector<8x8x8xf32>
    "tpu.trace_stop"() : () -> ()
    %213 = vector.shape_cast %212 : vector<8x8x8xf32> to vector<64x8xf32>
    %c0_162 = arith.constant 0 : index
    %c3_163 = arith.constant 3 : index
    %c0_164 = arith.constant 0 : index
    %c0_165 = arith.constant 0 : index
    %214 = vector.load %arg11[%c0_162, %c3_163, %c0_164, %c0_165] : memref<2x4x8x32xf32, #tpu.memory_space<vmem>>, vector<1x1x8x32xf32>
    %215 = vector.shape_cast %214 : vector<1x1x8x32xf32> to vector<8x32xf32>
    %cst_166 = arith.constant dense<0.000000e+00> : vector<64x32xf32>
    %216 = tpu.matmul %213, %215, %cst_166 {dimension_numbers = #tpu.dot_dimension_numbers<[1], [0], [0], [1], [0, 0, 1, 1], [], []>} : vector<64x8xf32>, vector<8x32xf32>, vector<64x32xf32> -> vector<64x32xf32>
    %217 = arith.addf %171, %216 : vector<64x32xf32>
    %218 = arith.addf %217, %25 : vector<64x32xf32>
    %c0_167 = arith.constant 0 : index
    %c0_168 = arith.constant 0 : index
    %c0_169 = arith.constant 0 : index
    %219 = vector.load %arg13[%c0_167, %c0_168, %c0_169] : memref<2x1x32xf32, #tpu.memory_space<vmem>>, vector<1x1x32xf32>
    %220 = vector.shape_cast %219 : vector<1x1x32xf32> to vector<1x32xf32>
    %c0_170 = arith.constant 0 : index
    %c0_171 = arith.constant 0 : index
    %c0_172 = arith.constant 0 : index
    %221 = vector.load %arg14[%c0_170, %c0_171, %c0_172] : memref<2x1x32xf32, #tpu.memory_space<vmem>>, vector<1x1x32xf32>
    %222 = vector.shape_cast %221 : vector<1x1x32xf32> to vector<1x32xf32>
    %cst_173 = arith.constant dense<0.000000e+00> : vector<64xf32>
    %223 = vector.multi_reduction <add>, %218, %cst_173 [1] : vector<64x32xf32> to vector<64xf32>
    %224 = vector.shape_cast %223 : vector<64xf32> to vector<64x1xf32>
    %cst_174 = arith.constant 3.200000e+01 : f32
    %225 = vector.broadcast %cst_174 : f32 to vector<64x1xf32>
    %226 = arith.divf %224, %225 : vector<64x1xf32>
    %227 = vector.broadcast %226 : vector<64x1xf32> to vector<64x32xf32>
    %228 = arith.subf %218, %227 : vector<64x32xf32>
    %229 = arith.mulf %228, %228 : vector<64x32xf32>
    %cst_175 = arith.constant dense<0.000000e+00> : vector<64xf32>
    %230 = vector.multi_reduction <add>, %229, %cst_175 [1] : vector<64x32xf32> to vector<64xf32>
    %231 = vector.shape_cast %230 : vector<64xf32> to vector<64x1xf32>
    %cst_176 = arith.constant 3.200000e+01 : f32
    %232 = vector.broadcast %cst_176 : f32 to vector<64x1xf32>
    %233 = arith.divf %231, %232 : vector<64x1xf32>
    %234 = vector.broadcast %226 : vector<64x1xf32> to vector<64x32xf32>
    %235 = arith.subf %218, %234 : vector<64x32xf32>
    %cst_177 = arith.constant 9.99999996E-13 : f32
    %236 = vector.broadcast %cst_177 : f32 to vector<64x1xf32>
    %237 = arith.addf %233, %236 : vector<64x1xf32>
    %238 = math.rsqrt %237 : vector<64x1xf32>
    %239 = vector.broadcast %238 : vector<64x1xf32> to vector<64x32xf32>
    %240 = arith.mulf %235, %239 : vector<64x32xf32>
    %241 = vector.broadcast %220 : vector<1x32xf32> to vector<64x32xf32>
    %242 = arith.mulf %240, %241 : vector<64x32xf32>
    %243 = vector.broadcast %222 : vector<1x32xf32> to vector<64x32xf32>
    %244 = arith.addf %242, %243 : vector<64x32xf32>
    %c0_178 = arith.constant 0 : index
    %c0_179 = arith.constant 0 : index
    %c0_180 = arith.constant 0 : index
    %245 = vector.load %arg15[%c0_178, %c0_179, %c0_180] : memref<2x32x64xf32, #tpu.memory_space<vmem>>, vector<1x32x64xf32>
    %246 = vector.shape_cast %245 : vector<1x32x64xf32> to vector<32x64xf32>
    %cst_181 = arith.constant dense<0.000000e+00> : vector<64x64xf32>
    %247 = tpu.matmul %244, %246, %cst_181 {dimension_numbers = #tpu.dot_dimension_numbers<[1], [0], [0], [1], [0, 0, 1, 1], [], []>} : vector<64x32xf32>, vector<32x64xf32>, vector<64x64xf32> -> vector<64x64xf32>
    %c0_182 = arith.constant 0 : index
    %c0_183 = arith.constant 0 : index
    %c0_184 = arith.constant 0 : index
    %248 = vector.load %arg16[%c0_182, %c0_183, %c0_184] : memref<2x1x64xf32, #tpu.memory_space<vmem>>, vector<1x1x64xf32>
    %249 = vector.shape_cast %248 : vector<1x1x64xf32> to vector<1x64xf32>
    %250 = vector.broadcast %249 : vector<1x64xf32> to vector<64x64xf32>
    %251 = arith.addf %247, %250 : vector<64x64xf32>
    %252 = arith.mulf %251, %251 : vector<64x64xf32>
    %253 = arith.mulf %251, %252 : vector<64x64xf32>
    %cst_185 = arith.constant 4.471500e-02 : f32
    %254 = vector.broadcast %cst_185 : f32 to vector<64x64xf32>
    %255 = arith.mulf %254, %253 : vector<64x64xf32>
    %256 = arith.addf %251, %255 : vector<64x64xf32>
    %cst_186 = arith.constant 0.797884583 : f32
    %257 = vector.broadcast %cst_186 : f32 to vector<64x64xf32>
    %258 = arith.mulf %257, %256 : vector<64x64xf32>
    %259 = math.tanh %258 : vector<64x64xf32>
    %cst_187 = arith.constant 1.000000e+00 : f32
    %260 = vector.broadcast %cst_187 : f32 to vector<64x64xf32>
    %261 = arith.addf %260, %259 : vector<64x64xf32>
    %cst_188 = arith.constant 5.000000e-01 : f32
    %262 = vector.broadcast %cst_188 : f32 to vector<64x64xf32>
    %263 = arith.mulf %262, %261 : vector<64x64xf32>
    %264 = arith.mulf %251, %263 : vector<64x64xf32>
    %c0_189 = arith.constant 0 : index
    %c0_190 = arith.constant 0 : index
    %c0_191 = arith.constant 0 : index
    %265 = vector.load %arg17[%c0_189, %c0_190, %c0_191] : memref<2x64x32xf32, #tpu.memory_space<vmem>>, vector<1x64x32xf32>
    %266 = vector.shape_cast %265 : vector<1x64x32xf32> to vector<64x32xf32>
    %cst_192 = arith.constant dense<0.000000e+00> : vector<64x32xf32>
    %267 = tpu.matmul %264, %266, %cst_192 {dimension_numbers = #tpu.dot_dimension_numbers<[1], [0], [0], [1], [0, 0, 1, 1], [], []>} : vector<64x64xf32>, vector<64x32xf32>, vector<64x32xf32> -> vector<64x32xf32>
    %c0_193 = arith.constant 0 : index
    %c0_194 = arith.constant 0 : index
    %c0_195 = arith.constant 0 : index
    %268 = vector.load %arg18[%c0_193, %c0_194, %c0_195] : memref<2x1x32xf32, #tpu.memory_space<vmem>>, vector<1x1x32xf32>
    %269 = vector.shape_cast %268 : vector<1x1x32xf32> to vector<1x32xf32>
    %270 = vector.broadcast %269 : vector<1x32xf32> to vector<64x32xf32>
    %271 = arith.addf %267, %270 : vector<64x32xf32>
    %272 = arith.addf %271, %244 : vector<64x32xf32>
    %c0_196 = arith.constant 0 : index
    %c0_197 = arith.constant 0 : index
    %c0_198 = arith.constant 0 : index
    %273 = vector.load %arg19[%c0_196, %c0_197, %c0_198] : memref<2x1x32xf32, #tpu.memory_space<vmem>>, vector<1x1x32xf32>
    %274 = vector.shape_cast %273 : vector<1x1x32xf32> to vector<1x32xf32>
    %c0_199 = arith.constant 0 : index
    %c0_200 = arith.constant 0 : index
    %c0_201 = arith.constant 0 : index
    %275 = vector.load %arg20[%c0_199, %c0_200, %c0_201] : memref<2x1x32xf32, #tpu.memory_space<vmem>>, vector<1x1x32xf32>
    %276 = vector.shape_cast %275 : vector<1x1x32xf32> to vector<1x32xf32>
    %cst_202 = arith.constant dense<0.000000e+00> : vector<64xf32>
    %277 = vector.multi_reduction <add>, %272, %cst_202 [1] : vector<64x32xf32> to vector<64xf32>
    %278 = vector.shape_cast %277 : vector<64xf32> to vector<64x1xf32>
    %cst_203 = arith.constant 3.200000e+01 : f32
    %279 = vector.broadcast %cst_203 : f32 to vector<64x1xf32>
    %280 = arith.divf %278, %279 : vector<64x1xf32>
    %281 = vector.broadcast %280 : vector<64x1xf32> to vector<64x32xf32>
    %282 = arith.subf %272, %281 : vector<64x32xf32>
    %283 = arith.mulf %282, %282 : vector<64x32xf32>
    %cst_204 = arith.constant dense<0.000000e+00> : vector<64xf32>
    %284 = vector.multi_reduction <add>, %283, %cst_204 [1] : vector<64x32xf32> to vector<64xf32>
    %285 = vector.shape_cast %284 : vector<64xf32> to vector<64x1xf32>
    %cst_205 = arith.constant 3.200000e+01 : f32
    %286 = vector.broadcast %cst_205 : f32 to vector<64x1xf32>
    %287 = arith.divf %285, %286 : vector<64x1xf32>
    %288 = vector.broadcast %280 : vector<64x1xf32> to vector<64x32xf32>
    %289 = arith.subf %272, %288 : vector<64x32xf32>
    %cst_206 = arith.constant 9.99999996E-13 : f32
    %290 = vector.broadcast %cst_206 : f32 to vector<64x1xf32>
    %291 = arith.addf %287, %290 : vector<64x1xf32>
    %292 = math.rsqrt %291 : vector<64x1xf32>
    %293 = vector.broadcast %292 : vector<64x1xf32> to vector<64x32xf32>
    %294 = arith.mulf %289, %293 : vector<64x32xf32>
    %295 = vector.broadcast %274 : vector<1x32xf32> to vector<64x32xf32>
    %296 = arith.mulf %294, %295 : vector<64x32xf32>
    %297 = vector.broadcast %276 : vector<1x32xf32> to vector<64x32xf32>
    %298 = arith.addf %296, %297 : vector<64x32xf32>
    %c1_207 = arith.constant 1 : index
    %c0_208 = arith.constant 0 : index
    %c0_209 = arith.constant 0 : index
    %299 = vector.load %arg12[%c1_207, %c0_208, %c0_209] : memref<2x1x32xf32, #tpu.memory_space<vmem>>, vector<1x1x32xf32>
    %300 = vector.shape_cast %299 : vector<1x1x32xf32> to vector<1x32xf32>
    %c1_210 = arith.constant 1 : index
    %c0_211 = arith.constant 0 : index
    %c0_212 = arith.constant 0 : index
    %c0_213 = arith.constant 0 : index
    %301 = vector.load %arg5[%c1_210, %c0_211, %c0_212, %c0_213] : memref<2x4x32x8xf32, #tpu.memory_space<vmem>>, vector<1x1x32x8xf32>
    %302 = vector.shape_cast %301 : vector<1x1x32x8xf32> to vector<32x8xf32>
    %cst_214 = arith.constant dense<0.000000e+00> : vector<64x8xf32>
    %303 = tpu.matmul %298, %302, %cst_214 {dimension_numbers = #tpu.dot_dimension_numbers<[1], [0], [0], [1], [0, 0, 1, 1], [], []>} : vector<64x32xf32>, vector<32x8xf32>, vector<64x8xf32> -> vector<64x8xf32>
    %c1_215 = arith.constant 1 : index
    %c0_216 = arith.constant 0 : index
    %c0_217 = arith.constant 0 : index
    %c0_218 = arith.constant 0 : index
    %304 = vector.load %arg6[%c1_215, %c0_216, %c0_217, %c0_218] : memref<2x4x1x8xf32, #tpu.memory_space<vmem>>, vector<1x1x1x8xf32>
    %305 = vector.shape_cast %304 : vector<1x1x1x8xf32> to vector<1x8xf32>
    %306 = vector.broadcast %305 : vector<1x8xf32> to vector<64x8xf32>
    %307 = arith.addf %303, %306 : vector<64x8xf32>
    %308 = vector.shape_cast %307 : vector<64x8xf32> to vector<8x8x8xf32>
    %c1_219 = arith.constant 1 : index
    %c0_220 = arith.constant 0 : index
    %c0_221 = arith.constant 0 : index
    %c0_222 = arith.constant 0 : index
    %309 = vector.load %arg7[%c1_219, %c0_220, %c0_221, %c0_222] : memref<2x4x32x8xf32, #tpu.memory_space<vmem>>, vector<1x1x32x8xf32>
    %310 = vector.shape_cast %309 : vector<1x1x32x8xf32> to vector<32x8xf32>
    %cst_223 = arith.constant dense<0.000000e+00> : vector<64x8xf32>
    %311 = tpu.matmul %298, %310, %cst_223 {dimension_numbers = #tpu.dot_dimension_numbers<[1], [0], [0], [1], [0, 0, 1, 1], [], []>} : vector<64x32xf32>, vector<32x8xf32>, vector<64x8xf32> -> vector<64x8xf32>
    %c1_224 = arith.constant 1 : index
    %c0_225 = arith.constant 0 : index
    %c0_226 = arith.constant 0 : index
    %c0_227 = arith.constant 0 : index
    %312 = vector.load %arg8[%c1_224, %c0_225, %c0_226, %c0_227] : memref<2x4x1x8xf32, #tpu.memory_space<vmem>>, vector<1x1x1x8xf32>
    %313 = vector.shape_cast %312 : vector<1x1x1x8xf32> to vector<1x8xf32>
    %314 = vector.broadcast %313 : vector<1x8xf32> to vector<64x8xf32>
    %315 = arith.addf %311, %314 : vector<64x8xf32>
    %316 = vector.shape_cast %315 : vector<64x8xf32> to vector<8x8x8xf32>
    %c1_228 = arith.constant 1 : index
    %c0_229 = arith.constant 0 : index
    %c0_230 = arith.constant 0 : index
    %c0_231 = arith.constant 0 : index
    %317 = vector.load %arg9[%c1_228, %c0_229, %c0_230, %c0_231] : memref<2x4x32x8xf32, #tpu.memory_space<vmem>>, vector<1x1x32x8xf32>
    %318 = vector.shape_cast %317 : vector<1x1x32x8xf32> to vector<32x8xf32>
    %cst_232 = arith.constant dense<0.000000e+00> : vector<64x8xf32>
    %319 = tpu.matmul %298, %318, %cst_232 {dimension_numbers = #tpu.dot_dimension_numbers<[1], [0], [0], [1], [0, 0, 1, 1], [], []>} : vector<64x32xf32>, vector<32x8xf32>, vector<64x8xf32> -> vector<64x8xf32>
    %c1_233 = arith.constant 1 : index
    %c0_234 = arith.constant 0 : index
    %c0_235 = arith.constant 0 : index
    %c0_236 = arith.constant 0 : index
    %320 = vector.load %arg10[%c1_233, %c0_234, %c0_235, %c0_236] : memref<2x4x1x8xf32, #tpu.memory_space<vmem>>, vector<1x1x1x8xf32>
    %321 = vector.shape_cast %320 : vector<1x1x1x8xf32> to vector<1x8xf32>
    %322 = vector.broadcast %321 : vector<1x8xf32> to vector<64x8xf32>
    %323 = arith.addf %319, %322 : vector<64x8xf32>
    %324 = vector.shape_cast %323 : vector<64x8xf32> to vector<8x8x8xf32>
    "tpu.trace_start"() <{level = 10 : i32, message = "bqd,bkd->bqk"}> : () -> ()
    %cst_237 = arith.constant dense<0.000000e+00> : vector<8x8x8xf32>
    %325 = tpu.matmul %308, %316, %cst_237 {dimension_numbers = #tpu.dot_dimension_numbers<[2], [2], [1], [1], [0, 0, 0, 1, 1, 1], [0], [0]>} : vector<8x8x8xf32>, vector<8x8x8xf32>, vector<8x8x8xf32> -> vector<8x8x8xf32>
    "tpu.trace_stop"() : () -> ()
    %cst_238 = arith.constant 0.353553385 : f32
    %326 = vector.broadcast %cst_238 : f32 to vector<8x8x8xf32>
    %327 = arith.mulf %325, %326 : vector<8x8x8xf32>
    %328 = vector.broadcast %30 : vector<8x1x8xf32> to vector<8x8x8xf32>
    %329 = arith.addf %327, %328 : vector<8x8x8xf32>
    %cst_239 = arith.constant dense<0xFF800000> : vector<8x8xf32>
    %330 = vector.multi_reduction <maximumf>, %329, %cst_239 [2] : vector<8x8x8xf32> to vector<8x8xf32>
    %cst_240 = arith.constant 0xFF800000 : f32
    %331 = vector.broadcast %cst_240 : f32 to vector<8x8xf32>
    %332 = arith.maximumf %331, %330 : vector<8x8xf32>
    %333 = vector.shape_cast %332 : vector<8x8xf32> to vector<8x8x1xf32>
    %334 = vector.broadcast %333 : vector<8x8x1xf32> to vector<8x8x8xf32>
    %335 = arith.subf %329, %334 : vector<8x8x8xf32>
    %336 = math.exp %335 : vector<8x8x8xf32>
    %cst_241 = arith.constant dense<0.000000e+00> : vector<8x8xf32>
    %337 = vector.multi_reduction <add>, %336, %cst_241 [2] : vector<8x8x8xf32> to vector<8x8xf32>
    %338 = vector.shape_cast %337 : vector<8x8xf32> to vector<8x8x1xf32>
    %339 = vector.broadcast %338 : vector<8x8x1xf32> to vector<8x8x8xf32>
    %340 = arith.divf %336, %339 : vector<8x8x8xf32>
    "tpu.trace_start"() <{level = 10 : i32, message = "bqk,bkd->bqd"}> : () -> ()
    %cst_242 = arith.constant dense<0.000000e+00> : vector<8x8x8xf32>
    %341 = tpu.matmul %340, %324, %cst_242 {dimension_numbers = #tpu.dot_dimension_numbers<[2], [1], [1], [2], [0, 0, 0, 1, 1, 2], [0], [0]>} : vector<8x8x8xf32>, vector<8x8x8xf32>, vector<8x8x8xf32> -> vector<8x8x8xf32>
    "tpu.trace_stop"() : () -> ()
    %342 = vector.shape_cast %341 : vector<8x8x8xf32> to vector<64x8xf32>
    %c1_243 = arith.constant 1 : index
    %c0_244 = arith.constant 0 : index
    %c0_245 = arith.constant 0 : index
    %c0_246 = arith.constant 0 : index
    %343 = vector.load %arg11[%c1_243, %c0_244, %c0_245, %c0_246] : memref<2x4x8x32xf32, #tpu.memory_space<vmem>>, vector<1x1x8x32xf32>
    %344 = vector.shape_cast %343 : vector<1x1x8x32xf32> to vector<8x32xf32>
    %cst_247 = arith.constant dense<0.000000e+00> : vector<64x32xf32>
    %345 = tpu.matmul %342, %344, %cst_247 {dimension_numbers = #tpu.dot_dimension_numbers<[1], [0], [0], [1], [0, 0, 1, 1], [], []>} : vector<64x8xf32>, vector<8x32xf32>, vector<64x32xf32> -> vector<64x32xf32>
    %346 = vector.broadcast %300 : vector<1x32xf32> to vector<64x32xf32>
    %347 = arith.addf %346, %345 : vector<64x32xf32>
    %c1_248 = arith.constant 1 : index
    %c1_249 = arith.constant 1 : index
    %c0_250 = arith.constant 0 : index
    %c0_251 = arith.constant 0 : index
    %348 = vector.load %arg5[%c1_248, %c1_249, %c0_250, %c0_251] : memref<2x4x32x8xf32, #tpu.memory_space<vmem>>, vector<1x1x32x8xf32>
    %349 = vector.shape_cast %348 : vector<1x1x32x8xf32> to vector<32x8xf32>
    %cst_252 = arith.constant dense<0.000000e+00> : vector<64x8xf32>
    %350 = tpu.matmul %298, %349, %cst_252 {dimension_numbers = #tpu.dot_dimension_numbers<[1], [0], [0], [1], [0, 0, 1, 1], [], []>} : vector<64x32xf32>, vector<32x8xf32>, vector<64x8xf32> -> vector<64x8xf32>
    %c1_253 = arith.constant 1 : index
    %c1_254 = arith.constant 1 : index
    %c0_255 = arith.constant 0 : index
    %c0_256 = arith.constant 0 : index
    %351 = vector.load %arg6[%c1_253, %c1_254, %c0_255, %c0_256] : memref<2x4x1x8xf32, #tpu.memory_space<vmem>>, vector<1x1x1x8xf32>
    %352 = vector.shape_cast %351 : vector<1x1x1x8xf32> to vector<1x8xf32>
    %353 = vector.broadcast %352 : vector<1x8xf32> to vector<64x8xf32>
    %354 = arith.addf %350, %353 : vector<64x8xf32>
    %355 = vector.shape_cast %354 : vector<64x8xf32> to vector<8x8x8xf32>
    %c1_257 = arith.constant 1 : index
    %c1_258 = arith.constant 1 : index
    %c0_259 = arith.constant 0 : index
    %c0_260 = arith.constant 0 : index
    %356 = vector.load %arg7[%c1_257, %c1_258, %c0_259, %c0_260] : memref<2x4x32x8xf32, #tpu.memory_space<vmem>>, vector<1x1x32x8xf32>
    %357 = vector.shape_cast %356 : vector<1x1x32x8xf32> to vector<32x8xf32>
    %cst_261 = arith.constant dense<0.000000e+00> : vector<64x8xf32>
    %358 = tpu.matmul %298, %357, %cst_261 {dimension_numbers = #tpu.dot_dimension_numbers<[1], [0], [0], [1], [0, 0, 1, 1], [], []>} : vector<64x32xf32>, vector<32x8xf32>, vector<64x8xf32> -> vector<64x8xf32>
    %c1_262 = arith.constant 1 : index
    %c1_263 = arith.constant 1 : index
    %c0_264 = arith.constant 0 : index
    %c0_265 = arith.constant 0 : index
    %359 = vector.load %arg8[%c1_262, %c1_263, %c0_264, %c0_265] : memref<2x4x1x8xf32, #tpu.memory_space<vmem>>, vector<1x1x1x8xf32>
    %360 = vector.shape_cast %359 : vector<1x1x1x8xf32> to vector<1x8xf32>
    %361 = vector.broadcast %360 : vector<1x8xf32> to vector<64x8xf32>
    %362 = arith.addf %358, %361 : vector<64x8xf32>
    %363 = vector.shape_cast %362 : vector<64x8xf32> to vector<8x8x8xf32>
    %c1_266 = arith.constant 1 : index
    %c1_267 = arith.constant 1 : index
    %c0_268 = arith.constant 0 : index
    %c0_269 = arith.constant 0 : index
    %364 = vector.load %arg9[%c1_266, %c1_267, %c0_268, %c0_269] : memref<2x4x32x8xf32, #tpu.memory_space<vmem>>, vector<1x1x32x8xf32>
    %365 = vector.shape_cast %364 : vector<1x1x32x8xf32> to vector<32x8xf32>
    %cst_270 = arith.constant dense<0.000000e+00> : vector<64x8xf32>
    %366 = tpu.matmul %298, %365, %cst_270 {dimension_numbers = #tpu.dot_dimension_numbers<[1], [0], [0], [1], [0, 0, 1, 1], [], []>} : vector<64x32xf32>, vector<32x8xf32>, vector<64x8xf32> -> vector<64x8xf32>
    %c1_271 = arith.constant 1 : index
    %c1_272 = arith.constant 1 : index
    %c0_273 = arith.constant 0 : index
    %c0_274 = arith.constant 0 : index
    %367 = vector.load %arg10[%c1_271, %c1_272, %c0_273, %c0_274] : memref<2x4x1x8xf32, #tpu.memory_space<vmem>>, vector<1x1x1x8xf32>
    %368 = vector.shape_cast %367 : vector<1x1x1x8xf32> to vector<1x8xf32>
    %369 = vector.broadcast %368 : vector<1x8xf32> to vector<64x8xf32>
    %370 = arith.addf %366, %369 : vector<64x8xf32>
    %371 = vector.shape_cast %370 : vector<64x8xf32> to vector<8x8x8xf32>
    "tpu.trace_start"() <{level = 10 : i32, message = "bqd,bkd->bqk"}> : () -> ()
    %cst_275 = arith.constant dense<0.000000e+00> : vector<8x8x8xf32>
    %372 = tpu.matmul %355, %363, %cst_275 {dimension_numbers = #tpu.dot_dimension_numbers<[2], [2], [1], [1], [0, 0, 0, 1, 1, 1], [0], [0]>} : vector<8x8x8xf32>, vector<8x8x8xf32>, vector<8x8x8xf32> -> vector<8x8x8xf32>
    "tpu.trace_stop"() : () -> ()
    %cst_276 = arith.constant 0.353553385 : f32
    %373 = vector.broadcast %cst_276 : f32 to vector<8x8x8xf32>
    %374 = arith.mulf %372, %373 : vector<8x8x8xf32>
    %375 = vector.broadcast %30 : vector<8x1x8xf32> to vector<8x8x8xf32>
    %376 = arith.addf %374, %375 : vector<8x8x8xf32>
    %cst_277 = arith.constant dense<0xFF800000> : vector<8x8xf32>
    %377 = vector.multi_reduction <maximumf>, %376, %cst_277 [2] : vector<8x8x8xf32> to vector<8x8xf32>
    %cst_278 = arith.constant 0xFF800000 : f32
    %378 = vector.broadcast %cst_278 : f32 to vector<8x8xf32>
    %379 = arith.maximumf %378, %377 : vector<8x8xf32>
    %380 = vector.shape_cast %379 : vector<8x8xf32> to vector<8x8x1xf32>
    %381 = vector.broadcast %380 : vector<8x8x1xf32> to vector<8x8x8xf32>
    %382 = arith.subf %376, %381 : vector<8x8x8xf32>
    %383 = math.exp %382 : vector<8x8x8xf32>
    %cst_279 = arith.constant dense<0.000000e+00> : vector<8x8xf32>
    %384 = vector.multi_reduction <add>, %383, %cst_279 [2] : vector<8x8x8xf32> to vector<8x8xf32>
    %385 = vector.shape_cast %384 : vector<8x8xf32> to vector<8x8x1xf32>
    %386 = vector.broadcast %385 : vector<8x8x1xf32> to vector<8x8x8xf32>
    %387 = arith.divf %383, %386 : vector<8x8x8xf32>
    "tpu.trace_start"() <{level = 10 : i32, message = "bqk,bkd->bqd"}> : () -> ()
    %cst_280 = arith.constant dense<0.000000e+00> : vector<8x8x8xf32>
    %388 = tpu.matmul %387, %371, %cst_280 {dimension_numbers = #tpu.dot_dimension_numbers<[2], [1], [1], [2], [0, 0, 0, 1, 1, 2], [0], [0]>} : vector<8x8x8xf32>, vector<8x8x8xf32>, vector<8x8x8xf32> -> vector<8x8x8xf32>
    "tpu.trace_stop"() : () -> ()
    %389 = vector.shape_cast %388 : vector<8x8x8xf32> to vector<64x8xf32>
    %c1_281 = arith.constant 1 : index
    %c1_282 = arith.constant 1 : index
    %c0_283 = arith.constant 0 : index
    %c0_284 = arith.constant 0 : index
    %390 = vector.load %arg11[%c1_281, %c1_282, %c0_283, %c0_284] : memref<2x4x8x32xf32, #tpu.memory_space<vmem>>, vector<1x1x8x32xf32>
    %391 = vector.shape_cast %390 : vector<1x1x8x32xf32> to vector<8x32xf32>
    %cst_285 = arith.constant dense<0.000000e+00> : vector<64x32xf32>
    %392 = tpu.matmul %389, %391, %cst_285 {dimension_numbers = #tpu.dot_dimension_numbers<[1], [0], [0], [1], [0, 0, 1, 1], [], []>} : vector<64x8xf32>, vector<8x32xf32>, vector<64x32xf32> -> vector<64x32xf32>
    %393 = arith.addf %347, %392 : vector<64x32xf32>
    %c1_286 = arith.constant 1 : index
    %c2_287 = arith.constant 2 : index
    %c0_288 = arith.constant 0 : index
    %c0_289 = arith.constant 0 : index
    %394 = vector.load %arg5[%c1_286, %c2_287, %c0_288, %c0_289] : memref<2x4x32x8xf32, #tpu.memory_space<vmem>>, vector<1x1x32x8xf32>
    %395 = vector.shape_cast %394 : vector<1x1x32x8xf32> to vector<32x8xf32>
    %cst_290 = arith.constant dense<0.000000e+00> : vector<64x8xf32>
    %396 = tpu.matmul %298, %395, %cst_290 {dimension_numbers = #tpu.dot_dimension_numbers<[1], [0], [0], [1], [0, 0, 1, 1], [], []>} : vector<64x32xf32>, vector<32x8xf32>, vector<64x8xf32> -> vector<64x8xf32>
    %c1_291 = arith.constant 1 : index
    %c2_292 = arith.constant 2 : index
    %c0_293 = arith.constant 0 : index
    %c0_294 = arith.constant 0 : index
    %397 = vector.load %arg6[%c1_291, %c2_292, %c0_293, %c0_294] : memref<2x4x1x8xf32, #tpu.memory_space<vmem>>, vector<1x1x1x8xf32>
    %398 = vector.shape_cast %397 : vector<1x1x1x8xf32> to vector<1x8xf32>
    %399 = vector.broadcast %398 : vector<1x8xf32> to vector<64x8xf32>
    %400 = arith.addf %396, %399 : vector<64x8xf32>
    %401 = vector.shape_cast %400 : vector<64x8xf32> to vector<8x8x8xf32>
    %c1_295 = arith.constant 1 : index
    %c2_296 = arith.constant 2 : index
    %c0_297 = arith.constant 0 : index
    %c0_298 = arith.constant 0 : index
    %402 = vector.load %arg7[%c1_295, %c2_296, %c0_297, %c0_298] : memref<2x4x32x8xf32, #tpu.memory_space<vmem>>, vector<1x1x32x8xf32>
    %403 = vector.shape_cast %402 : vector<1x1x32x8xf32> to vector<32x8xf32>
    %cst_299 = arith.constant dense<0.000000e+00> : vector<64x8xf32>
    %404 = tpu.matmul %298, %403, %cst_299 {dimension_numbers = #tpu.dot_dimension_numbers<[1], [0], [0], [1], [0, 0, 1, 1], [], []>} : vector<64x32xf32>, vector<32x8xf32>, vector<64x8xf32> -> vector<64x8xf32>
    %c1_300 = arith.constant 1 : index
    %c2_301 = arith.constant 2 : index
    %c0_302 = arith.constant 0 : index
    %c0_303 = arith.constant 0 : index
    %405 = vector.load %arg8[%c1_300, %c2_301, %c0_302, %c0_303] : memref<2x4x1x8xf32, #tpu.memory_space<vmem>>, vector<1x1x1x8xf32>
    %406 = vector.shape_cast %405 : vector<1x1x1x8xf32> to vector<1x8xf32>
    %407 = vector.broadcast %406 : vector<1x8xf32> to vector<64x8xf32>
    %408 = arith.addf %404, %407 : vector<64x8xf32>
    %409 = vector.shape_cast %408 : vector<64x8xf32> to vector<8x8x8xf32>
    %c1_304 = arith.constant 1 : index
    %c2_305 = arith.constant 2 : index
    %c0_306 = arith.constant 0 : index
    %c0_307 = arith.constant 0 : index
    %410 = vector.load %arg9[%c1_304, %c2_305, %c0_306, %c0_307] : memref<2x4x32x8xf32, #tpu.memory_space<vmem>>, vector<1x1x32x8xf32>
    %411 = vector.shape_cast %410 : vector<1x1x32x8xf32> to vector<32x8xf32>
    %cst_308 = arith.constant dense<0.000000e+00> : vector<64x8xf32>
    %412 = tpu.matmul %298, %411, %cst_308 {dimension_numbers = #tpu.dot_dimension_numbers<[1], [0], [0], [1], [0, 0, 1, 1], [], []>} : vector<64x32xf32>, vector<32x8xf32>, vector<64x8xf32> -> vector<64x8xf32>
    %c1_309 = arith.constant 1 : index
    %c2_310 = arith.constant 2 : index
    %c0_311 = arith.constant 0 : index
    %c0_312 = arith.constant 0 : index
    %413 = vector.load %arg10[%c1_309, %c2_310, %c0_311, %c0_312] : memref<2x4x1x8xf32, #tpu.memory_space<vmem>>, vector<1x1x1x8xf32>
    %414 = vector.shape_cast %413 : vector<1x1x1x8xf32> to vector<1x8xf32>
    %415 = vector.broadcast %414 : vector<1x8xf32> to vector<64x8xf32>
    %416 = arith.addf %412, %415 : vector<64x8xf32>
    %417 = vector.shape_cast %416 : vector<64x8xf32> to vector<8x8x8xf32>
    "tpu.trace_start"() <{level = 10 : i32, message = "bqd,bkd->bqk"}> : () -> ()
    %cst_313 = arith.constant dense<0.000000e+00> : vector<8x8x8xf32>
    %418 = tpu.matmul %401, %409, %cst_313 {dimension_numbers = #tpu.dot_dimension_numbers<[2], [2], [1], [1], [0, 0, 0, 1, 1, 1], [0], [0]>} : vector<8x8x8xf32>, vector<8x8x8xf32>, vector<8x8x8xf32> -> vector<8x8x8xf32>
    "tpu.trace_stop"() : () -> ()
    %cst_314 = arith.constant 0.353553385 : f32
    %419 = vector.broadcast %cst_314 : f32 to vector<8x8x8xf32>
    %420 = arith.mulf %418, %419 : vector<8x8x8xf32>
    %421 = vector.broadcast %30 : vector<8x1x8xf32> to vector<8x8x8xf32>
    %422 = arith.addf %420, %421 : vector<8x8x8xf32>
    %cst_315 = arith.constant dense<0xFF800000> : vector<8x8xf32>
    %423 = vector.multi_reduction <maximumf>, %422, %cst_315 [2] : vector<8x8x8xf32> to vector<8x8xf32>
    %cst_316 = arith.constant 0xFF800000 : f32
    %424 = vector.broadcast %cst_316 : f32 to vector<8x8xf32>
    %425 = arith.maximumf %424, %423 : vector<8x8xf32>
    %426 = vector.shape_cast %425 : vector<8x8xf32> to vector<8x8x1xf32>
    %427 = vector.broadcast %426 : vector<8x8x1xf32> to vector<8x8x8xf32>
    %428 = arith.subf %422, %427 : vector<8x8x8xf32>
    %429 = math.exp %428 : vector<8x8x8xf32>
    %cst_317 = arith.constant dense<0.000000e+00> : vector<8x8xf32>
    %430 = vector.multi_reduction <add>, %429, %cst_317 [2] : vector<8x8x8xf32> to vector<8x8xf32>
    %431 = vector.shape_cast %430 : vector<8x8xf32> to vector<8x8x1xf32>
    %432 = vector.broadcast %431 : vector<8x8x1xf32> to vector<8x8x8xf32>
    %433 = arith.divf %429, %432 : vector<8x8x8xf32>
    "tpu.trace_start"() <{level = 10 : i32, message = "bqk,bkd->bqd"}> : () -> ()
    %cst_318 = arith.constant dense<0.000000e+00> : vector<8x8x8xf32>
    %434 = tpu.matmul %433, %417, %cst_318 {dimension_numbers = #tpu.dot_dimension_numbers<[2], [1], [1], [2], [0, 0, 0, 1, 1, 2], [0], [0]>} : vector<8x8x8xf32>, vector<8x8x8xf32>, vector<8x8x8xf32> -> vector<8x8x8xf32>
    "tpu.trace_stop"() : () -> ()
    %435 = vector.shape_cast %434 : vector<8x8x8xf32> to vector<64x8xf32>
    %c1_319 = arith.constant 1 : index
    %c2_320 = arith.constant 2 : index
    %c0_321 = arith.constant 0 : index
    %c0_322 = arith.constant 0 : index
    %436 = vector.load %arg11[%c1_319, %c2_320, %c0_321, %c0_322] : memref<2x4x8x32xf32, #tpu.memory_space<vmem>>, vector<1x1x8x32xf32>
    %437 = vector.shape_cast %436 : vector<1x1x8x32xf32> to vector<8x32xf32>
    %cst_323 = arith.constant dense<0.000000e+00> : vector<64x32xf32>
    %438 = tpu.matmul %435, %437, %cst_323 {dimension_numbers = #tpu.dot_dimension_numbers<[1], [0], [0], [1], [0, 0, 1, 1], [], []>} : vector<64x8xf32>, vector<8x32xf32>, vector<64x32xf32> -> vector<64x32xf32>
    %439 = arith.addf %393, %438 : vector<64x32xf32>
    %c1_324 = arith.constant 1 : index
    %c3_325 = arith.constant 3 : index
    %c0_326 = arith.constant 0 : index
    %c0_327 = arith.constant 0 : index
    %440 = vector.load %arg5[%c1_324, %c3_325, %c0_326, %c0_327] : memref<2x4x32x8xf32, #tpu.memory_space<vmem>>, vector<1x1x32x8xf32>
    %441 = vector.shape_cast %440 : vector<1x1x32x8xf32> to vector<32x8xf32>
    %cst_328 = arith.constant dense<0.000000e+00> : vector<64x8xf32>
    %442 = tpu.matmul %298, %441, %cst_328 {dimension_numbers = #tpu.dot_dimension_numbers<[1], [0], [0], [1], [0, 0, 1, 1], [], []>} : vector<64x32xf32>, vector<32x8xf32>, vector<64x8xf32> -> vector<64x8xf32>
    %c1_329 = arith.constant 1 : index
    %c3_330 = arith.constant 3 : index
    %c0_331 = arith.constant 0 : index
    %c0_332 = arith.constant 0 : index
    %443 = vector.load %arg6[%c1_329, %c3_330, %c0_331, %c0_332] : memref<2x4x1x8xf32, #tpu.memory_space<vmem>>, vector<1x1x1x8xf32>
    %444 = vector.shape_cast %443 : vector<1x1x1x8xf32> to vector<1x8xf32>
    %445 = vector.broadcast %444 : vector<1x8xf32> to vector<64x8xf32>
    %446 = arith.addf %442, %445 : vector<64x8xf32>
    %447 = vector.shape_cast %446 : vector<64x8xf32> to vector<8x8x8xf32>
    %c1_333 = arith.constant 1 : index
    %c3_334 = arith.constant 3 : index
    %c0_335 = arith.constant 0 : index
    %c0_336 = arith.constant 0 : index
    %448 = vector.load %arg7[%c1_333, %c3_334, %c0_335, %c0_336] : memref<2x4x32x8xf32, #tpu.memory_space<vmem>>, vector<1x1x32x8xf32>
    %449 = vector.shape_cast %448 : vector<1x1x32x8xf32> to vector<32x8xf32>
    %cst_337 = arith.constant dense<0.000000e+00> : vector<64x8xf32>
    %450 = tpu.matmul %298, %449, %cst_337 {dimension_numbers = #tpu.dot_dimension_numbers<[1], [0], [0], [1], [0, 0, 1, 1], [], []>} : vector<64x32xf32>, vector<32x8xf32>, vector<64x8xf32> -> vector<64x8xf32>
    %c1_338 = arith.constant 1 : index
    %c3_339 = arith.constant 3 : index
    %c0_340 = arith.constant 0 : index
    %c0_341 = arith.constant 0 : index
    %451 = vector.load %arg8[%c1_338, %c3_339, %c0_340, %c0_341] : memref<2x4x1x8xf32, #tpu.memory_space<vmem>>, vector<1x1x1x8xf32>
    %452 = vector.shape_cast %451 : vector<1x1x1x8xf32> to vector<1x8xf32>
    %453 = vector.broadcast %452 : vector<1x8xf32> to vector<64x8xf32>
    %454 = arith.addf %450, %453 : vector<64x8xf32>
    %455 = vector.shape_cast %454 : vector<64x8xf32> to vector<8x8x8xf32>
    %c1_342 = arith.constant 1 : index
    %c3_343 = arith.constant 3 : index
    %c0_344 = arith.constant 0 : index
    %c0_345 = arith.constant 0 : index
    %456 = vector.load %arg9[%c1_342, %c3_343, %c0_344, %c0_345] : memref<2x4x32x8xf32, #tpu.memory_space<vmem>>, vector<1x1x32x8xf32>
    %457 = vector.shape_cast %456 : vector<1x1x32x8xf32> to vector<32x8xf32>
    %cst_346 = arith.constant dense<0.000000e+00> : vector<64x8xf32>
    %458 = tpu.matmul %298, %457, %cst_346 {dimension_numbers = #tpu.dot_dimension_numbers<[1], [0], [0], [1], [0, 0, 1, 1], [], []>} : vector<64x32xf32>, vector<32x8xf32>, vector<64x8xf32> -> vector<64x8xf32>
    %c1_347 = arith.constant 1 : index
    %c3_348 = arith.constant 3 : index
    %c0_349 = arith.constant 0 : index
    %c0_350 = arith.constant 0 : index
    %459 = vector.load %arg10[%c1_347, %c3_348, %c0_349, %c0_350] : memref<2x4x1x8xf32, #tpu.memory_space<vmem>>, vector<1x1x1x8xf32>
    %460 = vector.shape_cast %459 : vector<1x1x1x8xf32> to vector<1x8xf32>
    %461 = vector.broadcast %460 : vector<1x8xf32> to vector<64x8xf32>
    %462 = arith.addf %458, %461 : vector<64x8xf32>
    %463 = vector.shape_cast %462 : vector<64x8xf32> to vector<8x8x8xf32>
    "tpu.trace_start"() <{level = 10 : i32, message = "bqd,bkd->bqk"}> : () -> ()
    %cst_351 = arith.constant dense<0.000000e+00> : vector<8x8x8xf32>
    %464 = tpu.matmul %447, %455, %cst_351 {dimension_numbers = #tpu.dot_dimension_numbers<[2], [2], [1], [1], [0, 0, 0, 1, 1, 1], [0], [0]>} : vector<8x8x8xf32>, vector<8x8x8xf32>, vector<8x8x8xf32> -> vector<8x8x8xf32>
    "tpu.trace_stop"() : () -> ()
    %cst_352 = arith.constant 0.353553385 : f32
    %465 = vector.broadcast %cst_352 : f32 to vector<8x8x8xf32>
    %466 = arith.mulf %464, %465 : vector<8x8x8xf32>
    %467 = vector.broadcast %30 : vector<8x1x8xf32> to vector<8x8x8xf32>
    %468 = arith.addf %466, %467 : vector<8x8x8xf32>
    %cst_353 = arith.constant dense<0xFF800000> : vector<8x8xf32>
    %469 = vector.multi_reduction <maximumf>, %468, %cst_353 [2] : vector<8x8x8xf32> to vector<8x8xf32>
    %cst_354 = arith.constant 0xFF800000 : f32
    %470 = vector.broadcast %cst_354 : f32 to vector<8x8xf32>
    %471 = arith.maximumf %470, %469 : vector<8x8xf32>
    %472 = vector.shape_cast %471 : vector<8x8xf32> to vector<8x8x1xf32>
    %473 = vector.broadcast %472 : vector<8x8x1xf32> to vector<8x8x8xf32>
    %474 = arith.subf %468, %473 : vector<8x8x8xf32>
    %475 = math.exp %474 : vector<8x8x8xf32>
    %cst_355 = arith.constant dense<0.000000e+00> : vector<8x8xf32>
    %476 = vector.multi_reduction <add>, %475, %cst_355 [2] : vector<8x8x8xf32> to vector<8x8xf32>
    %477 = vector.shape_cast %476 : vector<8x8xf32> to vector<8x8x1xf32>
    %478 = vector.broadcast %477 : vector<8x8x1xf32> to vector<8x8x8xf32>
    %479 = arith.divf %475, %478 : vector<8x8x8xf32>
    "tpu.trace_start"() <{level = 10 : i32, message = "bqk,bkd->bqd"}> : () -> ()
    %cst_356 = arith.constant dense<0.000000e+00> : vector<8x8x8xf32>
    %480 = tpu.matmul %479, %463, %cst_356 {dimension_numbers = #tpu.dot_dimension_numbers<[2], [1], [1], [2], [0, 0, 0, 1, 1, 2], [0], [0]>} : vector<8x8x8xf32>, vector<8x8x8xf32>, vector<8x8x8xf32> -> vector<8x8x8xf32>
    "tpu.trace_stop"() : () -> ()
    %481 = vector.shape_cast %480 : vector<8x8x8xf32> to vector<64x8xf32>
    %c1_357 = arith.constant 1 : index
    %c3_358 = arith.constant 3 : index
    %c0_359 = arith.constant 0 : index
    %c0_360 = arith.constant 0 : index
    %482 = vector.load %arg11[%c1_357, %c3_358, %c0_359, %c0_360] : memref<2x4x8x32xf32, #tpu.memory_space<vmem>>, vector<1x1x8x32xf32>
    %483 = vector.shape_cast %482 : vector<1x1x8x32xf32> to vector<8x32xf32>
    %cst_361 = arith.constant dense<0.000000e+00> : vector<64x32xf32>
    %484 = tpu.matmul %481, %483, %cst_361 {dimension_numbers = #tpu.dot_dimension_numbers<[1], [0], [0], [1], [0, 0, 1, 1], [], []>} : vector<64x8xf32>, vector<8x32xf32>, vector<64x32xf32> -> vector<64x32xf32>
    %485 = arith.addf %439, %484 : vector<64x32xf32>
    %486 = arith.addf %485, %298 : vector<64x32xf32>
    %c1_362 = arith.constant 1 : index
    %c0_363 = arith.constant 0 : index
    %c0_364 = arith.constant 0 : index
    %487 = vector.load %arg13[%c1_362, %c0_363, %c0_364] : memref<2x1x32xf32, #tpu.memory_space<vmem>>, vector<1x1x32xf32>
    %488 = vector.shape_cast %487 : vector<1x1x32xf32> to vector<1x32xf32>
    %c1_365 = arith.constant 1 : index
    %c0_366 = arith.constant 0 : index
    %c0_367 = arith.constant 0 : index
    %489 = vector.load %arg14[%c1_365, %c0_366, %c0_367] : memref<2x1x32xf32, #tpu.memory_space<vmem>>, vector<1x1x32xf32>
    %490 = vector.shape_cast %489 : vector<1x1x32xf32> to vector<1x32xf32>
    %cst_368 = arith.constant dense<0.000000e+00> : vector<64xf32>
    %491 = vector.multi_reduction <add>, %486, %cst_368 [1] : vector<64x32xf32> to vector<64xf32>
    %492 = vector.shape_cast %491 : vector<64xf32> to vector<64x1xf32>
    %cst_369 = arith.constant 3.200000e+01 : f32
    %493 = vector.broadcast %cst_369 : f32 to vector<64x1xf32>
    %494 = arith.divf %492, %493 : vector<64x1xf32>
    %495 = vector.broadcast %494 : vector<64x1xf32> to vector<64x32xf32>
    %496 = arith.subf %486, %495 : vector<64x32xf32>
    %497 = arith.mulf %496, %496 : vector<64x32xf32>
    %cst_370 = arith.constant dense<0.000000e+00> : vector<64xf32>
    %498 = vector.multi_reduction <add>, %497, %cst_370 [1] : vector<64x32xf32> to vector<64xf32>
    %499 = vector.shape_cast %498 : vector<64xf32> to vector<64x1xf32>
    %cst_371 = arith.constant 3.200000e+01 : f32
    %500 = vector.broadcast %cst_371 : f32 to vector<64x1xf32>
    %501 = arith.divf %499, %500 : vector<64x1xf32>
    %502 = vector.broadcast %494 : vector<64x1xf32> to vector<64x32xf32>
    %503 = arith.subf %486, %502 : vector<64x32xf32>
    %cst_372 = arith.constant 9.99999996E-13 : f32
    %504 = vector.broadcast %cst_372 : f32 to vector<64x1xf32>
    %505 = arith.addf %501, %504 : vector<64x1xf32>
    %506 = math.rsqrt %505 : vector<64x1xf32>
    %507 = vector.broadcast %506 : vector<64x1xf32> to vector<64x32xf32>
    %508 = arith.mulf %503, %507 : vector<64x32xf32>
    %509 = vector.broadcast %488 : vector<1x32xf32> to vector<64x32xf32>
    %510 = arith.mulf %508, %509 : vector<64x32xf32>
    %511 = vector.broadcast %490 : vector<1x32xf32> to vector<64x32xf32>
    %512 = arith.addf %510, %511 : vector<64x32xf32>
    %c1_373 = arith.constant 1 : index
    %c0_374 = arith.constant 0 : index
    %c0_375 = arith.constant 0 : index
    %513 = vector.load %arg15[%c1_373, %c0_374, %c0_375] : memref<2x32x64xf32, #tpu.memory_space<vmem>>, vector<1x32x64xf32>
    %514 = vector.shape_cast %513 : vector<1x32x64xf32> to vector<32x64xf32>
    %cst_376 = arith.constant dense<0.000000e+00> : vector<64x64xf32>
    %515 = tpu.matmul %512, %514, %cst_376 {dimension_numbers = #tpu.dot_dimension_numbers<[1], [0], [0], [1], [0, 0, 1, 1], [], []>} : vector<64x32xf32>, vector<32x64xf32>, vector<64x64xf32> -> vector<64x64xf32>
    %c1_377 = arith.constant 1 : index
    %c0_378 = arith.constant 0 : index
    %c0_379 = arith.constant 0 : index
    %516 = vector.load %arg16[%c1_377, %c0_378, %c0_379] : memref<2x1x64xf32, #tpu.memory_space<vmem>>, vector<1x1x64xf32>
    %517 = vector.shape_cast %516 : vector<1x1x64xf32> to vector<1x64xf32>
    %518 = vector.broadcast %517 : vector<1x64xf32> to vector<64x64xf32>
    %519 = arith.addf %515, %518 : vector<64x64xf32>
    %520 = arith.mulf %519, %519 : vector<64x64xf32>
    %521 = arith.mulf %519, %520 : vector<64x64xf32>
    %cst_380 = arith.constant 4.471500e-02 : f32
    %522 = vector.broadcast %cst_380 : f32 to vector<64x64xf32>
    %523 = arith.mulf %522, %521 : vector<64x64xf32>
    %524 = arith.addf %519, %523 : vector<64x64xf32>
    %cst_381 = arith.constant 0.797884583 : f32
    %525 = vector.broadcast %cst_381 : f32 to vector<64x64xf32>
    %526 = arith.mulf %525, %524 : vector<64x64xf32>
    %527 = math.tanh %526 : vector<64x64xf32>
    %cst_382 = arith.constant 1.000000e+00 : f32
    %528 = vector.broadcast %cst_382 : f32 to vector<64x64xf32>
    %529 = arith.addf %528, %527 : vector<64x64xf32>
    %cst_383 = arith.constant 5.000000e-01 : f32
    %530 = vector.broadcast %cst_383 : f32 to vector<64x64xf32>
    %531 = arith.mulf %530, %529 : vector<64x64xf32>
    %532 = arith.mulf %519, %531 : vector<64x64xf32>
    %c1_384 = arith.constant 1 : index
    %c0_385 = arith.constant 0 : index
    %c0_386 = arith.constant 0 : index
    %533 = vector.load %arg17[%c1_384, %c0_385, %c0_386] : memref<2x64x32xf32, #tpu.memory_space<vmem>>, vector<1x64x32xf32>
    %534 = vector.shape_cast %533 : vector<1x64x32xf32> to vector<64x32xf32>
    %cst_387 = arith.constant dense<0.000000e+00> : vector<64x32xf32>
    %535 = tpu.matmul %532, %534, %cst_387 {dimension_numbers = #tpu.dot_dimension_numbers<[1], [0], [0], [1], [0, 0, 1, 1], [], []>} : vector<64x64xf32>, vector<64x32xf32>, vector<64x32xf32> -> vector<64x32xf32>
    %c1_388 = arith.constant 1 : index
    %c0_389 = arith.constant 0 : index
    %c0_390 = arith.constant 0 : index
    %536 = vector.load %arg18[%c1_388, %c0_389, %c0_390] : memref<2x1x32xf32, #tpu.memory_space<vmem>>, vector<1x1x32xf32>
    %537 = vector.shape_cast %536 : vector<1x1x32xf32> to vector<1x32xf32>
    %538 = vector.broadcast %537 : vector<1x32xf32> to vector<64x32xf32>
    %539 = arith.addf %535, %538 : vector<64x32xf32>
    %540 = arith.addf %539, %512 : vector<64x32xf32>
    %c1_391 = arith.constant 1 : index
    %c0_392 = arith.constant 0 : index
    %c0_393 = arith.constant 0 : index
    %541 = vector.load %arg19[%c1_391, %c0_392, %c0_393] : memref<2x1x32xf32, #tpu.memory_space<vmem>>, vector<1x1x32xf32>
    %542 = vector.shape_cast %541 : vector<1x1x32xf32> to vector<1x32xf32>
    %c1_394 = arith.constant 1 : index
    %c0_395 = arith.constant 0 : index
    %c0_396 = arith.constant 0 : index
    %543 = vector.load %arg20[%c1_394, %c0_395, %c0_396] : memref<2x1x32xf32, #tpu.memory_space<vmem>>, vector<1x1x32xf32>
    %544 = vector.shape_cast %543 : vector<1x1x32xf32> to vector<1x32xf32>
    %cst_397 = arith.constant dense<0.000000e+00> : vector<64xf32>
    %545 = vector.multi_reduction <add>, %540, %cst_397 [1] : vector<64x32xf32> to vector<64xf32>
    %546 = vector.shape_cast %545 : vector<64xf32> to vector<64x1xf32>
    %cst_398 = arith.constant 3.200000e+01 : f32
    %547 = vector.broadcast %cst_398 : f32 to vector<64x1xf32>
    %548 = arith.divf %546, %547 : vector<64x1xf32>
    %549 = vector.broadcast %548 : vector<64x1xf32> to vector<64x32xf32>
    %550 = arith.subf %540, %549 : vector<64x32xf32>
    %551 = arith.mulf %550, %550 : vector<64x32xf32>
    %cst_399 = arith.constant dense<0.000000e+00> : vector<64xf32>
    %552 = vector.multi_reduction <add>, %551, %cst_399 [1] : vector<64x32xf32> to vector<64xf32>
    %553 = vector.shape_cast %552 : vector<64xf32> to vector<64x1xf32>
    %cst_400 = arith.constant 3.200000e+01 : f32
    %554 = vector.broadcast %cst_400 : f32 to vector<64x1xf32>
    %555 = arith.divf %553, %554 : vector<64x1xf32>
    %556 = vector.broadcast %548 : vector<64x1xf32> to vector<64x32xf32>
    %557 = arith.subf %540, %556 : vector<64x32xf32>
    %cst_401 = arith.constant 9.99999996E-13 : f32
    %558 = vector.broadcast %cst_401 : f32 to vector<64x1xf32>
    %559 = arith.addf %555, %558 : vector<64x1xf32>
    %560 = math.rsqrt %559 : vector<64x1xf32>
    %561 = vector.broadcast %560 : vector<64x1xf32> to vector<64x32xf32>
    %562 = arith.mulf %557, %561 : vector<64x32xf32>
    %563 = vector.broadcast %542 : vector<1x32xf32> to vector<64x32xf32>
    %564 = arith.mulf %562, %563 : vector<64x32xf32>
    %565 = vector.broadcast %544 : vector<1x32xf32> to vector<64x32xf32>
    %566 = arith.addf %564, %565 : vector<64x32xf32>
    %567 = vector.shape_cast %566 : vector<64x32xf32> to vector<8x8x32xf32>
    %568 = vector.extract_strided_slice %567 {offsets = [0, 0, 0], sizes = [8, 1, 32], strides = [1, 1, 1]} : vector<8x8x32xf32> to vector<8x1x32xf32>
    %569 = vector.shape_cast %568 : vector<8x1x32xf32> to vector<8x32xf32>
    %c0_402 = arith.constant 0 : index
    %c0_403 = arith.constant 0 : index
    %570 = vector.load %arg21[%c0_402, %c0_403] : memref<32x32xf32, #tpu.memory_space<vmem>>, vector<32x32xf32>
    %cst_404 = arith.constant dense<0.000000e+00> : vector<8x32xf32>
    %571 = tpu.matmul %569, %570, %cst_404 {dimension_numbers = #tpu.dot_dimension_numbers<[1], [0], [0], [1], [0, 0, 1, 1], [], []>} : vector<8x32xf32>, vector<32x32xf32>, vector<8x32xf32> -> vector<8x32xf32>
    %c0_405 = arith.constant 0 : index
    %c0_406 = arith.constant 0 : index
    %572 = vector.load %arg22[%c0_405, %c0_406] : memref<1x32xf32, #tpu.memory_space<vmem>>, vector<1x32xf32>
    %573 = vector.broadcast %572 : vector<1x32xf32> to vector<8x32xf32>
    %574 = arith.addf %571, %573 : vector<8x32xf32>
    %575 = math.tanh %574 : vector<8x32xf32>
    %c0_407 = arith.constant 0 : index
    %c0_408 = arith.constant 0 : index
    %576 = vector.load %arg23[%c0_407, %c0_408] : memref<1x32xf32, #tpu.memory_space<vmem>>, vector<1x32xf32>
    %577 = tpu.transpose %575, [1, 0] : vector<8x32xf32> -> vector<32x8xf32>
    %cst_409 = arith.constant dense<0.000000e+00> : vector<1x8xf32>
    %578 = tpu.matmul %576, %577, %cst_409 {dimension_numbers = #tpu.dot_dimension_numbers<[1], [0], [0], [1], [0, 0, 1, 1], [], []>} : vector<1x32xf32>, vector<32x8xf32>, vector<1x8xf32> -> vector<1x8xf32>
    %c0_410 = arith.constant 0 : index
    %c0_411 = arith.constant 0 : index
    %579 = vector.load %arg24[%c0_410, %c0_411] : memref<1x1xf32, #tpu.memory_space<vmem>>, vector<1x1xf32>
    %580 = vector.broadcast %579 : vector<1x1xf32> to vector<1x8xf32>
    %581 = arith.addf %578, %580 : vector<1x8xf32>
    %582 = vector.shape_cast %581 : vector<1x8xf32> to vector<1x1x8xf32>
    %c0_412 = arith.constant 0 : index
    %c0_413 = arith.constant 0 : index
    %c0_414 = arith.constant 0 : index
    %583 = vector.load %arg25[%c0_412, %c0_413, %c0_414] : memref<1x1x8xf32, #tpu.memory_space<vmem>>, vector<1x1x8xf32>
    tpu.vector_store %arg25[%c0_412, %c0_413, %c0_414], %582 {strides = array<i32>} : memref<1x1x8xf32, #tpu.memory_space<vmem>>, vector<1x1x8xf32>,
    return
  }
  func.func @transform_0(%arg0: i32) -> (i32, i32, i32) {
    %c0_i32 = arith.constant 0 : i32
    %c0_i32_0 = arith.constant 0 : i32
    %c0_i32_1 = arith.constant 0 : i32
    return %arg0, %c0_i32, %c0_i32_0 : i32, i32, i32
  }
  func.func @transform_1(%arg0: i32) -> (i32, i32, i32) {
    %c0_i32 = arith.constant 0 : i32
    %c0_i32_0 = arith.constant 0 : i32
    %c0_i32_1 = arith.constant 0 : i32
    return %arg0, %c0_i32, %c0_i32_0 : i32, i32, i32
  }
  func.func @transform_2(%arg0: i32) -> (i32, i32) {
    %c0_i32 = arith.constant 0 : i32
    %c0_i32_0 = arith.constant 0 : i32
    %c0_i32_1 = arith.constant 0 : i32
    return %c0_i32, %c0_i32_0 : i32, i32
  }
  func.func @transform_3(%arg0: i32) -> (i32, i32) {
    %c0_i32 = arith.constant 0 : i32
    %c0_i32_0 = arith.constant 0 : i32
    %c0_i32_1 = arith.constant 0 : i32
    return %c0_i32, %c0_i32_0 : i32, i32
  }
  func.func @transform_4(%arg0: i32) -> (i32, i32, i32, i32) {
    %c0_i32 = arith.constant 0 : i32
    %c0_i32_0 = arith.constant 0 : i32
    %c0_i32_1 = arith.constant 0 : i32
    %c0_i32_2 = arith.constant 0 : i32
    %c0_i32_3 = arith.constant 0 : i32
    return %c0_i32, %c0_i32_0, %c0_i32_1, %c0_i32_2 : i32, i32, i32, i32
  }
  func.func @transform_5(%arg0: i32) -> (i32, i32, i32, i32) {
    %c0_i32 = arith.constant 0 : i32
    %c0_i32_0 = arith.constant 0 : i32
    %c0_i32_1 = arith.constant 0 : i32
    %c0_i32_2 = arith.constant 0 : i32
    %c0_i32_3 = arith.constant 0 : i32
    return %c0_i32, %c0_i32_0, %c0_i32_1, %c0_i32_2 : i32, i32, i32, i32
  }
  func.func @transform_6(%arg0: i32) -> (i32, i32, i32, i32) {
    %c0_i32 = arith.constant 0 : i32
    %c0_i32_0 = arith.constant 0 : i32
    %c0_i32_1 = arith.constant 0 : i32
    %c0_i32_2 = arith.constant 0 : i32
    %c0_i32_3 = arith.constant 0 : i32
    return %c0_i32, %c0_i32_0, %c0_i32_1, %c0_i32_2 : i32, i32, i32, i32
  }
  func.func @transform_7(%arg0: i32) -> (i32, i32, i32, i32) {
    %c0_i32 = arith.constant 0 : i32
    %c0_i32_0 = arith.constant 0 : i32
    %c0_i32_1 = arith.constant 0 : i32
    %c0_i32_2 = arith.constant 0 : i32
    %c0_i32_3 = arith.constant 0 : i32
    return %c0_i32, %c0_i32_0, %c0_i32_1, %c0_i32_2 : i32, i32, i32, i32
  }
  func.func @transform_8(%arg0: i32) -> (i32, i32, i32, i32) {
    %c0_i32 = arith.constant 0 : i32
    %c0_i32_0 = arith.constant 0 : i32
    %c0_i32_1 = arith.constant 0 : i32
    %c0_i32_2 = arith.constant 0 : i32
    %c0_i32_3 = arith.constant 0 : i32
    return %c0_i32, %c0_i32_0, %c0_i32_1, %c0_i32_2 : i32, i32, i32, i32
  }
  func.func @transform_9(%arg0: i32) -> (i32, i32, i32, i32) {
    %c0_i32 = arith.constant 0 : i32
    %c0_i32_0 = arith.constant 0 : i32
    %c0_i32_1 = arith.constant 0 : i32
    %c0_i32_2 = arith.constant 0 : i32
    %c0_i32_3 = arith.constant 0 : i32
    return %c0_i32, %c0_i32_0, %c0_i32_1, %c0_i32_2 : i32, i32, i32, i32
  }
  func.func @transform_10(%arg0: i32) -> (i32, i32, i32, i32) {
    %c0_i32 = arith.constant 0 : i32
    %c0_i32_0 = arith.constant 0 : i32
    %c0_i32_1 = arith.constant 0 : i32
    %c0_i32_2 = arith.constant 0 : i32
    %c0_i32_3 = arith.constant 0 : i32
    return %c0_i32, %c0_i32_0, %c0_i32_1, %c0_i32_2 : i32, i32, i32, i32
  }
  func.func @transform_11(%arg0: i32) -> (i32, i32, i32) {
    %c0_i32 = arith.constant 0 : i32
    %c0_i32_0 = arith.constant 0 : i32
    %c0_i32_1 = arith.constant 0 : i32
    %c0_i32_2 = arith.constant 0 : i32
    return %c0_i32, %c0_i32_0, %c0_i32_1 : i32, i32, i32
  }
  func.func @transform_12(%arg0: i32) -> (i32, i32, i32) {
    %c0_i32 = arith.constant 0 : i32
    %c0_i32_0 = arith.constant 0 : i32
    %c0_i32_1 = arith.constant 0 : i32
    %c0_i32_2 = arith.constant 0 : i32
    return %c0_i32, %c0_i32_0, %c0_i32_1 : i32, i32, i32
  }
  func.func @transform_13(%arg0: i32) -> (i32, i32, i32) {
    %c0_i32 = arith.constant 0 : i32
    %c0_i32_0 = arith.constant 0 : i32
    %c0_i32_1 = arith.constant 0 : i32
    %c0_i32_2 = arith.constant 0 : i32
    return %c0_i32, %c0_i32_0, %c0_i32_1 : i32, i32, i32
  }
  func.func @transform_14(%arg0: i32) -> (i32, i32, i32) {
    %c0_i32 = arith.constant 0 : i32
    %c0_i32_0 = arith.constant 0 : i32
    %c0_i32_1 = arith.constant 0 : i32
    %c0_i32_2 = arith.constant 0 : i32
    return %c0_i32, %c0_i32_0, %c0_i32_1 : i32, i32, i32
  }
  func.func @transform_15(%arg0: i32) -> (i32, i32, i32) {
    %c0_i32 = arith.constant 0 : i32
    %c0_i32_0 = arith.constant 0 : i32
    %c0_i32_1 = arith.constant 0 : i32
    %c0_i32_2 = arith.constant 0 : i32
    return %c0_i32, %c0_i32_0, %c0_i32_1 : i32, i32, i32
  }
  func.func @transform_16(%arg0: i32) -> (i32, i32, i32) {
    %c0_i32 = arith.constant 0 : i32
    %c0_i32_0 = arith.constant 0 : i32
    %c0_i32_1 = arith.constant 0 : i32
    %c0_i32_2 = arith.constant 0 : i32
    return %c0_i32, %c0_i32_0, %c0_i32_1 : i32, i32, i32
  }
  func.func @transform_17(%arg0: i32) -> (i32, i32, i32) {
    %c0_i32 = arith.constant 0 : i32
    %c0_i32_0 = arith.constant 0 : i32
    %c0_i32_1 = arith.constant 0 : i32
    %c0_i32_2 = arith.constant 0 : i32
    return %c0_i32, %c0_i32_0, %c0_i32_1 : i32, i32, i32
  }
  func.func @transform_18(%arg0: i32) -> (i32, i32, i32) {
    %c0_i32 = arith.constant 0 : i32
    %c0_i32_0 = arith.constant 0 : i32
    %c0_i32_1 = arith.constant 0 : i32
    %c0_i32_2 = arith.constant 0 : i32
    return %c0_i32, %c0_i32_0, %c0_i32_1 : i32, i32, i32
  }
  func.func @transform_19(%arg0: i32) -> (i32, i32, i32) {
    %c0_i32 = arith.constant 0 : i32
    %c0_i32_0 = arith.constant 0 : i32
    %c0_i32_1 = arith.constant 0 : i32
    %c0_i32_2 = arith.constant 0 : i32
    return %c0_i32, %c0_i32_0, %c0_i32_1 : i32, i32, i32
  }
  func.func @transform_20(%arg0: i32) -> (i32, i32) {
    %c0_i32 = arith.constant 0 : i32
    %c0_i32_0 = arith.constant 0 : i32
    %c0_i32_1 = arith.constant 0 : i32
    return %c0_i32, %c0_i32_0 : i32, i32
  }
  func.func @transform_21(%arg0: i32) -> (i32, i32) {
    %c0_i32 = arith.constant 0 : i32
    %c0_i32_0 = arith.constant 0 : i32
    %c0_i32_1 = arith.constant 0 : i32
    return %c0_i32, %c0_i32_0 : i32, i32
  }
  func.func @transform_22(%arg0: i32) -> (i32, i32) {
    %c0_i32 = arith.constant 0 : i32
    %c0_i32_0 = arith.constant 0 : i32
    %c0_i32_1 = arith.constant 0 : i32
    return %c0_i32, %c0_i32_0 : i32, i32
  }
  func.func @transform_23(%arg0: i32) -> (i32, i32) {
    %c0_i32 = arith.constant 0 : i32
    %c0_i32_0 = arith.constant 0 : i32
    %c0_i32_1 = arith.constant 0 : i32
    return %c0_i32, %c0_i32_0 : i32, i32
  }
  func.func @transform_24(%arg0: i32) -> (i32, i32, i32) {
    %c0_i32 = arith.constant 0 : i32
    %c0_i32_0 = arith.constant 0 : i32
    %c0_i32_1 = arith.constant 0 : i32
    return %arg0, %c0_i32, %c0_i32_0 : i32, i32, i32
  }
}

</mosaic_0001>

<bundles_post_ra>
// kernel: duma_forward.1
= control target key start
LH: loop header
LB: loop body
LE: loop exit
PB: predicated region body
PF: predicated region fallthrough
CT: control target
= control target key end

     0   :  { %vm89_vm0 = vcmask 261120   ;;  %vm19213_vm1 = vmmov 0   ;;  %vm620_vm2 = vcmask 64512   ;;  %vm7845_vm3 = vcmask 523264   ;;  %s22206_s0 = inlined_call_operand.vmem [shape: f32[8,8,32], index: 0, kind: input, shape index: {}]   ;;  %s22207_s4 = inlined_call_operand.vmem [shape: f32[2,4,32,8], index: 4, kind: input, shape index: {}]   ;;  %s22208_s6 = inlined_call_operand.vmem [shape: f32[2,4,32,8], index: 6, kind: input, shape index: {}]   ;;  %s22209_s8 = inlined_call_operand.vmem [shape: f32[2,4,32,8], index: 8, kind: input, shape index: {}]   ;;  %s22210_s2 = inlined_call_operand.vmem [shape: f32[1,32], index: 2, kind: input, shape index: {}]   ;;  %s22211_s3 = inlined_call_operand.vmem [shape: f32[1,32], index: 3, kind: input, shape index: {}]   ;;  %s22212_s7 = inlined_call_operand.vmem [shape: f32[2,4,1,8], index: 7, kind: input, shape index: {}]   ;;  %s22213_s5 = inlined_call_operand.vmem [shape: f32[2,4,1,8], index: 5, kind: input, shape index: {}]   ;;  %s22214_s9 = inlined_call_operand.vmem [shape: f32[2,4,1,8], index: 9, kind: input, shape index: {}]   ;;  %s22215_s1 = inlined_call_operand.vmem [shape: f32[8,1,8], index: 1, kind: input, shape index: {}]   ;;  %s22216_s10 = inlined_call_operand.vmem [shape: f32[2,4,8,32], index: 10, kind: input, shape index: {}]   ;;  %s22217_s11 = inlined_call_operand.vmem [shape: f32[2,1,32], index: 11, kind: input, shape index: {}]   ;;  %s22218_s14 = inlined_call_operand.vmem [shape: f32[2,32,64], index: 14, kind: input, shape index: {}]   ;;  %s22219_s12 = inlined_call_operand.vmem [shape: f32[2,1,32], index: 12, kind: input, shape index: {}]   ;;  %s22220_s13 = inlined_call_operand.vmem [shape: f32[2,1,32], index: 13, kind: input, shape index: {}]   ;;  %s22221_s16 = inlined_call_operand.vmem [shape: f32[2,64,32], index: 16, kind: input, shape index: {}]   ;;  %s22222_s15 = inlined_call_operand.vmem [shape: f32[2,1,64], index: 15, kind: input, shape index: {}]   ;;  %s22223_s17 = inlined_call_operand.vmem [shape: f32[2,1,32], index: 17, kind: input, shape index: {}]   ;;  %s22224_s18 = inlined_call_operand.vmem [shape: f32[2,1,32], index: 18, kind: input, shape index: {}]   ;;  %s22225_s19 = inlined_call_operand.vmem [shape: f32[2,1,32], index: 19, kind: input, shape index: {}]   ;;  %s22226_s20 = inlined_call_operand.vmem [shape: f32[32,32], index: 20, kind: input, shape index: {}]   ;;  %s22227_s23 = inlined_call_operand.<no memory space> [shape: f32[1,1], index: 23, kind: input, shape index: {}]   ;;  %s22228_s21 = inlined_call_operand.vmem [shape: f32[1,32], index: 21, kind: input, shape index: {}]   ;;  %s22229_s22 = inlined_call_operand.vmem [shape: f32[1,32], index: 22, kind: input, shape index: {}]   ;;  %s22230_s24 = inlined_call_operand.vmem [shape: f32[1,1,8], index: 24, kind: output, shape index: {}]  }
   0x1   :  { %22241 = sst [smem:[#allocation4_spill]] %s22206_s0  ;;  %vm15973_vm4 = vcmask 1041409   ;;  %vm15976_vm5 = vcmask 1042434   ;;  %vm15979_vm6 = vcmask 1043459   ;;  %vm15982_vm7 = vcmask 1044484  }
   0x2   :  { %22242 = sst [smem:[#allocation5_spill]] %s22207_s4  ;;  %vm15985_vm8 = vcmask 1045509   ;;  %vm15988_vm9 = vcmask 1046534   ;;  %vm15991_vm10 = vcmask 1047559   ;;  %vm16153_vm11 = vcmask 57344  }
   0x3   :  { %22243 = sst [smem:[#allocation6_spill]] %s22208_s6 }
   0x4   :  { %22244 = sst [smem:[#allocation7_spill]] %s22209_s8 }
   0x5   :  { %22245 = sst [smem:[#allocation8_spill]] %s22210_s2 }
   0x6   :  { %22246 = sst [smem:[#allocation9_spill]] %s22211_s3 }
   0x7   :  { %22247 = sst [smem:[#allocation10_spill]] %s22212_s7 }
   0x8   :  { %22248 = sst [smem:[#allocation11_spill]] %s22213_s5 }
   0x9   :  { %22249 = sst [smem:[#allocation12_spill]] %s22214_s9 }
   0xa   :  { %s22250_s27 = sld [smem:[#allocation4_spill]] }
   0xb   :  { %s22251_s7 = sld [smem:[#allocation5_spill]] }
   0xc   :  { %s22252_s0 = sld [smem:[#allocation6_spill]] }
   0xd   :  { %s22253_s30 = sld [smem:[#allocation7_spill]] }
   0xe   :  { %s22254_s9 = sld [smem:[#allocation8_spill]] }
   0xf   :  { %s22255_s3 = sld [smem:[#allocation9_spill]] }
  0x10   :  { %v79_v0 = vld [vmem:[%s22250_s27] sm:$0xff]  ;;  %v81_v1 = vld [vmem:[%s22250_s27 + $0x10] sm:$0xff]  ;;  %v80_v2 = vld [vmem:[%s22250_s27 + $0x8] sm:$0xff]  ;;  %s22258_s28 = sld [smem:[#allocation12_spill]] }
  0x11   :  { %v90_v3 = vsel %vm89_vm0, %v79_v0, 0.0  ;;  %v96_v4 = vsel %vm89_vm0, %v81_v1, 0.0  ;;  %v82_v5 = vld [vmem:[%s22250_s27 + $0x18] sm:$0xff]  ;;  %v93_v6 = vsel %vm89_vm0, %v80_v2, 0.0  ;;  %v83_v8 = vld [vmem:[%s22250_s27 + $0x20] sm:$0xff]  ;;  %v84_v9 = vld [vmem:[%s22250_s27 + $0x28] sm:$0xff] }
  0x12   :  { %91 = vadd.xlane.f32.xlu0 %v90_v3  ;;  %97 = vadd.xlane.f32.xlu1 %v96_v4  ;;  %v99_v7 = vsel %vm89_vm0, %v82_v5, 0.0  ;;  %v102_v10 = vsel %vm89_vm0, %v83_v8, 0.0  ;;  %v105_v11 = vsel %vm89_vm0, %v84_v9, 0.0  ;;  %v85_v12 = vld [vmem:[%s22250_s27 + $0x30] sm:$0xff]  ;;  %v86_v13 = vld [vmem:[%s22250_s27 + $0x38] sm:$0xff]  ;;  %v249_v60 = vld [vmem:[%s22251_s7 + $0x8] sm:$0xff] }
  0x13   :  { %v108_v14 = vsel %vm89_vm0, %v85_v12, 0.0  ;;  %v111_v15 = vsel %vm89_vm0, %v86_v13, 0.0  ;;  %v251_v56 = vld [vmem:[%s22251_s7 + $0x18] sm:$0xff]  ;;  %v250_v58 = vld [vmem:[%s22251_s7 + $0x10] sm:$0xff]  ;;  %v389_v61 = vld [vmem:[%s22252_s0 + $0x8] sm:$0xff] }
  0x14   :  { %v391_v57 = vld [vmem:[%s22252_s0 + $0x18] sm:$0xff]  ;;  %17493 = vmatprep.subr.mxu0 %v251_v56  ;;  %v390_v59 = vld [vmem:[%s22252_s0 + $0x10] sm:$0xff]  ;;  %v248_v62 = vld [vmem:[%s22251_s7] sm:$0xff] }
  0x15   :  { %17513 = vmatprep.subr.mxu1 %v391_v57  ;;  %17494 = vmatpush3.msra.mxu0 %v251_v56  ;;  %v388_v63 = vld [vmem:[%s22252_s0] sm:$0xff]  ;;  %v505_v56 = vld [vmem:[%s22253_s30 + $0x8] sm:$0xff] }
  0x16   :  { %94 = vadd.xlane.f32.xlu0 %v93_v6  ;;  %100 = vadd.xlane.f32.xlu1 %v99_v7 }
  0x17   :  { %17514 = vmatpush3.msra.mxu1 %v391_v57  ;;  %17495 = vmatprep.subr.mxu0 %v250_v58 }
  0x18   :  { %17515 = vmatprep.subr.mxu1 %v390_v59  ;;  %17496 = vmatpush3.msra.mxu0 %v250_v58 }
  0x19   :  { %17516 = vmatpush3.msra.mxu1 %v390_v59  ;;  %17497 = vmatprep.subr.mxu0 %v249_v60 }
  0x1a   :  { %103 = vadd.xlane.f32.xlu0 %v102_v10  ;;  %106 = vadd.xlane.f32.xlu1 %v105_v11 }
  0x1b   :  { %17517 = vmatprep.subr.mxu1 %v389_v61  ;;  %17498 = vmatpush3.msra.mxu0 %v249_v60 }
  0x1c   :  { %17518 = vmatpush3.msra.mxu1 %v389_v61  ;;  %17499 = vmatprep.subr.mxu0 %v248_v62  ;;  %v504_v61 = vld [vmem:[%s22253_s30] sm:$0xff] }
  0x1d   :  { %17519 = vmatprep.subr.mxu1 %v388_v63  ;;  %17500 = vmatpush3.msra.mxu0 %v248_v62  ;;  %v22238_v62 = vmov 0.0  }
  0x1e   :  { %109 = vadd.xlane.f32.xlu0 %v108_v14  ;;  %112 = vadd.xlane.f32.xlu1 %v111_v15 }
  0x1f   :  { %17520 = vmatpush3.msra.mxu1 %v388_v63 }
  0x20   :  { %17553 = vmatprep.subr.mxu1 %v22238_v62 }
  0x9b   :  { %v92_v16 = vpop.xlane.xlu0 %91  ;;  %v98_v17 = vpop.xlane.xlu1 %97 }
  0x9c   :  { %v115_v18 = vmul.f32 0.03125, %v92_v16  ;;  %v117_v19 = vmul.f32 0.03125, %v98_v17 }
  0x9e   :  { %v19372_v20 = vsub.f32 %v79_v0, %v115_v18  ;;  %v19374_v21 = vsub.f32 %v81_v1, %v117_v19  ;;  %v19439_v0 = vld [vmem:[%s22253_s30 + $0x18] sm:$0xff] }
  0x9f   :  { %v95_v22 = vpop.xlane.xlu0 %94  ;;  %v101_v23 = vpop.xlane.xlu1 %100  ;;  %17533 = vmatprep.subr.mxu0 %v19439_v0 }
  0xa0   :  { %v116_v24 = vmul.f32 0.03125, %v95_v22  ;;  %v118_v25 = vmul.f32 0.03125, %v101_v23  ;;  %v131_v26 = vmul.f32 %v19372_v20, %v19372_v20  ;;  %v133_v27 = vmul.f32 %v19374_v21, %v19374_v21 }
  0xa2   :  { %v19380_v28 = vsub.f32 %v80_v2, %v116_v24  ;;  %v19382_v29 = vsub.f32 %v82_v5, %v118_v25  ;;  %v139_v30 = vsel %vm89_vm0, %v131_v26, 0.0  ;;  %v145_v33 = vsel %vm89_vm0, %v133_v27, 0.0  ;;  %v16159_v27 = vld [vmem:[%s22254_s9] ss:$0 sm:$0xff]  ;;  %s22256_s9 = sld [smem:[#allocation10_spill]] }
  0xa3   :  { %140 = vadd.xlane.f32.xlu0 %v139_v30  ;;  %v104_v31 = vpop.xlane.xlu0 %103  ;;  %v107_v32 = vpop.xlane.xlu1 %106 }
  0xa4   :  { %v119_v34 = vmul.f32 0.03125, %v104_v31  ;;  %v120_v35 = vmul.f32 0.03125, %v107_v32  ;;  %v132_v36 = vmul.f32 %v19380_v28, %v19380_v28  ;;  %v134_v37 = vmul.f32 %v19382_v29, %v19382_v29  ;;  %v16160_v32 = vld [vmem:[%s22255_s3] ss:$0 sm:$0xff]  ;;  %s22257_s3 = sld [smem:[#allocation11_spill]] }
  0xa6   :  { %v19390_v38 = vsub.f32 %v83_v8, %v119_v34  ;;  %v19392_v39 = vsub.f32 %v84_v9, %v120_v35  ;;  %v142_v40 = vsel %vm89_vm0, %v132_v36, 0.0  ;;  %v148_v43 = vsel %vm89_vm0, %v134_v37, 0.0 }
  0xa7   :  { %146 = vadd.xlane.f32.xlu0 %v145_v33  ;;  %143 = vadd.xlane.f32.xlu1 %v142_v40  ;;  %v110_v41 = vpop.xlane.xlu0 %109  ;;  %v113_v42 = vpop.xlane.xlu1 %112 }
  0xa8   :  { %v121_v44 = vmul.f32 0.03125, %v110_v41  ;;  %v122_v45 = vmul.f32 0.03125, %v113_v42  ;;  %v135_v46 = vmul.f32 %v19390_v38, %v19390_v38  ;;  %v136_v47 = vmul.f32 %v19392_v39, %v19392_v39 }
  0xaa   :  { %v19400_v48 = vsub.f32 %v85_v12, %v121_v44  ;;  %v19402_v49 = vsub.f32 %v86_v13, %v122_v45  ;;  %v151_v50 = vsel %vm89_vm0, %v135_v46, 0.0  ;;  %v154_v51 = vsel %vm89_vm0, %v136_v47, 0.0 }
  0xab   :  { %149 = vadd.xlane.f32.xlu1 %v148_v43  ;;  %152 = vadd.xlane.f32.xlu0 %v151_v50 }
  0xac   :  { %v137_v52 = vmul.f32 %v19400_v48, %v19400_v48  ;;  %v138_v53 = vmul.f32 %v19402_v49, %v19402_v49 }
  0xae   :  { %v157_v54 = vsel %vm89_vm0, %v137_v52, 0.0  ;;  %v160_v55 = vsel %vm89_vm0, %v138_v53, 0.0 }
  0xaf   :  { %155 = vadd.xlane.f32.xlu1 %v154_v51  ;;  %158 = vadd.xlane.f32.xlu0 %v157_v54 }
  0xb3   :  { %161 = vadd.xlane.f32.xlu1 %v160_v55 }
 0x12c   :  { %v141_v1 = vpop.xlane.xlu0 %140 }
 0x12d   :  { %v163_v2 = vmul.f32 0.03125, %v141_v1  ;;  %v19539_v1 = vld [vmem:[%s22256_s9] ss:$0 sm:$0xff] }
 0x12f   :  { %v171_v3 = vadd.f32 1e-12, %v163_v2 }
 0x130   :  { %v144_v4 = vpop.xlane.xlu1 %143  ;;  %v147_v5 = vpop.xlane.xlu0 %146 }
 0x131   :  { %18841 = vrsqrt.f32 %v171_v3  ;;  %v164_v6 = vmul.f32 0.03125, %v144_v4  ;;  %v165_v7 = vmul.f32 0.03125, %v147_v5 }
 0x133   :  { %v172_v8 = vadd.f32 1e-12, %v164_v6  ;;  %v173_v9 = vadd.f32 1e-12, %v165_v7  ;;  %v19545_v7 = vld [vmem:[%s22257_s3] ss:$0 sm:$0xff] }
 0x134   :  { %v150_v10 = vpop.xlane.xlu1 %149  ;;  %v153_v11 = vpop.xlane.xlu0 %152 }
 0x135   :  { %18843 = vrsqrt.f32 %v172_v8  ;;  %v166_v12 = vmul.f32 0.03125, %v150_v10  ;;  %v167_v13 = vmul.f32 0.03125, %v153_v11 }
 0x136   :  { %18845 = vrsqrt.f32 %v173_v9 }
 0x137   :  { %v174_v14 = vadd.f32 1e-12, %v166_v12  ;;  %v175_v15 = vadd.f32 1e-12, %v167_v13 }
 0x138   :  { %v156_v16 = vpop.xlane.xlu1 %155  ;;  %v159_v17 = vpop.xlane.xlu0 %158 }
 0x139   :  { %18847 = vrsqrt.f32 %v174_v14  ;;  %v168_v18 = vmul.f32 0.03125, %v156_v16  ;;  %v169_v19 = vmul.f32 0.03125, %v159_v17 }
 0x13a   :  { %18849 = vrsqrt.f32 %v175_v15 }
 0x13b   :  { %v176_v22 = vadd.f32 1e-12, %v168_v18  ;;  %v177_v23 = vadd.f32 1e-12, %v169_v19 }
 0x13c   :  { %v162_v24 = vpop.xlane.xlu1 %161 }
 0x13d   :  { %18851 = vrsqrt.f32 %v176_v22  ;;  %v170_v25 = vmul.f32 0.03125, %v162_v24 }
 0x13e   :  { %v18842_v26 = vpop.eup %18841  ;;  %18853 = vrsqrt.f32 %v177_v23 }
 0x13f   :  { %v187_v30 = vmul.f32 %v18842_v26, %v19372_v20  ;;  %v178_v31 = vadd.f32 1e-12, %v170_v25 }
 0x141   :  { %v201_v33 = vmul.f32 %v16159_v27, %v187_v30  ;;  %18855 = vrsqrt.f32 %v178_v31 }
 0x142   :  { %v18844_v34 = vpop.eup %18843 }
 0x143   :  { %v18846_v35 = vpop.eup %18845  ;;  %v19449_v36 = vadd.f32 %v16160_v32, %v201_v33  ;;  %v188_v37 = vmul.f32 %v18844_v34, %v19380_v28  ;;  %v19579_v34 = vld [vmem:[%s22258_s28] ss:$0 sm:$0xff] }
 0x144   :  { %v189_v40 = vmul.f32 %v18846_v35, %v19374_v21  ;;  %v506_v21 = vld [vmem:[%s22253_s30 + $0x10] sm:$0xff] }
 0x145   :  { %v202_v41 = vmul.f32 %v16159_v27, %v188_v37  ;;  %17501 = vmatprep.mubr.msk.f32.mxu0 %vm89_vm0, %v19449_v36  ;;  %17521 = vmatprep.mubr.msk.f32.mxu1 %vm89_vm0, %v19449_v36 }
 0x146   :  { %v18848_v20 = vpop.eup %18847  ;;  %v203_v42 = vmul.f32 %v16159_v27, %v189_v40 }
 0x147   :  { %v18850_v43 = vpop.eup %18849  ;;  %v19457_v44 = vadd.f32 %v16160_v32, %v202_v41  ;;  %v190_v45 = vmul.f32 %v18848_v20, %v19382_v29 }
 0x148   :  { %v19460_v46 = vadd.f32 %v16160_v32, %v203_v42  ;;  %v191_v28 = vmul.f32 %v18850_v43, %v19390_v38 }
 0x149   :  { %v204_v47 = vmul.f32 %v16159_v27, %v190_v45  ;;  %17502 = vmatmul.mubr.msk.f32.vlgmr.msra.gmra.mxu0 %vm89_vm0, %v19457_v44  ;;  %17522 = vmatmul.mubr.msk.f32.vlgmr.msra.gmra.mxu1 %vm89_vm0, %v19457_v44 }
 0x14a   :  { %v18852_v50 = vpop.eup %18851  ;;  %v205_v51 = vmul.f32 %v16159_v27, %v191_v28  ;;  %17504 = vmatprep.mubr.msk.f32.mxu0 %vm89_vm0, %v19460_v46  ;;  %17524 = vmatprep.mubr.msk.f32.mxu1 %vm89_vm0, %v19460_v46 }
 0x14b   :  { %v18854_v29 = vpop.eup %18853  ;;  %v19474_v38 = vadd.f32 %v16160_v32, %v204_v47  ;;  %v192_v52 = vmul.f32 %v18852_v50, %v19392_v39  ;;  %17534 = vmatpush3.msra.mxu0 %v19439_v0 }
 0x14c   :  { %v19478_v53 = vadd.f32 %v16160_v32, %v205_v51  ;;  %v193_v54 = vmul.f32 %v18854_v29, %v19400_v48  ;;  %17535 = vmatprep.subr.mxu0 %v506_v21 }
 0x14d   :  { %v206_v55 = vmul.f32 %v16159_v27, %v192_v52  ;;  %17505 = vmatmul.mubr.msk.f32.gmra.mxu0 %vm89_vm0, %v19474_v38  ;;  %17525 = vmatmul.mubr.msk.f32.gmra.mxu1 %vm89_vm0, %v19474_v38 }
 0x14e   :  { %v18856_v57 = vpop.eup %18855  ;;  %v207_v39 = vmul.f32 %v16159_v27, %v193_v54  ;;  %17507 = vmatprep.mubr.msk.f32.mxu0 %vm89_vm0, %v19478_v53  ;;  %17527 = vmatprep.mubr.msk.f32.mxu1 %vm89_vm0, %v19478_v53  ;;  %v1245_v54 = vlaneseq }
 0x14f   :  { %v19492_v48 = vadd.f32 %v16160_v32, %v206_v55  ;;  %v194_v58 = vmul.f32 %v18856_v57, %v19402_v49  ;;  %17536 = vmatpush3.msra.mxu0 %v506_v21  ;;  %v223_v55 = vld [vmem:[%s22215_s1] sm:$0x1] }
 0x150   :  { %v19495_v59 = vadd.f32 %v16160_v32, %v207_v39  ;;  %17537 = vmatprep.subr.mxu0 %v505_v56  ;;  %v1246_v57 = vshrl.u32 %v1245_v54, 7  ;;  %v224_v39 = vld [vmem:[%s22215_s1 + $0x1] sm:$0x1] }
 0x151   :  { %v208_v60 = vmul.f32 %v16159_v27, %v194_v58  ;;  %17508 = vmatmul.mubr.msk.f32.gmra.mxu0 %vm89_vm0, %v19492_v48  ;;  %17528 = vmatmul.mubr.msk.f32.gmra.mxu1 %vm89_vm0, %v19492_v48 }
 0x152   :  { %17510 = vmatprep.mubr.msk.f32.mxu0 %vm89_vm0, %v19495_v59  ;;  %17530 = vmatprep.mubr.msk.f32.mxu1 %vm89_vm0, %v19495_v59 }
 0x153   :  { %v19508_v49 = vadd.f32 %v16160_v32, %v208_v60  ;;  %17538 = vmatpush3.msra.mxu0 %v505_v56  ;;  %v231_v56 = vsub.f32 1.0, %v223_v55  ;;  %v19630_v60 = vsub.s32 0, %v1246_v57 }
 0x154   :  { %17539 = vmatprep.subr.mxu0 %v504_v61 }
 0x155   :  { %17511 = vmatmul.mubr.msk.f32.gmra.mxu0 %vm89_vm0, %v19508_v49  ;;  %17531 = vmatmul.mubr.msk.f32.gmra.mxu1 %vm89_vm0, %v19508_v49  ;;  %v239_v58 = vmul.f32 -10000.0, %v231_v56  ;;  %22259 = vst [vmem:[#allocation3_spill] sm:$0xff] %v19630_v60 }
 0x156   :  { %17541 = vmatprep.mubr.msk.f32.mxu0 %vm89_vm0, %v19449_v36  ;;  %17540 = vmatpush3.msra.mxu0 %v504_v61  ;;  %v232_v61 = vsub.f32 1.0, %v224_v39 }
 0x157   :  { %17573 = vmatprep.subr.mxu0 %v22238_v62  ;;  %17555 = vmatprep.mubr.msk.f32.mxu1 %vm19213_vm1, %v22238_v62 }
 0x159   :  { %17542 = vmatmul.mubr.msk.f32.vlgmr.msra.gmra.mxu0 %vm89_vm0, %v19457_v44 }
 0x15a   :  { %17544 = vmatprep.mubr.msk.f32.mxu0 %vm89_vm0, %v19460_v46 }
 0x15d   :  { %17545 = vmatmul.mubr.msk.f32.gmra.mxu0 %vm89_vm0, %v19474_v38 }
 0x15e   :  { %17547 = vmatprep.mubr.msk.f32.mxu0 %vm89_vm0, %v19478_v53 }
 0x161   :  { %17548 = vmatmul.mubr.msk.f32.gmra.mxu0 %vm89_vm0, %v19492_v48 }
 0x162   :  { %17550 = vmatprep.mubr.msk.f32.mxu0 %vm89_vm0, %v19495_v59 }
 0x165   :  { %17551 = vmatmul.mubr.msk.f32.gmra.mxu0 %vm89_vm0, %v19508_v49 }
 0x166   :  { %17575 = vmatprep.mubr.msk.f32.mxu0 %vm19213_vm1, %v22238_v62 }
 0x209   :  { %v17503_v63 = vpop.f32.mrf.mxu0  ;;  %v17523_v0 = vpop.f32.mrf.mxu1 }
 0x20a   :  { %v471_v11 = vadd.f32 %v17523_v0, %v19539_v1  ;;  %v355_v14 = vadd.f32 %v17503_v63, %v19545_v7  ;;  %v225_v63 = vld [vmem:[%s22215_s1 + $0x2] sm:$0x1]  ;;  %v227_v0 = vld [vmem:[%s22215_s1 + $0x4] sm:$0x1] }
 0x20b   :  { %v349_v2 = vpop.f32.mrf.mxu0  ;;  %v465_v3 = vpop.f32.mrf.mxu1 }
 0x20c   :  { %v466_v4 = vadd.f32 %v19539_v1, %v465_v3  ;;  %v350_v8 = vadd.f32 %v19545_v7, %v349_v2  ;;  %v240_v2 = vmul.f32 -10000.0, %v232_v61  ;;  %v233_v3 = vsub.f32 1.0, %v225_v63 }
 0x20d   :  { %v17506_v5 = vpop.f32.mrf.mxu0  ;;  %v17526_v6 = vpop.f32.mrf.mxu1 }
 0x20e   :  { %17554 = vmatpush3.xpose.msk.msra.mxu1 %vm620_vm2, %v466_v4  ;;  %v481_v27 = vadd.f32 %v17526_v6, %v19539_v1  ;;  %v365_v32 = vadd.f32 %v17506_v5, %v19545_v7  ;;  %v226_v5 = vld [vmem:[%s22215_s1 + $0x3] sm:$0x1] }
 0x20f   :  { %v359_v9 = vpop.f32.mrf.mxu0  ;;  %v475_v10 = vpop.f32.mrf.mxu1  ;;  %17558 = vmatprep.subr.mxu1 %v22238_v62 }
 0x210   :  { %v476_v17 = vadd.f32 %v19539_v1, %v475_v10  ;;  %v360_v23 = vadd.f32 %v19545_v7, %v359_v9 }
 0x211   :  { %v17509_v12 = vpop.f32.mrf.mxu0  ;;  %v17529_v13 = vpop.f32.mrf.mxu1  ;;  %17556 = vmatmul.mubr.msk.f32.vlgmr.msra.gmra.mxu1 %vm620_vm2, %v350_v8  ;;  %v229_v8 = vld [vmem:[%s22215_s1 + $0x6] sm:$0x1] }
 0x212   :  { %17559 = vmatpush3.xpose.msk.msra.mxu1 %vm620_vm2, %v471_v11  ;;  %17560 = vmatprep.mubr.msk.f32.mxu1 %vm19213_vm1, %v22238_v62  ;;  %v491_v37 = vadd.f32 %v17529_v13, %v19539_v1  ;;  %v375_v42 = vadd.f32 %v17509_v12, %v19545_v7  ;;  %v19651_v11 = vrot.slane %v240_v2, %v19630_v60  ;;  %v241_v12 = vmul.f32 -10000.0, %v233_v3 }
 0x213   :  { %v369_v15 = vpop.f32.mrf.mxu0  ;;  %v485_v16 = vpop.f32.mrf.mxu1  ;;  %17563 = vmatprep.subr.mxu1 %v22238_v62  ;;  %v234_v13 = vsub.f32 1.0, %v226_v5 }
 0x214   :  { %v486_v18 = vadd.f32 %v19539_v1, %v485_v16  ;;  %v370_v24 = vadd.f32 %v19545_v7, %v369_v15  ;;  %v228_v15 = vld [vmem:[%s22215_s1 + $0x5] sm:$0x1]  ;;  %v237_v16 = vsub.f32 1.0, %v229_v8 }
 0x215   :  { %v17512_v19 = vpop.f32.mrf.mxu0  ;;  %v17532_v22 = vpop.f32.mrf.mxu1  ;;  %17561 = vmatmul.mubr.msk.f32.vlgmr.msra.gmra.mxu1 %vm620_vm2, %v355_v14 }
 0x216   :  { %17564 = vmatpush3.xpose.msk.msra.mxu1 %vm620_vm2, %v476_v17  ;;  %17574 = vmatpush3.xpose.msk.msra.mxu0 %vm620_vm2, %v486_v18  ;;  %v501_v45 = vadd.f32 %v17532_v22, %v19539_v1  ;;  %v385_v21 = vadd.f32 %v17512_v19, %v19545_v7 }
 0x217   :  { %v379_v25 = vpop.f32.mrf.mxu0  ;;  %v495_v26 = vpop.f32.mrf.mxu1  ;;  %17565 = vmatprep.mubr.msk.f32.mxu1 %vm19213_vm1, %v22238_v62  ;;  %17568 = vmatprep.subr.mxu1 %v22238_v62 }
 0x218   :  { %v496_v30 = vadd.f32 %v19539_v1, %v495_v26  ;;  %17583 = vmatprep.subr.mxu0 %v22238_v62  ;;  %v380_v33 = vadd.f32 %v19545_v7, %v379_v25  ;;  %v19639_v1 = vrot.slane %v239_v58, %v19630_v60  ;;  %v235_v7 = vsub.f32 1.0, %v227_v0 }
 0x219   :  { %v17543_v31 = vpop.f32.mrf.mxu0  ;;  %17566 = vmatmul.mubr.msk.f32.vlgmr.msra.gmra.mxu1 %vm620_vm2, %v360_v23  ;;  %17576 = vmatmul.mubr.msk.f32.vlgmr.msra.gmra.mxu0 %vm620_vm2, %v370_v24  ;;  %v19662_v25 = vrot.slane %v241_v12, %v19630_v60  ;;  %v242_v26 = vmul.f32 -10000.0, %v234_v13 }
 0x21a   :  { %17569 = vmatpush3.xpose.msk.msra.mxu1 %vm620_vm2, %v481_v27  ;;  %17584 = vmatpush3.xpose.msk.msra.mxu0 %vm620_vm2, %v496_v30  ;;  %v587_v51 = vadd.f32 %v17543_v31, %v19579_v34  ;;  %v243_v19 = vmul.f32 -10000.0, %v235_v7  ;;  %v236_v27 = vsub.f32 1.0, %v228_v15 }
 0x21b   :  { %v581_v35 = vpop.f32.mrf.mxu0  ;;  %17570 = vmatprep.mubr.msk.f32.mxu1 %vm19213_vm1, %v22238_v62  ;;  %17585 = vmatprep.mubr.msk.f32.mxu0 %vm19213_vm1, %v22238_v62 }
 0x21c   :  { %v582_v40 = vadd.f32 %v19579_v34, %v581_v35  ;;  %17578 = vmatprep.subr.mxu1 %v22238_v62  ;;  %17593 = vmatprep.subr.mxu0 %v22238_v62 }
 0x21d   :  { %v17546_v41 = vpop.f32.mrf.mxu0  ;;  %17571 = vmatmul.mubr.msk.f32.vlgmr.msra.gmra.mxu1 %vm620_vm2, %v365_v32  ;;  %17586 = vmatmul.mubr.msk.f32.vlgmr.msra.gmra.mxu0 %vm620_vm2, %v380_v33  ;;  %v245_v32 = vmul.f32 -10000.0, %v237_v16  ;;  %v230_v33 = vld [vmem:[%s22215_s1 + $0x7] sm:$0x1] }
 0x21e   :  { %v19592_v20 = vadd.f32 %v17546_v41, %v19579_v34  ;;  %17579 = vmatpush3.xpose.msk.msra.mxu1 %vm620_vm2, %v491_v37  ;;  %17594 = vmatpush3.msra.mxu0 %v582_v40  ;;  %v19669_v41 = vrot.slane %v243_v19, %v19630_v60 }
 0x21f   :  { %v19596_v43 = vpop.f32.mrf.mxu0  ;;  %17580 = vmatprep.mubr.msk.f32.mxu1 %vm19213_vm1, %v22238_v62  ;;  %17588 = vmatprep.subr.mxu1 %v22238_v62  ;;  %v19676_v56 = vrot.slane %v245_v32, %v19630_v60 }
 0x220   :  { %17595 = vmatprep.mubr.msk.f32.mxu0 %vm19213_vm1, %v22238_v62  ;;  %17603 = vmatprep.subr.mxu0 %v22238_v62 }
 0x221   :  { %v17549_v28 = vpop.f32.mrf.mxu0  ;;  %17581 = vmatmul.mubr.msk.f32.vlgmr.msra.gmra.mxu1 %vm620_vm2, %v375_v42 }
 0x222   :  { %v19607_v47 = vadd.f32 %v17549_v28, %v19579_v34  ;;  %17589 = vmatpush3.xpose.msk.msra.mxu1 %vm620_vm2, %v501_v45  ;;  %17590 = vmatprep.mubr.msk.f32.mxu1 %vm19213_vm1, %v22238_v62 }
 0x223   :  { %v19613_v50 = vpop.f32.mrf.mxu0  ;;  %17598 = vmatprep.subr.mxu1 %v22238_v62 }
 0x225   :  { %v17552_v29 = vpop.f32.mrf.mxu0  ;;  %17591 = vmatmul.mubr.msk.f32.vlgmr.msra.gmra.mxu1 %vm620_vm2, %v385_v21  ;;  %v19673_v21 = vrot.slane %v242_v26, %v19630_v60 }
 0x226   :  { %v19619_v52 = vadd.f32 %v17552_v29, %v19579_v34  ;;  %17599 = vmatpush3.msra.mxu1 %v587_v51  ;;  %17600 = vmatprep.mubr.msk.f32.mxu1 %vm19213_vm1, %v22238_v62  ;;  %v244_v51 = vmul.f32 -10000.0, %v236_v27  ;;  %v238_v29 = vsub.f32 1.0, %v230_v33 }
 0x227   :  { %17608 = vmatprep.subr.mxu1 %v22238_v62  ;;  %v19658_v22 = vpop.f32.mrf.mxu0 }
 0x228   :  { %v19682_v3 = vrot.slane %v244_v51, %v19630_v60 }
 0x2d1   :  { %v693_v4 = vpop.f32.mrf.mxu1 }
 0x2d2   :  { %v1229_v6 = vmul.f32 0.35355338, %v693_v4  ;;  %v246_v4 = vmul.f32 -10000.0, %v238_v29 }
 0x2d3   :  { %v17557_v9 = vpop.f32.mrf.mxu1 }
 0x2d4   :  { %v19648_v10 = vadd.f32 %v19639_v1, %v1229_v6 }
 0x2d5   :  { %v769_v14 = vpop.f32.mrf.mxu1 }
 0x2d6   :  { %v1230_v17 = vmul.f32 0.35355338, %v769_v14  ;;  %v1293_v18 = vsel %vm620_vm2, %v19648_v10, -inf  ;;  %v19689_v14 = vrot.slane %v246_v4, %v19630_v60 }
 0x2d7   :  { %1294 = vmax.xlane.f32.xlu0 %v1293_v18  ;;  %v17562_v23 = vpop.f32.mrf.mxu1 }
 0x2d8   :  { %v1286_v24 = vadd.f32 %v19651_v11, %v1230_v17 }
 0x2d9   :  { %v845_v30 = vpop.f32.mrf.mxu1  ;;  %v997_v31 = vpop.f32.mrf.mxu0 }
 0x2da   :  { %v1231_v35 = vmul.f32 0.35355338, %v845_v30  ;;  %v1233_v37 = vmul.f32 0.35355338, %v997_v31  ;;  %v1296_v40 = vsel %vm620_vm2, %v1286_v24, -inf }
 0x2db   :  { %1297 = vmax.xlane.f32.xlu1 %v1296_v40  ;;  %v17567_v42 = vpop.f32.mrf.mxu1  ;;  %v17577_v45 = vpop.f32.mrf.mxu0 }
 0x2dc   :  { %v1287_v28 = vadd.f32 %v19662_v25, %v1231_v35  ;;  %v1289_v61 = vadd.f32 %v19669_v41, %v1233_v37 }
 0x2dd   :  { %v921_v54 = vpop.f32.mrf.mxu1  ;;  %v1149_v55 = vpop.f32.mrf.mxu0 }
 0x2de   :  { %v1232_v57 = vmul.f32 0.35355338, %v921_v54  ;;  %v1235_v39 = vmul.f32 0.35355338, %v1149_v55  ;;  %v1299_v58 = vsel %vm620_vm2, %v1287_v28, -inf  ;;  %v1305_v8 = vsel %vm620_vm2, %v1289_v61, -inf }
 0x2df   :  { %1300 = vmax.xlane.f32.xlu0 %v1299_v58  ;;  %v17572_v63 = vpop.f32.mrf.mxu1  ;;  %v17587_v0 = vpop.f32.mrf.mxu0 }
 0x2e0   :  { %v1288_v2 = vadd.f32 %v19673_v21, %v1232_v57  ;;  %v1291_v9 = vadd.f32 %v19676_v56, %v1235_v39 }
 0x2e1   :  { %v1073_v5 = vpop.f32.mrf.mxu1 }
 0x2e2   :  { %v1234_v6 = vmul.f32 0.35355338, %v1073_v5  ;;  %v1302_v7 = vsel %vm620_vm2, %v1288_v2, -inf  ;;  %v1311_v18 = vsel %vm620_vm2, %v1291_v9, -inf }
 0x2e3   :  { %1303 = vmax.xlane.f32.xlu1 %v1302_v7  ;;  %v17582_v12 = vpop.f32.mrf.mxu1  ;;  %1306 = vmax.xlane.f32.xlu0 %v1305_v8 }
 0x2e4   :  { %v1290_v13 = vadd.f32 %v19682_v3, %v1234_v6 }
 0x2e5   :  { %v1225_v15 = vpop.f32.mrf.mxu1 }
 0x2e6   :  { %v1236_v16 = vmul.f32 0.35355338, %v1225_v15  ;;  %v1308_v17 = vsel %vm620_vm2, %v1290_v13, -inf }
 0x2e7   :  { %1309 = vmax.xlane.f32.xlu1 %v1308_v17  ;;  %v17592_v19 = vpop.f32.mrf.mxu1  ;;  %1312 = vmax.xlane.f32.xlu0 %v1311_v18 }
 0x2e8   :  { %v1292_v23 = vadd.f32 %v19689_v14, %v1236_v16 }
 0x2ea   :  { %v1314_v26 = vsel %vm620_vm2, %v1292_v23, -inf }
 0x2eb   :  { %1315 = vmax.xlane.f32.xlu1 %v1314_v26 }
 0x360   :  { %v1295_v27 = vpop.xlane.xlu0 %1294 }
 0x361   :  { %v1317_v30 = vsub.f32 %v19648_v10, %v1295_v27 }
 0x363   :  { %v1325_v31 = vmul.f32 1.442695, %v1317_v30 }
 0x364   :  { %v1298_v32 = vpop.xlane.xlu1 %1297 }
 0x365   :  { %18857 = vpow2.f32 %v1325_v31  ;;  %v1318_v33 = vsub.f32 %v1286_v24, %v1298_v32 }
 0x367   :  { %v1327_v35 = vmul.f32 1.442695, %v1318_v33 }
 0x368   :  { %v1301_v37 = vpop.xlane.xlu0 %1300 }
 0x369   :  { %18859 = vpow2.f32 %v1327_v35  ;;  %v1319_v40 = vsub.f32 %v1287_v28, %v1301_v37 }
 0x36b   :  { %v1329_v42 = vmul.f32 1.442695, %v1319_v40 }
 0x36c   :  { %v1304_v45 = vpop.xlane.xlu1 %1303  ;;  %v1307_v51 = vpop.xlane.xlu0 %1306 }
 0x36d   :  { %18861 = vpow2.f32 %v1329_v42  ;;  %v1320_v29 = vsub.f32 %v1288_v2, %v1304_v45  ;;  %v1321_v54 = vsub.f32 %v1289_v61, %v1307_v51  ;;  %v592_v42 = vadd.f32 %v19579_v34, %v19596_v43 }
 0x36f   :  { %v1331_v55 = vmul.f32 1.442695, %v1320_v29  ;;  %v1333_v57 = vmul.f32 1.442695, %v1321_v54 }
 0x370   :  { %v1310_v39 = vpop.xlane.xlu1 %1309  ;;  %v1313_v58 = vpop.xlane.xlu0 %1312 }
 0x371   :  { %18863 = vpow2.f32 %v1331_v55  ;;  %v1322_v10 = vsub.f32 %v1290_v13, %v1310_v39  ;;  %v1323_v63 = vsub.f32 %v1291_v9, %v1313_v58  ;;  %v602_v39 = vadd.f32 %v19579_v34, %v19613_v50 }
 0x372   :  { %v18858_v0 = vpop.eup %18857  ;;  %18865 = vpow2.f32 %v1333_v57 }
 0x373   :  { %v1335_v24 = vmul.f32 1.442695, %v1322_v10  ;;  %v1337_v4 = vmul.f32 1.442695, %v1323_v63  ;;  %v1341_v5 = vsel %vm620_vm2, %v18858_v0, 0.0 }
 0x374   :  { %v1316_v28 = vpop.xlane.xlu1 %1315  ;;  %1342 = vadd.xlane.f32.xlu0 %v1341_v5 }
 0x375   :  { %18867 = vpow2.f32 %v1335_v24  ;;  %v1324_v6 = vsub.f32 %v1292_v23, %v1316_v28  ;;  %v16223_v28 = vld [vmem:[%s22251_s7 + $0x30] sm:$0xff] }
 0x376   :  { %v18860_v7 = vpop.eup %18859  ;;  %18869 = vpow2.f32 %v1337_v4 }
 0x377   :  { %v1339_v61 = vmul.f32 1.442695, %v1324_v6  ;;  %v1344_v2 = vsel %vm620_vm2, %v18860_v7, 0.0  ;;  %v16222_v6 = vld [vmem:[%s22251_s7 + $0x28] sm:$0xff] }
 0x378   :  { %1345 = vadd.xlane.f32.xlu1 %v1344_v2  ;;  %v16250_v2 = vld [vmem:[%s22253_s30 + $0x28] sm:$0xff] }
 0x379   :  { %18871 = vpow2.f32 %v1339_v61  ;;  %v16251_v61 = vld [vmem:[%s22253_s30 + $0x30] sm:$0xff] }
 0x37a   :  { %v18862_v8 = vpop.eup %18861 }
 0x37b   :  { %v1347_v9 = vsel %vm620_vm2, %v18862_v8, 0.0 }
 0x37c   :  { %1348 = vadd.xlane.f32.xlu0 %v1347_v9  ;;  %v1965_v9 = vld [vmem:[%s22216_s10] sm:$0xff] }
 0x37e   :  { %v18864_v12 = vpop.eup %18863 }
 0x37f   :  { %v18866_v13 = vpop.eup %18865  ;;  %v1350_v15 = vsel %vm620_vm2, %v18864_v12, 0.0 }
 0x380   :  { %1351 = vadd.xlane.f32.xlu1 %v1350_v15  ;;  %v1353_v16 = vsel %vm620_vm2, %v18866_v13, 0.0 }
 0x381   :  { %1354 = vadd.xlane.f32.xlu0 %v1353_v16 }
 0x382   :  { %v18868_v17 = vpop.eup %18867 }
 0x383   :  { %v18870_v18 = vpop.eup %18869  ;;  %v1356_v19 = vsel %vm620_vm2, %v18868_v17, 0.0 }
 0x384   :  { %1357 = vadd.xlane.f32.xlu1 %v1356_v19  ;;  %v1359_v23 = vsel %vm620_vm2, %v18870_v18, 0.0  ;;  %v16236_v19 = vld [vmem:[%s22252_s0 + $0x28] sm:$0xff] }
 0x385   :  { %1360 = vadd.xlane.f32.xlu0 %v1359_v23 }
 0x386   :  { %v18872_v26 = vpop.eup %18871 }
 0x387   :  { %v1362_v27 = vsel %vm620_vm2, %v18872_v26, 0.0 }
 0x388   :  { %1363 = vadd.xlane.f32.xlu1 %v1362_v27 }
 0x3fd   :  { %v1343_v30 = vpop.xlane.xlu0 %1342 }
 0x3fe   :  { %18873 = vrcp.f32 %v1343_v30 }
 0x401   :  { %v1346_v31 = vpop.xlane.xlu1 %1345 }
 0x402   :  { %18875 = vrcp.f32 %v1346_v31 }
 0x405   :  { %v1349_v32 = vpop.xlane.xlu0 %1348 }
 0x406   :  { %18877 = vrcp.f32 %v1349_v32 }
 0x409   :  { %v1352_v33 = vpop.xlane.xlu1 %1351 }
 0x40a   :  { %18879 = vrcp.f32 %v1352_v33  ;;  %v1355_v35 = vpop.xlane.xlu0 %1354 }
 0x40b   :  { %v18874_v37 = vpop.eup %18873  ;;  %18881 = vrcp.f32 %v1355_v35 }
 0x40c   :  { %v1366_v40 = vmul.f32 %v18874_v37, %v18858_v0  ;;  %v612_v0 = vadd.f32 %v19579_v34, %v19658_v22  ;;  %v16224_v34 = vld [vmem:[%s22251_s7 + $0x38] sm:$0xff] }
 0x40d   :  { %v1358_v45 = vpop.xlane.xlu1 %1357 }
 0x40e   :  { %18883 = vrcp.f32 %v1358_v45  ;;  %v1361_v51 = vpop.xlane.xlu0 %1360  ;;  %17596 = vmatmul.mubr.msk.f32.vlgmr.msra.gmra.mxu0 %vm620_vm2, %v1366_v40 }
 0x40f   :  { %v18876_v29 = vpop.eup %18875  ;;  %18885 = vrcp.f32 %v1361_v51  ;;  %17604 = vmatpush3.msra.mxu0 %v592_v42  ;;  %17605 = vmatprep.mubr.msk.f32.mxu0 %vm19213_vm1, %v22238_v62 }
 0x410   :  { %v1368_v54 = vmul.f32 %v18876_v29, %v18860_v7  ;;  %17613 = vmatprep.subr.mxu0 %v22238_v62  ;;  %v16252_v7 = vld [vmem:[%s22253_s30 + $0x38] sm:$0xff] }
 0x411   :  { %v1364_v55 = vpop.xlane.xlu1 %1363 }
 0x412   :  { %18887 = vrcp.f32 %v1364_v55  ;;  %17601 = vmatmul.mubr.msk.f32.vlgmr.msra.gmra.mxu1 %vm620_vm2, %v1368_v54 }
 0x413   :  { %v18878_v57 = vpop.eup %18877  ;;  %17609 = vmatpush3.msra.mxu1 %v19592_v20  ;;  %17610 = vmatprep.mubr.msk.f32.mxu1 %vm19213_vm1, %v22238_v62 }
 0x414   :  { %v1370_v43 = vmul.f32 %v18878_v57, %v18862_v8  ;;  %17618 = vmatprep.subr.mxu1 %v22238_v62  ;;  %v16249_v8 = vld [vmem:[%s22253_s30 + $0x20] sm:$0xff] }
 0x416   :  { %17606 = vmatmul.mubr.msk.f32.vlgmr.msra.gmra.mxu0 %vm620_vm2, %v1370_v43 }
 0x417   :  { %v18880_v58 = vpop.eup %18879  ;;  %17614 = vmatpush3.msra.mxu0 %v602_v39  ;;  %17615 = vmatprep.mubr.msk.f32.mxu0 %vm19213_vm1, %v22238_v62 }
 0x418   :  { %v18882_v10 = vpop.eup %18881  ;;  %17623 = vmatprep.subr.mxu0 %v22238_v62  ;;  %v1372_v20 = vmul.f32 %v18880_v58, %v18864_v12  ;;  %v16238_v12 = vld [vmem:[%s22252_s0 + $0x38] sm:$0xff] }
 0x419   :  { %v1374_v63 = vmul.f32 %v18882_v10, %v18866_v13 }
 0x41a   :  { %17611 = vmatmul.mubr.msk.f32.vlgmr.msra.gmra.mxu1 %vm620_vm2, %v1372_v20 }
 0x41b   :  { %v18884_v24 = vpop.eup %18883  ;;  %17616 = vmatmul.mubr.msk.f32.vlgmr.msra.gmra.mxu0 %vm620_vm2, %v1374_v63  ;;  %17619 = vmatpush3.msra.mxu1 %v19607_v47 }
 0x41c   :  { %v18886_v50 = vpop.eup %18885  ;;  %17624 = vmatpush3.msra.mxu0 %v612_v0  ;;  %17620 = vmatprep.mubr.msk.f32.mxu1 %vm19213_vm1, %v22238_v62  ;;  %v1376_v4 = vmul.f32 %v18884_v24, %v18868_v17  ;;  %v16237_v17 = vld [vmem:[%s22252_s0 + $0x30] sm:$0xff]  ;;  %v19851_v0 = vld [vmem:[%s22258_s28 + $0x1] ss:$0 sm:$0xff] }
 0x41d   :  { %17625 = vmatprep.mubr.msk.f32.mxu0 %vm19213_vm1, %v22238_v62  ;;  %17628 = vmatprep.subr.mxu1 %v22238_v62  ;;  %v1378_v5 = vmul.f32 %v18886_v50, %v18870_v18 }
 0x41e   :  { %17621 = vmatmul.mubr.msk.f32.vlgmr.msra.gmra.mxu1 %vm620_vm2, %v1376_v4  ;;  %17633 = vmatprep.subr.mxu0 %v1965_v9 }
 0x41f   :  { %v18888_v22 = vpop.eup %18887  ;;  %17626 = vmatmul.mubr.msk.f32.vlgmr.msra.gmra.mxu0 %vm620_vm2, %v1378_v5  ;;  %17629 = vmatpush3.msra.mxu1 %v19619_v52  ;;  %v16221_v52 = vld [vmem:[%s22251_s7 + $0x20] sm:$0xff] }
 0x420   :  { %17630 = vmatprep.mubr.msk.f32.mxu1 %vm19213_vm1, %v22238_v62  ;;  %17647 = vmatprep.subr.mxu1 %v16224_v34  ;;  %v1380_v47 = vmul.f32 %v18888_v22, %v18872_v26  ;;  %v16235_v26 = vld [vmem:[%s22252_s0 + $0x20] sm:$0xff] }
 0x421   :  { %17634 = vmatpush3.msra.mxu0 %v1965_v9 }
 0x422   :  { %17631 = vmatmul.mubr.msk.f32.vlgmr.msra.gmra.mxu1 %vm620_vm2, %v1380_v47  ;;  %17667 = vmatprep.subr.mxu0 %v16238_v12 }
 0x423   :  { %17648 = vmatpush3.msra.mxu1 %v16224_v34  ;;  %17655 = vmatprep.mubr.msk.f32.mxu1 %vm89_vm0, %v19449_v36 }
 0x424   :  { %17649 = vmatprep.subr.mxu1 %v16223_v28 }
 0x425   :  { %17650 = vmatpush3.msra.mxu1 %v16223_v28 }
 0x426   :  { %17651 = vmatprep.subr.mxu1 %v16222_v6 }
 0x427   :  { %17652 = vmatpush3.msra.mxu1 %v16222_v6 }
 0x428   :  { %17653 = vmatprep.subr.mxu1 %v16221_v52 }
 0x429   :  { %17654 = vmatpush3.msra.mxu1 %v16221_v52 }
 0x42a   :  { %17656 = vmatmul.mubr.msk.f32.vlgmr.msra.gmra.mxu1 %vm89_vm0, %v19457_v44  ;;  %17687 = vmatprep.subr.mxu1 %v16252_v7 }
 0x42b   :  { %17658 = vmatprep.mubr.msk.f32.mxu1 %vm89_vm0, %v19460_v46  ;;  %17688 = vmatpush3.msra.mxu1 %v16252_v7 }
 0x42c   :  { %17689 = vmatprep.subr.mxu1 %v16251_v61 }
 0x42d   :  { %17690 = vmatpush3.msra.mxu1 %v16251_v61 }
 0x42e   :  { %17659 = vmatmul.mubr.msk.f32.gmra.mxu1 %vm89_vm0, %v19474_v38  ;;  %17691 = vmatprep.subr.mxu1 %v16250_v2 }
 0x42f   :  { %17661 = vmatprep.mubr.msk.f32.mxu1 %vm89_vm0, %v19478_v53  ;;  %17692 = vmatpush3.msra.mxu1 %v16250_v2 }
 0x430   :  { %17693 = vmatprep.subr.mxu1 %v16249_v8 }
 0x431   :  { %17694 = vmatpush3.msra.mxu1 %v16249_v8 }
 0x432   :  { %17662 = vmatmul.mubr.msk.f32.gmra.mxu1 %vm89_vm0, %v19492_v48  ;;  %17717 = vmatprep.subr.mxu1 %v22238_v62 }
 0x433   :  { %17664 = vmatprep.mubr.msk.f32.mxu1 %vm89_vm0, %v19495_v59 }
 0x436   :  { %17665 = vmatmul.mubr.msk.f32.gmra.mxu1 %vm89_vm0, %v19508_v49 }
 0x437   :  { %17695 = vmatprep.mubr.msk.f32.mxu1 %vm89_vm0, %v19449_v36 }
 0x43a   :  { %17696 = vmatmul.mubr.msk.f32.vlgmr.msra.gmra.mxu1 %vm89_vm0, %v19457_v44 }
 0x43b   :  { %17698 = vmatprep.mubr.msk.f32.mxu1 %vm89_vm0, %v19460_v46 }
 0x43e   :  { %17699 = vmatmul.mubr.msk.f32.gmra.mxu1 %vm89_vm0, %v19474_v38 }
 0x43f   :  { %17701 = vmatprep.mubr.msk.f32.mxu1 %vm89_vm0, %v19478_v53 }
 0x442   :  { %17702 = vmatmul.mubr.msk.f32.gmra.mxu1 %vm89_vm0, %v19492_v48 }
 0x443   :  { %17704 = vmatprep.mubr.msk.f32.mxu1 %vm89_vm0, %v19495_v59 }
 0x446   :  { %17705 = vmatmul.mubr.msk.f32.gmra.mxu1 %vm89_vm0, %v19508_v49 }
 0x447   :  { %17719 = vmatprep.mubr.msk.f32.mxu1 %vm19213_vm1, %v22238_v62 }
 0x4ce   :  { %v1450_v13 = vpop.f32.mrf.mxu0 }
 0x4cf   :  { %17635 = vmatprep.mubr.msk.f32.mxu0 %vm620_vm2, %v1450_v13 }
 0x4d0   :  { %v17597_v15 = vpop.f32.mrf.mxu0 }
 0x4d1   :  { %v16240_v15 = vld [vmem:[%s22256_s9 + $0x1] ss:$0 sm:$0xff] }
 0x4d2   :  { %v1523_v16 = vpop.f32.mrf.mxu1 }
 0x4d3   :  { %17636 = vmatmul.mubr.msk.f32.vlgmr.msra.gmra.mxu0 %vm620_vm2, %v1523_v16 }
 0x4d4   :  { %v17602_v18 = vpop.f32.mrf.mxu1  ;;  %17668 = vmatpush3.msra.mxu0 %v16238_v12 }
 0x4d5   :  { %17669 = vmatprep.subr.mxu0 %v16237_v17 }
 0x4d6   :  { %v1596_v23 = vpop.f32.mrf.mxu0  ;;  %17670 = vmatpush3.msra.mxu0 %v16237_v17 }
 0x4d7   :  { %17638 = vmatprep.mubr.msk.f32.mxu0 %vm620_vm2, %v1596_v23  ;;  %17671 = vmatprep.subr.mxu0 %v16236_v19 }
 0x4d8   :  { %v17607_v27 = vpop.f32.mrf.mxu0  ;;  %17672 = vmatpush3.msra.mxu0 %v16236_v19  ;;  %v16226_v19 = vld [vmem:[%s22257_s3 + $0x1] ss:$0 sm:$0xff] }
 0x4d9   :  { %17673 = vmatprep.subr.mxu0 %v16235_v26 }
 0x4da   :  { %v1669_v30 = vpop.f32.mrf.mxu1  ;;  %17674 = vmatpush3.msra.mxu0 %v16235_v26 }
 0x4db   :  { %v1742_v31 = vpop.f32.mrf.mxu0  ;;  %17639 = vmatmul.mubr.msk.f32.gmra.mxu0 %vm620_vm2, %v1669_v30  ;;  %17707 = vmatprep.subr.mxu0 %v22238_v62 }
 0x4dc   :  { %v17612_v32 = vpop.f32.mrf.mxu1  ;;  %17641 = vmatprep.mubr.msk.f32.mxu0 %vm620_vm2, %v1742_v31 }
 0x4dd   :  { %v17617_v33 = vpop.f32.mrf.mxu0 }
 0x4de   :  { %v1815_v35 = vpop.f32.mrf.mxu1 }
 0x4df   :  { %v1888_v37 = vpop.f32.mrf.mxu0  ;;  %17642 = vmatmul.mubr.msk.f32.gmra.mxu0 %vm620_vm2, %v1815_v35 }
 0x4e0   :  { %v17622_v40 = vpop.f32.mrf.mxu1  ;;  %17644 = vmatprep.mubr.msk.f32.mxu0 %vm620_vm2, %v1888_v37 }
 0x4e1   :  { %v17627_v42 = vpop.f32.mrf.mxu0 }
 0x4e2   :  { %v1961_v45 = vpop.f32.mrf.mxu1 }
 0x4e3   :  { %17645 = vmatmul.mubr.msk.f32.gmra.mxu0 %vm620_vm2, %v1961_v45 }
 0x4e4   :  { %v17632_v51 = vpop.f32.mrf.mxu1  ;;  %17675 = vmatprep.mubr.msk.f32.mxu0 %vm89_vm0, %v19449_v36 }
 0x4e7   :  { %17676 = vmatmul.mubr.msk.f32.vlgmr.msra.gmra.mxu0 %vm89_vm0, %v19457_v44 }
 0x4e8   :  { %17678 = vmatprep.mubr.msk.f32.mxu0 %vm89_vm0, %v19460_v46 }
 0x4ea   :  { %v17657_v29 = vpop.f32.mrf.mxu1 }
 0x4eb   :  { %17679 = vmatmul.mubr.msk.f32.gmra.mxu0 %vm89_vm0, %v19474_v38  ;;  %v2194_v32 = vadd.f32 %v17657_v29, %v16226_v19 }
 0x4ec   :  { %v2188_v54 = vpop.f32.mrf.mxu1  ;;  %17681 = vmatprep.mubr.msk.f32.mxu0 %vm89_vm0, %v19478_v53 }
 0x4ed   :  { %v2189_v23 = vadd.f32 %v16226_v19, %v2188_v54 }
 0x4ee   :  { %v17660_v55 = vpop.f32.mrf.mxu1 }
 0x4ef   :  { %17682 = vmatmul.mubr.msk.f32.gmra.mxu0 %vm89_vm0, %v19492_v48  ;;  %v2204_v45 = vadd.f32 %v17660_v55, %v16226_v19 }
 0x4f0   :  { %v2198_v57 = vpop.f32.mrf.mxu1  ;;  %17684 = vmatprep.mubr.msk.f32.mxu0 %vm89_vm0, %v19495_v59 }
 0x4f1   :  { %v2199_v33 = vadd.f32 %v16226_v19, %v2198_v57 }
 0x4f2   :  { %v19834_v43 = vpop.f32.mrf.mxu1 }
 0x4f3   :  { %17685 = vmatmul.mubr.msk.f32.gmra.mxu0 %vm89_vm0, %v19508_v49  ;;  %v2214_v55 = vadd.f32 %v19834_v43, %v16226_v19 }
 0x4f4   :  { %v2208_v39 = vpop.f32.mrf.mxu1  ;;  %17709 = vmatprep.mubr.msk.f32.mxu0 %vm19213_vm1, %v22238_v62 }
 0x4f5   :  { %v2209_v51 = vadd.f32 %v16226_v19, %v2208_v39 }
 0x4f6   :  { %v19840_v58 = vpop.f32.mrf.mxu1 }
 0x4f7   :  { %v2224_v43 = vadd.f32 %v19840_v58, %v16226_v19 }
 0x4f8   :  { %v19842_v10 = vpop.f32.mrf.mxu1 }
 0x4f9   :  { %v2219_v39 = vadd.f32 %v16226_v19, %v19842_v10 }
 0x4fa   :  { %v19844_v20 = vpop.f32.mrf.mxu1 }
 0x4fb   :  { %v2430_v10 = vadd.f32 %v19844_v20, %v19851_v0 }
 0x4fc   :  { %v19846_v63 = vpop.f32.mrf.mxu1 }
 0x4fe   :  { %v17700_v24 = vpop.f32.mrf.mxu1 }
 0x4ff   :  { %v19854_v50 = vadd.f32 %v17700_v24, %v19851_v0  ;;  %v2425_v24 = vadd.f32 %v19851_v0, %v19846_v63 }
 0x500   :  { %v19856_v4 = vpop.f32.mrf.mxu1 }
 0x502   :  { %v17703_v5 = vpop.f32.mrf.mxu1 }
 0x503   :  { %v19859_v34 = vadd.f32 %v17703_v5, %v19851_v0 }
 0x504   :  { %v19861_v22 = vpop.f32.mrf.mxu1 }
 0x506   :  { %v17706_v47 = vpop.f32.mrf.mxu1 }
 0x507   :  { %v19864_v28 = vadd.f32 %v17706_v47, %v19851_v0 }
 0x508   :  { %v19937_v47 = vpop.f32.mrf.mxu1 }
 0x593   :  { %v19866_v6 = vpop.f32.mrf.mxu0 }
 0x595   :  { %v19868_v52 = vpop.f32.mrf.mxu0 }
 0x59b   :  { %v19870_v7 = vpop.f32.mrf.mxu0 }
 0x59d   :  { %v19872_v61 = vpop.f32.mrf.mxu0 }
 0x59f   :  { %v19874_v2 = vpop.f32.mrf.mxu0 }
 0x5a1   :  { %v19876_v8 = vpop.f32.mrf.mxu0 }
 0x5a3   :  { %v19878_v9 = vpop.f32.mrf.mxu0 }
 0x5a5   :  { %v19880_v12 = vpop.f32.mrf.mxu0 }
 0x5a7   :  { %v17677_v13 = vpop.f32.mrf.mxu0 }
 0x5a8   :  { %v2312_v27 = vadd.f32 %v17677_v13, %v16240_v15 }
 0x5a9   :  { %v2306_v16 = vpop.f32.mrf.mxu0 }
 0x5aa   :  { %v2307_v17 = vadd.f32 %v16240_v15, %v2306_v16 }
 0x5ab   :  { %v17680_v18 = vpop.f32.mrf.mxu0 }
 0x5ac   :  { %17708 = vmatpush3.xpose.msk.msra.mxu0 %vm620_vm2, %v2307_v17  ;;  %v2322_v37 = vadd.f32 %v17680_v18, %v16240_v15 }
 0x5ad   :  { %v2316_v26 = vpop.f32.mrf.mxu0  ;;  %17712 = vmatprep.subr.mxu0 %v22238_v62 }
 0x5ae   :  { %v2317_v30 = vadd.f32 %v16240_v15, %v2316_v26 }
 0x5af   :  { %v17683_v31 = vpop.f32.mrf.mxu0  ;;  %17710 = vmatmul.mubr.msk.f32.vlgmr.msra.gmra.mxu0 %vm620_vm2, %v2189_v23 }
 0x5b0   :  { %17713 = vmatpush3.xpose.msk.msra.mxu0 %vm620_vm2, %v2312_v27  ;;  %17718 = vmatpush3.xpose.msk.msra.mxu1 %vm620_vm2, %v2317_v30  ;;  %v2332_v54 = vadd.f32 %v17683_v31, %v16240_v15 }
 0x5b1   :  { %v2326_v35 = vpop.f32.mrf.mxu0  ;;  %17714 = vmatprep.mubr.msk.f32.mxu0 %vm19213_vm1, %v22238_v62  ;;  %17722 = vmatprep.subr.mxu0 %v22238_v62 }
 0x5b2   :  { %v2327_v40 = vadd.f32 %v16240_v15, %v2326_v35  ;;  %17727 = vmatprep.subr.mxu1 %v22238_v62 }
 0x5b3   :  { %v17686_v42 = vpop.f32.mrf.mxu0  ;;  %17715 = vmatmul.mubr.msk.f32.vlgmr.msra.gmra.mxu0 %vm620_vm2, %v2194_v32  ;;  %17720 = vmatmul.mubr.msk.f32.vlgmr.msra.gmra.mxu1 %vm620_vm2, %v2199_v33 }
 0x5b4   :  { %17723 = vmatpush3.xpose.msk.msra.mxu0 %vm620_vm2, %v2322_v37  ;;  %17728 = vmatpush3.xpose.msk.msra.mxu1 %vm620_vm2, %v2327_v40  ;;  %v2342_v5 = vadd.f32 %v17686_v42, %v16240_v15 }
 0x5b5   :  { %v2336_v29 = vpop.f32.mrf.mxu0  ;;  %17724 = vmatprep.mubr.msk.f32.mxu0 %vm19213_vm1, %v22238_v62  ;;  %17729 = vmatprep.mubr.msk.f32.mxu1 %vm19213_vm1, %v22238_v62 }
 0x5b6   :  { %v2337_v57 = vadd.f32 %v16240_v15, %v2336_v29  ;;  %17732 = vmatprep.subr.mxu0 %v22238_v62  ;;  %17737 = vmatprep.subr.mxu1 %v22238_v62 }
 0x5b7   :  { %17725 = vmatmul.mubr.msk.f32.vlgmr.msra.gmra.mxu0 %vm620_vm2, %v2204_v45  ;;  %17730 = vmatmul.mubr.msk.f32.vlgmr.msra.gmra.mxu1 %vm620_vm2, %v2209_v51 }
 0x5b8   :  { %17733 = vmatpush3.xpose.msk.msra.mxu0 %vm620_vm2, %v2332_v54  ;;  %17738 = vmatpush3.xpose.msk.msra.mxu1 %vm620_vm2, %v2337_v57 }
 0x5b9   :  { %17734 = vmatprep.mubr.msk.f32.mxu0 %vm19213_vm1, %v22238_v62  ;;  %17739 = vmatprep.mubr.msk.f32.mxu1 %vm19213_vm1, %v22238_v62 }
 0x5ba   :  { %17742 = vmatprep.subr.mxu0 %v22238_v62  ;;  %17747 = vmatprep.subr.mxu1 %v22238_v62 }
 0x5bb   :  { %17735 = vmatmul.mubr.msk.f32.vlgmr.msra.gmra.mxu0 %vm620_vm2, %v2214_v55  ;;  %17740 = vmatmul.mubr.msk.f32.vlgmr.msra.gmra.mxu1 %vm620_vm2, %v2219_v39 }
 0x5bc   :  { %17743 = vmatpush3.xpose.msk.msra.mxu0 %vm620_vm2, %v2342_v5  ;;  %17748 = vmatpush3.msra.mxu1 %v2425_v24 }
 0x5bd   :  { %17744 = vmatprep.mubr.msk.f32.mxu0 %vm19213_vm1, %v22238_v62  ;;  %17752 = vmatprep.subr.mxu0 %v22238_v62 }
 0x5be   :  { %17749 = vmatprep.mubr.msk.f32.mxu1 %vm19213_vm1, %v22238_v62  ;;  %17757 = vmatprep.subr.mxu1 %v22238_v62 }
 0x5bf   :  { %17745 = vmatmul.mubr.msk.f32.vlgmr.msra.gmra.mxu0 %vm620_vm2, %v2224_v43 }
 0x5c0   :  { %17753 = vmatpush3.msra.mxu0 %v2430_v10  ;;  %17754 = vmatprep.mubr.msk.f32.mxu0 %vm19213_vm1, %v22238_v62 }
 0x5c1   :  { %17762 = vmatprep.subr.mxu0 %v22238_v62 }
 0x66f   :  { %v2535_v58 = vpop.f32.mrf.mxu0 }
 0x670   :  { %v3071_v63 = vmul.f32 0.35355338, %v2535_v58 }
 0x671   :  { %v17711_v13 = vpop.f32.mrf.mxu0 }
 0x672   :  { %v3079_v20 = vadd.f32 %v3071_v63, %v19639_v1 }
 0x673   :  { %v2611_v15 = vpop.f32.mrf.mxu0  ;;  %v2687_v16 = vpop.f32.mrf.mxu1 }
 0x674   :  { %v3072_v17 = vmul.f32 0.35355338, %v2611_v15  ;;  %v3073_v18 = vmul.f32 0.35355338, %v2687_v16  ;;  %v3087_v19 = vsel %vm620_vm2, %v3079_v20, -inf }
 0x675   :  { %v17721_v23 = vpop.f32.mrf.mxu1  ;;  %3088 = vmax.xlane.f32.xlu0 %v3087_v19  ;;  %v17716_v26 = vpop.f32.mrf.mxu0 }
 0x676   :  { %v3081_v27 = vadd.f32 %v3073_v18, %v19662_v25  ;;  %v3080_v30 = vadd.f32 %v3072_v17, %v19651_v11 }
 0x677   :  { %v2763_v31 = vpop.f32.mrf.mxu0  ;;  %v2839_v32 = vpop.f32.mrf.mxu1 }
 0x678   :  { %v3074_v33 = vmul.f32 0.35355338, %v2763_v31  ;;  %v3075_v35 = vmul.f32 0.35355338, %v2839_v32  ;;  %v3093_v37 = vsel %vm620_vm2, %v3081_v27, -inf  ;;  %v3090_v40 = vsel %vm620_vm2, %v3080_v30, -inf }
 0x679   :  { %v17731_v42 = vpop.f32.mrf.mxu1  ;;  %3094 = vmax.xlane.f32.xlu0 %v3093_v37  ;;  %3091 = vmax.xlane.f32.xlu1 %v3090_v40  ;;  %v17726_v45 = vpop.f32.mrf.mxu0 }
 0x67a   :  { %v3083_v51 = vadd.f32 %v3075_v35, %v19669_v41  ;;  %v3082_v29 = vadd.f32 %v3074_v33, %v19673_v21 }
 0x67b   :  { %v2915_v54 = vpop.f32.mrf.mxu0  ;;  %v2991_v57 = vpop.f32.mrf.mxu1 }
 0x67c   :  { %v3076_v55 = vmul.f32 0.35355338, %v2915_v54  ;;  %v3077_v39 = vmul.f32 0.35355338, %v2991_v57  ;;  %v3099_v24 = vsel %vm620_vm2, %v3083_v51, -inf  ;;  %v3096_v5 = vsel %vm620_vm2, %v3082_v29, -inf }
 0x67d   :  { %v17741_v43 = vpop.f32.mrf.mxu1  ;;  %3100 = vmax.xlane.f32.xlu0 %v3099_v24  ;;  %3097 = vmax.xlane.f32.xlu1 %v3096_v5  ;;  %v17736_v10 = vpop.f32.mrf.mxu0 }
 0x67e   :  { %v3085_v58 = vadd.f32 %v3077_v39, %v19676_v56  ;;  %v3084_v63 = vadd.f32 %v3076_v55, %v19682_v3 }
 0x67f   :  { %v3067_v13 = vpop.f32.mrf.mxu0 }
 0x680   :  { %v3078_v15 = vmul.f32 0.35355338, %v3067_v13  ;;  %v3105_v16 = vsel %vm620_vm2, %v3085_v58, -inf  ;;  %v3102_v17 = vsel %vm620_vm2, %v3084_v63, -inf }
 0x681   :  { %3106 = vmax.xlane.f32.xlu0 %v3105_v16  ;;  %3103 = vmax.xlane.f32.xlu1 %v3102_v17  ;;  %v17746_v18 = vpop.f32.mrf.mxu0 }
 0x682   :  { %v3086_v19 = vadd.f32 %v3078_v15, %v19689_v14 }
 0x684   :  { %v3108_v23 = vsel %vm620_vm2, %v3086_v19, -inf }
 0x685   :  { %3109 = vmax.xlane.f32.xlu1 %v3108_v23 }
 0x6fe   :  { %v3089_v26 = vpop.xlane.xlu0 %3088 }
 0x6ff   :  { %v3111_v31 = vsub.f32 %v3079_v20, %v3089_v26 }
 0x701   :  { %v3119_v32 = vmul.f32 1.442695, %v3111_v31 }
 0x702   :  { %v3095_v33 = vpop.xlane.xlu0 %3094  ;;  %v3092_v35 = vpop.xlane.xlu1 %3091 }
 0x703   :  { %18889 = vpow2.f32 %v3119_v32  ;;  %v3113_v37 = vsub.f32 %v3081_v27, %v3095_v33  ;;  %v3112_v40 = vsub.f32 %v3080_v30, %v3092_v35 }
 0x705   :  { %v3123_v42 = vmul.f32 1.442695, %v3113_v37  ;;  %v3121_v45 = vmul.f32 1.442695, %v3112_v40 }
 0x706   :  { %v3101_v54 = vpop.xlane.xlu0 %3100  ;;  %v3098_v57 = vpop.xlane.xlu1 %3097 }
 0x707   :  { %18891 = vpow2.f32 %v3123_v42  ;;  %v3115_v55 = vsub.f32 %v3083_v51, %v3101_v54  ;;  %v3114_v39 = vsub.f32 %v3082_v29, %v3098_v57 }
 0x708   :  { %18893 = vpow2.f32 %v3121_v45 }
 0x709   :  { %v3127_v24 = vmul.f32 1.442695, %v3115_v55  ;;  %v3125_v5 = vmul.f32 1.442695, %v3114_v39 }
 0x70a   :  { %v3107_v43 = vpop.xlane.xlu0 %3106  ;;  %v3104_v10 = vpop.xlane.xlu1 %3103 }
 0x70b   :  { %18895 = vpow2.f32 %v3127_v24  ;;  %v3117_v20 = vsub.f32 %v3085_v58, %v3107_v43  ;;  %v3116_v13 = vsub.f32 %v3084_v63, %v3104_v10 }
 0x70c   :  { %18897 = vpow2.f32 %v3125_v5 }
 0x70d   :  { %v3131_v15 = vmul.f32 1.442695, %v3117_v20  ;;  %v3129_v16 = vmul.f32 1.442695, %v3116_v13  ;;  %v2435_v13 = vadd.f32 %v19851_v0, %v19856_v4 }
 0x70e   :  { %v3110_v27 = vpop.xlane.xlu1 %3109 }
 0x70f   :  { %18899 = vpow2.f32 %v3131_v15  ;;  %v3118_v30 = vsub.f32 %v3086_v19, %v3110_v27 }
 0x710   :  { %v18890_v17 = vpop.eup %18889  ;;  %18901 = vpow2.f32 %v3129_v16 }
 0x711   :  { %v3133_v18 = vmul.f32 1.442695, %v3118_v30  ;;  %v3135_v51 = vsel %vm620_vm2, %v18890_v17, 0.0 }
 0x712   :  { %3136 = vadd.xlane.f32.xlu0 %v3135_v51 }
 0x713   :  { %18903 = vpow2.f32 %v3133_v18  ;;  %v2445_v18 = vadd.f32 %v19851_v0, %v19861_v22 }
 0x714   :  { %v18892_v29 = vpop.eup %18891 }
 0x715   :  { %v18894_v23 = vpop.eup %18893  ;;  %v3141_v26 = vsel %vm620_vm2, %v18892_v29, 0.0 }
 0x716   :  { %3142 = vadd.xlane.f32.xlu0 %v3141_v26  ;;  %v3138_v58 = vsel %vm620_vm2, %v18894_v23, 0.0 }
 0x717   :  { %3139 = vadd.xlane.f32.xlu1 %v3138_v58  ;;  %v16299_v58 = vld [vmem:[%s22251_s7 + $0x58] sm:$0xff] }
 0x718   :  { %v18896_v63 = vpop.eup %18895 }
 0x719   :  { %v18898_v31 = vpop.eup %18897  ;;  %v3147_v32 = vsel %vm620_vm2, %v18896_v63, 0.0 }
 0x71a   :  { %3148 = vadd.xlane.f32.xlu0 %v3147_v32  ;;  %v3144_v19 = vsel %vm620_vm2, %v18898_v31, 0.0  ;;  %v16297_v32 = vld [vmem:[%s22251_s7 + $0x48] sm:$0xff] }
 0x71b   :  { %3145 = vadd.xlane.f32.xlu1 %v3144_v19  ;;  %v16327_v19 = vld [vmem:[%s22253_s30 + $0x58] sm:$0xff] }
 0x71c   :  { %v18900_v33 = vpop.eup %18899 }
 0x71d   :  { %v18902_v35 = vpop.eup %18901  ;;  %v3153_v37 = vsel %vm620_vm2, %v18900_v33, 0.0 }
 0x71e   :  { %3154 = vadd.xlane.f32.xlu0 %v3153_v37  ;;  %v3150_v40 = vsel %vm620_vm2, %v18902_v35, 0.0  ;;  %v16324_v37 = vld [vmem:[%s22253_s30 + $0x40] sm:$0xff] }
 0x71f   :  { %3151 = vadd.xlane.f32.xlu1 %v3150_v40  ;;  %v16287_v40 = vld [vmem:[%s22216_s10 + $0x8] sm:$0xff] }
 0x720   :  { %v18904_v42 = vpop.eup %18903 }
 0x721   :  { %v3156_v45 = vsel %vm620_vm2, %v18904_v42, 0.0 }
 0x723   :  { %3157 = vadd.xlane.f32.xlu1 %v3156_v45 }
 0x79b   :  { %v3137_v54 = vpop.xlane.xlu0 %3136 }
 0x79c   :  { %18905 = vrcp.f32 %v3137_v54 }
 0x79f   :  { %v3143_v57 = vpop.xlane.xlu0 %3142 }
 0x7a0   :  { %18907 = vrcp.f32 %v3143_v57  ;;  %v3140_v55 = vpop.xlane.xlu1 %3139 }
 0x7a1   :  { %18909 = vrcp.f32 %v3140_v55 }
 0x7a3   :  { %v3149_v39 = vpop.xlane.xlu0 %3148 }
 0x7a4   :  { %18911 = vrcp.f32 %v3149_v39  ;;  %v3146_v24 = vpop.xlane.xlu1 %3145  ;;  %v16312_v39 = vld [vmem:[%s22252_s0 + $0x50] sm:$0xff] }
 0x7a5   :  { %18913 = vrcp.f32 %v3146_v24 }
 0x7a7   :  { %v3155_v5 = vpop.xlane.xlu0 %3154 }
 0x7a8   :  { %18915 = vrcp.f32 %v3155_v5  ;;  %v3152_v43 = vpop.xlane.xlu1 %3151 }
 0x7a9   :  { %v18906_v10 = vpop.eup %18905  ;;  %18917 = vrcp.f32 %v3152_v43  ;;  %v16311_v43 = vld [vmem:[%s22252_s0 + $0x48] sm:$0xff] }
 0x7aa   :  { %v3160_v20 = vmul.f32 %v18906_v10, %v18890_v17 }
 0x7ac   :  { %v3158_v15 = vpop.xlane.xlu1 %3157  ;;  %17750 = vmatmul.mubr.msk.f32.vlgmr.msra.gmra.mxu1 %vm620_vm2, %v3160_v20 }
 0x7ad   :  { %v18908_v16 = vpop.eup %18907  ;;  %18919 = vrcp.f32 %v3158_v15  ;;  %17758 = vmatpush3.msra.mxu1 %v2435_v13  ;;  %17759 = vmatprep.mubr.msk.f32.mxu1 %vm19213_vm1, %v22238_v62  ;;  %v16310_v13 = vld [vmem:[%s22252_s0 + $0x40] sm:$0xff] }
 0x7ae   :  { %v18910_v27 = vpop.eup %18909  ;;  %17767 = vmatprep.subr.mxu1 %v22238_v62  ;;  %v3164_v30 = vmul.f32 %v18908_v16, %v18892_v29  ;;  %v2455_v29 = vadd.f32 %v19851_v0, %v19937_v47 }
 0x7af   :  { %v3162_v17 = vmul.f32 %v18910_v27, %v18894_v23 }
 0x7b0   :  { %17760 = vmatmul.mubr.msk.f32.vlgmr.msra.gmra.mxu1 %vm620_vm2, %v3164_v30 }
 0x7b1   :  { %v18912_v4 = vpop.eup %18911  ;;  %17755 = vmatmul.mubr.msk.f32.vlgmr.msra.gmra.mxu0 %vm620_vm2, %v3162_v17  ;;  %17768 = vmatpush3.msra.mxu1 %v2445_v18 }
 0x7b2   :  { %v18914_v51 = vpop.eup %18913  ;;  %17763 = vmatpush3.msra.mxu0 %v19854_v50  ;;  %17764 = vmatprep.mubr.msk.f32.mxu0 %vm19213_vm1, %v22238_v62  ;;  %v3168_v26 = vmul.f32 %v18912_v4, %v18896_v63 }
 0x7b3   :  { %17769 = vmatprep.mubr.msk.f32.mxu1 %vm19213_vm1, %v22238_v62  ;;  %17772 = vmatprep.subr.mxu0 %v22238_v62  ;;  %v3166_v22 = vmul.f32 %v18914_v51, %v18898_v31  ;;  %v16298_v31 = vld [vmem:[%s22251_s7 + $0x50] sm:$0xff] }
 0x7b4   :  { %17777 = vmatprep.subr.mxu1 %v22238_v62  ;;  %17770 = vmatmul.mubr.msk.f32.vlgmr.msra.gmra.mxu1 %vm620_vm2, %v3168_v26 }
 0x7b5   :  { %v18916_v23 = vpop.eup %18915  ;;  %17765 = vmatmul.mubr.msk.f32.vlgmr.msra.gmra.mxu0 %vm620_vm2, %v3166_v22  ;;  %17778 = vmatpush3.msra.mxu1 %v2455_v29 }
 0x7b6   :  { %v18918_v50 = vpop.eup %18917  ;;  %17773 = vmatpush3.msra.mxu0 %v19859_v34  ;;  %17774 = vmatprep.mubr.msk.f32.mxu0 %vm19213_vm1, %v22238_v62  ;;  %v3172_v0 = vmul.f32 %v18916_v23, %v18900_v33  ;;  %v16326_v33 = vld [vmem:[%s22253_s30 + $0x50] sm:$0xff] }
 0x7b7   :  { %17779 = vmatprep.mubr.msk.f32.mxu1 %vm19213_vm1, %v22238_v62  ;;  %17782 = vmatprep.subr.mxu0 %v22238_v62  ;;  %v3170_v47 = vmul.f32 %v18918_v50, %v18902_v35  ;;  %v16325_v35 = vld [vmem:[%s22253_s30 + $0x48] sm:$0xff] }
 0x7b8   :  { %17780 = vmatmul.mubr.msk.f32.vlgmr.msra.gmra.mxu1 %vm620_vm2, %v3172_v0  ;;  %17787 = vmatprep.subr.mxu1 %v16287_v40 }
 0x7b9   :  { %17775 = vmatmul.mubr.msk.f32.vlgmr.msra.gmra.mxu0 %vm620_vm2, %v3170_v47  ;;  %17788 = vmatpush3.msra.mxu1 %v16287_v40 }
 0x7ba   :  { %v18920_v63 = vpop.eup %18919  ;;  %17783 = vmatpush3.msra.mxu0 %v19864_v28  ;;  %17784 = vmatprep.mubr.msk.f32.mxu0 %vm19213_vm1, %v22238_v62  ;;  %v16296_v28 = vld [vmem:[%s22251_s7 + $0x40] sm:$0xff] }
 0x7bb   :  { %17801 = vmatprep.subr.mxu0 %v16299_v58  ;;  %v3174_v34 = vmul.f32 %v18920_v63, %v18904_v42  ;;  %v16313_v42 = vld [vmem:[%s22252_s0 + $0x58] sm:$0xff] }
 0x7bc   :  { %17821 = vmatprep.subr.mxu1 %v16313_v42 }
 0x7bd   :  { %17785 = vmatmul.mubr.msk.f32.vlgmr.msra.gmra.mxu0 %vm620_vm2, %v3174_v34 }
 0x7be   :  { %17802 = vmatpush3.msra.mxu0 %v16299_v58  ;;  %17809 = vmatprep.mubr.msk.f32.mxu0 %vm89_vm0, %v19449_v36 }
 0x7bf   :  { %17803 = vmatprep.subr.mxu0 %v16298_v31 }
 0x7c0   :  { %17804 = vmatpush3.msra.mxu0 %v16298_v31  ;;  %v20114_v31 = vld [vmem:[%s22258_s28 + $0x2] ss:$0 sm:$0xff] }
 0x7c1   :  { %17805 = vmatprep.subr.mxu0 %v16297_v32 }
 0x7c2   :  { %17806 = vmatpush3.msra.mxu0 %v16297_v32 }
 0x7c3   :  { %17807 = vmatprep.subr.mxu0 %v16296_v28 }
 0x7c4   :  { %17808 = vmatpush3.msra.mxu0 %v16296_v28 }
 0x7c5   :  { %17810 = vmatmul.mubr.msk.f32.vlgmr.msra.gmra.mxu0 %vm89_vm0, %v19457_v44  ;;  %17841 = vmatprep.subr.mxu0 %v16327_v19 }
 0x7c6   :  { %17812 = vmatprep.mubr.msk.f32.mxu0 %vm89_vm0, %v19460_v46  ;;  %17842 = vmatpush3.msra.mxu0 %v16327_v19 }
 0x7c7   :  { %17843 = vmatprep.subr.mxu0 %v16326_v33 }
 0x7c8   :  { %17844 = vmatpush3.msra.mxu0 %v16326_v33 }
 0x7c9   :  { %17813 = vmatmul.mubr.msk.f32.gmra.mxu0 %vm89_vm0, %v19474_v38  ;;  %17845 = vmatprep.subr.mxu0 %v16325_v35 }
 0x7ca   :  { %17815 = vmatprep.mubr.msk.f32.mxu0 %vm89_vm0, %v19478_v53  ;;  %17846 = vmatpush3.msra.mxu0 %v16325_v35 }
 0x7cb   :  { %17847 = vmatprep.subr.mxu0 %v16324_v37 }
 0x7cc   :  { %17848 = vmatpush3.msra.mxu0 %v16324_v37 }
 0x7cd   :  { %17816 = vmatmul.mubr.msk.f32.gmra.mxu0 %vm89_vm0, %v19492_v48  ;;  %17871 = vmatprep.subr.mxu0 %v22238_v62 }
 0x7ce   :  { %17818 = vmatprep.mubr.msk.f32.mxu0 %vm89_vm0, %v19495_v59 }
 0x7d1   :  { %17819 = vmatmul.mubr.msk.f32.gmra.mxu0 %vm89_vm0, %v19508_v49 }
 0x7d2   :  { %17849 = vmatprep.mubr.msk.f32.mxu0 %vm89_vm0, %v19449_v36 }
 0x7d5   :  { %17850 = vmatmul.mubr.msk.f32.vlgmr.msra.gmra.mxu0 %vm89_vm0, %v19457_v44 }
 0x7d6   :  { %17852 = vmatprep.mubr.msk.f32.mxu0 %vm89_vm0, %v19460_v46 }
 0x7d9   :  { %17853 = vmatmul.mubr.msk.f32.gmra.mxu0 %vm89_vm0, %v19474_v38 }
 0x7da   :  { %17855 = vmatprep.mubr.msk.f32.mxu0 %vm89_vm0, %v19478_v53 }
 0x7dd   :  { %17856 = vmatmul.mubr.msk.f32.gmra.mxu0 %vm89_vm0, %v19492_v48 }
 0x7de   :  { %17858 = vmatprep.mubr.msk.f32.mxu0 %vm89_vm0, %v19495_v59 }
 0x7e1   :  { %17859 = vmatmul.mubr.msk.f32.gmra.mxu0 %vm89_vm0, %v19508_v49 }
 0x7e2   :  { %17873 = vmatprep.mubr.msk.f32.mxu0 %vm19213_vm1, %v22238_v62 }
 0x86c   :  { %v3244_v45 = vpop.f32.mrf.mxu1 }
 0x86d   :  { %17789 = vmatprep.mubr.msk.f32.mxu1 %vm620_vm2, %v3244_v45  ;;  %v16220_v45 = vld [vmem:[%s22217_s11] ss:$0 sm:$0xff] }
 0x86e   :  { %v17751_v54 = vpop.f32.mrf.mxu1 }
 0x86f   :  { %v2102_v54 = vadd.f32 %v19866_v6, %v16220_v45  ;;  %v2108_v6 = vadd.f32 %v19878_v9, %v16220_v45 }
 0x870   :  { %v3390_v57 = vpop.f32.mrf.mxu1 }
 0x871   :  { %v3317_v55 = vpop.f32.mrf.mxu0 }
 0x872   :  { %17790 = vmatmul.mubr.msk.f32.vlgmr.msra.gmra.mxu1 %vm620_vm2, %v3317_v55  ;;  %v17761_v24 = vpop.f32.mrf.mxu1 }
 0x873   :  { %v17756_v5 = vpop.f32.mrf.mxu0  ;;  %17792 = vmatprep.mubr.msk.f32.mxu1 %vm620_vm2, %v3390_v57  ;;  %17822 = vmatpush3.msra.mxu1 %v16313_v42  ;;  %v2104_v24 = vadd.f32 %v19870_v7, %v16220_v45 }
 0x874   :  { %v3536_v10 = vpop.f32.mrf.mxu1  ;;  %17823 = vmatprep.subr.mxu1 %v16312_v39 }
 0x875   :  { %v3463_v20 = vpop.f32.mrf.mxu0  ;;  %17824 = vmatpush3.msra.mxu1 %v16312_v39 }
 0x876   :  { %17793 = vmatmul.mubr.msk.f32.gmra.mxu1 %vm620_vm2, %v3463_v20  ;;  %v17771_v15 = vpop.f32.mrf.mxu1  ;;  %17825 = vmatprep.subr.mxu1 %v16311_v43  ;;  %v2106_v20 = vadd.f32 %v19874_v2, %v16220_v45 }
 0x877   :  { %v17766_v16 = vpop.f32.mrf.mxu0  ;;  %17795 = vmatprep.mubr.msk.f32.mxu1 %vm620_vm2, %v3536_v10  ;;  %17826 = vmatpush3.msra.mxu1 %v16311_v43 }
 0x878   :  { %v3682_v27 = vpop.f32.mrf.mxu1  ;;  %17827 = vmatprep.subr.mxu1 %v16310_v13 }
 0x879   :  { %v3609_v30 = vpop.f32.mrf.mxu0  ;;  %17828 = vmatpush3.msra.mxu1 %v16310_v13 }
 0x87a   :  { %17796 = vmatmul.mubr.msk.f32.gmra.mxu1 %vm620_vm2, %v3609_v30  ;;  %v17781_v18 = vpop.f32.mrf.mxu1  ;;  %17861 = vmatprep.subr.mxu1 %v22238_v62 }
 0x87b   :  { %v17776_v17 = vpop.f32.mrf.mxu0  ;;  %17798 = vmatprep.mubr.msk.f32.mxu1 %vm620_vm2, %v3682_v27 }
 0x87c   :  { %v16315_v17 = vld [vmem:[%s22256_s9 + $0x2] ss:$0 sm:$0xff] }
 0x87d   :  { %v3755_v4 = vpop.f32.mrf.mxu0 }
 0x87e   :  { %17799 = vmatmul.mubr.msk.f32.gmra.mxu1 %vm620_vm2, %v3755_v4 }
 0x87f   :  { %v17786_v51 = vpop.f32.mrf.mxu0  ;;  %17829 = vmatprep.mubr.msk.f32.mxu1 %vm89_vm0, %v19449_v36 }
 0x882   :  { %17830 = vmatmul.mubr.msk.f32.vlgmr.msra.gmra.mxu1 %vm89_vm0, %v19457_v44 }
 0x883   :  { %17832 = vmatprep.mubr.msk.f32.mxu1 %vm89_vm0, %v19460_v46 }
 0x885   :  { %v17811_v26 = vpop.f32.mrf.mxu0 }
 0x886   :  { %17833 = vmatmul.mubr.msk.f32.gmra.mxu1 %vm89_vm0, %v19474_v38 }
 0x887   :  { %v3977_v29 = vpop.f32.mrf.mxu0  ;;  %17835 = vmatprep.mubr.msk.f32.mxu1 %vm89_vm0, %v19478_v53 }
 0x889   :  { %v20089_v22 = vpop.f32.mrf.mxu0 }
 0x88a   :  { %17836 = vmatmul.mubr.msk.f32.gmra.mxu1 %vm89_vm0, %v19492_v48 }
 0x88b   :  { %v3987_v23 = vpop.f32.mrf.mxu0  ;;  %17838 = vmatprep.mubr.msk.f32.mxu1 %vm89_vm0, %v19495_v59 }
 0x88d   :  { %v20095_v50 = vpop.f32.mrf.mxu0 }
 0x88e   :  { %17839 = vmatmul.mubr.msk.f32.gmra.mxu1 %vm89_vm0, %v19508_v49 }
 0x88f   :  { %v20099_v0 = vpop.f32.mrf.mxu0  ;;  %17863 = vmatprep.mubr.msk.f32.mxu1 %vm19213_vm1, %v22238_v62 }
 0x891   :  { %v20103_v47 = vpop.f32.mrf.mxu0 }
 0x893   :  { %v20105_v58 = vpop.f32.mrf.mxu0 }
 0x895   :  { %v20107_v63 = vpop.f32.mrf.mxu0 }
 0x897   :  { %v20109_v34 = vpop.f32.mrf.mxu0 }
 0x899   :  { %v17854_v32 = vpop.f32.mrf.mxu0 }
 0x89a   :  { %v20117_v28 = vadd.f32 %v17854_v32, %v20114_v31  ;;  %v16301_v32 = vld [vmem:[%s22257_s3 + $0x2] ss:$0 sm:$0xff] }
 0x89b   :  { %v20119_v19 = vpop.f32.mrf.mxu0  ;;  %v3978_v9 = vadd.f32 %v16301_v32, %v3977_v29 }
 0x89d   :  { %v17857_v33 = vpop.f32.mrf.mxu0 }
 0x89e   :  { %v20122_v35 = vadd.f32 %v17857_v33, %v20114_v31 }
 0x89f   :  { %v20124_v37 = vpop.f32.mrf.mxu0 }
 0x8a1   :  { %v17860_v40 = vpop.f32.mrf.mxu0 }
 0x8a2   :  { %v20127_v42 = vadd.f32 %v17860_v40, %v20114_v31 }
 0x932   :  { %v17791_v57 = vpop.f32.mrf.mxu1 }
 0x933   :  { %v20133_v55 = vadd.f32 %v17791_v57, %v2102_v54  ;;  %v3983_v57 = vadd.f32 %v17811_v26, %v16301_v32  ;;  %v3993_v26 = vadd.f32 %v20089_v22, %v16301_v32  ;;  %v4003_v22 = vadd.f32 %v20095_v50, %v16301_v32 }
 0x934   :  { %v20135_v39 = vpop.f32.mrf.mxu1  ;;  %v4013_v50 = vadd.f32 %v20103_v47, %v16301_v32 }
 0x936   :  { %v17794_v5 = vpop.f32.mrf.mxu1 }
 0x937   :  { %v20138_v43 = vadd.f32 %v17794_v5, %v2104_v24  ;;  %v3988_v24 = vadd.f32 %v16301_v32, %v3987_v23  ;;  %v3998_v23 = vadd.f32 %v16301_v32, %v20099_v0  ;;  %v4008_v0 = vadd.f32 %v16301_v32, %v20105_v58 }
 0x938   :  { %v20140_v10 = vpop.f32.mrf.mxu1  ;;  %v4219_v58 = vadd.f32 %v20107_v63, %v20114_v31 }
 0x93a   :  { %v17797_v13 = vpop.f32.mrf.mxu1 }
 0x93b   :  { %v20143_v15 = vadd.f32 %v17797_v13, %v2106_v20 }
 0x93c   :  { %v20145_v16 = vpop.f32.mrf.mxu1 }
 0x93e   :  { %v17800_v27 = vpop.f32.mrf.mxu1 }
 0x93f   :  { %v20148_v30 = vadd.f32 %v17800_v27, %v2108_v6 }
 0x940   :  { %v20150_v18 = vpop.f32.mrf.mxu1 }
 0x942   :  { %v17831_v7 = vpop.f32.mrf.mxu1 }
 0x943   :  { %v4101_v40 = vadd.f32 %v17831_v7, %v16315_v17 }
 0x944   :  { %v4095_v4 = vpop.f32.mrf.mxu1 }
 0x945   :  { %v4096_v51 = vadd.f32 %v16315_v17, %v4095_v4  ;;  %v4214_v4 = vadd.f32 %v20114_v31, %v20109_v34 }
 0x946   :  { %v17834_v2 = vpop.f32.mrf.mxu1 }
 0x947   :  { %17862 = vmatpush3.xpose.msk.msra.mxu1 %vm620_vm2, %v4096_v51  ;;  %v4111_v29 = vadd.f32 %v17834_v2, %v16315_v17 }
 0x948   :  { %v4105_v33 = vpop.f32.mrf.mxu1  ;;  %17866 = vmatprep.subr.mxu1 %v22238_v62 }
 0x949   :  { %v4106_v45 = vadd.f32 %v16315_v17, %v4105_v33 }
 0x94a   :  { %v17837_v54 = vpop.f32.mrf.mxu1  ;;  %17864 = vmatmul.mubr.msk.f32.vlgmr.msra.gmra.mxu1 %vm620_vm2, %v3978_v9 }
 0x94b   :  { %17867 = vmatpush3.xpose.msk.msra.mxu1 %vm620_vm2, %v4101_v40  ;;  %17872 = vmatpush3.xpose.msk.msra.mxu0 %vm620_vm2, %v4106_v45  ;;  %v4121_v27 = vadd.f32 %v17837_v54, %v16315_v17 }
 0x94c   :  { %v4115_v5 = vpop.f32.mrf.mxu1  ;;  %17868 = vmatprep.mubr.msk.f32.mxu1 %vm19213_vm1, %v22238_v62  ;;  %17876 = vmatprep.subr.mxu1 %v22238_v62 }
 0x94d   :  { %v4116_v20 = vadd.f32 %v16315_v17, %v4115_v5  ;;  %17881 = vmatprep.subr.mxu0 %v22238_v62 }
 0x94e   :  { %v17840_v13 = vpop.f32.mrf.mxu1  ;;  %17869 = vmatmul.mubr.msk.f32.vlgmr.msra.gmra.mxu1 %vm620_vm2, %v3983_v57  ;;  %17874 = vmatmul.mubr.msk.f32.vlgmr.msra.gmra.mxu0 %vm620_vm2, %v3988_v24 }
 0x94f   :  { %17877 = vmatpush3.xpose.msk.msra.mxu1 %vm620_vm2, %v4111_v29  ;;  %17882 = vmatpush3.xpose.msk.msra.mxu0 %vm620_vm2, %v4116_v20  ;;  %v4131_v51 = vadd.f32 %v17840_v13, %v16315_v17 }
 0x950   :  { %v4125_v6 = vpop.f32.mrf.mxu1  ;;  %17878 = vmatprep.mubr.msk.f32.mxu1 %vm19213_vm1, %v22238_v62  ;;  %17883 = vmatprep.mubr.msk.f32.mxu0 %vm19213_vm1, %v22238_v62 }
 0x951   :  { %v4126_v7 = vadd.f32 %v16315_v17, %v4125_v6  ;;  %17886 = vmatprep.subr.mxu1 %v22238_v62  ;;  %17891 = vmatprep.subr.mxu0 %v22238_v62  ;;  %v20209_v17 = vpop.f32.mrf.mxu0 }
 0x952   :  { %17879 = vmatmul.mubr.msk.f32.vlgmr.msra.gmra.mxu1 %vm620_vm2, %v3993_v26  ;;  %17884 = vmatmul.mubr.msk.f32.vlgmr.msra.gmra.mxu0 %vm620_vm2, %v3998_v23 }
 0x953   :  { %17887 = vmatpush3.xpose.msk.msra.mxu1 %vm620_vm2, %v4121_v27  ;;  %17892 = vmatpush3.xpose.msk.msra.mxu0 %vm620_vm2, %v4126_v7 }
 0x954   :  { %17888 = vmatprep.mubr.msk.f32.mxu1 %vm19213_vm1, %v22238_v62  ;;  %17893 = vmatprep.mubr.msk.f32.mxu0 %vm19213_vm1, %v22238_v62 }
 0x955   :  { %17896 = vmatprep.subr.mxu1 %v22238_v62  ;;  %17901 = vmatprep.subr.mxu0 %v22238_v62 }
 0x956   :  { %17889 = vmatmul.mubr.msk.f32.vlgmr.msra.gmra.mxu1 %vm620_vm2, %v4003_v22  ;;  %17894 = vmatmul.mubr.msk.f32.vlgmr.msra.gmra.mxu0 %vm620_vm2, %v4008_v0 }
 0x957   :  { %17897 = vmatpush3.xpose.msk.msra.mxu1 %vm620_vm2, %v4131_v51  ;;  %17902 = vmatpush3.msra.mxu0 %v4214_v4 }
 0x958   :  { %17898 = vmatprep.mubr.msk.f32.mxu1 %vm19213_vm1, %v22238_v62  ;;  %17906 = vmatprep.subr.mxu1 %v22238_v62 }
 0x959   :  { %17903 = vmatprep.mubr.msk.f32.mxu0 %vm19213_vm1, %v22238_v62  ;;  %17911 = vmatprep.subr.mxu0 %v22238_v62 }
 0x95a   :  { %17899 = vmatmul.mubr.msk.f32.vlgmr.msra.gmra.mxu1 %vm620_vm2, %v4013_v50 }
 0x95b   :  { %17907 = vmatpush3.msra.mxu1 %v4219_v58  ;;  %17908 = vmatprep.mubr.msk.f32.mxu1 %vm19213_vm1, %v22238_v62 }
 0x95c   :  { %17916 = vmatprep.subr.mxu1 %v22238_v62 }
 0xa0a   :  { %v4324_v47 = vpop.f32.mrf.mxu1 }
 0xa0b   :  { %v4860_v34 = vmul.f32 0.35355338, %v4324_v47 }
 0xa0c   :  { %v17865_v2 = vpop.f32.mrf.mxu1 }
 0xa0d   :  { %v4868_v63 = vadd.f32 %v4860_v34, %v19639_v1 }
 0xa0e   :  { %v4400_v32 = vpop.f32.mrf.mxu1  ;;  %v4476_v9 = vpop.f32.mrf.mxu0 }
 0xa0f   :  { %v4861_v33 = vmul.f32 0.35355338, %v4400_v32  ;;  %v4862_v40 = vmul.f32 0.35355338, %v4476_v9  ;;  %v4876_v45 = vsel %vm620_vm2, %v4868_v63, -inf }
 0xa10   :  { %v17875_v54 = vpop.f32.mrf.mxu0  ;;  %4877 = vmax.xlane.f32.xlu0 %v4876_v45  ;;  %v17870_v57 = vpop.f32.mrf.mxu1 }
 0xa11   :  { %v4870_v24 = vadd.f32 %v4862_v40, %v19662_v25  ;;  %v4869_v5 = vadd.f32 %v4861_v33, %v19651_v11 }
 0xa12   :  { %v4552_v29 = vpop.f32.mrf.mxu1  ;;  %v4628_v20 = vpop.f32.mrf.mxu0 }
 0xa13   :  { %v4863_v13 = vmul.f32 0.35355338, %v4552_v29  ;;  %v4864_v26 = vmul.f32 0.35355338, %v4628_v20  ;;  %v4882_v23 = vsel %vm620_vm2, %v4870_v24, -inf  ;;  %v4879_v6 = vsel %vm620_vm2, %v4869_v5, -inf }
 0xa14   :  { %v17885_v27 = vpop.f32.mrf.mxu0  ;;  %4883 = vmax.xlane.f32.xlu0 %v4882_v23  ;;  %4880 = vmax.xlane.f32.xlu1 %v4879_v6  ;;  %v17880_v7 = vpop.f32.mrf.mxu1 }
 0xa15   :  { %v4872_v22 = vadd.f32 %v4864_v26, %v19669_v41  ;;  %v4871_v0 = vadd.f32 %v4863_v13, %v19673_v21 }
 0xa16   :  { %v4704_v4 = vpop.f32.mrf.mxu1  ;;  %v4780_v51 = vpop.f32.mrf.mxu0 }
 0xa17   :  { %v4865_v50 = vmul.f32 0.35355338, %v4704_v4  ;;  %v4866_v58 = vmul.f32 0.35355338, %v4780_v51  ;;  %v4888_v47 = vsel %vm620_vm2, %v4872_v22, -inf  ;;  %v4885_v34 = vsel %vm620_vm2, %v4871_v0, -inf }
 0xa18   :  { %v17895_v2 = vpop.f32.mrf.mxu0  ;;  %4889 = vmax.xlane.f32.xlu0 %v4888_v47  ;;  %4886 = vmax.xlane.f32.xlu1 %v4885_v34  ;;  %v17890_v32 = vpop.f32.mrf.mxu1 }
 0xa19   :  { %v4874_v9 = vadd.f32 %v4866_v58, %v19676_v56  ;;  %v4873_v33 = vadd.f32 %v4865_v50, %v19682_v3 }
 0xa1a   :  { %v4856_v40 = vpop.f32.mrf.mxu1 }
 0xa1b   :  { %v4867_v45 = vmul.f32 0.35355338, %v4856_v40  ;;  %v4894_v54 = vsel %vm620_vm2, %v4874_v9, -inf  ;;  %v4891_v57 = vsel %vm620_vm2, %v4873_v33, -inf }
 0xa1c   :  { %4895 = vmax.xlane.f32.xlu0 %v4894_v54  ;;  %4892 = vmax.xlane.f32.xlu1 %v4891_v57  ;;  %v17900_v29 = vpop.f32.mrf.mxu1 }
 0xa1d   :  { %v4875_v20 = vadd.f32 %v4867_v45, %v19689_v14 }
 0xa1f   :  { %v4897_v13 = vsel %vm620_vm2, %v4875_v20, -inf }
 0xa20   :  { %4898 = vmax.xlane.f32.xlu1 %v4897_v13 }
 0xa99   :  { %v4878_v26 = vpop.xlane.xlu0 %4877 }
 0xa9a   :  { %v4900_v23 = vsub.f32 %v4868_v63, %v4878_v26 }
 0xa9c   :  { %v4908_v6 = vmul.f32 1.442695, %v4900_v23 }
 0xa9d   :  { %v4884_v27 = vpop.xlane.xlu0 %4883  ;;  %v4881_v7 = vpop.xlane.xlu1 %4880 }
 0xa9e   :  { %18921 = vpow2.f32 %v4908_v6  ;;  %v4902_v4 = vsub.f32 %v4870_v24, %v4884_v27  ;;  %v4901_v51 = vsub.f32 %v4869_v5, %v4881_v7 }
 0xaa0   :  { %v4912_v50 = vmul.f32 1.442695, %v4902_v4  ;;  %v4910_v58 = vmul.f32 1.442695, %v4901_v51 }
 0xaa1   :  { %v4890_v47 = vpop.xlane.xlu0 %4889  ;;  %v4887_v34 = vpop.xlane.xlu1 %4886 }
 0xaa2   :  { %18923 = vpow2.f32 %v4912_v50  ;;  %v4904_v2 = vsub.f32 %v4872_v22, %v4890_v47  ;;  %v4903_v32 = vsub.f32 %v4871_v0, %v4887_v34 }
 0xaa3   :  { %18925 = vpow2.f32 %v4910_v58 }
 0xaa4   :  { %v4916_v40 = vmul.f32 1.442695, %v4904_v2  ;;  %v4914_v45 = vmul.f32 1.442695, %v4903_v32 }
 0xaa5   :  { %v4896_v54 = vpop.xlane.xlu0 %4895  ;;  %v4893_v57 = vpop.xlane.xlu1 %4892 }
 0xaa6   :  { %18927 = vpow2.f32 %v4916_v40  ;;  %v4906_v63 = vsub.f32 %v4874_v9, %v4896_v54  ;;  %v4905_v29 = vsub.f32 %v4873_v33, %v4893_v57 }
 0xaa7   :  { %18929 = vpow2.f32 %v4914_v45 }
 0xaa8   :  { %v4920_v13 = vmul.f32 1.442695, %v4906_v63  ;;  %v4918_v26 = vmul.f32 1.442695, %v4905_v29 }
 0xaa9   :  { %v4899_v24 = vpop.xlane.xlu1 %4898 }
 0xaaa   :  { %18931 = vpow2.f32 %v4920_v13  ;;  %v4907_v5 = vsub.f32 %v4875_v20, %v4899_v24 }
 0xaab   :  { %v18922_v23 = vpop.eup %18921  ;;  %18933 = vpow2.f32 %v4918_v26 }
 0xaac   :  { %v4922_v6 = vmul.f32 1.442695, %v4907_v5  ;;  %v4924_v22 = vsel %vm620_vm2, %v18922_v23, 0.0  ;;  %v4224_v5 = vadd.f32 %v20114_v31, %v20119_v19 }
 0xaad   :  { %4925 = vadd.xlane.f32.xlu0 %v4924_v22 }
 0xaae   :  { %18935 = vpow2.f32 %v4922_v6 }
 0xaaf   :  { %v18924_v0 = vpop.eup %18923 }
 0xab0   :  { %v18926_v27 = vpop.eup %18925  ;;  %v4930_v7 = vsel %vm620_vm2, %v18924_v0, 0.0 }
 0xab1   :  { %4931 = vadd.xlane.f32.xlu0 %v4930_v7  ;;  %v4927_v9 = vsel %vm620_vm2, %v18926_v27, 0.0 }
 0xab2   :  { %4928 = vadd.xlane.f32.xlu1 %v4927_v9 }
 0xab3   :  { %v18928_v33 = vpop.eup %18927 }
 0xab4   :  { %v18930_v4 = vpop.eup %18929  ;;  %v4936_v51 = vsel %vm620_vm2, %v18928_v33, 0.0 }
 0xab5   :  { %4937 = vadd.xlane.f32.xlu0 %v4936_v51  ;;  %v4933_v20 = vsel %vm620_vm2, %v18930_v4, 0.0  ;;  %v4234_v51 = vadd.f32 %v20114_v31, %v20124_v37 }
 0xab6   :  { %4934 = vadd.xlane.f32.xlu1 %v4933_v20 }
 0xab7   :  { %v18932_v50 = vpop.eup %18931 }
 0xab8   :  { %v18934_v58 = vpop.eup %18933  ;;  %v4942_v47 = vsel %vm620_vm2, %v18932_v50, 0.0 }
 0xab9   :  { %4943 = vadd.xlane.f32.xlu0 %v4942_v47  ;;  %v4939_v34 = vsel %vm620_vm2, %v18934_v58, 0.0 }
 0xaba   :  { %4940 = vadd.xlane.f32.xlu1 %v4939_v34  ;;  %v16402_v34 = vld [vmem:[%s22253_s30 + $0x78] sm:$0xff] }
 0xabb   :  { %v18936_v2 = vpop.eup %18935 }
 0xabc   :  { %v4945_v32 = vsel %vm620_vm2, %v18936_v2, 0.0 }
 0xabe   :  { %4946 = vadd.xlane.f32.xlu1 %v4945_v32  ;;  %v16400_v32 = vld [vmem:[%s22253_s30 + $0x68] sm:$0xff] }
 0xb36   :  { %v4926_v40 = vpop.xlane.xlu0 %4925 }
 0xb37   :  { %18937 = vrcp.f32 %v4926_v40  ;;  %v16399_v40 = vld [vmem:[%s22253_s30 + $0x60] sm:$0xff] }
 0xb3a   :  { %v4932_v45 = vpop.xlane.xlu0 %4931 }
 0xb3b   :  { %18939 = vrcp.f32 %v4932_v45  ;;  %v4929_v54 = vpop.xlane.xlu1 %4928  ;;  %v16362_v45 = vld [vmem:[%s22216_s10 + $0x10] sm:$0xff] }
 0xb3c   :  { %18941 = vrcp.f32 %v4929_v54  ;;  %v16388_v54 = vld [vmem:[%s22252_s0 + $0x78] sm:$0xff] }
 0xb3e   :  { %v4938_v57 = vpop.xlane.xlu0 %4937 }
 0xb3f   :  { %18943 = vrcp.f32 %v4938_v57  ;;  %v4935_v63 = vpop.xlane.xlu1 %4934 }
 0xb40   :  { %18945 = vrcp.f32 %v4935_v63 }
 0xb42   :  { %v4944_v29 = vpop.xlane.xlu0 %4943 }
 0xb43   :  { %18947 = vrcp.f32 %v4944_v29  ;;  %v4941_v13 = vpop.xlane.xlu1 %4940 }
 0xb44   :  { %v18938_v26 = vpop.eup %18937  ;;  %18949 = vrcp.f32 %v4941_v13 }
 0xb45   :  { %v4949_v24 = vmul.f32 %v18938_v26, %v18922_v23  ;;  %v16387_v26 = vld [vmem:[%s22252_s0 + $0x70] sm:$0xff] }
 0xb47   :  { %v4947_v6 = vpop.xlane.xlu1 %4946  ;;  %17904 = vmatmul.mubr.msk.f32.vlgmr.msra.gmra.mxu0 %vm620_vm2, %v4949_v24 }
 0xb48   :  { %v18940_v22 = vpop.eup %18939  ;;  %18951 = vrcp.f32 %v4947_v6  ;;  %17912 = vmatpush3.msra.mxu0 %v4224_v5  ;;  %17913 = vmatprep.mubr.msk.f32.mxu0 %vm19213_vm1, %v22238_v62  ;;  %v16386_v6 = vld [vmem:[%s22252_s0 + $0x68] sm:$0xff] }
 0xb49   :  { %v18942_v7 = vpop.eup %18941  ;;  %17921 = vmatprep.subr.mxu0 %v22238_v62  ;;  %v4953_v9 = vmul.f32 %v18940_v22, %v18924_v0  ;;  %v4244_v0 = vadd.f32 %v20114_v31, %v20209_v17 }
 0xb4a   :  { %v4951_v23 = vmul.f32 %v18942_v7, %v18926_v27 }
 0xb4b   :  { %17914 = vmatmul.mubr.msk.f32.vlgmr.msra.gmra.mxu0 %vm620_vm2, %v4953_v9  ;;  %v16385_v9 = vld [vmem:[%s22252_s0 + $0x60] sm:$0xff] }
 0xb4c   :  { %v18944_v19 = vpop.eup %18943  ;;  %17909 = vmatmul.mubr.msk.f32.vlgmr.msra.gmra.mxu1 %vm620_vm2, %v4951_v23  ;;  %17922 = vmatpush3.msra.mxu0 %v4234_v51 }
 0xb4d   :  { %v18946_v20 = vpop.eup %18945  ;;  %17917 = vmatpush3.msra.mxu1 %v20117_v28  ;;  %17918 = vmatprep.mubr.msk.f32.mxu1 %vm19213_vm1, %v22238_v62  ;;  %v4957_v47 = vmul.f32 %v18944_v19, %v18928_v33  ;;  %v16374_v33 = vld [vmem:[%s22251_s7 + $0x78] sm:$0xff] }
 0xb4e   :  { %17923 = vmatprep.mubr.msk.f32.mxu0 %vm19213_vm1, %v22238_v62  ;;  %17926 = vmatprep.subr.mxu1 %v22238_v62  ;;  %v4955_v37 = vmul.f32 %v18946_v20, %v18930_v4 }
 0xb4f   :  { %17931 = vmatprep.subr.mxu0 %v22238_v62  ;;  %17924 = vmatmul.mubr.msk.f32.vlgmr.msra.gmra.mxu0 %vm620_vm2, %v4957_v47 }
 0xb50   :  { %v18948_v27 = vpop.eup %18947  ;;  %17919 = vmatmul.mubr.msk.f32.vlgmr.msra.gmra.mxu1 %vm620_vm2, %v4955_v37  ;;  %17932 = vmatpush3.msra.mxu0 %v4244_v0 }
 0xb51   :  { %v18950_v28 = vpop.eup %18949  ;;  %17927 = vmatpush3.msra.mxu1 %v20122_v35  ;;  %17928 = vmatprep.mubr.msk.f32.mxu1 %vm19213_vm1, %v22238_v62  ;;  %v4961_v31 = vmul.f32 %v18948_v27, %v18932_v50  ;;  %v16373_v50 = vld [vmem:[%s22251_s7 + $0x70] sm:$0xff] }
 0xb52   :  { %17933 = vmatprep.mubr.msk.f32.mxu0 %vm19213_vm1, %v22238_v62  ;;  %17936 = vmatprep.subr.mxu1 %v22238_v62  ;;  %v4959_v17 = vmul.f32 %v18950_v28, %v18934_v58  ;;  %v16372_v58 = vld [vmem:[%s22251_s7 + $0x68] sm:$0xff] }
 0xb53   :  { %17934 = vmatmul.mubr.msk.f32.vlgmr.msra.gmra.mxu0 %vm620_vm2, %v4961_v31  ;;  %17941 = vmatprep.subr.mxu0 %v16362_v45 }
 0xb54   :  { %17929 = vmatmul.mubr.msk.f32.vlgmr.msra.gmra.mxu1 %vm620_vm2, %v4959_v17  ;;  %17942 = vmatpush3.msra.mxu0 %v16362_v45 }
 0xb55   :  { %v18952_v4 = vpop.eup %18951  ;;  %17937 = vmatpush3.msra.mxu1 %v20127_v42  ;;  %17938 = vmatprep.mubr.msk.f32.mxu1 %vm19213_vm1, %v22238_v62  ;;  %v16371_v42 = vld [vmem:[%s22251_s7 + $0x60] sm:$0xff] }
 0xb56   :  { %17955 = vmatprep.subr.mxu1 %v16374_v33  ;;  %v4963_v35 = vmul.f32 %v18952_v4, %v18936_v2  ;;  %v16401_v2 = vld [vmem:[%s22253_s30 + $0x70] sm:$0xff]  ;;  %17975 = vmatprep.subr.mxu0 %v16388_v54 }
 0xb58   :  { %17939 = vmatmul.mubr.msk.f32.vlgmr.msra.gmra.mxu1 %vm620_vm2, %v4963_v35 }
 0xb59   :  { %17956 = vmatpush3.msra.mxu1 %v16374_v33  ;;  %17963 = vmatprep.mubr.msk.f32.mxu1 %vm89_vm0, %v19449_v36 }
 0xb5a   :  { %17957 = vmatprep.subr.mxu1 %v16373_v50 }
 0xb5b   :  { %17958 = vmatpush3.msra.mxu1 %v16373_v50 }
 0xb5c   :  { %17959 = vmatprep.subr.mxu1 %v16372_v58 }
 0xb5d   :  { %17960 = vmatpush3.msra.mxu1 %v16372_v58 }
 0xb5e   :  { %17961 = vmatprep.subr.mxu1 %v16371_v42 }
 0xb5f   :  { %17962 = vmatpush3.msra.mxu1 %v16371_v42 }
 0xb60   :  { %17964 = vmatmul.mubr.msk.f32.vlgmr.msra.gmra.mxu1 %vm89_vm0, %v19457_v44  ;;  %17995 = vmatprep.subr.mxu1 %v16402_v34 }
 0xb61   :  { %17966 = vmatprep.mubr.msk.f32.mxu1 %vm89_vm0, %v19460_v46  ;;  %17996 = vmatpush3.msra.mxu1 %v16402_v34 }
 0xb62   :  { %17997 = vmatprep.subr.mxu1 %v16401_v2 }
 0xb63   :  { %17998 = vmatpush3.msra.mxu1 %v16401_v2  ;;  %v20382_v2 = vld [vmem:[%s22258_s28 + $0x3] ss:$0 sm:$0xff] }
 0xb64   :  { %17967 = vmatmul.mubr.msk.f32.gmra.mxu1 %vm89_vm0, %v19474_v38  ;;  %17999 = vmatprep.subr.mxu1 %v16400_v32 }
 0xb65   :  { %17969 = vmatprep.mubr.msk.f32.mxu1 %vm89_vm0, %v19478_v53  ;;  %18000 = vmatpush3.msra.mxu1 %v16400_v32 }
 0xb66   :  { %18001 = vmatprep.subr.mxu1 %v16399_v40 }
 0xb67   :  { %18002 = vmatpush3.msra.mxu1 %v16399_v40 }
 0xb68   :  { %17970 = vmatmul.mubr.msk.f32.gmra.mxu1 %vm89_vm0, %v19492_v48  ;;  %18025 = vmatprep.subr.mxu1 %v22238_v62 }
 0xb69   :  { %17972 = vmatprep.mubr.msk.f32.mxu1 %vm89_vm0, %v19495_v59 }
 0xb6c   :  { %17973 = vmatmul.mubr.msk.f32.gmra.mxu1 %vm89_vm0, %v19508_v49 }
 0xb6d   :  { %18003 = vmatprep.mubr.msk.f32.mxu1 %vm89_vm0, %v19449_v36 }
 0xb70   :  { %18004 = vmatmul.mubr.msk.f32.vlgmr.msra.gmra.mxu1 %vm89_vm0, %v19457_v44 }
 0xb71   :  { %18006 = vmatprep.mubr.msk.f32.mxu1 %vm89_vm0, %v19460_v46 }
 0xb74   :  { %18007 = vmatmul.mubr.msk.f32.gmra.mxu1 %vm89_vm0, %v19474_v38 }
 0xb75   :  { %18009 = vmatprep.mubr.msk.f32.mxu1 %vm89_vm0, %v19478_v53 }
 0xb78   :  { %18010 = vmatmul.mubr.msk.f32.gmra.mxu1 %vm89_vm0, %v19492_v48 }
 0xb79   :  { %18012 = vmatprep.mubr.msk.f32.mxu1 %vm89_vm0, %v19495_v59 }
 0xb7c   :  { %18013 = vmatmul.mubr.msk.f32.gmra.mxu1 %vm89_vm0, %v19508_v49 }
 0xb7d   :  { %18027 = vmatprep.mubr.msk.f32.mxu1 %vm19213_vm1, %v22238_v62 }
 0xc07   :  { %v5033_v57 = vpop.f32.mrf.mxu0 }
 0xc08   :  { %17943 = vmatprep.mubr.msk.f32.mxu0 %vm620_vm2, %v5033_v57 }
 0xc09   :  { %v17905_v63 = vpop.f32.mrf.mxu0 }
 0xc0b   :  { %v5179_v29 = vpop.f32.mrf.mxu0 }
 0xc0c   :  { %v5106_v13 = vpop.f32.mrf.mxu1 }
 0xc0d   :  { %17944 = vmatmul.mubr.msk.f32.vlgmr.msra.gmra.mxu0 %vm620_vm2, %v5106_v13  ;;  %v17915_v24 = vpop.f32.mrf.mxu0 }
 0xc0e   :  { %v17910_v5 = vpop.f32.mrf.mxu1  ;;  %17946 = vmatprep.mubr.msk.f32.mxu0 %vm620_vm2, %v5179_v29  ;;  %17976 = vmatpush3.msra.mxu0 %v16388_v54 }
 0xc0f   :  { %v5325_v22 = vpop.f32.mrf.mxu0  ;;  %17977 = vmatprep.subr.mxu0 %v16387_v26 }
 0xc10   :  { %v5252_v7 = vpop.f32.mrf.mxu1  ;;  %17978 = vmatpush3.msra.mxu0 %v16387_v26 }
 0xc11   :  { %17947 = vmatmul.mubr.msk.f32.gmra.mxu0 %vm620_vm2, %v5252_v7  ;;  %v17925_v51 = vpop.f32.mrf.mxu0  ;;  %17979 = vmatprep.subr.mxu0 %v16386_v6 }
 0xc12   :  { %v17920_v23 = vpop.f32.mrf.mxu1  ;;  %17949 = vmatprep.mubr.msk.f32.mxu0 %vm620_vm2, %v5325_v22  ;;  %17980 = vmatpush3.msra.mxu0 %v16386_v6 }
 0xc13   :  { %v5471_v19 = vpop.f32.mrf.mxu0  ;;  %17981 = vmatprep.subr.mxu0 %v16385_v9 }
 0xc14   :  { %v5398_v20 = vpop.f32.mrf.mxu1  ;;  %17982 = vmatpush3.msra.mxu0 %v16385_v9 }
 0xc15   :  { %17950 = vmatmul.mubr.msk.f32.gmra.mxu0 %vm620_vm2, %v5398_v20  ;;  %v17935_v47 = vpop.f32.mrf.mxu0  ;;  %18015 = vmatprep.subr.mxu0 %v22238_v62 }
 0xc16   :  { %v17930_v0 = vpop.f32.mrf.mxu1  ;;  %17952 = vmatprep.mubr.msk.f32.mxu0 %vm620_vm2, %v5471_v19 }
 0xc18   :  { %v5544_v37 = vpop.f32.mrf.mxu1 }
 0xc19   :  { %17953 = vmatmul.mubr.msk.f32.gmra.mxu0 %vm620_vm2, %v5544_v37 }
 0xc1a   :  { %v17940_v27 = vpop.f32.mrf.mxu1  ;;  %17983 = vmatprep.mubr.msk.f32.mxu0 %vm89_vm0, %v19449_v36 }
 0xc1d   :  { %17984 = vmatmul.mubr.msk.f32.vlgmr.msra.gmra.mxu0 %vm89_vm0, %v19457_v44 }
 0xc1e   :  { %17986 = vmatprep.mubr.msk.f32.mxu0 %vm89_vm0, %v19460_v46 }
 0xc20   :  { %v17965_v28 = vpop.f32.mrf.mxu1 }
 0xc21   :  { %17987 = vmatmul.mubr.msk.f32.gmra.mxu0 %vm89_vm0, %v19474_v38 }
 0xc22   :  { %v5766_v31 = vpop.f32.mrf.mxu1  ;;  %17989 = vmatprep.mubr.msk.f32.mxu0 %vm89_vm0, %v19478_v53 }
 0xc24   :  { %v17968_v17 = vpop.f32.mrf.mxu1 }
 0xc25   :  { %17990 = vmatmul.mubr.msk.f32.gmra.mxu0 %vm89_vm0, %v19492_v48 }
 0xc26   :  { %v5776_v33 = vpop.f32.mrf.mxu1  ;;  %17992 = vmatprep.mubr.msk.f32.mxu0 %vm89_vm0, %v19495_v59 }
 0xc28   :  { %v20365_v4 = vpop.f32.mrf.mxu1 }
 0xc29   :  { %17993 = vmatmul.mubr.msk.f32.gmra.mxu0 %vm89_vm0, %v19508_v49 }
 0xc2a   :  { %v5786_v35 = vpop.f32.mrf.mxu1  ;;  %18017 = vmatprep.mubr.msk.f32.mxu0 %vm19213_vm1, %v22238_v62 }
 0xc2c   :  { %v20371_v50 = vpop.f32.mrf.mxu1 }
 0xc2e   :  { %v20373_v58 = vpop.f32.mrf.mxu1 }
 0xc30   :  { %v20375_v42 = vpop.f32.mrf.mxu1 }
 0xc32   :  { %v20377_v34 = vpop.f32.mrf.mxu1 }
 0xc34   :  { %v18008_v32 = vpop.f32.mrf.mxu1 }
 0xc35   :  { %v20385_v40 = vadd.f32 %v18008_v32, %v20382_v2 }
 0xc36   :  { %v20387_v45 = vpop.f32.mrf.mxu1 }
 0xc38   :  { %v18011_v54 = vpop.f32.mrf.mxu1 }
 0xc39   :  { %v20390_v57 = vadd.f32 %v18011_v54, %v20382_v2 }
 0xc3a   :  { %v20392_v63 = vpop.f32.mrf.mxu1 }
 0xc3c   :  { %v18014_v29 = vpop.f32.mrf.mxu1 }
 0xc3d   :  { %v20395_v13 = vadd.f32 %v18014_v29, %v20382_v2 }
 0xccd   :  { %v17945_v26 = vpop.f32.mrf.mxu0 }
 0xcce   :  { %v20398_v24 = vadd.f32 %v17945_v26, %v20133_v55 }
 0xccf   :  { %v20400_v5 = vpop.f32.mrf.mxu0 }
 0xcd1   :  { %v17948_v6 = vpop.f32.mrf.mxu0 }
 0xcd2   :  { %v20403_v22 = vadd.f32 %v17948_v6, %v20138_v43  ;;  %v16390_v43 = vld [vmem:[%s22256_s9 + $0x3] ss:$0 sm:$0xff] }
 0xcd3   :  { %v20405_v7 = vpop.f32.mrf.mxu0 }
 0xcd5   :  { %v17951_v9 = vpop.f32.mrf.mxu0 }
 0xcd6   :  { %v20408_v51 = vadd.f32 %v17951_v9, %v20143_v15  ;;  %v16376_v15 = vld [vmem:[%s22257_s3 + $0x3] ss:$0 sm:$0xff] }
 0xcd7   :  { %v20410_v23 = vpop.f32.mrf.mxu0  ;;  %v5767_v32 = vadd.f32 %v16376_v15, %v5766_v31  ;;  %v5772_v6 = vadd.f32 %v17965_v28, %v16376_v15  ;;  %v5777_v9 = vadd.f32 %v16376_v15, %v5776_v33  ;;  %v5782_v28 = vadd.f32 %v17968_v17, %v16376_v15 }
 0xcd8   :  { %v5787_v33 = vadd.f32 %v16376_v15, %v5786_v35  ;;  %v5792_v17 = vadd.f32 %v20365_v4, %v16376_v15  ;;  %v5797_v35 = vadd.f32 %v16376_v15, %v20373_v58  ;;  %v5802_v4 = vadd.f32 %v20371_v50, %v16376_v15 }
 0xcd9   :  { %v17954_v19 = vpop.f32.mrf.mxu0  ;;  %v6008_v58 = vadd.f32 %v20375_v42, %v20382_v2 }
 0xcda   :  { %v20413_v20 = vadd.f32 %v17954_v19, %v20148_v30 }
 0xcdb   :  { %v20415_v55 = vpop.f32.mrf.mxu0 }
 0xcdd   :  { %v17985_v47 = vpop.f32.mrf.mxu0 }
 0xcde   :  { %v5890_v30 = vadd.f32 %v17985_v47, %v16390_v43 }
 0xcdf   :  { %v5884_v0 = vpop.f32.mrf.mxu0 }
 0xce0   :  { %v5885_v37 = vadd.f32 %v16390_v43, %v5884_v0 }
 0xce1   :  { %v17988_v27 = vpop.f32.mrf.mxu0 }
 0xce2   :  { %18016 = vmatpush3.xpose.msk.msra.mxu0 %vm620_vm2, %v5885_v37  ;;  %v5900_v31 = vadd.f32 %v17988_v27, %v16390_v43 }
 0xce3   :  { %v5894_v54 = vpop.f32.mrf.mxu0  ;;  %18020 = vmatprep.subr.mxu0 %v22238_v62 }
 0xce4   :  { %v5895_v29 = vadd.f32 %v16390_v43, %v5894_v54  ;;  %v6003_v54 = vadd.f32 %v20382_v2, %v20377_v34 }
 0xce5   :  { %v17991_v26 = vpop.f32.mrf.mxu0  ;;  %18018 = vmatmul.mubr.msk.f32.vlgmr.msra.gmra.mxu0 %vm620_vm2, %v5767_v32 }
 0xce6   :  { %18021 = vmatpush3.xpose.msk.msra.mxu0 %vm620_vm2, %v5890_v30  ;;  %18026 = vmatpush3.xpose.msk.msra.mxu1 %vm620_vm2, %v5895_v29  ;;  %v5910_v27 = vadd.f32 %v17991_v26, %v16390_v43 }
 0xce7   :  { %v5904_v19 = vpop.f32.mrf.mxu0  ;;  %18022 = vmatprep.mubr.msk.f32.mxu0 %vm19213_vm1, %v22238_v62  ;;  %18030 = vmatprep.subr.mxu0 %v22238_v62 }
 0xce8   :  { %v5905_v0 = vadd.f32 %v16390_v43, %v5904_v19  ;;  %18035 = vmatprep.subr.mxu1 %v22238_v62 }
 0xce9   :  { %v17994_v47 = vpop.f32.mrf.mxu0  ;;  %18023 = vmatmul.mubr.msk.f32.vlgmr.msra.gmra.mxu0 %vm620_vm2, %v5772_v6  ;;  %18028 = vmatmul.mubr.msk.f32.vlgmr.msra.gmra.mxu1 %vm620_vm2, %v5777_v9 }
 0xcea   :  { %18031 = vmatpush3.xpose.msk.msra.mxu0 %vm620_vm2, %v5900_v31  ;;  %18036 = vmatpush3.xpose.msk.msra.mxu1 %vm620_vm2, %v5905_v0  ;;  %v5920_v30 = vadd.f32 %v17994_v47, %v16390_v43 }
 0xceb   :  { %v5914_v37 = vpop.f32.mrf.mxu0  ;;  %18032 = vmatprep.mubr.msk.f32.mxu0 %vm19213_vm1, %v22238_v62  ;;  %18037 = vmatprep.mubr.msk.f32.mxu1 %vm19213_vm1, %v22238_v62 }
 0xcec   :  { %v5915_v32 = vadd.f32 %v16390_v43, %v5914_v37  ;;  %18040 = vmatprep.subr.mxu0 %v22238_v62  ;;  %18045 = vmatprep.subr.mxu1 %v22238_v62  ;;  %v20472_v43 = vpop.f32.mrf.mxu1 }
 0xced   :  { %18033 = vmatmul.mubr.msk.f32.vlgmr.msra.gmra.mxu0 %vm620_vm2, %v5782_v28  ;;  %18038 = vmatmul.mubr.msk.f32.vlgmr.msra.gmra.mxu1 %vm620_vm2, %v5787_v33 }
 0xcee   :  { %18041 = vmatpush3.xpose.msk.msra.mxu0 %vm620_vm2, %v5910_v27  ;;  %18046 = vmatpush3.xpose.msk.msra.mxu1 %vm620_vm2, %v5915_v32 }
 0xcef   :  { %18042 = vmatprep.mubr.msk.f32.mxu0 %vm19213_vm1, %v22238_v62  ;;  %18047 = vmatprep.mubr.msk.f32.mxu1 %vm19213_vm1, %v22238_v62 }
 0xcf0   :  { %18050 = vmatprep.subr.mxu0 %v22238_v62  ;;  %18055 = vmatprep.subr.mxu1 %v22238_v62 }
 0xcf1   :  { %18043 = vmatmul.mubr.msk.f32.vlgmr.msra.gmra.mxu0 %vm620_vm2, %v5792_v17  ;;  %18048 = vmatmul.mubr.msk.f32.vlgmr.msra.gmra.mxu1 %vm620_vm2, %v5797_v35 }
 0xcf2   :  { %18051 = vmatpush3.xpose.msk.msra.mxu0 %vm620_vm2, %v5920_v30  ;;  %18056 = vmatpush3.msra.mxu1 %v6003_v54 }
 0xcf3   :  { %18052 = vmatprep.mubr.msk.f32.mxu0 %vm19213_vm1, %v22238_v62  ;;  %18060 = vmatprep.subr.mxu0 %v22238_v62 }
 0xcf4   :  { %18057 = vmatprep.mubr.msk.f32.mxu1 %vm19213_vm1, %v22238_v62  ;;  %18065 = vmatprep.subr.mxu1 %v22238_v62 }
 0xcf5   :  { %18053 = vmatmul.mubr.msk.f32.vlgmr.msra.gmra.mxu0 %vm620_vm2, %v5802_v4 }
 0xcf6   :  { %18061 = vmatpush3.msra.mxu0 %v6008_v58  ;;  %18062 = vmatprep.mubr.msk.f32.mxu0 %vm19213_vm1, %v22238_v62 }
 0xcf7   :  { %18070 = vmatprep.subr.mxu0 %v22238_v62 }
 0xda5   :  { %v6113_v50 = vpop.f32.mrf.mxu0 }
 0xda6   :  { %v6649_v34 = vmul.f32 0.35355338, %v6113_v50 }
 0xda7   :  { %v18019_v15 = vpop.f32.mrf.mxu0 }
 0xda8   :  { %v6657_v42 = vadd.f32 %v6649_v34, %v19639_v1 }
 0xda9   :  { %v6189_v29 = vpop.f32.mrf.mxu0  ;;  %v6265_v26 = vpop.f32.mrf.mxu1 }
 0xdaa   :  { %v6650_v6 = vmul.f32 0.35355338, %v6189_v29  ;;  %v6651_v9 = vmul.f32 0.35355338, %v6265_v26  ;;  %v6665_v19 = vsel %vm620_vm2, %v6657_v42, -inf }
 0xdab   :  { %v18029_v31 = vpop.f32.mrf.mxu1  ;;  %6666 = vmax.xlane.f32.xlu0 %v6665_v19  ;;  %v18024_v0 = vpop.f32.mrf.mxu0 }
 0xdac   :  { %v6659_v47 = vadd.f32 %v6651_v9, %v19662_v25  ;;  %v6658_v28 = vadd.f32 %v6650_v6, %v19651_v11 }
 0xdad   :  { %v6341_v33 = vpop.f32.mrf.mxu0  ;;  %v6417_v37 = vpop.f32.mrf.mxu1 }
 0xdae   :  { %v6652_v27 = vmul.f32 0.35355338, %v6341_v33  ;;  %v6653_v32 = vmul.f32 0.35355338, %v6417_v37  ;;  %v6671_v17 = vsel %vm620_vm2, %v6659_v47, -inf  ;;  %v6668_v35 = vsel %vm620_vm2, %v6658_v28, -inf }
 0xdaf   :  { %v18039_v54 = vpop.f32.mrf.mxu1  ;;  %6672 = vmax.xlane.f32.xlu0 %v6671_v17  ;;  %6669 = vmax.xlane.f32.xlu1 %v6668_v35  ;;  %v18034_v30 = vpop.f32.mrf.mxu0 }
 0xdb0   :  { %v6661_v4 = vadd.f32 %v6653_v32, %v19669_v41  ;;  %v6660_v58 = vadd.f32 %v6652_v27, %v19673_v21 }
 0xdb1   :  { %v6493_v50 = vpop.f32.mrf.mxu0  ;;  %v6569_v34 = vpop.f32.mrf.mxu1 }
 0xdb2   :  { %v6654_v15 = vmul.f32 0.35355338, %v6493_v50  ;;  %v6655_v29 = vmul.f32 0.35355338, %v6569_v34  ;;  %v6677_v26 = vsel %vm620_vm2, %v6661_v4, -inf  ;;  %v6674_v6 = vsel %vm620_vm2, %v6660_v58, -inf }
 0xdb3   :  { %v18049_v9 = vpop.f32.mrf.mxu1  ;;  %6678 = vmax.xlane.f32.xlu0 %v6677_v26  ;;  %6675 = vmax.xlane.f32.xlu1 %v6674_v6  ;;  %v18044_v19 = vpop.f32.mrf.mxu0 }
 0xdb4   :  { %v6663_v31 = vadd.f32 %v6655_v29, %v19676_v56  ;;  %v6662_v0 = vadd.f32 %v6654_v15, %v19682_v3 }
 0xdb5   :  { %v6645_v33 = vpop.f32.mrf.mxu0 }
 0xdb6   :  { %v6656_v37 = vmul.f32 0.35355338, %v6645_v33  ;;  %v6683_v27 = vsel %vm620_vm2, %v6663_v31, -inf  ;;  %v6680_v32 = vsel %vm620_vm2, %v6662_v0, -inf }
 0xdb7   :  { %6684 = vmax.xlane.f32.xlu0 %v6683_v27  ;;  %6681 = vmax.xlane.f32.xlu1 %v6680_v32  ;;  %v18054_v17 = vpop.f32.mrf.mxu0 }
 0xdb8   :  { %v6664_v35 = vadd.f32 %v6656_v37, %v19689_v14 }
 0xdba   :  { %v6686_v54 = vsel %vm620_vm2, %v6664_v35, -inf }
 0xdbb   :  { %6687 = vmax.xlane.f32.xlu1 %v6686_v54 }
 0xe34   :  { %v6667_v30 = vpop.xlane.xlu0 %6666 }
 0xe35   :  { %v6689_v50 = vsub.f32 %v6657_v42, %v6667_v30 }
 0xe37   :  { %v6697_v34 = vmul.f32 1.442695, %v6689_v50 }
 0xe38   :  { %v6673_v29 = vpop.xlane.xlu0 %6672  ;;  %v6670_v26 = vpop.xlane.xlu1 %6669 }
 0xe39   :  { %18953 = vpow2.f32 %v6697_v34  ;;  %v6691_v15 = vsub.f32 %v6659_v47, %v6673_v29  ;;  %v6690_v6 = vsub.f32 %v6658_v28, %v6670_v26 }
 0xe3b   :  { %v6701_v9 = vmul.f32 1.442695, %v6691_v15  ;;  %v6699_v19 = vmul.f32 1.442695, %v6690_v6 }
 0xe3c   :  { %v6679_v33 = vpop.xlane.xlu0 %6678  ;;  %v6676_v62 = vpop.xlane.xlu1 %6675 }
 0xe3d   :  { %18955 = vpow2.f32 %v6701_v9  ;;  %v6693_v27 = vsub.f32 %v6661_v4, %v6679_v33  ;;  %v6692_v32 = vsub.f32 %v6660_v58, %v6676_v62 }
 0xe3e   :  { %18957 = vpow2.f32 %v6699_v19 }
 0xe3f   :  { %v6705_v37 = vmul.f32 1.442695, %v6693_v27  ;;  %v6703_v17 = vmul.f32 1.442695, %v6692_v32 }
 0xe40   :  { %v6685_v60 = vpop.xlane.xlu0 %6684  ;;  %v6682_v54 = vpop.xlane.xlu1 %6681 }
 0xe41   :  { %18959 = vpow2.f32 %v6705_v37  ;;  %v6695_v42 = vsub.f32 %v6663_v31, %v6685_v60  ;;  %v6694_v30 = vsub.f32 %v6662_v0, %v6682_v54 }
 0xe42   :  { %18961 = vpow2.f32 %v6703_v17 }
 0xe43   :  { %v6709_v50 = vmul.f32 1.442695, %v6695_v42  ;;  %v6707_v34 = vmul.f32 1.442695, %v6694_v30 }
 0xe44   :  { %v6688_v47 = vpop.xlane.xlu1 %6687 }
 0xe45   :  { %18963 = vpow2.f32 %v6709_v50  ;;  %v6696_v28 = vsub.f32 %v6664_v35, %v6688_v47 }
 0xe46   :  { %v18954_v29 = vpop.eup %18953  ;;  %18965 = vpow2.f32 %v6707_v34 }
 0xe47   :  { %v6711_v26 = vmul.f32 1.442695, %v6696_v28  ;;  %v6713_v4 = vsel %vm620_vm2, %v18954_v29, 0.0 }
 0xe48   :  { %6714 = vadd.xlane.f32.xlu0 %v6713_v4  ;;  %v6013_v4 = vadd.f32 %v20382_v2, %v20387_v45 }
 0xe49   :  { %18967 = vpow2.f32 %v6711_v26 }
 0xe4a   :  { %v18956_v62 = vpop.eup %18955 }
 0xe4b   :  { %v18958_v58 = vpop.eup %18957  ;;  %v6719_v15 = vsel %vm620_vm2, %v18956_v62, 0.0 }
 0xe4c   :  { %6720 = vadd.xlane.f32.xlu0 %v6719_v15  ;;  %v6716_v60 = vsel %vm620_vm2, %v18958_v58, 0.0 }
 0xe4d   :  { %6717 = vadd.xlane.f32.xlu1 %v6716_v60 }
 0xe4e   :  { %v18960_v31 = vpop.eup %18959 }
 0xe4f   :  { %v18962_v0 = vpop.eup %18961  ;;  %v6725_v6 = vsel %vm620_vm2, %v18960_v31, 0.0 }
 0xe50   :  { %6726 = vadd.xlane.f32.xlu0 %v6725_v6  ;;  %v6722_v35 = vsel %vm620_vm2, %v18962_v0, 0.0  ;;  %v22260_v6 = vmov 0.0  }
 0xe51   :  { %6723 = vadd.xlane.f32.xlu1 %v6722_v35 }
 0xe52   :  { %v18964_v9 = vpop.eup %18963 }
 0xe53   :  { %v18966_v19 = vpop.eup %18965  ;;  %v6731_v33 = vsel %vm620_vm2, %v18964_v9, 0.0 }
 0xe54   :  { %6732 = vadd.xlane.f32.xlu0 %v6731_v33  ;;  %v6728_v27 = vsel %vm620_vm2, %v18966_v19, 0.0 }
 0xe55   :  { %6729 = vadd.xlane.f32.xlu1 %v6728_v27  ;;  %v6023_v27 = vadd.f32 %v20382_v2, %v20392_v63 }
 0xe56   :  { %v18968_v32 = vpop.eup %18967 }
 0xe57   :  { %v6734_v37 = vsel %vm620_vm2, %v18968_v32, 0.0 }
 0xe59   :  { %6735 = vadd.xlane.f32.xlu1 %v6734_v37 }
 0xed1   :  { %v6715_v17 = vpop.xlane.xlu0 %6714 }
 0xed2   :  { %18969 = vrcp.f32 %v6715_v17 }
 0xed5   :  { %v6721_v54 = vpop.xlane.xlu0 %6720 }
 0xed6   :  { %18971 = vrcp.f32 %v6721_v54  ;;  %v6718_v42 = vpop.xlane.xlu1 %6717 }
 0xed7   :  { %18973 = vrcp.f32 %v6718_v42 }
 0xed9   :  { %v6727_v30 = vpop.xlane.xlu0 %6726 }
 0xeda   :  { %18975 = vrcp.f32 %v6727_v30  ;;  %v6724_v50 = vpop.xlane.xlu1 %6723 }
 0xedb   :  { %18977 = vrcp.f32 %v6724_v50 }
 0xedd   :  { %v6733_v34 = vpop.xlane.xlu0 %6732 }
 0xede   :  { %18979 = vrcp.f32 %v6733_v34  ;;  %v6730_v47 = vpop.xlane.xlu1 %6729 }
 0xedf   :  { %v18970_v28 = vpop.eup %18969  ;;  %18981 = vrcp.f32 %v6730_v47 }
 0xee0   :  { %v6738_v26 = vmul.f32 %v18970_v28, %v18954_v29 }
 0xee2   :  { %v6736_v15 = vpop.xlane.xlu1 %6735  ;;  %18058 = vmatmul.mubr.msk.f32.vlgmr.msra.gmra.mxu1 %vm620_vm2, %v6738_v26 }
 0xee3   :  { %v18972_v60 = vpop.eup %18971  ;;  %18983 = vrcp.f32 %v6736_v15  ;;  %18066 = vmatpush3.msra.mxu1 %v6013_v4  ;;  %18067 = vmatprep.mubr.msk.f32.mxu1 %vm19213_vm1, %v22260_v6 }
 0xee4   :  { %v18974_v35 = vpop.eup %18973  ;;  %v6742_v33 = vmul.f32 %v18972_v60, %v18956_v62  ;;  %18075 = vmatprep.subr.mxu1 %v22260_v6  ;;  %v6033_v62 = vadd.f32 %v20382_v2, %v20472_v43 }
 0xee5   :  { %v6740_v29 = vmul.f32 %v18974_v35, %v18958_v58 }
 0xee6   :  { %18068 = vmatmul.mubr.msk.f32.vlgmr.msra.gmra.mxu1 %vm620_vm2, %v6742_v33  ;;  %v19211_v33 = vld [vmem:[%s22217_s11] ss:$0 sm:$0xff] }
 0xee7   :  { %v18976_v45 = vpop.eup %18975  ;;  %18063 = vmatmul.mubr.msk.f32.vlgmr.msra.gmra.mxu0 %vm620_vm2, %v6740_v29  ;;  %18076 = vmatpush3.msra.mxu1 %v6023_v27  ;;  %v2101_v27 = vadd.f32 %v19211_v33, %v19868_v52 }
 0xee8   :  { %v18978_v37 = vpop.eup %18977  ;;  %v6746_v17 = vmul.f32 %v18976_v45, %v18960_v31  ;;  %18071 = vmatpush3.msra.mxu0 %v20385_v40  ;;  %18072 = vmatprep.mubr.msk.f32.mxu0 %vm19213_vm1, %v22260_v6  ;;  %v16437_v31 = vld [vmem:[%s22216_s10 + $0x18] sm:$0xff] }
 0xee9   :  { %v6744_v54 = vmul.f32 %v18978_v37, %v18962_v0  ;;  %18077 = vmatprep.mubr.msk.f32.mxu1 %vm19213_vm1, %v22260_v6  ;;  %18080 = vmatprep.subr.mxu0 %v22260_v6  ;;  %v3890_v29 = vadd.f32 %v20135_v39, %v2101_v27  ;;  %v2103_v37 = vadd.f32 %v19211_v33, %v19872_v61 }
 0xeea   :  { %18085 = vmatprep.subr.mxu1 %v22260_v6  ;;  %18078 = vmatmul.mubr.msk.f32.vlgmr.msra.gmra.mxu1 %vm620_vm2, %v6746_v17 }
 0xeeb   :  { %v18980_v63 = vpop.eup %18979  ;;  %18073 = vmatmul.mubr.msk.f32.vlgmr.msra.gmra.mxu0 %vm620_vm2, %v6744_v54  ;;  %18086 = vmatpush3.msra.mxu1 %v6033_v62  ;;  %v5679_v17 = vadd.f32 %v20400_v5, %v3890_v29 }
 0xeec   :  { %v18982_v40 = vpop.eup %18981  ;;  %v6750_v58 = vmul.f32 %v18980_v63, %v18964_v9  ;;  %18081 = vmatpush3.msra.mxu0 %v20390_v57  ;;  %18082 = vmatprep.mubr.msk.f32.mxu0 %vm19213_vm1, %v22260_v6  ;;  %v3892_v63 = vadd.f32 %v20140_v10, %v2103_v37 }
 0xeed   :  { %v6748_v2 = vmul.f32 %v18982_v40, %v18966_v19  ;;  %18087 = vmatprep.mubr.msk.f32.mxu1 %vm19213_vm1, %v22260_v6  ;;  %18090 = vmatprep.subr.mxu0 %v22260_v6 }
 0xeee   :  { %18088 = vmatmul.mubr.msk.f32.vlgmr.msra.gmra.mxu1 %vm620_vm2, %v6750_v58  ;;  %18095 = vmatprep.subr.mxu1 %v16437_v31  ;;  %v5681_v52 = vadd.f32 %v20405_v7, %v3892_v63 }
 0xeef   :  { %18083 = vmatmul.mubr.msk.f32.vlgmr.msra.gmra.mxu0 %vm620_vm2, %v6748_v2  ;;  %18096 = vmatpush3.msra.mxu1 %v16437_v31  ;;  %v2105_v2 = vadd.f32 %v19211_v33, %v19876_v8  ;;  %v2107_v8 = vadd.f32 %v19211_v33, %v19880_v12 }
 0xef0   :  { %v18984_v43 = vpop.eup %18983  ;;  %18091 = vmatpush3.msra.mxu0 %v20395_v13  ;;  %18092 = vmatprep.mubr.msk.f32.mxu0 %vm19213_vm1, %v22260_v6 }
 0xef1   :  { %v6752_v57 = vmul.f32 %v18984_v43, %v18968_v32 }
 0xef3   :  { %18093 = vmatmul.mubr.msk.f32.vlgmr.msra.gmra.mxu0 %vm620_vm2, %v6752_v57 }
 0xfa2   :  { %v6822_v0 = vpop.f32.mrf.mxu1 }
 0xfa3   :  { %18097 = vmatprep.mubr.msk.f32.mxu1 %vm620_vm2, %v6822_v0 }
 0xfa4   :  { %v18059_v9 = vpop.f32.mrf.mxu1 }
 0xfa6   :  { %v6968_v19 = vpop.f32.mrf.mxu1 }
 0xfa7   :  { %v6895_v42 = vpop.f32.mrf.mxu0 }
 0xfa8   :  { %18098 = vmatmul.mubr.msk.f32.vlgmr.msra.gmra.mxu1 %vm620_vm2, %v6895_v42  ;;  %v18069_v13 = vpop.f32.mrf.mxu1 }
 0xfa9   :  { %v18064_v30 = vpop.f32.mrf.mxu0  ;;  %18100 = vmatprep.mubr.msk.f32.mxu1 %vm620_vm2, %v6968_v19 }
 0xfaa   :  { %v7114_v32 = vpop.f32.mrf.mxu1 }
 0xfab   :  { %v7041_v50 = vpop.f32.mrf.mxu0 }
 0xfac   :  { %18101 = vmatmul.mubr.msk.f32.gmra.mxu1 %vm620_vm2, %v7041_v50  ;;  %v18079_v34 = vpop.f32.mrf.mxu1 }
 0xfad   :  { %v18074_v47 = vpop.f32.mrf.mxu0  ;;  %18103 = vmatprep.mubr.msk.f32.mxu1 %vm620_vm2, %v7114_v32 }
 0xfae   :  { %v7260_v28 = vpop.f32.mrf.mxu1 }
 0xfaf   :  { %v7187_v26 = vpop.f32.mrf.mxu0 }
 0xfb0   :  { %18104 = vmatmul.mubr.msk.f32.gmra.mxu1 %vm620_vm2, %v7187_v26  ;;  %v18089_v4 = vpop.f32.mrf.mxu1 }
 0xfb1   :  { %v18084_v15 = vpop.f32.mrf.mxu0  ;;  %18106 = vmatprep.mubr.msk.f32.mxu1 %vm620_vm2, %v7260_v28 }
 0xfb3   :  { %v7333_v60 = vpop.f32.mrf.mxu0 }
 0xfb4   :  { %18107 = vmatmul.mubr.msk.f32.gmra.mxu1 %vm620_vm2, %v7333_v60 }
 0xfb5   :  { %v18094_v35 = vpop.f32.mrf.mxu0 }
0x1068   :  { %v18099_v45 = vpop.f32.mrf.mxu1 }
0x1069   :  { %v7469_v62 = vadd.f32 %v18099_v45, %v20398_v24  ;;  %v3894_v24 = vadd.f32 %v20145_v16, %v2105_v2  ;;  %v3896_v16 = vadd.f32 %v20150_v18, %v2107_v8 }
0x106a   :  { %v7429_v54 = vpop.f32.mrf.mxu1 }
0x106b   :  { %v7468_v40 = vadd.f32 %v7429_v54, %v5679_v17  ;;  %v7477_v58 = vadd.f32 %v7469_v62, %v19457_v44  ;;  %v5683_v7 = vadd.f32 %v20410_v23, %v3894_v24  ;;  %v5685_v30 = vadd.f32 %v20415_v55, %v3896_v16 }
0x106c   :  { %v18102_v43 = vpop.f32.mrf.mxu1 }
0x106d   :  { %v7471_v39 = vadd.f32 %v18102_v43, %v20403_v22  ;;  %v7489_v57 = vsel %vm89_vm0, %v7477_v58, 0.0  ;;  %v7476_v61 = vadd.f32 %v7468_v40, %v19449_v36 }
0x106e   :  { %7490 = vadd.xlane.f32.xlu1 %v7489_v57  ;;  %v7439_v5 = vpop.f32.mrf.mxu1 }
0x106f   :  { %v7470_v31 = vadd.f32 %v7439_v5, %v5681_v52  ;;  %v7486_v10 = vsel %vm89_vm0, %v7476_v61, 0.0  ;;  %v7479_v44 = vadd.f32 %v7471_v39, %v19474_v38 }
0x1070   :  { %7487 = vadd.xlane.f32.xlu0 %v7486_v10  ;;  %v18105_v0 = vpop.f32.mrf.mxu1 }
0x1071   :  { %v7473_v22 = vadd.f32 %v18105_v0, %v20408_v51  ;;  %v7495_v9 = vsel %vm89_vm0, %v7479_v44, 0.0  ;;  %v7478_v36 = vadd.f32 %v7470_v31, %v19460_v46 }
0x1072   :  { %7496 = vadd.xlane.f32.xlu1 %v7495_v9  ;;  %v7449_v19 = vpop.f32.mrf.mxu1 }
0x1073   :  { %v7472_v42 = vadd.f32 %v7449_v19, %v5683_v7  ;;  %v7492_v13 = vsel %vm89_vm0, %v7478_v36, 0.0  ;;  %v7481_v38 = vadd.f32 %v7473_v22, %v19492_v48 }
0x1074   :  { %7493 = vadd.xlane.f32.xlu0 %v7492_v13  ;;  %v18108_v12 = vpop.f32.mrf.mxu1  ;;  %v7620_v13 = vld [vmem:[%s22218_s14 + $0x10] sm:$0xff] }
0x1075   :  { %v7475_v23 = vadd.f32 %v18108_v12, %v20413_v20  ;;  %v7501_v51 = vsel %vm89_vm0, %v7481_v38, 0.0  ;;  %v7480_v32 = vadd.f32 %v7472_v42, %v19478_v53  ;;  %v7621_v42 = vld [vmem:[%s22218_s14 + $0x18] sm:$0xff]  ;;  %v7618_v12 = vld [vmem:[%s22218_s14] sm:$0xff] }
0x1076   :  { %7502 = vadd.xlane.f32.xlu1 %v7501_v51  ;;  %v7459_v46 = vpop.f32.mrf.mxu1  ;;  %18109 = vmatprep.subr.mxu0 %v7621_v42 }
0x1077   :  { %v7474_v50 = vadd.f32 %v7459_v46, %v5685_v30  ;;  %v7498_v18 = vsel %vm89_vm0, %v7480_v32, 0.0  ;;  %v7483_v34 = vadd.f32 %v7475_v23, %v19508_v49  ;;  %18110 = vmatpush3.msra.mxu0 %v7621_v42 }
0x1078   :  { %7499 = vadd.xlane.f32.xlu0 %v7498_v18  ;;  %18111 = vmatprep.subr.mxu0 %v7620_v13 }
0x1079   :  { %v7507_v48 = vsel %vm89_vm0, %v7483_v34, 0.0  ;;  %v7482_v47 = vadd.f32 %v7474_v50, %v19495_v59  ;;  %18112 = vmatpush3.msra.mxu0 %v7620_v13 }
0x107a   :  { %7508 = vadd.xlane.f32.xlu1 %v7507_v48 }
0x107b   :  { %v7504_v55 = vsel %vm89_vm0, %v7482_v47, 0.0 }
0x107c   :  { %7505 = vadd.xlane.f32.xlu0 %v7504_v55 }
0x10f7   :  { %v7491_v20 = vpop.xlane.xlu1 %7490 }
0x10f8   :  { %v7511_v28 = vmul.f32 0.03125, %v7491_v20 }
0x10f9   :  { %v7488_v26 = vpop.xlane.xlu0 %7487 }
0x10fa   :  { %v20577_v53 = vsub.f32 %v7477_v58, %v7511_v28  ;;  %v7510_v4 = vmul.f32 0.03125, %v7488_v26 }
0x10fb   :  { %v7497_v15 = vpop.xlane.xlu1 %7496 }
0x10fc   :  { %v20579_v60 = vsub.f32 %v7476_v61, %v7510_v4  ;;  %v7513_v35 = vmul.f32 0.03125, %v7497_v15  ;;  %v7527_v49 = vmul.f32 %v20577_v53, %v20577_v53 }
0x10fd   :  { %v7494_v33 = vpop.xlane.xlu0 %7493 }
0x10fe   :  { %v20583_v27 = vsub.f32 %v7479_v44, %v7513_v35  ;;  %v7512_v59 = vmul.f32 0.03125, %v7494_v33  ;;  %v7537_v29 = vsel %vm89_vm0, %v7527_v49, 0.0  ;;  %v7526_v45 = vmul.f32 %v20579_v60, %v20579_v60 }
0x10ff   :  { %v7503_v37 = vpop.xlane.xlu1 %7502  ;;  %7538 = vadd.xlane.f32.xlu1 %v7537_v29 }
0x1100   :  { %v20588_v17 = vsub.f32 %v7478_v36, %v7512_v59  ;;  %v7515_v62 = vmul.f32 0.03125, %v7503_v37  ;;  %v7534_v54 = vsel %vm89_vm0, %v7526_v45, 0.0  ;;  %v7529_v63 = vmul.f32 %v20583_v27, %v20583_v27 }
0x1101   :  { %v7500_v40 = vpop.xlane.xlu0 %7499  ;;  %7535 = vadd.xlane.f32.xlu0 %v7534_v54 }
0x1102   :  { %v20593_v58 = vsub.f32 %v7481_v38, %v7515_v62  ;;  %v7514_v2 = vmul.f32 0.03125, %v7500_v40  ;;  %v7543_v43 = vsel %vm89_vm0, %v7529_v63, 0.0  ;;  %v7528_v52 = vmul.f32 %v20588_v17, %v20588_v17  ;;  %v7619_v38 = vld [vmem:[%s22218_s14 + $0x8] sm:$0xff]  ;;  %v16446_v63 = vld [vmem:[%s22219_s12] ss:$0 sm:$0xff] }
0x1103   :  { %7544 = vadd.xlane.f32.xlu1 %v7543_v43  ;;  %v7509_v39 = vpop.xlane.xlu1 %7508  ;;  %18113 = vmatprep.subr.mxu0 %v7619_v38 }
0x1104   :  { %v20598_v57 = vsub.f32 %v7480_v32, %v7514_v2  ;;  %v7517_v61 = vmul.f32 0.03125, %v7509_v39  ;;  %v7540_v5 = vsel %vm89_vm0, %v7528_v52, 0.0  ;;  %v7531_v24 = vmul.f32 %v20593_v58, %v20593_v58  ;;  %18114 = vmatpush3.msra.mxu0 %v7619_v38 }
0x1105   :  { %7541 = vadd.xlane.f32.xlu0 %v7540_v5  ;;  %v7506_v31 = vpop.xlane.xlu0 %7505  ;;  %18115 = vmatprep.subr.mxu0 %v7618_v12 }
0x1106   :  { %v20603_v10 = vsub.f32 %v7483_v34, %v7517_v61  ;;  %v7516_v44 = vmul.f32 0.03125, %v7506_v31  ;;  %v7549_v8 = vsel %vm89_vm0, %v7531_v24, 0.0  ;;  %v7530_v0 = vmul.f32 %v20598_v57, %v20598_v57  ;;  %18116 = vmatpush3.msra.mxu0 %v7618_v12  ;;  %v16447_v61 = vld [vmem:[%s22220_s13] ss:$0 sm:$0xff] }
0x1107   :  { %7550 = vadd.xlane.f32.xlu1 %v7549_v8 }
0x1108   :  { %v20608_v7 = vsub.f32 %v7482_v47, %v7516_v44  ;;  %v7546_v22 = vsel %vm89_vm0, %v7530_v0, 0.0  ;;  %v7533_v9 = vmul.f32 %v20603_v10, %v20603_v10 }
0x1109   :  { %7547 = vadd.xlane.f32.xlu0 %v7546_v22 }
0x110a   :  { %v7555_v36 = vsel %vm89_vm0, %v7533_v9, 0.0  ;;  %v7532_v19 = vmul.f32 %v20608_v7, %v20608_v7 }
0x110b   :  { %7556 = vadd.xlane.f32.xlu1 %v7555_v36 }
0x110c   :  { %v7552_v16 = vsel %vm89_vm0, %v7532_v19, 0.0 }
0x110d   :  { %7553 = vadd.xlane.f32.xlu0 %v7552_v16 }
0x1188   :  { %v7539_v30 = vpop.xlane.xlu1 %7538 }
0x1189   :  { %v7559_v23 = vmul.f32 0.03125, %v7539_v30 }
0x118a   :  { %v7536_v51 = vpop.xlane.xlu0 %7535 }
0x118b   :  { %v7567_v32 = vadd.f32 1e-12, %v7559_v23  ;;  %v7558_v46 = vmul.f32 0.03125, %v7536_v51 }
0x118c   :  { %v7545_v50 = vpop.xlane.xlu1 %7544 }
0x118d   :  { %18985 = vrsqrt.f32 %v7567_v32  ;;  %v7566_v18 = vadd.f32 1e-12, %v7558_v46  ;;  %v7561_v34 = vmul.f32 0.03125, %v7545_v50  ;;  %v7836_v46 = vld [vmem:[%s22221_s16 + $0x30] sm:$0xff]  ;;  %v7835_v50 = vld [vmem:[%s22221_s16 + $0x28] sm:$0xff] }
0x118e   :  { %v7542_v48 = vpop.xlane.xlu0 %7541 }
0x118f   :  { %18987 = vrsqrt.f32 %v7566_v18  ;;  %v7569_v47 = vadd.f32 1e-12, %v7561_v34  ;;  %v7560_v55 = vmul.f32 0.03125, %v7542_v48  ;;  %v7834_v18 = vld [vmem:[%s22221_s16 + $0x20] sm:$0xff]  ;;  %v7833_v34 = vld [vmem:[%s22221_s16 + $0x18] sm:$0xff]  ;;  %v7832_v48 = vld [vmem:[%s22221_s16 + $0x10] sm:$0xff] }
0x1190   :  { %v7551_v20 = vpop.xlane.xlu1 %7550 }
0x1191   :  { %18989 = vrsqrt.f32 %v7569_v47  ;;  %v7568_v28 = vadd.f32 1e-12, %v7560_v55  ;;  %v7563_v26 = vmul.f32 0.03125, %v7551_v20  ;;  %v7831_v47 = vld [vmem:[%s22221_s16 + $0x8] sm:$0xff]  ;;  %v7830_v55 = vld [vmem:[%s22221_s16] sm:$0xff] }
0x1192   :  { %v7548_v4 = vpop.xlane.xlu0 %7547  ;;  %v16448_v20 = vld [vmem:[%s22222_s15] ss:$0 sm:$0xff] }
0x1193   :  { %18991 = vrsqrt.f32 %v7568_v28  ;;  %v7571_v15 = vadd.f32 1e-12, %v7563_v26  ;;  %v7562_v35 = vmul.f32 0.03125, %v7548_v4 }
0x1194   :  { %v7557_v49 = vpop.xlane.xlu1 %7556 }
0x1195   :  { %18993 = vrsqrt.f32 %v7571_v15  ;;  %v7570_v33 = vadd.f32 1e-12, %v7562_v35  ;;  %v7565_v59 = vmul.f32 0.03125, %v7557_v49 }
0x1196   :  { %v7554_v29 = vpop.xlane.xlu0 %7553 }
0x1197   :  { %18995 = vrsqrt.f32 %v7570_v33  ;;  %v7573_v45 = vadd.f32 1e-12, %v7565_v59  ;;  %v7564_v37 = vmul.f32 0.03125, %v7554_v29 }
0x1199   :  { %18997 = vrsqrt.f32 %v7573_v45  ;;  %v7572_v62 = vadd.f32 1e-12, %v7564_v37 }
0x119a   :  { %v18986_v54 = vpop.eup %18985 }
0x119b   :  { %v7583_v40 = vmul.f32 %v18986_v54, %v20577_v53  ;;  %18999 = vrsqrt.f32 %v7572_v62 }
0x119c   :  { %v18988_v2 = vpop.eup %18987 }
0x119d   :  { %v7582_v43 = vmul.f32 %v18988_v2, %v20579_v60  ;;  %v7597_v39 = vmul.f32 %v16446_v63, %v7583_v40 }
0x119e   :  { %v18990_v52 = vpop.eup %18989 }
0x119f   :  { %v7596_v5 = vmul.f32 %v16446_v63, %v7582_v43  ;;  %v7585_v24 = vmul.f32 %v18990_v52, %v20583_v27  ;;  %v20641_v53 = vadd.f32 %v16447_v61, %v7597_v39 }
0x11a0   :  { %v18992_v31 = vpop.eup %18991 }
0x11a1   :  { %v20638_v44 = vadd.f32 %v16447_v61, %v7596_v5  ;;  %v7584_v8 = vmul.f32 %v18992_v31, %v20588_v17  ;;  %v7599_v22 = vmul.f32 %v16446_v63, %v7585_v24 }
0x11a2   :  { %v18994_v0 = vpop.eup %18993 }
0x11a3   :  { %18117 = vmatprep.mubr.msk.f32.mxu0 %vm89_vm0, %v20638_v44  ;;  %v7598_v60 = vmul.f32 %v16446_v63, %v7584_v8  ;;  %v7587_v9 = vmul.f32 %v18994_v0, %v20593_v58  ;;  %v20651_v17 = vadd.f32 %v16447_v61, %v7599_v22 }
0x11a4   :  { %v18996_v36 = vpop.eup %18995  ;;  %18118 = vmatmul.mubr.msk.f32.vlgmr.msra.gmra.mxu0 %vm89_vm0, %v20641_v53 }
0x11a5   :  { %v20648_v27 = vadd.f32 %v16447_v61, %v7598_v60  ;;  %v7586_v19 = vmul.f32 %v18996_v36, %v20598_v57  ;;  %v7601_v42 = vmul.f32 %v16446_v63, %v7587_v9 }
0x11a6   :  { %v18998_v16 = vpop.eup %18997 }
0x11a7   :  { %18120 = vmatprep.mubr.msk.f32.mxu0 %vm89_vm0, %v20648_v27  ;;  %v7600_v13 = vmul.f32 %v16446_v63, %v7586_v19  ;;  %v7589_v38 = vmul.f32 %v18998_v16, %v20603_v10  ;;  %v20661_v23 = vadd.f32 %v16447_v61, %v7601_v42 }
0x11a8   :  { %v19000_v12 = vpop.eup %18999  ;;  %18121 = vmatmul.mubr.msk.f32.gmra.mxu0 %vm89_vm0, %v20651_v17 }
0x11a9   :  { %v20658_v58 = vadd.f32 %v16447_v61, %v7600_v13  ;;  %v7588_v30 = vmul.f32 %v19000_v12, %v20608_v7  ;;  %v7603_v57 = vmul.f32 %v16446_v63, %v7589_v38  ;;  %v7837_v7 = vld [vmem:[%s22221_s16 + $0x38] sm:$0xff] }
0x11aa   :  { %18129 = vmatprep.subr.mxu1 %v7837_v7 }
0x11ab   :  { %18123 = vmatprep.mubr.msk.f32.mxu0 %vm89_vm0, %v20658_v58  ;;  %v7602_v51 = vmul.f32 %v16446_v63, %v7588_v30  ;;  %v20669_v10 = vadd.f32 %v16447_v61, %v7603_v57  ;;  %18130 = vmatpush3.msra.mxu1 %v7837_v7 }
0x11ac   :  { %18124 = vmatmul.mubr.msk.f32.gmra.mxu0 %vm89_vm0, %v20661_v23  ;;  %18131 = vmatprep.subr.mxu1 %v7836_v46 }
0x11ad   :  { %v20667_v32 = vadd.f32 %v16447_v61, %v7602_v51  ;;  %18132 = vmatpush3.msra.mxu1 %v7836_v46 }
0x11ae   :  { %18133 = vmatprep.subr.mxu1 %v7835_v50 }
0x11af   :  { %18126 = vmatprep.mubr.msk.f32.mxu0 %vm89_vm0, %v20667_v32  ;;  %18134 = vmatpush3.msra.mxu1 %v7835_v50 }
0x11b0   :  { %18127 = vmatmul.mubr.msk.f32.gmra.mxu0 %vm89_vm0, %v20669_v10  ;;  %18135 = vmatprep.subr.mxu1 %v7834_v18 }
0x11b1   :  { %18136 = vmatpush3.msra.mxu1 %v7834_v18 }
0x11b2   :  { %18137 = vmatprep.subr.mxu1 %v7833_v34 }
0x11b3   :  { %18138 = vmatpush3.msra.mxu1 %v7833_v34 }
0x11b4   :  { %18139 = vmatprep.subr.mxu1 %v7832_v48 }
0x11b5   :  { %18140 = vmatpush3.msra.mxu1 %v7832_v48 }
0x11b6   :  { %18141 = vmatprep.subr.mxu1 %v7831_v47 }
0x11b7   :  { %18142 = vmatpush3.msra.mxu1 %v7831_v47 }
0x11b8   :  { %18143 = vmatprep.subr.mxu1 %v7830_v55 }
0x11b9   :  { %18144 = vmatpush3.msra.mxu1 %v7830_v55 }
0x1264   :  { %v18119_v28 = vpop.f32.mrf.mxu0 }
0x1265   :  { %v20702_v26 = vadd.f32 %v18119_v28, %v16448_v20 }
0x1266   :  { %v7719_v4 = vpop.f32.mrf.mxu0 }
0x1267   :  { %v7759_v15 = vmul.f32 %v20702_v26, %v20702_v26  ;;  %v20706_v35 = vadd.f32 %v16448_v20, %v7719_v4 }
0x1268   :  { %v18122_v49 = vpop.f32.mrf.mxu0 }
0x1269   :  { %v7767_v33 = vmul.f32 %v7759_v15, %v20702_v26  ;;  %v7758_v59 = vmul.f32 %v20706_v35, %v20706_v35  ;;  %v20711_v29 = vadd.f32 %v18122_v49, %v16448_v20 }
0x126a   :  { %v7729_v45 = vpop.f32.mrf.mxu0 }
0x126b   :  { %v7775_v37 = vmul.f32 0.044715, %v7767_v33  ;;  %v7766_v62 = vmul.f32 %v7758_v59, %v20706_v35  ;;  %v7761_v54 = vmul.f32 %v20711_v29, %v20711_v29  ;;  %v20716_v63 = vadd.f32 %v16448_v20, %v7729_v45 }
0x126c   :  { %v18125_v40 = vpop.f32.mrf.mxu0 }
0x126d   :  { %v7783_v2 = vadd.f32 %v7775_v37, %v20702_v26  ;;  %v7774_v43 = vmul.f32 0.044715, %v7766_v62  ;;  %v7769_v52 = vmul.f32 %v7761_v54, %v20711_v29  ;;  %v7760_v39 = vmul.f32 %v20716_v63, %v20716_v63 }
0x126e   :  { %v20722_v61 = vadd.f32 %v18125_v40, %v16448_v20  ;;  %v7739_v5 = vpop.f32.mrf.mxu0 }
0x126f   :  { %v7791_v24 = vmul.f32 0.7978846, %v7783_v2  ;;  %v7782_v31 = vadd.f32 %v7774_v43, %v20706_v35  ;;  %v7777_v8 = vmul.f32 0.044715, %v7769_v52  ;;  %v7768_v0 = vmul.f32 %v7760_v39, %v20716_v63 }
0x1270   :  { %v7763_v22 = vmul.f32 %v20722_v61, %v20722_v61  ;;  %v20728_v60 = vadd.f32 %v16448_v20, %v7739_v5  ;;  %v18128_v9 = vpop.f32.mrf.mxu0 }
0x1271   :  { %19001 = vtanh.f32 %v7791_v24  ;;  %v7790_v36 = vmul.f32 0.7978846, %v7782_v31  ;;  %v7785_v19 = vadd.f32 %v7777_v8, %v20711_v29  ;;  %v7776_v16 = vmul.f32 0.044715, %v7768_v0 }
0x1272   :  { %v7771_v42 = vmul.f32 %v7763_v22, %v20722_v61  ;;  %v7762_v13 = vmul.f32 %v20728_v60, %v20728_v60  ;;  %v20734_v38 = vadd.f32 %v18128_v9, %v16448_v20  ;;  %v7749_v12 = vpop.f32.mrf.mxu0 }
0x1273   :  { %19003 = vtanh.f32 %v7790_v36  ;;  %v7793_v30 = vmul.f32 0.7978846, %v7785_v19  ;;  %v7784_v57 = vadd.f32 %v7776_v16, %v20716_v63  ;;  %v7750_v51 = vadd.f32 %v16448_v20, %v7749_v12 }
0x1274   :  { %v7779_v7 = vmul.f32 0.044715, %v7771_v42  ;;  %v7770_v46 = vmul.f32 %v7762_v13, %v20728_v60  ;;  %v7765_v50 = vmul.f32 %v20734_v38, %v20734_v38 }
0x1275   :  { %19005 = vtanh.f32 %v7793_v30  ;;  %v7792_v18 = vmul.f32 0.7978846, %v7784_v57  ;;  %v7764_v34 = vmul.f32 %v7750_v51, %v7750_v51 }
0x1276   :  { %v7787_v48 = vadd.f32 %v7779_v7, %v20722_v61  ;;  %v7778_v47 = vmul.f32 0.044715, %v7770_v46  ;;  %v7773_v55 = vmul.f32 %v7765_v50, %v20734_v38 }
0x1277   :  { %19007 = vtanh.f32 %v7792_v18  ;;  %v7772_v28 = vmul.f32 %v7764_v34, %v7750_v51 }
0x1278   :  { %v7795_v4 = vmul.f32 0.7978846, %v7787_v48  ;;  %v7786_v15 = vadd.f32 %v7778_v47, %v20728_v60  ;;  %v7781_v20 = vmul.f32 0.044715, %v7773_v55  ;;  %v16457_v55 = vld [vmem:[%s22223_s17] ss:$0 sm:$0xff] }
0x1279   :  { %v7780_v49 = vmul.f32 0.044715, %v7772_v28 }
0x127a   :  { %19009 = vtanh.f32 %v7795_v4  ;;  %v7794_v33 = vmul.f32 0.7978846, %v7786_v15  ;;  %v7789_v59 = vadd.f32 %v7781_v20, %v20734_v38 }
0x127b   :  { %v7788_v45 = vadd.f32 %v7780_v49, %v7750_v51 }
0x127c   :  { %19011 = vtanh.f32 %v7794_v33  ;;  %v7797_v37 = vmul.f32 0.7978846, %v7789_v59 }
0x127d   :  { %v7796_v62 = vmul.f32 0.7978846, %v7788_v45 }
0x127e   :  { %v19002_v54 = vpop.eup %19001  ;;  %19013 = vtanh.f32 %v7797_v37 }
0x127f   :  { %v7807_v40 = vadd.f32 1.0, %v19002_v54  ;;  %19015 = vtanh.f32 %v7796_v62 }
0x1280   :  { %v19004_v2 = vpop.eup %19003 }
0x1281   :  { %v7806_v43 = vadd.f32 1.0, %v19004_v2  ;;  %v7815_v39 = vmul.f32 0.5, %v7807_v40 }
0x1282   :  { %v19006_v52 = vpop.eup %19005 }
0x1283   :  { %v7809_v5 = vadd.f32 1.0, %v19006_v52  ;;  %v7814_v24 = vmul.f32 0.5, %v7806_v43  ;;  %v7823_v22 = vmul.f32 %v7815_v39, %v20702_v26 }
0x1284   :  { %v19008_v31 = vpop.eup %19007 }
0x1285   :  { %v7822_v8 = vmul.f32 %v7814_v24, %v20706_v35  ;;  %v7808_v0 = vadd.f32 1.0, %v19008_v31  ;;  %v7817_v9 = vmul.f32 0.5, %v7809_v5 }
0x1287   :  { %v19010_v36 = vpop.eup %19009  ;;  %18145 = vmatprep.mubr.msk.f32.mxu1 %vm7845_vm3, %v7822_v8  ;;  %v7816_v19 = vmul.f32 0.5, %v7808_v0  ;;  %v7825_v12 = vmul.f32 %v7817_v9, %v20711_v29 }
0x1288   :  { %v7811_v16 = vadd.f32 1.0, %v19010_v36  ;;  %18146 = vmatmul.mubr.msk.f32.vlgmr.msra.gmra.mxu1 %vm7845_vm3, %v7823_v22 }
0x1289   :  { %v19012_v42 = vpop.eup %19011  ;;  %v7824_v13 = vmul.f32 %v7816_v19, %v20716_v63 }
0x128a   :  { %v7810_v30 = vadd.f32 1.0, %v19012_v42  ;;  %v7819_v7 = vmul.f32 0.5, %v7811_v16 }
0x128b   :  { %v19014_v57 = vpop.eup %19013  ;;  %18148 = vmatprep.mubr.msk.f32.mxu1 %vm7845_vm3, %v7824_v13 }
0x128c   :  { %v19016_v35 = vpop.eup %19015  ;;  %v7813_v26 = vadd.f32 1.0, %v19014_v57  ;;  %18149 = vmatmul.mubr.msk.f32.gmra.mxu1 %vm7845_vm3, %v7825_v12  ;;  %v7818_v46 = vmul.f32 0.5, %v7810_v30  ;;  %v7827_v34 = vmul.f32 %v7819_v7, %v20722_v61 }
0x128d   :  { %v7812_v50 = vadd.f32 1.0, %v19016_v35 }
0x128e   :  { %v7826_v18 = vmul.f32 %v7818_v46, %v20728_v60  ;;  %v7821_v48 = vmul.f32 0.5, %v7813_v26 }
0x128f   :  { %v7820_v47 = vmul.f32 0.5, %v7812_v50 }
0x1290   :  { %18151 = vmatprep.mubr.msk.f32.mxu1 %vm7845_vm3, %v7826_v18  ;;  %v7829_v63 = vmul.f32 %v7821_v48, %v20734_v38 }
0x1291   :  { %18152 = vmatmul.mubr.msk.f32.gmra.mxu1 %vm7845_vm3, %v7827_v34  ;;  %v7828_v29 = vmul.f32 %v7820_v47, %v7750_v51 }
0x1293   :  { %18154 = vmatprep.mubr.msk.f32.mxu1 %vm7845_vm3, %v7828_v29 }
0x1295   :  { %18155 = vmatmul.mubr.msk.f32.gmra.mxu1 %vm7845_vm3, %v7829_v63 }
0x1348   :  { %v18147_v60 = vpop.f32.mrf.mxu1 }
0x1349   :  { %v7942_v28 = vadd.f32 %v18147_v60, %v16457_v55 }
0x134a   :  { %v7936_v61 = vpop.f32.mrf.mxu1 }
0x134b   :  { %v7937_v4 = vadd.f32 %v16457_v55, %v7936_v61  ;;  %v7976_v15 = vadd.f32 %v7942_v28, %v20641_v53 }
0x134c   :  { %v18150_v20 = vpop.f32.mrf.mxu1 }
0x134d   :  { %v7952_v49 = vadd.f32 %v18150_v20, %v16457_v55  ;;  %v7988_v51 = vsel %vm89_vm0, %v7976_v15, 0.0  ;;  %v7975_v38 = vadd.f32 %v7937_v4, %v20638_v44 }
0x134e   :  { %7989 = vadd.xlane.f32.xlu1 %v7988_v51  ;;  %v7946_v33 = vpop.f32.mrf.mxu1 }
0x134f   :  { %v7978_v59 = vadd.f32 %v7952_v49, %v20651_v17  ;;  %v7947_v45 = vadd.f32 %v16457_v55, %v7946_v33  ;;  %v7985_v37 = vsel %vm89_vm0, %v7975_v38, 0.0 }
0x1350   :  { %7986 = vadd.xlane.f32.xlu0 %v7985_v37 }
0x1351   :  { %v18153_v62 = vpop.f32.mrf.mxu1  ;;  %v7994_v54 = vsel %vm89_vm0, %v7978_v59, 0.0  ;;  %v7977_v40 = vadd.f32 %v7947_v45, %v20648_v27 }
0x1352   :  { %v7962_v53 = vadd.f32 %v18153_v62, %v16457_v55  ;;  %7995 = vadd.xlane.f32.xlu1 %v7994_v54 }
0x1353   :  { %v7956_v2 = vpop.f32.mrf.mxu1  ;;  %v7991_v43 = vsel %vm89_vm0, %v7977_v40, 0.0 }
0x1354   :  { %v7980_v44 = vadd.f32 %v7962_v53, %v20661_v23  ;;  %v7957_v52 = vadd.f32 %v16457_v55, %v7956_v2  ;;  %7992 = vadd.xlane.f32.xlu0 %v7991_v43  ;;  %v16472_v2 = vld [vmem:[%s22251_s7 + $0x98] sm:$0xff] }
0x1355   :  { %v18156_v39 = vpop.f32.mrf.mxu1  ;;  %v16486_v43 = vld [vmem:[%s22252_s0 + $0x98] sm:$0xff]  ;;  %18157 = vmatprep.subr.mxu0 %v16472_v2 }
0x1356   :  { %v7972_v17 = vadd.f32 %v18156_v39, %v16457_v55  ;;  %v8000_v5 = vsel %vm89_vm0, %v7980_v44, 0.0  ;;  %v7979_v24 = vadd.f32 %v7957_v52, %v20658_v58  ;;  %18177 = vmatprep.subr.mxu1 %v16486_v43  ;;  %18158 = vmatpush3.msra.mxu0 %v16472_v2  ;;  %v16485_v52 = vld [vmem:[%s22252_s0 + $0x90] sm:$0xff]  ;;  %v16470_v39 = vld [vmem:[%s22251_s7 + $0x88] sm:$0xff] }
0x1357   :  { %8001 = vadd.xlane.f32.xlu1 %v8000_v5  ;;  %v7966_v31 = vpop.f32.mrf.mxu1  ;;  %18178 = vmatpush3.msra.mxu1 %v16486_v43  ;;  %v16469_v5 = vld [vmem:[%s22251_s7 + $0x80] sm:$0xff] }
0x1358   :  { %v7982_v8 = vadd.f32 %v7972_v17, %v20669_v10  ;;  %v7967_v27 = vadd.f32 %v16457_v55, %v7966_v31  ;;  %v7997_v0 = vsel %vm89_vm0, %v7979_v24, 0.0  ;;  %18179 = vmatprep.subr.mxu1 %v16485_v52  ;;  %v16484_v17 = vld [vmem:[%s22252_s0 + $0x88] sm:$0xff]  ;;  %v16500_v31 = vld [vmem:[%s22253_s30 + $0x98] sm:$0xff] }
0x1359   :  { %7998 = vadd.xlane.f32.xlu0 %v7997_v0  ;;  %18180 = vmatpush3.msra.mxu1 %v16485_v52 }
0x135a   :  { %v8006_v22 = vsel %vm89_vm0, %v7982_v8, 0.0  ;;  %v7981_v23 = vadd.f32 %v7967_v27, %v20667_v32  ;;  %18181 = vmatprep.subr.mxu1 %v16484_v17 }
0x135b   :  { %8007 = vadd.xlane.f32.xlu1 %v8006_v22  ;;  %18182 = vmatpush3.msra.mxu1 %v16484_v17 }
0x135c   :  { %v8003_v9 = vsel %vm89_vm0, %v7981_v23, 0.0 }
0x135d   :  { %8004 = vadd.xlane.f32.xlu0 %v8003_v9 }
0x13d7   :  { %v7990_v36 = vpop.xlane.xlu1 %7989 }
0x13d8   :  { %v8010_v19 = vmul.f32 0.03125, %v7990_v36 }
0x13d9   :  { %v7987_v16 = vpop.xlane.xlu0 %7986 }
0x13da   :  { %v20778_v58 = vsub.f32 %v7976_v15, %v8010_v19  ;;  %v8009_v42 = vmul.f32 0.03125, %v7987_v16 }
0x13db   :  { %v7996_v13 = vpop.xlane.xlu1 %7995 }
0x13dc   :  { %v20780_v10 = vsub.f32 %v7975_v38, %v8009_v42  ;;  %v8012_v12 = vmul.f32 0.03125, %v7996_v13  ;;  %v8026_v30 = vmul.f32 %v20778_v58, %v20778_v58 }
0x13dd   :  { %v7993_v57 = vpop.xlane.xlu0 %7992 }
0x13de   :  { %v20784_v7 = vsub.f32 %v7978_v59, %v8012_v12  ;;  %v8011_v32 = vmul.f32 0.03125, %v7993_v57  ;;  %v8036_v35 = vsel %vm89_vm0, %v8026_v30, 0.0  ;;  %v8025_v26 = vmul.f32 %v20780_v10, %v20780_v10 }
0x13df   :  { %8037 = vadd.xlane.f32.xlu1 %v8036_v35 }
0x13e0   :  { %v20789_v46 = vsub.f32 %v7977_v40, %v8011_v32  ;;  %v8002_v50 = vpop.xlane.xlu1 %8001  ;;  %v8033_v18 = vsel %vm89_vm0, %v8025_v26, 0.0  ;;  %v8028_v34 = vmul.f32 %v20784_v7, %v20784_v7 }
0x13e1   :  { %v8014_v48 = vmul.f32 0.03125, %v8002_v50  ;;  %8034 = vadd.xlane.f32.xlu0 %v8033_v18 }
0x13e2   :  { %v7999_v47 = vpop.xlane.xlu0 %7998  ;;  %v8042_v29 = vsel %vm89_vm0, %v8028_v34, 0.0  ;;  %v8027_v63 = vmul.f32 %v20789_v46, %v20789_v46 }
0x13e3   :  { %v20797_v55 = vsub.f32 %v7980_v44, %v8014_v48  ;;  %v8013_v60 = vmul.f32 0.03125, %v7999_v47  ;;  %8043 = vadd.xlane.f32.xlu1 %v8042_v29  ;;  %v16471_v44 = vld [vmem:[%s22251_s7 + $0x90] sm:$0xff] }
0x13e4   :  { %v8008_v28 = vpop.xlane.xlu1 %8007  ;;  %v8039_v61 = vsel %vm89_vm0, %v8027_v63, 0.0  ;;  %18159 = vmatprep.subr.mxu0 %v16471_v44 }
0x13e5   :  { %v20800_v4 = vsub.f32 %v7979_v24, %v8013_v60  ;;  %v8016_v15 = vmul.f32 0.03125, %v8008_v28  ;;  %8040 = vadd.xlane.f32.xlu0 %v8039_v61  ;;  %v8030_v20 = vmul.f32 %v20797_v55, %v20797_v55  ;;  %18160 = vmatpush3.msra.mxu0 %v16471_v44  ;;  %v16483_v24 = vld [vmem:[%s22252_s0 + $0x80] sm:$0xff] }
0x13e6   :  { %v8005_v49 = vpop.xlane.xlu0 %8004  ;;  %18161 = vmatprep.subr.mxu0 %v16470_v39  ;;  %18183 = vmatprep.subr.mxu1 %v16483_v24  ;;  %v16466_v28 = vld [vmem:[%s22224_s18] ss:$0 sm:$0xff] }
0x13e7   :  { %v20804_v51 = vsub.f32 %v7982_v8, %v8016_v15  ;;  %v8015_v38 = vmul.f32 0.03125, %v8005_v49  ;;  %v8048_v33 = vsel %vm89_vm0, %v8030_v20, 0.0  ;;  %v8029_v59 = vmul.f32 %v20800_v4, %v20800_v4  ;;  %18162 = vmatpush3.msra.mxu0 %v16470_v39  ;;  %18184 = vmatpush3.msra.mxu1 %v16483_v24 }
0x13e8   :  { %8049 = vadd.xlane.f32.xlu1 %v8048_v33  ;;  %18163 = vmatprep.subr.mxu0 %v16469_v5  ;;  %v16467_v33 = vld [vmem:[%s22225_s19] ss:$0 sm:$0xff] }
0x13e9   :  { %v20809_v45 = vsub.f32 %v7981_v23, %v8015_v38  ;;  %v8045_v37 = vsel %vm89_vm0, %v8029_v59, 0.0  ;;  %v8032_v62 = vmul.f32 %v20804_v51, %v20804_v51  ;;  %18164 = vmatpush3.msra.mxu0 %v16469_v5  ;;  %18217 = vmatprep.subr.mxu1 %v22260_v6 }
0x13ea   :  { %8046 = vadd.xlane.f32.xlu0 %v8045_v37  ;;  %18197 = vmatprep.subr.mxu0 %v16500_v31 }
0x13eb   :  { %v8054_v54 = vsel %vm89_vm0, %v8032_v62, 0.0  ;;  %v8031_v40 = vmul.f32 %v20809_v45, %v20809_v45 }
0x13ec   :  { %8055 = vadd.xlane.f32.xlu1 %v8054_v54 }
0x13ed   :  { %v8051_v53 = vsel %vm89_vm0, %v8031_v40, 0.0 }
0x13ee   :  { %8052 = vadd.xlane.f32.xlu0 %v8051_v53 }
0x1468   :  { %v8038_v8 = vpop.xlane.xlu1 %8037 }
0x1469   :  { %v8058_v27 = vmul.f32 0.03125, %v8038_v8 }
0x146a   :  { %v8035_v0 = vpop.xlane.xlu0 %8034 }
0x146b   :  { %v8066_v22 = vadd.f32 1e-12, %v8058_v27  ;;  %v8057_v23 = vmul.f32 0.03125, %v8035_v0 }
0x146c   :  { %v8044_v9 = vpop.xlane.xlu1 %8043 }
0x146d   :  { %19017 = vrsqrt.f32 %v8066_v22  ;;  %v8065_v36 = vadd.f32 1e-12, %v8057_v23  ;;  %v8060_v19 = vmul.f32 0.03125, %v8044_v9 }
0x146e   :  { %v8041_v16 = vpop.xlane.xlu0 %8040 }
0x146f   :  { %19019 = vrsqrt.f32 %v8065_v36  ;;  %v8068_v42 = vadd.f32 1e-12, %v8060_v19  ;;  %v8059_v13 = vmul.f32 0.03125, %v8041_v16  ;;  %v16488_v16 = vld [vmem:[%s22256_s9 + $0x4] ss:$0 sm:$0xff] }
0x1471   :  { %19021 = vrsqrt.f32 %v8068_v42  ;;  %v8067_v12 = vadd.f32 1e-12, %v8059_v13  ;;  %v8050_v30 = vpop.xlane.xlu1 %8049 }
0x1472   :  { %v8062_v57 = vmul.f32 0.03125, %v8050_v30 }
0x1473   :  { %19023 = vrsqrt.f32 %v8067_v12  ;;  %v8047_v32 = vpop.xlane.xlu0 %8046 }
0x1474   :  { %v8070_v35 = vadd.f32 1e-12, %v8062_v57  ;;  %v8061_v26 = vmul.f32 0.03125, %v8047_v32  ;;  %v16474_v32 = vld [vmem:[%s22257_s3 + $0x4] ss:$0 sm:$0xff] }
0x1475   :  { %v8056_v50 = vpop.xlane.xlu1 %8055 }
0x1476   :  { %19025 = vrsqrt.f32 %v8070_v35  ;;  %v8069_v18 = vadd.f32 1e-12, %v8061_v26  ;;  %v8064_v34 = vmul.f32 0.03125, %v8056_v50 }
0x1477   :  { %v8053_v48 = vpop.xlane.xlu0 %8052 }
0x1478   :  { %19027 = vrsqrt.f32 %v8069_v18  ;;  %v8072_v47 = vadd.f32 1e-12, %v8064_v34  ;;  %v8063_v29 = vmul.f32 0.03125, %v8053_v48 }
0x147a   :  { %v19018_v63 = vpop.eup %19017  ;;  %19029 = vrsqrt.f32 %v8072_v47  ;;  %v8071_v60 = vadd.f32 1e-12, %v8063_v29 }
0x147b   :  { %v8082_v61 = vmul.f32 %v19018_v63, %v20778_v58 }
0x147c   :  { %v19020_v15 = vpop.eup %19019  ;;  %19031 = vrsqrt.f32 %v8071_v60 }
0x147d   :  { %v8081_v20 = vmul.f32 %v19020_v15, %v20780_v10  ;;  %v8096_v38 = vmul.f32 %v16466_v28, %v8082_v61  ;;  %v16499_v10 = vld [vmem:[%s22253_s30 + $0x90] sm:$0xff] }
0x147e   :  { %v19022_v49 = vpop.eup %19021 }
0x147f   :  { %v8095_v59 = vmul.f32 %v16466_v28, %v8081_v20  ;;  %v8084_v37 = vmul.f32 %v19022_v49, %v20784_v7  ;;  %v20858_v53 = vadd.f32 %v16467_v33, %v8096_v38 }
0x1480   :  { %v19024_v62 = vpop.eup %19023 }
0x1481   :  { %v20855_v54 = vadd.f32 %v16467_v33, %v8095_v59  ;;  %v8083_v40 = vmul.f32 %v19024_v62, %v20789_v46  ;;  %v8098_v58 = vmul.f32 %v16466_v28, %v8084_v37 }
0x1483   :  { %v19026_v2 = vpop.eup %19025  ;;  %v8097_v43 = vmul.f32 %v16466_v28, %v8083_v40  ;;  %18165 = vmatprep.mubr.msk.f32.mxu0 %vm89_vm0, %v20855_v54  ;;  %18185 = vmatprep.mubr.msk.f32.mxu1 %vm89_vm0, %v20855_v54  ;;  %v20874_v52 = vadd.f32 %v16467_v33, %v8098_v58 }
0x1484   :  { %v8086_v7 = vmul.f32 %v19026_v2, %v20797_v55  ;;  %18166 = vmatmul.mubr.msk.f32.vlgmr.msra.gmra.mxu0 %vm89_vm0, %v20858_v53  ;;  %18186 = vmatmul.mubr.msk.f32.vlgmr.msra.gmra.mxu1 %vm89_vm0, %v20858_v53  ;;  %v16498_v55 = vld [vmem:[%s22253_s30 + $0x88] sm:$0xff] }
0x1485   :  { %v19028_v46 = vpop.eup %19027  ;;  %v20872_v44 = vadd.f32 %v16467_v33, %v8097_v43  ;;  %18198 = vmatpush3.msra.mxu0 %v16500_v31 }
0x1486   :  { %v8085_v39 = vmul.f32 %v19028_v46, %v20800_v4  ;;  %18199 = vmatprep.subr.mxu0 %v16499_v10  ;;  %v8100_v5 = vmul.f32 %v16466_v28, %v8086_v7  ;;  %v20972_v7 = vld [vmem:[%s22258_s28 + $0x4] ss:$0 sm:$0xff] }
0x1487   :  { %v19030_v17 = vpop.eup %19029  ;;  %18168 = vmatprep.mubr.msk.f32.mxu0 %vm89_vm0, %v20872_v44  ;;  %18188 = vmatprep.mubr.msk.f32.mxu1 %vm89_vm0, %v20872_v44 }
0x1488   :  { %v8099_v24 = vmul.f32 %v16466_v28, %v8085_v39  ;;  %v8088_v31 = vmul.f32 %v19030_v17, %v20804_v51  ;;  %18169 = vmatmul.mubr.msk.f32.gmra.mxu0 %vm89_vm0, %v20874_v52  ;;  %18189 = vmatmul.mubr.msk.f32.gmra.mxu1 %vm89_vm0, %v20874_v52  ;;  %v20892_v0 = vadd.f32 %v16467_v33, %v8100_v5  ;;  %v16497_v51 = vld [vmem:[%s22253_s30 + $0x80] sm:$0xff] }
0x1489   :  { %v19032_v4 = vpop.eup %19031  ;;  %18200 = vmatpush3.msra.mxu0 %v16499_v10 }
0x148a   :  { %v20889_v8 = vadd.f32 %v16467_v33, %v8099_v24  ;;  %v8087_v27 = vmul.f32 %v19032_v4, %v20809_v45  ;;  %18201 = vmatprep.subr.mxu0 %v16498_v55  ;;  %v8102_v22 = vmul.f32 %v16466_v28, %v8088_v31 }
0x148b   :  { %18202 = vmatpush3.msra.mxu0 %v16498_v55 }
0x148c   :  { %v8101_v23 = vmul.f32 %v16466_v28, %v8087_v27  ;;  %18171 = vmatprep.mubr.msk.f32.mxu0 %vm89_vm0, %v20889_v8  ;;  %18191 = vmatprep.mubr.msk.f32.mxu1 %vm89_vm0, %v20889_v8  ;;  %v20907_v9 = vadd.f32 %v16467_v33, %v8102_v22 }
0x148d   :  { %18172 = vmatmul.mubr.msk.f32.gmra.mxu0 %vm89_vm0, %v20892_v0  ;;  %18192 = vmatmul.mubr.msk.f32.gmra.mxu1 %vm89_vm0, %v20892_v0 }
0x148e   :  { %v20905_v45 = vadd.f32 %v16467_v33, %v8101_v23  ;;  %18203 = vmatprep.subr.mxu0 %v16497_v51 }
0x148f   :  { %18204 = vmatpush3.msra.mxu0 %v16497_v51 }
0x1490   :  { %18174 = vmatprep.mubr.msk.f32.mxu0 %vm89_vm0, %v20905_v45  ;;  %18194 = vmatprep.mubr.msk.f32.mxu1 %vm89_vm0, %v20905_v45 }
0x1491   :  { %18175 = vmatmul.mubr.msk.f32.gmra.mxu0 %vm89_vm0, %v20907_v9  ;;  %18195 = vmatmul.mubr.msk.f32.gmra.mxu1 %vm89_vm0, %v20907_v9 }
0x1492   :  { %18205 = vmatprep.mubr.msk.f32.mxu0 %vm89_vm0, %v20855_v54  ;;  %18219 = vmatprep.mubr.msk.f32.mxu1 %vm19213_vm1, %v22260_v6 }
0x1493   :  { %18227 = vmatprep.subr.mxu0 %v22260_v6 }
0x1495   :  { %18206 = vmatmul.mubr.msk.f32.vlgmr.msra.gmra.mxu0 %vm89_vm0, %v20858_v53 }
0x1496   :  { %18208 = vmatprep.mubr.msk.f32.mxu0 %vm89_vm0, %v20872_v44 }
0x1499   :  { %18209 = vmatmul.mubr.msk.f32.gmra.mxu0 %vm89_vm0, %v20874_v52 }
0x149a   :  { %18211 = vmatprep.mubr.msk.f32.mxu0 %vm89_vm0, %v20889_v8 }
0x149d   :  { %18212 = vmatmul.mubr.msk.f32.gmra.mxu0 %vm89_vm0, %v20892_v0 }
0x149e   :  { %18214 = vmatprep.mubr.msk.f32.mxu0 %vm89_vm0, %v20905_v45 }
0x14a1   :  { %18215 = vmatmul.mubr.msk.f32.gmra.mxu0 %vm89_vm0, %v20907_v9 }
0x14a2   :  { %18229 = vmatprep.mubr.msk.f32.mxu0 %vm19213_vm1, %v22260_v6 }
0x1544   :  { %v18167_v36 = vpop.f32.mrf.mxu0  ;;  %v18187_v19 = vpop.f32.mrf.mxu1 }
0x1545   :  { %v8346_v18 = vadd.f32 %v18187_v19, %v16488_v16  ;;  %v8228_v29 = vadd.f32 %v18167_v36, %v16474_v32 }
0x1546   :  { %v8222_v42 = vpop.f32.mrf.mxu0  ;;  %v8340_v13 = vpop.f32.mrf.mxu1 }
0x1547   :  { %v8341_v12 = vadd.f32 %v16488_v16, %v8340_v13  ;;  %v8223_v35 = vadd.f32 %v16474_v32, %v8222_v42 }
0x1548   :  { %v18170_v30 = vpop.f32.mrf.mxu0  ;;  %v18190_v57 = vpop.f32.mrf.mxu1 }
0x1549   :  { %18218 = vmatpush3.xpose.msk.msra.mxu1 %vm620_vm2, %v8341_v12  ;;  %v8356_v60 = vadd.f32 %v18190_v57, %v16488_v16  ;;  %v8238_v38 = vadd.f32 %v18170_v30, %v16474_v32 }
0x154a   :  { %v8232_v26 = vpop.f32.mrf.mxu0  ;;  %v8350_v50 = vpop.f32.mrf.mxu1  ;;  %18222 = vmatprep.subr.mxu1 %v22260_v6 }
0x154b   :  { %v8351_v34 = vadd.f32 %v16488_v16, %v8350_v50  ;;  %v8233_v63 = vadd.f32 %v16474_v32, %v8232_v26 }
0x154c   :  { %18220 = vmatmul.mubr.msk.f32.vlgmr.msra.gmra.mxu1 %vm620_vm2, %v8223_v35 }
0x154d   :  { %v18173_v48 = vpop.f32.mrf.mxu0  ;;  %v18193_v47 = vpop.f32.mrf.mxu1  ;;  %18223 = vmatpush3.xpose.msk.msra.mxu1 %vm620_vm2, %v8346_v18  ;;  %18228 = vmatpush3.xpose.msk.msra.mxu0 %vm620_vm2, %v8351_v34 }
0x154e   :  { %18224 = vmatprep.mubr.msk.f32.mxu1 %vm19213_vm1, %v22260_v6  ;;  %18232 = vmatprep.subr.mxu1 %v22260_v6  ;;  %v8366_v33 = vadd.f32 %v18193_v47, %v16488_v16  ;;  %v8248_v2 = vadd.f32 %v18173_v48, %v16474_v32 }
0x154f   :  { %v8242_v28 = vpop.f32.mrf.mxu0  ;;  %v8360_v61 = vpop.f32.mrf.mxu1  ;;  %18237 = vmatprep.subr.mxu0 %v22260_v6 }
0x1550   :  { %v8361_v15 = vadd.f32 %v16488_v16, %v8360_v61  ;;  %18225 = vmatmul.mubr.msk.f32.vlgmr.msra.gmra.mxu1 %vm620_vm2, %v8228_v29  ;;  %18230 = vmatmul.mubr.msk.f32.vlgmr.msra.gmra.mxu0 %vm620_vm2, %v8233_v63  ;;  %v8243_v59 = vadd.f32 %v16474_v32, %v8242_v28 }
0x1551   :  { %v18176_v20 = vpop.f32.mrf.mxu0  ;;  %v18196_v49 = vpop.f32.mrf.mxu1  ;;  %18233 = vmatpush3.xpose.msk.msra.mxu1 %vm620_vm2, %v8356_v60  ;;  %18234 = vmatprep.mubr.msk.f32.mxu1 %vm19213_vm1, %v22260_v6 }
0x1552   :  { %18238 = vmatpush3.xpose.msk.msra.mxu0 %vm620_vm2, %v8361_v15  ;;  %18239 = vmatprep.mubr.msk.f32.mxu0 %vm19213_vm1, %v22260_v6  ;;  %v8376_v43 = vadd.f32 %v18196_v49, %v16488_v16  ;;  %v8258_v5 = vadd.f32 %v18176_v20, %v16474_v32 }
0x1553   :  { %v8252_v37 = vpop.f32.mrf.mxu0  ;;  %v8370_v62 = vpop.f32.mrf.mxu1  ;;  %18242 = vmatprep.subr.mxu1 %v22260_v6  ;;  %18247 = vmatprep.subr.mxu0 %v22260_v6 }
0x1554   :  { %v8371_v40 = vadd.f32 %v16488_v16, %v8370_v62  ;;  %18235 = vmatmul.mubr.msk.f32.vlgmr.msra.gmra.mxu1 %vm620_vm2, %v8238_v38  ;;  %v8253_v10 = vadd.f32 %v16474_v32, %v8252_v37 }
0x1555   :  { %v18207_v58 = vpop.f32.mrf.mxu0  ;;  %18240 = vmatmul.mubr.msk.f32.vlgmr.msra.gmra.mxu0 %vm620_vm2, %v8243_v59  ;;  %18243 = vmatpush3.xpose.msk.msra.mxu1 %vm620_vm2, %v8366_v33 }
0x1556   :  { %18248 = vmatpush3.xpose.msk.msra.mxu0 %vm620_vm2, %v8371_v40  ;;  %18244 = vmatprep.mubr.msk.f32.mxu1 %vm19213_vm1, %v22260_v6  ;;  %v8464_v24 = vadd.f32 %v18207_v58, %v20972_v7 }
0x1557   :  { %v8458_v46 = vpop.f32.mrf.mxu0  ;;  %18249 = vmatprep.mubr.msk.f32.mxu0 %vm19213_vm1, %v22260_v6  ;;  %18252 = vmatprep.subr.mxu1 %v22260_v6 }
0x1558   :  { %v8459_v39 = vadd.f32 %v20972_v7, %v8458_v46  ;;  %18245 = vmatmul.mubr.msk.f32.vlgmr.msra.gmra.mxu1 %vm620_vm2, %v8248_v2  ;;  %18257 = vmatprep.subr.mxu0 %v22260_v6 }
0x1559   :  { %v18210_v17 = vpop.f32.mrf.mxu0  ;;  %18250 = vmatmul.mubr.msk.f32.vlgmr.msra.gmra.mxu0 %vm620_vm2, %v8253_v10  ;;  %18253 = vmatpush3.xpose.msk.msra.mxu1 %vm620_vm2, %v8376_v43 }
0x155a   :  { %v20983_v55 = vadd.f32 %v18210_v17, %v20972_v7  ;;  %18258 = vmatpush3.msra.mxu0 %v8459_v39  ;;  %18254 = vmatprep.mubr.msk.f32.mxu1 %vm19213_vm1, %v22260_v6 }
0x155b   :  { %v20988_v31 = vpop.f32.mrf.mxu0  ;;  %18262 = vmatprep.subr.mxu1 %v22260_v6  ;;  %18259 = vmatprep.mubr.msk.f32.mxu0 %vm19213_vm1, %v22260_v6 }
0x155c   :  { %18255 = vmatmul.mubr.msk.f32.vlgmr.msra.gmra.mxu1 %vm620_vm2, %v8258_v5  ;;  %18267 = vmatprep.subr.mxu0 %v22260_v6 }
0x155d   :  { %v18213_v4 = vpop.f32.mrf.mxu0  ;;  %18263 = vmatpush3.msra.mxu1 %v8464_v24  ;;  %18264 = vmatprep.mubr.msk.f32.mxu1 %vm19213_vm1, %v22260_v6 }
0x155e   :  { %v20998_v27 = vadd.f32 %v18213_v4, %v20972_v7  ;;  %18272 = vmatprep.subr.mxu1 %v22260_v6 }
0x155f   :  { %v21001_v22 = vpop.f32.mrf.mxu0 }
0x1561   :  { %v18216_v51 = vpop.f32.mrf.mxu0 }
0x1562   :  { %v21004_v23 = vadd.f32 %v18216_v51, %v20972_v7 }
0x1563   :  { %v21006_v16 = vpop.f32.mrf.mxu0 }
0x160c   :  { %v8569_v36 = vpop.f32.mrf.mxu1 }
0x160d   :  { %v9105_v19 = vmul.f32 0.35355338, %v8569_v36 }
0x160e   :  { %v18221_v42 = vpop.f32.mrf.mxu1 }
0x160f   :  { %v9113_v13 = vadd.f32 %v9105_v19, %v19639_v1 }
0x1610   :  { %v8645_v12 = vpop.f32.mrf.mxu1  ;;  %v8721_v30 = vpop.f32.mrf.mxu0 }
0x1611   :  { %v9106_v57 = vmul.f32 0.35355338, %v8645_v12  ;;  %v9107_v32 = vmul.f32 0.35355338, %v8721_v30  ;;  %v9121_v35 = vsel %vm620_vm2, %v9113_v13, -inf }
0x1612   :  { %9122 = vmax.xlane.f32.xlu0 %v9121_v35  ;;  %v18226_v26 = vpop.f32.mrf.mxu1  ;;  %v18231_v50 = vpop.f32.mrf.mxu0 }
0x1613   :  { %v9114_v18 = vadd.f32 %v9106_v57, %v19651_v11  ;;  %v9115_v34 = vadd.f32 %v9107_v32, %v19662_v25 }
0x1614   :  { %v8797_v48 = vpop.f32.mrf.mxu1 }
0x1615   :  { %v9108_v47 = vmul.f32 0.35355338, %v8797_v48  ;;  %v8873_v29 = vpop.f32.mrf.mxu0  ;;  %v9124_v63 = vsel %vm620_vm2, %v9114_v18, -inf  ;;  %v9127_v60 = vsel %vm620_vm2, %v9115_v34, -inf }
0x1616   :  { %v9109_v28 = vmul.f32 0.35355338, %v8873_v29  ;;  %9125 = vmax.xlane.f32.xlu1 %v9124_v63  ;;  %v18236_v61 = vpop.f32.mrf.mxu1  ;;  %9128 = vmax.xlane.f32.xlu0 %v9127_v60 }
0x1617   :  { %v9116_v15 = vadd.f32 %v9108_v47, %v19673_v21  ;;  %v18241_v20 = vpop.f32.mrf.mxu0 }
0x1618   :  { %v9117_v49 = vadd.f32 %v9109_v28, %v19669_v41  ;;  %v8949_v38 = vpop.f32.mrf.mxu1 }
0x1619   :  { %v9110_v33 = vmul.f32 0.35355338, %v8949_v38  ;;  %v9025_v59 = vpop.f32.mrf.mxu0  ;;  %v9130_v37 = vsel %vm620_vm2, %v9116_v15, -inf }
0x161a   :  { %v9111_v62 = vmul.f32 0.35355338, %v9025_v59  ;;  %9131 = vmax.xlane.f32.xlu1 %v9130_v37  ;;  %v18246_v40 = vpop.f32.mrf.mxu1  ;;  %v9133_v58 = vsel %vm620_vm2, %v9117_v49, -inf }
0x161b   :  { %v9118_v2 = vadd.f32 %v9110_v33, %v19682_v3  ;;  %9134 = vmax.xlane.f32.xlu0 %v9133_v58  ;;  %v18251_v43 = vpop.f32.mrf.mxu0 }
0x161c   :  { %v9119_v10 = vadd.f32 %v9111_v62, %v19676_v56  ;;  %v9101_v46 = vpop.f32.mrf.mxu1 }
0x161d   :  { %v9112_v39 = vmul.f32 0.35355338, %v9101_v46  ;;  %v9136_v17 = vsel %vm620_vm2, %v9118_v2, -inf }
0x161e   :  { %9137 = vmax.xlane.f32.xlu1 %v9136_v17  ;;  %v18256_v5 = vpop.f32.mrf.mxu1  ;;  %v9139_v24 = vsel %vm620_vm2, %v9119_v10, -inf }
0x161f   :  { %v9120_v4 = vadd.f32 %v9112_v39, %v19689_v14  ;;  %9140 = vmax.xlane.f32.xlu0 %v9139_v24 }
0x1621   :  { %v9142_v51 = vsel %vm620_vm2, %v9120_v4, -inf }
0x1622   :  { %9143 = vmax.xlane.f32.xlu1 %v9142_v51 }
0x169b   :  { %v9123_v36 = vpop.xlane.xlu0 %9122 }
0x169c   :  { %v9145_v19 = vsub.f32 %v9113_v13, %v9123_v36 }
0x169e   :  { %v9153_v42 = vmul.f32 1.442695, %v9145_v19 }
0x169f   :  { %v9126_v12 = vpop.xlane.xlu1 %9125  ;;  %v9129_v30 = vpop.xlane.xlu0 %9128 }
0x16a0   :  { %19033 = vpow2.f32 %v9153_v42  ;;  %v9146_v57 = vsub.f32 %v9114_v18, %v9126_v12  ;;  %v9147_v32 = vsub.f32 %v9115_v34, %v9129_v30 }
0x16a2   :  { %v9155_v35 = vmul.f32 1.442695, %v9146_v57  ;;  %v9157_v26 = vmul.f32 1.442695, %v9147_v32 }
0x16a3   :  { %v9132_v50 = vpop.xlane.xlu1 %9131 }
0x16a4   :  { %19035 = vpow2.f32 %v9155_v35  ;;  %v9148_v48 = vsub.f32 %v9116_v15, %v9132_v50  ;;  %v9135_v47 = vpop.xlane.xlu0 %9134  ;;  %v8469_v50 = vadd.f32 %v20972_v7, %v20988_v31 }
0x16a5   :  { %19037 = vpow2.f32 %v9157_v26  ;;  %v9149_v29 = vsub.f32 %v9117_v49, %v9135_v47 }
0x16a6   :  { %v9159_v63 = vmul.f32 1.442695, %v9148_v48 }
0x16a7   :  { %v9161_v60 = vmul.f32 1.442695, %v9149_v29  ;;  %v9138_v28 = vpop.xlane.xlu1 %9137 }
0x16a8   :  { %19039 = vpow2.f32 %v9159_v63  ;;  %v9150_v61 = vsub.f32 %v9118_v2, %v9138_v28  ;;  %v9141_v13 = vpop.xlane.xlu0 %9140  ;;  %v8479_v28 = vadd.f32 %v20972_v7, %v21001_v22  ;;  %v8489_v22 = vadd.f32 %v20972_v7, %v21006_v16  ;;  %v16548_v7 = vld [vmem:[%s22251_s7 + $0xb8] sm:$0xff] }
0x16a9   :  { %19041 = vpow2.f32 %v9161_v60  ;;  %v9151_v20 = vsub.f32 %v9119_v10, %v9141_v13 }
0x16aa   :  { %v9163_v38 = vmul.f32 1.442695, %v9150_v61 }
0x16ab   :  { %v9165_v33 = vmul.f32 1.442695, %v9151_v20  ;;  %v9144_v18 = vpop.xlane.xlu1 %9143 }
0x16ac   :  { %19043 = vpow2.f32 %v9163_v38  ;;  %v9152_v34 = vsub.f32 %v9120_v4, %v9144_v18 }
0x16ad   :  { %v19034_v59 = vpop.eup %19033  ;;  %19045 = vpow2.f32 %v9165_v33 }
0x16ae   :  { %v9167_v37 = vmul.f32 1.442695, %v9152_v34  ;;  %v9169_v15 = vsel %vm620_vm2, %v19034_v59, 0.0  ;;  %v16547_v34 = vld [vmem:[%s22251_s7 + $0xb0] sm:$0xff] }
0x16af   :  { %9170 = vadd.xlane.f32.xlu0 %v9169_v15  ;;  %v16575_v15 = vld [vmem:[%s22253_s30 + $0xb0] sm:$0xff] }
0x16b0   :  { %19047 = vpow2.f32 %v9167_v37  ;;  %v16576_v37 = vld [vmem:[%s22253_s30 + $0xb8] sm:$0xff] }
0x16b1   :  { %v19036_v49 = vpop.eup %19035 }
0x16b2   :  { %v19038_v62 = vpop.eup %19037  ;;  %v9172_v40 = vsel %vm620_vm2, %v19036_v49, 0.0 }
0x16b3   :  { %9173 = vadd.xlane.f32.xlu1 %v9172_v40  ;;  %v9175_v58 = vsel %vm620_vm2, %v19038_v62, 0.0  ;;  %v16535_v40 = vld [vmem:[%s22216_s10 + $0x20] sm:$0xff] }
0x16b4   :  { %9176 = vadd.xlane.f32.xlu0 %v9175_v58  ;;  %v16562_v58 = vld [vmem:[%s22252_s0 + $0xb8] sm:$0xff] }
0x16b5   :  { %v19040_v2 = vpop.eup %19039 }
0x16b6   :  { %v19042_v43 = vpop.eup %19041  ;;  %v9178_v10 = vsel %vm620_vm2, %v19040_v2, 0.0 }
0x16b7   :  { %9179 = vadd.xlane.f32.xlu1 %v9178_v10  ;;  %v9181_v46 = vsel %vm620_vm2, %v19042_v43, 0.0 }
0x16b8   :  { %9182 = vadd.xlane.f32.xlu0 %v9181_v46  ;;  %v16561_v46 = vld [vmem:[%s22252_s0 + $0xb0] sm:$0xff] }
0x16b9   :  { %v19044_v39 = vpop.eup %19043 }
0x16ba   :  { %v19046_v17 = vpop.eup %19045  ;;  %v9184_v5 = vsel %vm620_vm2, %v19044_v39, 0.0 }
0x16bb   :  { %9185 = vadd.xlane.f32.xlu1 %v9184_v5  ;;  %v9187_v24 = vsel %vm620_vm2, %v19046_v17, 0.0  ;;  %v16560_v5 = vld [vmem:[%s22252_s0 + $0xa8] sm:$0xff] }
0x16bc   :  { %9188 = vadd.xlane.f32.xlu0 %v9187_v24 }
0x16bd   :  { %v19048_v4 = vpop.eup %19047 }
0x16be   :  { %v9190_v51 = vsel %vm620_vm2, %v19048_v4, 0.0 }
0x16bf   :  { %9191 = vadd.xlane.f32.xlu1 %v9190_v51  ;;  %v16559_v51 = vld [vmem:[%s22252_s0 + $0xa0] sm:$0xff] }
0x1738   :  { %v9171_v36 = vpop.xlane.xlu0 %9170 }
0x1739   :  { %19049 = vrcp.f32 %v9171_v36 }
0x173c   :  { %v9174_v19 = vpop.xlane.xlu1 %9173 }
0x173d   :  { %19051 = vrcp.f32 %v9174_v19  ;;  %v9177_v42 = vpop.xlane.xlu0 %9176 }
0x173e   :  { %19053 = vrcp.f32 %v9177_v42 }
0x1740   :  { %v9180_v12 = vpop.xlane.xlu1 %9179 }
0x1741   :  { %19055 = vrcp.f32 %v9180_v12  ;;  %v9183_v30 = vpop.xlane.xlu0 %9182 }
0x1742   :  { %19057 = vrcp.f32 %v9183_v30 }
0x1744   :  { %v9186_v57 = vpop.xlane.xlu1 %9185 }
0x1745   :  { %19059 = vrcp.f32 %v9186_v57  ;;  %v9189_v32 = vpop.xlane.xlu0 %9188 }
0x1746   :  { %v19050_v35 = vpop.eup %19049  ;;  %19061 = vrcp.f32 %v9189_v32 }
0x1747   :  { %v9194_v26 = vmul.f32 %v19050_v35, %v19034_v59  ;;  %v16546_v59 = vld [vmem:[%s22251_s7 + $0xa8] sm:$0xff] }
0x1748   :  { %v9192_v48 = vpop.xlane.xlu1 %9191 }
0x1749   :  { %19063 = vrcp.f32 %v9192_v48  ;;  %18260 = vmatmul.mubr.msk.f32.vlgmr.msra.gmra.mxu0 %vm620_vm2, %v9194_v26 }
0x174a   :  { %v19052_v47 = vpop.eup %19051  ;;  %18268 = vmatpush3.msra.mxu0 %v8469_v50  ;;  %18269 = vmatprep.mubr.msk.f32.mxu0 %vm19213_vm1, %v22260_v6 }
0x174b   :  { %v19054_v29 = vpop.eup %19053  ;;  %v9196_v63 = vmul.f32 %v19052_v47, %v19036_v49  ;;  %18277 = vmatprep.subr.mxu0 %v22260_v6  ;;  %v16574_v49 = vld [vmem:[%s22253_s30 + $0xa8] sm:$0xff] }
0x174c   :  { %v9198_v60 = vmul.f32 %v19054_v29, %v19038_v62  ;;  %v16573_v62 = vld [vmem:[%s22253_s30 + $0xa0] sm:$0xff] }
0x174d   :  { %18265 = vmatmul.mubr.msk.f32.vlgmr.msra.gmra.mxu1 %vm620_vm2, %v9196_v63 }
0x174e   :  { %v19056_v31 = vpop.eup %19055  ;;  %18270 = vmatmul.mubr.msk.f32.vlgmr.msra.gmra.mxu0 %vm620_vm2, %v9198_v60  ;;  %18273 = vmatpush3.msra.mxu1 %v20983_v55 }
0x174f   :  { %v19058_v61 = vpop.eup %19057  ;;  %v9200_v13 = vmul.f32 %v19056_v31, %v19040_v2  ;;  %18278 = vmatpush3.msra.mxu0 %v8479_v28  ;;  %18274 = vmatprep.mubr.msk.f32.mxu1 %vm19213_vm1, %v22260_v6 }
0x1750   :  { %v9202_v20 = vmul.f32 %v19058_v61, %v19042_v43  ;;  %18279 = vmatprep.mubr.msk.f32.mxu0 %vm19213_vm1, %v22260_v6  ;;  %18282 = vmatprep.subr.mxu1 %v22260_v6 }
0x1751   :  { %18287 = vmatprep.subr.mxu0 %v22260_v6  ;;  %18275 = vmatmul.mubr.msk.f32.vlgmr.msra.gmra.mxu1 %vm620_vm2, %v9200_v13 }
0x1752   :  { %v19060_v55 = vpop.eup %19059  ;;  %18280 = vmatmul.mubr.msk.f32.vlgmr.msra.gmra.mxu0 %vm620_vm2, %v9202_v20  ;;  %18283 = vmatpush3.msra.mxu1 %v20998_v27  ;;  %v21179_v20 = vld [vmem:[%s22258_s28 + $0x5] ss:$0 sm:$0xff] }
0x1753   :  { %v19062_v38 = vpop.eup %19061  ;;  %v9204_v33 = vmul.f32 %v19060_v55, %v19044_v39  ;;  %18288 = vmatpush3.msra.mxu0 %v8489_v22  ;;  %18284 = vmatprep.mubr.msk.f32.mxu1 %vm19213_vm1, %v22260_v6 }
0x1754   :  { %v9206_v18 = vmul.f32 %v19062_v38, %v19046_v17  ;;  %18289 = vmatprep.mubr.msk.f32.mxu0 %vm19213_vm1, %v22260_v6  ;;  %18292 = vmatprep.subr.mxu1 %v22260_v6 }
0x1755   :  { %18285 = vmatmul.mubr.msk.f32.vlgmr.msra.gmra.mxu1 %vm620_vm2, %v9204_v33  ;;  %18297 = vmatprep.subr.mxu0 %v16535_v40 }
0x1756   :  { %v19064_v16 = vpop.eup %19063  ;;  %18290 = vmatmul.mubr.msk.f32.vlgmr.msra.gmra.mxu0 %vm620_vm2, %v9206_v18  ;;  %18293 = vmatpush3.msra.mxu1 %v21004_v23  ;;  %v16545_v23 = vld [vmem:[%s22251_s7 + $0xa0] sm:$0xff] }
0x1757   :  { %v9208_v27 = vmul.f32 %v19064_v16, %v19048_v4  ;;  %18294 = vmatprep.mubr.msk.f32.mxu1 %vm19213_vm1, %v22260_v6  ;;  %18311 = vmatprep.subr.mxu1 %v16548_v7 }
0x1758   :  { %18298 = vmatpush3.msra.mxu0 %v16535_v40 }
0x1759   :  { %18295 = vmatmul.mubr.msk.f32.vlgmr.msra.gmra.mxu1 %vm620_vm2, %v9208_v27  ;;  %18331 = vmatprep.subr.mxu0 %v16562_v58 }
0x175a   :  { %18312 = vmatpush3.msra.mxu1 %v16548_v7  ;;  %18319 = vmatprep.mubr.msk.f32.mxu1 %vm89_vm0, %v20855_v54 }
0x175b   :  { %18313 = vmatprep.subr.mxu1 %v16547_v34 }
0x175c   :  { %18314 = vmatpush3.msra.mxu1 %v16547_v34 }
0x175d   :  { %18315 = vmatprep.subr.mxu1 %v16546_v59 }
0x175e   :  { %18316 = vmatpush3.msra.mxu1 %v16546_v59 }
0x175f   :  { %18317 = vmatprep.subr.mxu1 %v16545_v23 }
0x1760   :  { %18318 = vmatpush3.msra.mxu1 %v16545_v23 }
0x1761   :  { %18320 = vmatmul.mubr.msk.f32.vlgmr.msra.gmra.mxu1 %vm89_vm0, %v20858_v53  ;;  %18351 = vmatprep.subr.mxu1 %v16576_v37 }
0x1762   :  { %18322 = vmatprep.mubr.msk.f32.mxu1 %vm89_vm0, %v20872_v44  ;;  %18352 = vmatpush3.msra.mxu1 %v16576_v37 }
0x1763   :  { %18353 = vmatprep.subr.mxu1 %v16575_v15 }
0x1764   :  { %18354 = vmatpush3.msra.mxu1 %v16575_v15 }
0x1765   :  { %18323 = vmatmul.mubr.msk.f32.gmra.mxu1 %vm89_vm0, %v20874_v52  ;;  %18355 = vmatprep.subr.mxu1 %v16574_v49 }
0x1766   :  { %18325 = vmatprep.mubr.msk.f32.mxu1 %vm89_vm0, %v20889_v8  ;;  %18356 = vmatpush3.msra.mxu1 %v16574_v49 }
0x1767   :  { %18357 = vmatprep.subr.mxu1 %v16573_v62 }
0x1768   :  { %18358 = vmatpush3.msra.mxu1 %v16573_v62 }
0x1769   :  { %18326 = vmatmul.mubr.msk.f32.gmra.mxu1 %vm89_vm0, %v20892_v0  ;;  %18381 = vmatprep.subr.mxu1 %v22260_v6 }
0x176a   :  { %18328 = vmatprep.mubr.msk.f32.mxu1 %vm89_vm0, %v20905_v45 }
0x176d   :  { %18329 = vmatmul.mubr.msk.f32.gmra.mxu1 %vm89_vm0, %v20907_v9 }
0x176e   :  { %18359 = vmatprep.mubr.msk.f32.mxu1 %vm89_vm0, %v20855_v54 }
0x1771   :  { %18360 = vmatmul.mubr.msk.f32.vlgmr.msra.gmra.mxu1 %vm89_vm0, %v20858_v53 }
0x1772   :  { %18362 = vmatprep.mubr.msk.f32.mxu1 %vm89_vm0, %v20872_v44 }
0x1775   :  { %18363 = vmatmul.mubr.msk.f32.gmra.mxu1 %vm89_vm0, %v20874_v52 }
0x1776   :  { %18365 = vmatprep.mubr.msk.f32.mxu1 %vm89_vm0, %v20889_v8 }
0x1779   :  { %18366 = vmatmul.mubr.msk.f32.gmra.mxu1 %vm89_vm0, %v20892_v0 }
0x177a   :  { %18368 = vmatprep.mubr.msk.f32.mxu1 %vm89_vm0, %v20905_v45 }
0x177d   :  { %18369 = vmatmul.mubr.msk.f32.gmra.mxu1 %vm89_vm0, %v20907_v9 }
0x177e   :  { %18383 = vmatprep.mubr.msk.f32.mxu1 %vm19213_vm1, %v22260_v6 }
0x1809   :  { %v9278_v2 = vpop.f32.mrf.mxu0 }
0x180a   :  { %18299 = vmatprep.mubr.msk.f32.mxu0 %vm620_vm2, %v9278_v2 }
0x180b   :  { %v18261_v43 = vpop.f32.mrf.mxu0 }
0x180d   :  { %v9351_v10 = vpop.f32.mrf.mxu1 }
0x180e   :  { %v9424_v39 = vpop.f32.mrf.mxu0  ;;  %18300 = vmatmul.mubr.msk.f32.vlgmr.msra.gmra.mxu0 %vm620_vm2, %v9351_v10  ;;  %v16564_v10 = vld [vmem:[%s22256_s9 + $0x5] ss:$0 sm:$0xff] }
0x180f   :  { %v18266_v17 = vpop.f32.mrf.mxu1  ;;  %18302 = vmatprep.mubr.msk.f32.mxu0 %vm620_vm2, %v9424_v39  ;;  %18332 = vmatpush3.msra.mxu0 %v16562_v58 }
0x1810   :  { %v18271_v24 = vpop.f32.mrf.mxu0  ;;  %18333 = vmatprep.subr.mxu0 %v16561_v46 }
0x1811   :  { %v9497_v4 = vpop.f32.mrf.mxu1  ;;  %18334 = vmatpush3.msra.mxu0 %v16561_v46 }
0x1812   :  { %v9570_v36 = vpop.f32.mrf.mxu0  ;;  %18303 = vmatmul.mubr.msk.f32.gmra.mxu0 %vm620_vm2, %v9497_v4  ;;  %18335 = vmatprep.subr.mxu0 %v16560_v5 }
0x1813   :  { %v18276_v19 = vpop.f32.mrf.mxu1  ;;  %18305 = vmatprep.mubr.msk.f32.mxu0 %vm620_vm2, %v9570_v36  ;;  %18336 = vmatpush3.msra.mxu0 %v16560_v5  ;;  %v16550_v5 = vld [vmem:[%s22257_s3 + $0x5] ss:$0 sm:$0xff] }
0x1814   :  { %v18281_v42 = vpop.f32.mrf.mxu0  ;;  %18337 = vmatprep.subr.mxu0 %v16559_v51 }
0x1815   :  { %v9643_v12 = vpop.f32.mrf.mxu1  ;;  %18338 = vmatpush3.msra.mxu0 %v16559_v51 }
0x1816   :  { %v9716_v30 = vpop.f32.mrf.mxu0  ;;  %18306 = vmatmul.mubr.msk.f32.gmra.mxu0 %vm620_vm2, %v9643_v12  ;;  %18371 = vmatprep.subr.mxu0 %v22260_v6 }
0x1817   :  { %v18286_v57 = vpop.f32.mrf.mxu1  ;;  %18308 = vmatprep.mubr.msk.f32.mxu0 %vm620_vm2, %v9716_v30 }
0x1818   :  { %v18291_v32 = vpop.f32.mrf.mxu0 }
0x1819   :  { %v9789_v35 = vpop.f32.mrf.mxu1 }
0x181a   :  { %18309 = vmatmul.mubr.msk.f32.gmra.mxu0 %vm620_vm2, %v9789_v35 }
0x181b   :  { %v18296_v26 = vpop.f32.mrf.mxu1  ;;  %18339 = vmatprep.mubr.msk.f32.mxu0 %vm89_vm0, %v20855_v54 }
0x181e   :  { %18340 = vmatmul.mubr.msk.f32.vlgmr.msra.gmra.mxu0 %vm89_vm0, %v20858_v53 }
0x181f   :  { %18342 = vmatprep.mubr.msk.f32.mxu0 %vm89_vm0, %v20872_v44 }
0x1821   :  { %v18321_v50 = vpop.f32.mrf.mxu1 }
0x1822   :  { %18343 = vmatmul.mubr.msk.f32.gmra.mxu0 %vm89_vm0, %v20874_v52  ;;  %v10023_v42 = vadd.f32 %v18321_v50, %v16550_v5 }
0x1823   :  { %v10017_v48 = vpop.f32.mrf.mxu1  ;;  %18345 = vmatprep.mubr.msk.f32.mxu0 %vm89_vm0, %v20889_v8 }
0x1824   :  { %v10018_v24 = vadd.f32 %v16550_v5, %v10017_v48 }
0x1825   :  { %v18324_v47 = vpop.f32.mrf.mxu1 }
0x1826   :  { %18346 = vmatmul.mubr.msk.f32.gmra.mxu0 %vm89_vm0, %v20892_v0  ;;  %v10033_v26 = vadd.f32 %v18324_v47, %v16550_v5 }
0x1827   :  { %v10027_v29 = vpop.f32.mrf.mxu1  ;;  %18348 = vmatprep.mubr.msk.f32.mxu0 %vm89_vm0, %v20905_v45 }
0x1828   :  { %v10028_v12 = vadd.f32 %v16550_v5, %v10027_v29 }
0x1829   :  { %v21162_v63 = vpop.f32.mrf.mxu1 }
0x182a   :  { %18349 = vmatmul.mubr.msk.f32.gmra.mxu0 %vm89_vm0, %v20907_v9  ;;  %v10043_v47 = vadd.f32 %v21162_v63, %v16550_v5 }
0x182b   :  { %v10037_v60 = vpop.f32.mrf.mxu1  ;;  %18373 = vmatprep.mubr.msk.f32.mxu0 %vm19213_vm1, %v22260_v6 }
0x182c   :  { %v10038_v50 = vadd.f32 %v16550_v5, %v10037_v60 }
0x182d   :  { %v21168_v28 = vpop.f32.mrf.mxu1 }
0x182e   :  { %v10053_v63 = vadd.f32 %v21168_v28, %v16550_v5 }
0x182f   :  { %v21170_v31 = vpop.f32.mrf.mxu1 }
0x1830   :  { %v10048_v60 = vadd.f32 %v16550_v5, %v21170_v31 }
0x1831   :  { %v21172_v61 = vpop.f32.mrf.mxu1 }
0x1832   :  { %v10259_v31 = vadd.f32 %v21172_v61, %v21179_v20 }
0x1833   :  { %v21174_v13 = vpop.f32.mrf.mxu1 }
0x1835   :  { %v18364_v22 = vpop.f32.mrf.mxu1 }
0x1836   :  { %v21182_v55 = vadd.f32 %v18364_v22, %v21179_v20 }
0x1837   :  { %v10263_v38 = vpop.f32.mrf.mxu1 }
0x1838   :  { %v21185_v33 = vadd.f32 %v21179_v20, %v10263_v38  ;;  %v10254_v38 = vadd.f32 %v21179_v20, %v21174_v13 }
0x1839   :  { %v18367_v18 = vpop.f32.mrf.mxu1 }
0x183a   :  { %v21188_v7 = vadd.f32 %v18367_v18, %v21179_v20 }
0x183b   :  { %v10273_v16 = vpop.f32.mrf.mxu1 }
0x183c   :  { %v21191_v27 = vadd.f32 %v21179_v20, %v10273_v16 }
0x183d   :  { %v18370_v34 = vpop.f32.mrf.mxu1 }
0x183e   :  { %v21194_v59 = vadd.f32 %v18370_v34, %v21179_v20 }
0x183f   :  { %v21267_v16 = vpop.f32.mrf.mxu1 }
0x18ce   :  { %v21196_v23 = vpop.f32.mrf.mxu0 }
0x18d0   :  { %v21198_v37 = vpop.f32.mrf.mxu0 }
0x18d2   :  { %v21200_v15 = vpop.f32.mrf.mxu0 }
0x18d4   :  { %v21202_v49 = vpop.f32.mrf.mxu0 }
0x18d6   :  { %v21204_v62 = vpop.f32.mrf.mxu0 }
0x18d8   :  { %v21206_v40 = vpop.f32.mrf.mxu0 }
0x18da   :  { %v21208_v58 = vpop.f32.mrf.mxu0 }
0x18dc   :  { %v21210_v2 = vpop.f32.mrf.mxu0 }
0x18de   :  { %v18341_v43 = vpop.f32.mrf.mxu0 }
0x18df   :  { %v10141_v51 = vadd.f32 %v18341_v43, %v16564_v10 }
0x18e0   :  { %v10135_v46 = vpop.f32.mrf.mxu0 }
0x18e1   :  { %v10136_v39 = vadd.f32 %v16564_v10, %v10135_v46 }
0x18e2   :  { %v18344_v17 = vpop.f32.mrf.mxu0 }
0x18e3   :  { %18372 = vmatpush3.xpose.msk.msra.mxu0 %vm620_vm2, %v10136_v39  ;;  %v10151_v57 = vadd.f32 %v18344_v17, %v16564_v10 }
0x18e4   :  { %v10145_v4 = vpop.f32.mrf.mxu0  ;;  %18376 = vmatprep.subr.mxu0 %v22260_v6 }
0x18e5   :  { %v10146_v36 = vadd.f32 %v16564_v10, %v10145_v4 }
0x18e6   :  { %v18347_v19 = vpop.f32.mrf.mxu0  ;;  %18374 = vmatmul.mubr.msk.f32.vlgmr.msra.gmra.mxu0 %vm620_vm2, %v10018_v24 }
0x18e7   :  { %18377 = vmatpush3.xpose.msk.msra.mxu0 %vm620_vm2, %v10141_v51  ;;  %18382 = vmatpush3.xpose.msk.msra.mxu1 %vm620_vm2, %v10146_v36  ;;  %v10161_v29 = vadd.f32 %v18347_v19, %v16564_v10 }
0x18e8   :  { %v10155_v30 = vpop.f32.mrf.mxu0  ;;  %18378 = vmatprep.mubr.msk.f32.mxu0 %vm19213_vm1, %v22260_v6  ;;  %18386 = vmatprep.subr.mxu0 %v22260_v6 }
0x18e9   :  { %v10156_v32 = vadd.f32 %v16564_v10, %v10155_v30  ;;  %18391 = vmatprep.subr.mxu1 %v22260_v6 }
0x18ea   :  { %v18350_v35 = vpop.f32.mrf.mxu0  ;;  %18379 = vmatmul.mubr.msk.f32.vlgmr.msra.gmra.mxu0 %vm620_vm2, %v10023_v42  ;;  %18384 = vmatmul.mubr.msk.f32.vlgmr.msra.gmra.mxu1 %vm620_vm2, %v10028_v12 }
0x18eb   :  { %18387 = vmatpush3.xpose.msk.msra.mxu0 %vm620_vm2, %v10151_v57  ;;  %18392 = vmatpush3.xpose.msk.msra.mxu1 %vm620_vm2, %v10156_v32  ;;  %v10171_v18 = vadd.f32 %v18350_v35, %v16564_v10 }
0x18ec   :  { %v10165_v48 = vpop.f32.mrf.mxu0  ;;  %18388 = vmatprep.mubr.msk.f32.mxu0 %vm19213_vm1, %v22260_v6  ;;  %18393 = vmatprep.mubr.msk.f32.mxu1 %vm19213_vm1, %v22260_v6 }
0x18ed   :  { %v10166_v22 = vadd.f32 %v16564_v10, %v10165_v48  ;;  %18396 = vmatprep.subr.mxu0 %v22260_v6  ;;  %18401 = vmatprep.subr.mxu1 %v22260_v6 }
0x18ee   :  { %18389 = vmatmul.mubr.msk.f32.vlgmr.msra.gmra.mxu0 %vm620_vm2, %v10033_v26  ;;  %18394 = vmatmul.mubr.msk.f32.vlgmr.msra.gmra.mxu1 %vm620_vm2, %v10038_v50 }
0x18ef   :  { %18397 = vmatpush3.xpose.msk.msra.mxu0 %vm620_vm2, %v10161_v29  ;;  %18402 = vmatpush3.xpose.msk.msra.mxu1 %vm620_vm2, %v10166_v22 }
0x18f0   :  { %18398 = vmatprep.mubr.msk.f32.mxu0 %vm19213_vm1, %v22260_v6  ;;  %18403 = vmatprep.mubr.msk.f32.mxu1 %vm19213_vm1, %v22260_v6 }
0x18f1   :  { %18406 = vmatprep.subr.mxu0 %v22260_v6  ;;  %18411 = vmatprep.subr.mxu1 %v22260_v6 }
0x18f2   :  { %18399 = vmatmul.mubr.msk.f32.vlgmr.msra.gmra.mxu0 %vm620_vm2, %v10043_v47  ;;  %18404 = vmatmul.mubr.msk.f32.vlgmr.msra.gmra.mxu1 %vm620_vm2, %v10048_v60 }
0x18f3   :  { %18407 = vmatpush3.xpose.msk.msra.mxu0 %vm620_vm2, %v10171_v18  ;;  %18412 = vmatpush3.msra.mxu1 %v10254_v38 }
0x18f4   :  { %18408 = vmatprep.mubr.msk.f32.mxu0 %vm19213_vm1, %v22260_v6  ;;  %18416 = vmatprep.subr.mxu0 %v22260_v6 }
0x18f5   :  { %18413 = vmatprep.mubr.msk.f32.mxu1 %vm19213_vm1, %v22260_v6  ;;  %18421 = vmatprep.subr.mxu1 %v22260_v6 }
0x18f6   :  { %18409 = vmatmul.mubr.msk.f32.vlgmr.msra.gmra.mxu0 %vm620_vm2, %v10053_v63 }
0x18f7   :  { %18417 = vmatpush3.msra.mxu0 %v10259_v31  ;;  %18418 = vmatprep.mubr.msk.f32.mxu0 %vm19213_vm1, %v22260_v6 }
0x18f8   :  { %18426 = vmatprep.subr.mxu0 %v22260_v6 }
0x19a6   :  { %v10364_v28 = vpop.f32.mrf.mxu0 }
0x19a7   :  { %v10900_v13 = vmul.f32 0.35355338, %v10364_v28 }
0x19a8   :  { %v18375_v34 = vpop.f32.mrf.mxu0 }
0x19a9   :  { %v10908_v61 = vadd.f32 %v10900_v13, %v19639_v1 }
0x19aa   :  { %v10440_v43 = vpop.f32.mrf.mxu0  ;;  %v10516_v10 = vpop.f32.mrf.mxu1 }
0x19ab   :  { %v10901_v46 = vmul.f32 0.35355338, %v10440_v43  ;;  %v10902_v39 = vmul.f32 0.35355338, %v10516_v10  ;;  %v10916_v17 = vsel %vm620_vm2, %v10908_v61, -inf }
0x19ac   :  { %v18385_v5 = vpop.f32.mrf.mxu1  ;;  %10917 = vmax.xlane.f32.xlu0 %v10916_v17  ;;  %v18380_v24 = vpop.f32.mrf.mxu0 }
0x19ad   :  { %v10909_v4 = vadd.f32 %v10901_v46, %v19651_v11  ;;  %v10910_v51 = vadd.f32 %v10902_v39, %v19662_v25 }
0x19ae   :  { %v10592_v36 = vpop.f32.mrf.mxu0  ;;  %v10668_v19 = vpop.f32.mrf.mxu1 }
0x19af   :  { %v10903_v42 = vmul.f32 0.35355338, %v10592_v36  ;;  %v10904_v12 = vmul.f32 0.35355338, %v10668_v19  ;;  %v10922_v30 = vsel %vm620_vm2, %v10910_v51, -inf  ;;  %v10919_v57 = vsel %vm620_vm2, %v10909_v4, -inf }
0x19b0   :  { %v18395_v32 = vpop.f32.mrf.mxu1  ;;  %10923 = vmax.xlane.f32.xlu0 %v10922_v30  ;;  %10920 = vmax.xlane.f32.xlu1 %v10919_v57  ;;  %v18390_v35 = vpop.f32.mrf.mxu0 }
0x19b1   :  { %v10911_v26 = vadd.f32 %v10903_v42, %v19673_v21  ;;  %v10912_v50 = vadd.f32 %v10904_v12, %v19669_v41 }
0x19b2   :  { %v10744_v48 = vpop.f32.mrf.mxu0  ;;  %v10820_v29 = vpop.f32.mrf.mxu1 }
0x19b3   :  { %v10905_v22 = vmul.f32 0.35355338, %v10744_v48  ;;  %v10906_v47 = vmul.f32 0.35355338, %v10820_v29  ;;  %v10928_v60 = vsel %vm620_vm2, %v10912_v50, -inf  ;;  %v10925_v38 = vsel %vm620_vm2, %v10911_v26, -inf }
0x19b4   :  { %v18405_v18 = vpop.f32.mrf.mxu1  ;;  %10929 = vmax.xlane.f32.xlu0 %v10928_v60  ;;  %10926 = vmax.xlane.f32.xlu1 %v10925_v38  ;;  %v18400_v63 = vpop.f32.mrf.mxu0 }
0x19b5   :  { %v10913_v31 = vadd.f32 %v10905_v22, %v19682_v3  ;;  %v10914_v28 = vadd.f32 %v10906_v47, %v19676_v56 }
0x19b6   :  { %v10896_v13 = vpop.f32.mrf.mxu0 }
0x19b7   :  { %v10907_v34 = vmul.f32 0.35355338, %v10896_v13  ;;  %v10934_v43 = vsel %vm620_vm2, %v10914_v28, -inf  ;;  %v10931_v10 = vsel %vm620_vm2, %v10913_v31, -inf }
0x19b8   :  { %10935 = vmax.xlane.f32.xlu0 %v10934_v43  ;;  %10932 = vmax.xlane.f32.xlu1 %v10931_v10  ;;  %v18410_v46 = vpop.f32.mrf.mxu0 }
0x19b9   :  { %v10915_v39 = vadd.f32 %v10907_v34, %v19689_v14 }
0x19bb   :  { %v10937_v17 = vsel %vm620_vm2, %v10915_v39, -inf }
0x19bc   :  { %10938 = vmax.xlane.f32.xlu1 %v10937_v17 }
0x1a35   :  { %v10918_v5 = vpop.xlane.xlu0 %10917 }
0x1a36   :  { %v10940_v24 = vsub.f32 %v10908_v61, %v10918_v5 }
0x1a38   :  { %v10948_v36 = vmul.f32 1.442695, %v10940_v24 }
0x1a39   :  { %v10924_v19 = vpop.xlane.xlu0 %10923  ;;  %v10921_v42 = vpop.xlane.xlu1 %10920 }
0x1a3a   :  { %19065 = vpow2.f32 %v10948_v36  ;;  %v10942_v12 = vsub.f32 %v10910_v51, %v10924_v19  ;;  %v10941_v30 = vsub.f32 %v10909_v4, %v10921_v42 }
0x1a3c   :  { %v10952_v57 = vmul.f32 1.442695, %v10942_v12  ;;  %v10950_v32 = vmul.f32 1.442695, %v10941_v30 }
0x1a3d   :  { %v10930_v35 = vpop.xlane.xlu0 %10929  ;;  %v10927_v48 = vpop.xlane.xlu1 %10926 }
0x1a3e   :  { %19067 = vpow2.f32 %v10952_v57  ;;  %v10944_v29 = vsub.f32 %v10912_v50, %v10930_v35  ;;  %v10943_v22 = vsub.f32 %v10911_v26, %v10927_v48 }
0x1a3f   :  { %19069 = vpow2.f32 %v10950_v32 }
0x1a40   :  { %v10956_v47 = vmul.f32 1.442695, %v10944_v29  ;;  %v10954_v60 = vmul.f32 1.442695, %v10943_v22 }
0x1a41   :  { %v10936_v38 = vpop.xlane.xlu0 %10935  ;;  %v10933_v18 = vpop.xlane.xlu1 %10932 }
0x1a42   :  { %19071 = vpow2.f32 %v10956_v47  ;;  %v10946_v61 = vsub.f32 %v10914_v28, %v10936_v38  ;;  %v10945_v63 = vsub.f32 %v10913_v31, %v10933_v18 }
0x1a43   :  { %19073 = vpow2.f32 %v10954_v60 }
0x1a44   :  { %v10960_v13 = vmul.f32 1.442695, %v10946_v61  ;;  %v10958_v34 = vmul.f32 1.442695, %v10945_v63 }
0x1a45   :  { %v10939_v51 = vpop.xlane.xlu1 %10938 }
0x1a46   :  { %19075 = vpow2.f32 %v10960_v13  ;;  %v10947_v4 = vsub.f32 %v10915_v39, %v10939_v51 }
0x1a47   :  { %v19066_v43 = vpop.eup %19065  ;;  %19077 = vpow2.f32 %v10958_v34 }
0x1a48   :  { %v10962_v10 = vmul.f32 1.442695, %v10947_v4  ;;  %v10964_v50 = vsel %vm620_vm2, %v19066_v43, 0.0 }
0x1a49   :  { %10965 = vadd.xlane.f32.xlu0 %v10964_v50 }
0x1a4a   :  { %19079 = vpow2.f32 %v10962_v10 }
0x1a4b   :  { %v19068_v26 = vpop.eup %19067 }
0x1a4c   :  { %v19070_v46 = vpop.eup %19069  ;;  %v10970_v17 = vsel %vm620_vm2, %v19068_v26, 0.0 }
0x1a4d   :  { %10971 = vadd.xlane.f32.xlu0 %v10970_v17  ;;  %v10967_v31 = vsel %vm620_vm2, %v19070_v46, 0.0  ;;  %v16622_v17 = vld [vmem:[%s22251_s7 + $0xd0] sm:$0xff] }
0x1a4e   :  { %10968 = vadd.xlane.f32.xlu1 %v10967_v31  ;;  %v16621_v31 = vld [vmem:[%s22251_s7 + $0xc8] sm:$0xff] }
0x1a4f   :  { %v19072_v28 = vpop.eup %19071 }
0x1a50   :  { %v19074_v5 = vpop.eup %19073  ;;  %v10976_v24 = vsel %vm620_vm2, %v19072_v28, 0.0 }
0x1a51   :  { %10977 = vadd.xlane.f32.xlu0 %v10976_v24  ;;  %v10973_v39 = vsel %vm620_vm2, %v19074_v5, 0.0  ;;  %v16649_v24 = vld [vmem:[%s22253_s30 + $0xc8] sm:$0xff] }
0x1a52   :  { %10974 = vadd.xlane.f32.xlu1 %v10973_v39  ;;  %v16648_v39 = vld [vmem:[%s22253_s30 + $0xc0] sm:$0xff] }
0x1a53   :  { %v19076_v36 = vpop.eup %19075 }
0x1a54   :  { %v19078_v19 = vpop.eup %19077  ;;  %v10982_v42 = vsel %vm620_vm2, %v19076_v36, 0.0 }
0x1a55   :  { %10983 = vadd.xlane.f32.xlu0 %v10982_v42  ;;  %v10979_v12 = vsel %vm620_vm2, %v19078_v19, 0.0 }
0x1a56   :  { %10980 = vadd.xlane.f32.xlu1 %v10979_v12 }
0x1a57   :  { %v19080_v30 = vpop.eup %19079 }
0x1a58   :  { %v10985_v57 = vsel %vm620_vm2, %v19080_v30, 0.0 }
0x1a5a   :  { %10986 = vadd.xlane.f32.xlu1 %v10985_v57 }
0x1ad2   :  { %v10966_v32 = vpop.xlane.xlu0 %10965 }
0x1ad3   :  { %19081 = vrcp.f32 %v10966_v32  ;;  %v16636_v32 = vld [vmem:[%s22252_s0 + $0xd0] sm:$0xff] }
0x1ad6   :  { %v10972_v35 = vpop.xlane.xlu0 %10971 }
0x1ad7   :  { %19083 = vrcp.f32 %v10972_v35  ;;  %v10969_v48 = vpop.xlane.xlu1 %10968 }
0x1ad8   :  { %19085 = vrcp.f32 %v10969_v48 }
0x1ada   :  { %v10978_v29 = vpop.xlane.xlu0 %10977 }
0x1adb   :  { %19087 = vrcp.f32 %v10978_v29  ;;  %v10975_v22 = vpop.xlane.xlu1 %10974  ;;  %v16635_v29 = vld [vmem:[%s22252_s0 + $0xc8] sm:$0xff] }
0x1adc   :  { %19089 = vrcp.f32 %v10975_v22 }
0x1ade   :  { %v10984_v47 = vpop.xlane.xlu0 %10983 }
0x1adf   :  { %19091 = vrcp.f32 %v10984_v47  ;;  %v10981_v60 = vpop.xlane.xlu1 %10980 }
0x1ae0   :  { %v19082_v38 = vpop.eup %19081  ;;  %19093 = vrcp.f32 %v10981_v60  ;;  %v16634_v60 = vld [vmem:[%s22252_s0 + $0xc0] sm:$0xff] }
0x1ae1   :  { %v10989_v18 = vmul.f32 %v19082_v38, %v19066_v43 }
0x1ae3   :  { %v10987_v61 = vpop.xlane.xlu1 %10986  ;;  %18414 = vmatmul.mubr.msk.f32.vlgmr.msra.gmra.mxu1 %vm620_vm2, %v10989_v18 }
0x1ae4   :  { %v19084_v63 = vpop.eup %19083  ;;  %19095 = vrcp.f32 %v10987_v61  ;;  %18422 = vmatpush3.msra.mxu1 %v21185_v33  ;;  %18423 = vmatprep.mubr.msk.f32.mxu1 %vm19213_vm1, %v22260_v6  ;;  %v10284_v33 = vadd.f32 %v21179_v20, %v21267_v16  ;;  %v16623_v16 = vld [vmem:[%s22251_s7 + $0xd8] sm:$0xff] }
0x1ae5   :  { %v19086_v13 = vpop.eup %19085  ;;  %v10993_v34 = vmul.f32 %v19084_v63, %v19068_v26  ;;  %18431 = vmatprep.subr.mxu1 %v22260_v6 }
0x1ae6   :  { %v10991_v51 = vmul.f32 %v19086_v13, %v19070_v46 }
0x1ae7   :  { %18424 = vmatmul.mubr.msk.f32.vlgmr.msra.gmra.mxu1 %vm620_vm2, %v10993_v34 }
0x1ae8   :  { %v19088_v4 = vpop.eup %19087  ;;  %18419 = vmatmul.mubr.msk.f32.vlgmr.msra.gmra.mxu0 %vm620_vm2, %v10991_v51  ;;  %18432 = vmatpush3.msra.mxu1 %v21191_v27 }
0x1ae9   :  { %v19090_v43 = vpop.eup %19089  ;;  %v10997_v10 = vmul.f32 %v19088_v4, %v19072_v28  ;;  %18427 = vmatpush3.msra.mxu0 %v21182_v55  ;;  %18428 = vmatprep.mubr.msk.f32.mxu0 %vm19213_vm1, %v22260_v6  ;;  %v16651_v28 = vld [vmem:[%s22253_s30 + $0xd8] sm:$0xff] }
0x1aea   :  { %v10995_v50 = vmul.f32 %v19090_v43, %v19074_v5  ;;  %18433 = vmatprep.mubr.msk.f32.mxu1 %vm19213_vm1, %v22260_v6  ;;  %18436 = vmatprep.subr.mxu0 %v22260_v6  ;;  %v16650_v5 = vld [vmem:[%s22253_s30 + $0xd0] sm:$0xff] }
0x1aeb   :  { %18441 = vmatprep.subr.mxu1 %v22260_v6  ;;  %18434 = vmatmul.mubr.msk.f32.vlgmr.msra.gmra.mxu1 %vm620_vm2, %v10997_v10 }
0x1aec   :  { %v19092_v27 = vpop.eup %19091  ;;  %18429 = vmatmul.mubr.msk.f32.vlgmr.msra.gmra.mxu0 %vm620_vm2, %v10995_v50  ;;  %18442 = vmatpush3.msra.mxu1 %v10284_v33 }
0x1aed   :  { %v19094_v55 = vpop.eup %19093  ;;  %v11001_v26 = vmul.f32 %v19092_v27, %v19076_v36  ;;  %18437 = vmatpush3.msra.mxu0 %v21188_v7  ;;  %18438 = vmatprep.mubr.msk.f32.mxu0 %vm19213_vm1, %v22260_v6  ;;  %v16611_v36 = vld [vmem:[%s22216_s10 + $0x28] sm:$0xff] }
0x1aee   :  { %v10999_v20 = vmul.f32 %v19094_v55, %v19078_v19  ;;  %18443 = vmatprep.mubr.msk.f32.mxu1 %vm19213_vm1, %v22260_v6  ;;  %18446 = vmatprep.subr.mxu0 %v22260_v6  ;;  %v16637_v19 = vld [vmem:[%s22252_s0 + $0xd8] sm:$0xff] }
0x1aef   :  { %18444 = vmatmul.mubr.msk.f32.vlgmr.msra.gmra.mxu1 %vm620_vm2, %v11001_v26  ;;  %18451 = vmatprep.subr.mxu1 %v16611_v36 }
0x1af0   :  { %18439 = vmatmul.mubr.msk.f32.vlgmr.msra.gmra.mxu0 %vm620_vm2, %v10999_v20  ;;  %18452 = vmatpush3.msra.mxu1 %v16611_v36 }
0x1af1   :  { %v19096_v46 = vpop.eup %19095  ;;  %18447 = vmatpush3.msra.mxu0 %v21194_v59  ;;  %18448 = vmatprep.mubr.msk.f32.mxu0 %vm19213_vm1, %v22260_v6  ;;  %v16620_v59 = vld [vmem:[%s22251_s7 + $0xc0] sm:$0xff] }
0x1af2   :  { %v11003_v7 = vmul.f32 %v19096_v46, %v19080_v30  ;;  %18465 = vmatprep.subr.mxu0 %v16623_v16  ;;  %18485 = vmatprep.subr.mxu1 %v16637_v19 }
0x1af4   :  { %18449 = vmatmul.mubr.msk.f32.vlgmr.msra.gmra.mxu0 %vm620_vm2, %v11003_v7  ;;  %v21446_v7 = vld [vmem:[%s22258_s28 + $0x6] ss:$0 sm:$0xff] }
0x1af5   :  { %18466 = vmatpush3.msra.mxu0 %v16623_v16  ;;  %18473 = vmatprep.mubr.msk.f32.mxu0 %vm89_vm0, %v20855_v54 }
0x1af6   :  { %18467 = vmatprep.subr.mxu0 %v16622_v17 }
0x1af7   :  { %18468 = vmatpush3.msra.mxu0 %v16622_v17 }
0x1af8   :  { %18469 = vmatprep.subr.mxu0 %v16621_v31 }
0x1af9   :  { %18470 = vmatpush3.msra.mxu0 %v16621_v31 }
0x1afa   :  { %18471 = vmatprep.subr.mxu0 %v16620_v59 }
0x1afb   :  { %18472 = vmatpush3.msra.mxu0 %v16620_v59 }
0x1afc   :  { %18474 = vmatmul.mubr.msk.f32.vlgmr.msra.gmra.mxu0 %vm89_vm0, %v20858_v53  ;;  %18505 = vmatprep.subr.mxu0 %v16651_v28 }
0x1afd   :  { %18476 = vmatprep.mubr.msk.f32.mxu0 %vm89_vm0, %v20872_v44  ;;  %18506 = vmatpush3.msra.mxu0 %v16651_v28 }
0x1afe   :  { %18507 = vmatprep.subr.mxu0 %v16650_v5 }
0x1aff   :  { %18508 = vmatpush3.msra.mxu0 %v16650_v5 }
0x1b00   :  { %18477 = vmatmul.mubr.msk.f32.gmra.mxu0 %vm89_vm0, %v20874_v52  ;;  %18509 = vmatprep.subr.mxu0 %v16649_v24 }
0x1b01   :  { %18479 = vmatprep.mubr.msk.f32.mxu0 %vm89_vm0, %v20889_v8  ;;  %18510 = vmatpush3.msra.mxu0 %v16649_v24 }
0x1b02   :  { %18511 = vmatprep.subr.mxu0 %v16648_v39 }
0x1b03   :  { %18512 = vmatpush3.msra.mxu0 %v16648_v39 }
0x1b04   :  { %18480 = vmatmul.mubr.msk.f32.gmra.mxu0 %vm89_vm0, %v20892_v0  ;;  %18535 = vmatprep.subr.mxu0 %v22260_v6 }
0x1b05   :  { %18482 = vmatprep.mubr.msk.f32.mxu0 %vm89_vm0, %v20905_v45 }
0x1b08   :  { %18483 = vmatmul.mubr.msk.f32.gmra.mxu0 %vm89_vm0, %v20907_v9 }
0x1b09   :  { %18513 = vmatprep.mubr.msk.f32.mxu0 %vm89_vm0, %v20855_v54 }
0x1b0c   :  { %18514 = vmatmul.mubr.msk.f32.vlgmr.msra.gmra.mxu0 %vm89_vm0, %v20858_v53 }
0x1b0d   :  { %18516 = vmatprep.mubr.msk.f32.mxu0 %vm89_vm0, %v20872_v44 }
0x1b10   :  { %18517 = vmatmul.mubr.msk.f32.gmra.mxu0 %vm89_vm0, %v20874_v52 }
0x1b11   :  { %18519 = vmatprep.mubr.msk.f32.mxu0 %vm89_vm0, %v20889_v8 }
0x1b14   :  { %18520 = vmatmul.mubr.msk.f32.gmra.mxu0 %vm89_vm0, %v20892_v0 }
0x1b15   :  { %18522 = vmatprep.mubr.msk.f32.mxu0 %vm89_vm0, %v20905_v45 }
0x1b18   :  { %18523 = vmatmul.mubr.msk.f32.gmra.mxu0 %vm89_vm0, %v20907_v9 }
0x1b19   :  { %18537 = vmatprep.mubr.msk.f32.mxu0 %vm19213_vm1, %v22260_v6 }
0x1ba3   :  { %v11073_v42 = vpop.f32.mrf.mxu1 }
0x1ba4   :  { %18453 = vmatprep.mubr.msk.f32.mxu1 %vm620_vm2, %v11073_v42 }
0x1ba5   :  { %v18415_v12 = vpop.f32.mrf.mxu1 }
0x1ba6   :  { %v16544_v12 = vld [vmem:[%s22217_s11 + $0x1] ss:$0 sm:$0xff] }
0x1ba7   :  { %v11219_v30 = vpop.f32.mrf.mxu1 }
0x1ba8   :  { %v11146_v57 = vpop.f32.mrf.mxu0 }
0x1ba9   :  { %18454 = vmatmul.mubr.msk.f32.vlgmr.msra.gmra.mxu1 %vm620_vm2, %v11146_v57  ;;  %v18425_v35 = vpop.f32.mrf.mxu1 }
0x1baa   :  { %v18420_v48 = vpop.f32.mrf.mxu0  ;;  %18456 = vmatprep.mubr.msk.f32.mxu1 %vm620_vm2, %v11219_v30  ;;  %18486 = vmatpush3.msra.mxu1 %v16637_v19  ;;  %v9931_v30 = vadd.f32 %v21196_v23, %v16544_v12 }
0x1bab   :  { %v11365_v22 = vpop.f32.mrf.mxu1  ;;  %18487 = vmatprep.subr.mxu1 %v16636_v32 }
0x1bac   :  { %v11292_v47 = vpop.f32.mrf.mxu0  ;;  %18488 = vmatpush3.msra.mxu1 %v16636_v32  ;;  %v9930_v32 = vadd.f32 %v16544_v12, %v21198_v37  ;;  %v9934_v37 = vadd.f32 %v16544_v12, %v21206_v40  ;;  %v16639_v40 = vld [vmem:[%s22256_s9 + $0x6] ss:$0 sm:$0xff] }
0x1bad   :  { %18457 = vmatmul.mubr.msk.f32.gmra.mxu1 %vm620_vm2, %v11292_v47  ;;  %v18435_v38 = vpop.f32.mrf.mxu1  ;;  %18489 = vmatprep.subr.mxu1 %v16635_v29 }
0x1bae   :  { %v18430_v18 = vpop.f32.mrf.mxu0  ;;  %18459 = vmatprep.mubr.msk.f32.mxu1 %vm620_vm2, %v11365_v22  ;;  %18490 = vmatpush3.msra.mxu1 %v16635_v29  ;;  %v9933_v29 = vadd.f32 %v21200_v15, %v16544_v12  ;;  %v9937_v15 = vadd.f32 %v21208_v58, %v16544_v12  ;;  %v16625_v58 = vld [vmem:[%s22257_s3 + $0x6] ss:$0 sm:$0xff] }
0x1baf   :  { %v11511_v61 = vpop.f32.mrf.mxu1  ;;  %18491 = vmatprep.subr.mxu1 %v16634_v60 }
0x1bb0   :  { %v11438_v63 = vpop.f32.mrf.mxu0  ;;  %18492 = vmatpush3.msra.mxu1 %v16634_v60  ;;  %v9932_v60 = vadd.f32 %v16544_v12, %v21202_v49  ;;  %v9936_v49 = vadd.f32 %v16544_v12, %v21210_v2 }
0x1bb1   :  { %18460 = vmatmul.mubr.msk.f32.gmra.mxu1 %vm620_vm2, %v11438_v63  ;;  %v18445_v13 = vpop.f32.mrf.mxu1  ;;  %18525 = vmatprep.subr.mxu1 %v22260_v6 }
0x1bb2   :  { %v18440_v34 = vpop.f32.mrf.mxu0  ;;  %18462 = vmatprep.mubr.msk.f32.mxu1 %vm620_vm2, %v11511_v61  ;;  %v9935_v61 = vadd.f32 %v21204_v62, %v16544_v12 }
0x1bb4   :  { %v11584_v51 = vpop.f32.mrf.mxu0 }
0x1bb5   :  { %18463 = vmatmul.mubr.msk.f32.gmra.mxu1 %vm620_vm2, %v11584_v51 }
0x1bb6   :  { %v18450_v4 = vpop.f32.mrf.mxu0  ;;  %18493 = vmatprep.mubr.msk.f32.mxu1 %vm89_vm0, %v20855_v54 }
0x1bb9   :  { %18494 = vmatmul.mubr.msk.f32.vlgmr.msra.gmra.mxu1 %vm89_vm0, %v20858_v53 }
0x1bba   :  { %18496 = vmatprep.mubr.msk.f32.mxu1 %vm89_vm0, %v20872_v44 }
0x1bbc   :  { %v21413_v43 = vpop.f32.mrf.mxu0 }
0x1bbd   :  { %18497 = vmatmul.mubr.msk.f32.gmra.mxu1 %vm89_vm0, %v20874_v52 }
0x1bbe   :  { %v11806_v10 = vpop.f32.mrf.mxu0  ;;  %18499 = vmatprep.mubr.msk.f32.mxu1 %vm89_vm0, %v20889_v8 }
0x1bbf   :  { %v11807_v2 = vadd.f32 %v16625_v58, %v11806_v10 }
0x1bc0   :  { %v21419_v33 = vpop.f32.mrf.mxu0 }
0x1bc1   :  { %18500 = vmatmul.mubr.msk.f32.gmra.mxu1 %vm89_vm0, %v20892_v0 }
0x1bc2   :  { %v21423_v50 = vpop.f32.mrf.mxu0  ;;  %18502 = vmatprep.mubr.msk.f32.mxu1 %vm89_vm0, %v20905_v45 }
0x1bc4   :  { %v21427_v27 = vpop.f32.mrf.mxu0 }
0x1bc5   :  { %18503 = vmatmul.mubr.msk.f32.gmra.mxu1 %vm89_vm0, %v20907_v9 }
0x1bc6   :  { %v21431_v55 = vpop.f32.mrf.mxu0  ;;  %18527 = vmatprep.mubr.msk.f32.mxu1 %vm19213_vm1, %v22260_v6 }
0x1bc8   :  { %v21435_v26 = vpop.f32.mrf.mxu0 }
0x1bca   :  { %v21437_v20 = vpop.f32.mrf.mxu0 }
0x1bcc   :  { %v21439_v16 = vpop.f32.mrf.mxu0 }
0x1bce   :  { %v21441_v46 = vpop.f32.mrf.mxu0 }
0x1bd0   :  { %v18518_v17 = vpop.f32.mrf.mxu0 }
0x1bd1   :  { %v21449_v31 = vadd.f32 %v18518_v17, %v21446_v7 }
0x1bd2   :  { %v12052_v59 = vpop.f32.mrf.mxu0 }
0x1bd3   :  { %v21452_v28 = vadd.f32 %v21446_v7, %v12052_v59 }
0x1bd4   :  { %v18521_v5 = vpop.f32.mrf.mxu0 }
0x1bd5   :  { %v21455_v24 = vadd.f32 %v18521_v5, %v21446_v7 }
0x1bd6   :  { %v12062_v39 = vpop.f32.mrf.mxu0 }
0x1bd7   :  { %v21458_v36 = vadd.f32 %v21446_v7, %v12062_v39 }
0x1bd8   :  { %v18524_v19 = vpop.f32.mrf.mxu0 }
0x1bd9   :  { %v21461_v42 = vadd.f32 %v18524_v19, %v21446_v7 }
0x1c69   :  { %v18455_v57 = vpop.f32.mrf.mxu1 }
0x1c6a   :  { %v21468_v35 = vadd.f32 %v18455_v57, %v9931_v30 }
0x1c6b   :  { %v11680_v48 = vpop.f32.mrf.mxu1 }
0x1c6c   :  { %v21471_v22 = vadd.f32 %v11680_v48, %v9930_v32 }
0x1c6d   :  { %v18458_v47 = vpop.f32.mrf.mxu1 }
0x1c6e   :  { %v21474_v38 = vadd.f32 %v18458_v47, %v9933_v29  ;;  %v11812_v29 = vadd.f32 %v21413_v43, %v16625_v58  ;;  %v11817_v47 = vadd.f32 %v16625_v58, %v21423_v50  ;;  %v11822_v43 = vadd.f32 %v21419_v33, %v16625_v58 }
0x1c6f   :  { %v11690_v18 = vpop.f32.mrf.mxu1  ;;  %v11827_v50 = vadd.f32 %v16625_v58, %v21431_v55  ;;  %v11832_v33 = vadd.f32 %v21427_v27, %v16625_v58  ;;  %v11837_v55 = vadd.f32 %v16625_v58, %v21437_v20  ;;  %v11842_v27 = vadd.f32 %v21435_v26, %v16625_v58 }
0x1c70   :  { %v21477_v63 = vadd.f32 %v11690_v18, %v9932_v60  ;;  %v12048_v20 = vadd.f32 %v21439_v16, %v21446_v7 }
0x1c71   :  { %v18461_v23 = vpop.f32.mrf.mxu1 }
0x1c72   :  { %v21480_v13 = vadd.f32 %v18461_v23, %v9935_v61 }
0x1c73   :  { %v11700_v34 = vpop.f32.mrf.mxu1 }
0x1c74   :  { %v21483_v51 = vadd.f32 %v11700_v34, %v9934_v37 }
0x1c75   :  { %v18464_v4 = vpop.f32.mrf.mxu1 }
0x1c76   :  { %v21486_v17 = vadd.f32 %v18464_v4, %v9937_v15  ;;  %v12043_v15 = vadd.f32 %v21446_v7, %v21441_v46 }
0x1c77   :  { %v11710_v59 = vpop.f32.mrf.mxu1 }
0x1c78   :  { %v21488_v5 = vadd.f32 %v11710_v59, %v9936_v49  ;;  %v21549_v49 = vpop.f32.mrf.mxu0 }
0x1c79   :  { %v18495_v62 = vpop.f32.mrf.mxu1 }
0x1c7a   :  { %v11930_v57 = vadd.f32 %v18495_v62, %v16639_v40 }
0x1c7b   :  { %v11924_v39 = vpop.f32.mrf.mxu1 }
0x1c7c   :  { %v11925_v19 = vadd.f32 %v16639_v40, %v11924_v39 }
0x1c7d   :  { %v18498_v30 = vpop.f32.mrf.mxu1 }
0x1c7e   :  { %18526 = vmatpush3.xpose.msk.msra.mxu1 %vm620_vm2, %v11925_v19  ;;  %v11940_v10 = vadd.f32 %v18498_v30, %v16639_v40 }
0x1c7f   :  { %v11934_v12 = vpop.f32.mrf.mxu1  ;;  %18530 = vmatprep.subr.mxu1 %v22260_v6 }
0x1c80   :  { %v11935_v32 = vadd.f32 %v16639_v40, %v11934_v12 }
0x1c81   :  { %v18501_v48 = vpop.f32.mrf.mxu1  ;;  %18528 = vmatmul.mubr.msk.f32.vlgmr.msra.gmra.mxu1 %vm620_vm2, %v11807_v2 }
0x1c82   :  { %18531 = vmatpush3.xpose.msk.msra.mxu1 %vm620_vm2, %v11930_v57  ;;  %18536 = vmatpush3.xpose.msk.msra.mxu0 %vm620_vm2, %v11935_v32  ;;  %v11950_v37 = vadd.f32 %v18501_v48, %v16639_v40 }
0x1c83   :  { %v11944_v60 = vpop.f32.mrf.mxu1  ;;  %18532 = vmatprep.mubr.msk.f32.mxu1 %vm19213_vm1, %v22260_v6  ;;  %18540 = vmatprep.subr.mxu1 %v22260_v6 }
0x1c84   :  { %v11945_v18 = vadd.f32 %v16639_v40, %v11944_v60  ;;  %18545 = vmatprep.subr.mxu0 %v22260_v6 }
0x1c85   :  { %v18504_v61 = vpop.f32.mrf.mxu1  ;;  %18533 = vmatmul.mubr.msk.f32.vlgmr.msra.gmra.mxu1 %vm620_vm2, %v11812_v29  ;;  %18538 = vmatmul.mubr.msk.f32.vlgmr.msra.gmra.mxu0 %vm620_vm2, %v11817_v47 }
0x1c86   :  { %18541 = vmatpush3.xpose.msk.msra.mxu1 %vm620_vm2, %v11940_v10  ;;  %18546 = vmatpush3.xpose.msk.msra.mxu0 %vm620_vm2, %v11945_v18  ;;  %v11960_v4 = vadd.f32 %v18504_v61, %v16639_v40 }
0x1c87   :  { %v11954_v23 = vpop.f32.mrf.mxu1  ;;  %18542 = vmatprep.mubr.msk.f32.mxu1 %vm19213_vm1, %v22260_v6  ;;  %18547 = vmatprep.mubr.msk.f32.mxu0 %vm19213_vm1, %v22260_v6 }
0x1c88   :  { %v11955_v34 = vadd.f32 %v16639_v40, %v11954_v23  ;;  %18550 = vmatprep.subr.mxu1 %v22260_v6  ;;  %18555 = vmatprep.subr.mxu0 %v22260_v6 }
0x1c89   :  { %18543 = vmatmul.mubr.msk.f32.vlgmr.msra.gmra.mxu1 %vm620_vm2, %v11822_v43  ;;  %18548 = vmatmul.mubr.msk.f32.vlgmr.msra.gmra.mxu0 %vm620_vm2, %v11827_v50 }
0x1c8a   :  { %18551 = vmatpush3.xpose.msk.msra.mxu1 %vm620_vm2, %v11950_v37  ;;  %18556 = vmatpush3.xpose.msk.msra.mxu0 %vm620_vm2, %v11955_v34 }
0x1c8b   :  { %18552 = vmatprep.mubr.msk.f32.mxu1 %vm19213_vm1, %v22260_v6  ;;  %18557 = vmatprep.mubr.msk.f32.mxu0 %vm19213_vm1, %v22260_v6 }
0x1c8c   :  { %18560 = vmatprep.subr.mxu1 %v22260_v6  ;;  %18565 = vmatprep.subr.mxu0 %v22260_v6 }
0x1c8d   :  { %18553 = vmatmul.mubr.msk.f32.vlgmr.msra.gmra.mxu1 %vm620_vm2, %v11832_v33  ;;  %18558 = vmatmul.mubr.msk.f32.vlgmr.msra.gmra.mxu0 %vm620_vm2, %v11837_v55 }
0x1c8e   :  { %18561 = vmatpush3.xpose.msk.msra.mxu1 %vm620_vm2, %v11960_v4  ;;  %18566 = vmatpush3.msra.mxu0 %v12043_v15 }
0x1c8f   :  { %18562 = vmatprep.mubr.msk.f32.mxu1 %vm19213_vm1, %v22260_v6  ;;  %18570 = vmatprep.subr.mxu1 %v22260_v6 }
0x1c90   :  { %18567 = vmatprep.mubr.msk.f32.mxu0 %vm19213_vm1, %v22260_v6  ;;  %18575 = vmatprep.subr.mxu0 %v22260_v6 }
0x1c91   :  { %18563 = vmatmul.mubr.msk.f32.vlgmr.msra.gmra.mxu1 %vm620_vm2, %v11842_v27 }
0x1c92   :  { %18571 = vmatpush3.msra.mxu1 %v12048_v20  ;;  %18572 = vmatprep.mubr.msk.f32.mxu1 %vm19213_vm1, %v22260_v6 }
0x1c93   :  { %18580 = vmatprep.subr.mxu1 %v22260_v6 }
0x1d41   :  { %v12153_v26 = vpop.f32.mrf.mxu1 }
0x1d42   :  { %v12689_v46 = vmul.f32 0.35355338, %v12153_v26 }
0x1d43   :  { %v18529_v59 = vpop.f32.mrf.mxu1 }
0x1d44   :  { %v12697_v16 = vadd.f32 %v12689_v46, %v19639_v1 }
0x1d45   :  { %v12229_v62 = vpop.f32.mrf.mxu1  ;;  %v12305_v40 = vpop.f32.mrf.mxu0 }
0x1d46   :  { %v12690_v39 = vmul.f32 0.35355338, %v12229_v62  ;;  %v12691_v19 = vmul.f32 0.35355338, %v12305_v40  ;;  %v12705_v30 = vsel %vm620_vm2, %v12697_v16, -inf }
0x1d47   :  { %v18539_v58 = vpop.f32.mrf.mxu0  ;;  %12706 = vmax.xlane.f32.xlu0 %v12705_v30  ;;  %v18534_v2 = vpop.f32.mrf.mxu1 }
0x1d48   :  { %v12698_v12 = vadd.f32 %v12690_v39, %v19651_v11  ;;  %v12699_v57 = vadd.f32 %v12691_v19, %v19662_v25 }
0x1d49   :  { %v12381_v32 = vpop.f32.mrf.mxu1  ;;  %v12457_v48 = vpop.f32.mrf.mxu0 }
0x1d4a   :  { %v12692_v29 = vmul.f32 0.35355338, %v12381_v32  ;;  %v12693_v47 = vmul.f32 0.35355338, %v12457_v48  ;;  %v12711_v60 = vsel %vm620_vm2, %v12699_v57, -inf  ;;  %v12708_v10 = vsel %vm620_vm2, %v12698_v12, -inf }
0x1d4b   :  { %v18549_v18 = vpop.f32.mrf.mxu0  ;;  %12712 = vmax.xlane.f32.xlu0 %v12711_v60  ;;  %12709 = vmax.xlane.f32.xlu1 %v12708_v10  ;;  %v18544_v61 = vpop.f32.mrf.mxu1 }
0x1d4c   :  { %v12700_v43 = vadd.f32 %v12692_v29, %v19673_v21  ;;  %v12701_v50 = vadd.f32 %v12693_v47, %v19669_v41 }
0x1d4d   :  { %v12533_v23 = vpop.f32.mrf.mxu1  ;;  %v12609_v37 = vpop.f32.mrf.mxu0 }
0x1d4e   :  { %v12694_v34 = vmul.f32 0.35355338, %v12533_v23  ;;  %v12695_v33 = vmul.f32 0.35355338, %v12609_v37  ;;  %v12717_v55 = vsel %vm620_vm2, %v12701_v50, -inf  ;;  %v12714_v15 = vsel %vm620_vm2, %v12700_v43, -inf }
0x1d4f   :  { %v18559_v4 = vpop.f32.mrf.mxu0  ;;  %12718 = vmax.xlane.f32.xlu0 %v12717_v55  ;;  %12715 = vmax.xlane.f32.xlu1 %v12714_v15  ;;  %v18554_v27 = vpop.f32.mrf.mxu1 }
0x1d50   :  { %v12702_v20 = vadd.f32 %v12694_v34, %v19682_v3  ;;  %v12703_v26 = vadd.f32 %v12695_v33, %v19676_v56 }
0x1d51   :  { %v12685_v46 = vpop.f32.mrf.mxu1 }
0x1d52   :  { %v12696_v59 = vmul.f32 0.35355338, %v12685_v46  ;;  %v12723_v62 = vsel %vm620_vm2, %v12703_v26, -inf  ;;  %v12720_v40 = vsel %vm620_vm2, %v12702_v20, -inf }
0x1d53   :  { %12724 = vmax.xlane.f32.xlu0 %v12723_v62  ;;  %12721 = vmax.xlane.f32.xlu1 %v12720_v40  ;;  %v18564_v39 = vpop.f32.mrf.mxu1 }
0x1d54   :  { %v12704_v19 = vadd.f32 %v12696_v59, %v19689_v14 }
0x1d56   :  { %v12726_v30 = vsel %vm620_vm2, %v12704_v19, -inf }
0x1d57   :  { %12727 = vmax.xlane.f32.xlu1 %v12726_v30 }
0x1dd0   :  { %v12707_v58 = vpop.xlane.xlu0 %12706 }
0x1dd1   :  { %v12729_v2 = vsub.f32 %v12697_v16, %v12707_v58 }
0x1dd3   :  { %v12737_v32 = vmul.f32 1.442695, %v12729_v2 }
0x1dd4   :  { %v12713_v48 = vpop.xlane.xlu0 %12712  ;;  %v12710_v29 = vpop.xlane.xlu1 %12709 }
0x1dd5   :  { %19097 = vpow2.f32 %v12737_v32  ;;  %v12731_v47 = vsub.f32 %v12699_v57, %v12713_v48  ;;  %v12730_v60 = vsub.f32 %v12698_v12, %v12710_v29 }
0x1dd7   :  { %v12741_v10 = vmul.f32 1.442695, %v12731_v47  ;;  %v12739_v18 = vmul.f32 1.442695, %v12730_v60 }
0x1dd8   :  { %v12719_v61 = vpop.xlane.xlu0 %12718  ;;  %v12716_v23 = vpop.xlane.xlu1 %12715 }
0x1dd9   :  { %19099 = vpow2.f32 %v12741_v10  ;;  %v12733_v37 = vsub.f32 %v12701_v50, %v12719_v61  ;;  %v12732_v34 = vsub.f32 %v12700_v43, %v12716_v23 }
0x1dda   :  { %19101 = vpow2.f32 %v12739_v18 }
0x1ddb   :  { %v12745_v33 = vmul.f32 1.442695, %v12733_v37  ;;  %v12743_v55 = vmul.f32 1.442695, %v12732_v34 }
0x1ddc   :  { %v12725_v15 = vpop.xlane.xlu0 %12724  ;;  %v12722_v4 = vpop.xlane.xlu1 %12721 }
0x1ddd   :  { %19103 = vpow2.f32 %v12745_v33  ;;  %v12735_v16 = vsub.f32 %v12703_v26, %v12725_v15  ;;  %v12734_v27 = vsub.f32 %v12702_v20, %v12722_v4 }
0x1dde   :  { %19105 = vpow2.f32 %v12743_v55 }
0x1ddf   :  { %v12749_v46 = vmul.f32 1.442695, %v12735_v16  ;;  %v12747_v59 = vmul.f32 1.442695, %v12734_v27 }
0x1de0   :  { %v12728_v57 = vpop.xlane.xlu1 %12727 }
0x1de1   :  { %19107 = vpow2.f32 %v12749_v46  ;;  %v12736_v12 = vsub.f32 %v12704_v19, %v12728_v57 }
0x1de2   :  { %v19098_v62 = vpop.eup %19097  ;;  %19109 = vpow2.f32 %v12747_v59 }
0x1de3   :  { %v12751_v40 = vmul.f32 1.442695, %v12736_v12  ;;  %v12753_v50 = vsel %vm620_vm2, %v19098_v62, 0.0 }
0x1de4   :  { %12754 = vadd.xlane.f32.xlu0 %v12753_v50 }
0x1de5   :  { %19111 = vpow2.f32 %v12751_v40 }
0x1de6   :  { %v19100_v43 = vpop.eup %19099 }
0x1de7   :  { %v19102_v39 = vpop.eup %19101  ;;  %v12759_v30 = vsel %vm620_vm2, %v19100_v43, 0.0 }
0x1de8   :  { %12760 = vadd.xlane.f32.xlu0 %v12759_v30  ;;  %v12756_v20 = vsel %vm620_vm2, %v19102_v39, 0.0  ;;  %v16697_v30 = vld [vmem:[%s22251_s7 + $0xf0] sm:$0xff] }
0x1de9   :  { %12757 = vadd.xlane.f32.xlu1 %v12756_v20  ;;  %v16696_v20 = vld [vmem:[%s22251_s7 + $0xe8] sm:$0xff] }
0x1dea   :  { %v19104_v26 = vpop.eup %19103 }
0x1deb   :  { %v19106_v58 = vpop.eup %19105  ;;  %v12765_v2 = vsel %vm620_vm2, %v19104_v26, 0.0 }
0x1dec   :  { %12766 = vadd.xlane.f32.xlu0 %v12765_v2  ;;  %v12762_v19 = vsel %vm620_vm2, %v19106_v58, 0.0  ;;  %v16724_v2 = vld [vmem:[%s22253_s30 + $0xe8] sm:$0xff] }
0x1ded   :  { %12763 = vadd.xlane.f32.xlu1 %v12762_v19  ;;  %v16723_v19 = vld [vmem:[%s22253_s30 + $0xe0] sm:$0xff] }
0x1dee   :  { %v19108_v32 = vpop.eup %19107 }
0x1def   :  { %v19110_v48 = vpop.eup %19109  ;;  %v12771_v29 = vsel %vm620_vm2, %v19108_v32, 0.0 }
0x1df0   :  { %12772 = vadd.xlane.f32.xlu0 %v12771_v29  ;;  %v12768_v47 = vsel %vm620_vm2, %v19110_v48, 0.0 }
0x1df1   :  { %12769 = vadd.xlane.f32.xlu1 %v12768_v47 }
0x1df2   :  { %v19112_v60 = vpop.eup %19111 }
0x1df3   :  { %v12774_v10 = vsel %vm620_vm2, %v19112_v60, 0.0 }
0x1df5   :  { %12775 = vadd.xlane.f32.xlu1 %v12774_v10 }
0x1e6d   :  { %v12755_v18 = vpop.xlane.xlu0 %12754 }
0x1e6e   :  { %19113 = vrcp.f32 %v12755_v18  ;;  %v16711_v18 = vld [vmem:[%s22252_s0 + $0xf0] sm:$0xff] }
0x1e71   :  { %v12761_v61 = vpop.xlane.xlu0 %12760 }
0x1e72   :  { %19115 = vrcp.f32 %v12761_v61  ;;  %v12758_v23 = vpop.xlane.xlu1 %12757 }
0x1e73   :  { %19117 = vrcp.f32 %v12758_v23 }
0x1e75   :  { %v12767_v37 = vpop.xlane.xlu0 %12766 }
0x1e76   :  { %19119 = vrcp.f32 %v12767_v37  ;;  %v12764_v34 = vpop.xlane.xlu1 %12763  ;;  %v16710_v37 = vld [vmem:[%s22252_s0 + $0xe8] sm:$0xff] }
0x1e77   :  { %19121 = vrcp.f32 %v12764_v34 }
0x1e79   :  { %v12773_v33 = vpop.xlane.xlu0 %12772 }
0x1e7a   :  { %19123 = vrcp.f32 %v12773_v33  ;;  %v12770_v55 = vpop.xlane.xlu1 %12769 }
0x1e7b   :  { %v19114_v15 = vpop.eup %19113  ;;  %19125 = vrcp.f32 %v12770_v55  ;;  %v16709_v55 = vld [vmem:[%s22252_s0 + $0xe0] sm:$0xff] }
0x1e7c   :  { %v12778_v4 = vmul.f32 %v19114_v15, %v19098_v62 }
0x1e7e   :  { %v12776_v16 = vpop.xlane.xlu1 %12775  ;;  %18568 = vmatmul.mubr.msk.f32.vlgmr.msra.gmra.mxu0 %vm620_vm2, %v12778_v4 }
0x1e7f   :  { %v19116_v27 = vpop.eup %19115  ;;  %19127 = vrcp.f32 %v12776_v16  ;;  %18576 = vmatpush3.msra.mxu0 %v21452_v28  ;;  %18577 = vmatprep.mubr.msk.f32.mxu0 %vm19213_vm1, %v22260_v6  ;;  %v12073_v28 = vadd.f32 %v21446_v7, %v21549_v49  ;;  %v16698_v49 = vld [vmem:[%s22251_s7 + $0xf8] sm:$0xff] }
0x1e80   :  { %v19118_v46 = vpop.eup %19117  ;;  %v12782_v59 = vmul.f32 %v19116_v27, %v19100_v43  ;;  %18585 = vmatprep.subr.mxu0 %v22260_v6 }
0x1e81   :  { %v12780_v57 = vmul.f32 %v19118_v46, %v19102_v39 }
0x1e82   :  { %18578 = vmatmul.mubr.msk.f32.vlgmr.msra.gmra.mxu0 %vm620_vm2, %v12782_v59 }
0x1e83   :  { %v19120_v12 = vpop.eup %19119  ;;  %18573 = vmatmul.mubr.msk.f32.vlgmr.msra.gmra.mxu1 %vm620_vm2, %v12780_v57  ;;  %18586 = vmatpush3.msra.mxu0 %v21458_v36 }
0x1e84   :  { %v19122_v62 = vpop.eup %19121  ;;  %v12786_v40 = vmul.f32 %v19120_v12, %v19104_v26  ;;  %18581 = vmatpush3.msra.mxu1 %v21449_v31  ;;  %18582 = vmatprep.mubr.msk.f32.mxu1 %vm19213_vm1, %v22260_v6  ;;  %v16726_v26 = vld [vmem:[%s22253_s30 + $0xf8] sm:$0xff] }
0x1e85   :  { %v12784_v50 = vmul.f32 %v19122_v62, %v19106_v58  ;;  %18587 = vmatprep.mubr.msk.f32.mxu0 %vm19213_vm1, %v22260_v6  ;;  %18590 = vmatprep.subr.mxu1 %v22260_v6  ;;  %v16725_v58 = vld [vmem:[%s22253_s30 + $0xf0] sm:$0xff] }
0x1e86   :  { %18595 = vmatprep.subr.mxu0 %v22260_v6  ;;  %18588 = vmatmul.mubr.msk.f32.vlgmr.msra.gmra.mxu0 %vm620_vm2, %v12786_v40 }
0x1e87   :  { %v19124_v36 = vpop.eup %19123  ;;  %18583 = vmatmul.mubr.msk.f32.vlgmr.msra.gmra.mxu1 %vm620_vm2, %v12784_v50  ;;  %18596 = vmatpush3.msra.mxu0 %v12073_v28 }
0x1e88   :  { %v19126_v31 = vpop.eup %19125  ;;  %v12790_v43 = vmul.f32 %v19124_v36, %v19108_v32  ;;  %18591 = vmatpush3.msra.mxu1 %v21455_v24  ;;  %18592 = vmatprep.mubr.msk.f32.mxu1 %vm19213_vm1, %v22260_v6  ;;  %v16686_v32 = vld [vmem:[%s22216_s10 + $0x30] sm:$0xff] }
0x1e89   :  { %v12788_v7 = vmul.f32 %v19126_v31, %v19110_v48  ;;  %18597 = vmatprep.mubr.msk.f32.mxu0 %vm19213_vm1, %v22260_v6  ;;  %18600 = vmatprep.subr.mxu1 %v22260_v6  ;;  %v16712_v48 = vld [vmem:[%s22252_s0 + $0xf8] sm:$0xff] }
0x1e8a   :  { %18598 = vmatmul.mubr.msk.f32.vlgmr.msra.gmra.mxu0 %vm620_vm2, %v12790_v43  ;;  %18605 = vmatprep.subr.mxu0 %v16686_v32 }
0x1e8b   :  { %18593 = vmatmul.mubr.msk.f32.vlgmr.msra.gmra.mxu1 %vm620_vm2, %v12788_v7  ;;  %18606 = vmatpush3.msra.mxu0 %v16686_v32 }
0x1e8c   :  { %v19128_v39 = vpop.eup %19127  ;;  %18601 = vmatpush3.msra.mxu1 %v21461_v42  ;;  %18602 = vmatprep.mubr.msk.f32.mxu1 %vm19213_vm1, %v22260_v6  ;;  %v16695_v42 = vld [vmem:[%s22251_s7 + $0xe0] sm:$0xff] }
0x1e8d   :  { %v12792_v24 = vmul.f32 %v19128_v39, %v19112_v60  ;;  %18619 = vmatprep.subr.mxu1 %v16698_v49  ;;  %18639 = vmatprep.subr.mxu0 %v16712_v48 }
0x1e8f   :  { %18603 = vmatmul.mubr.msk.f32.vlgmr.msra.gmra.mxu1 %vm620_vm2, %v12792_v24  ;;  %v21724_v24 = vld [vmem:[%s22258_s28 + $0x7] ss:$0 sm:$0xff] }
0x1e90   :  { %18620 = vmatpush3.msra.mxu1 %v16698_v49  ;;  %18627 = vmatprep.mubr.msk.f32.mxu1 %vm89_vm0, %v20855_v54 }
0x1e91   :  { %18621 = vmatprep.subr.mxu1 %v16697_v30 }
0x1e92   :  { %18622 = vmatpush3.msra.mxu1 %v16697_v30 }
0x1e93   :  { %18623 = vmatprep.subr.mxu1 %v16696_v20 }
0x1e94   :  { %18624 = vmatpush3.msra.mxu1 %v16696_v20 }
0x1e95   :  { %18625 = vmatprep.subr.mxu1 %v16695_v42 }
0x1e96   :  { %18626 = vmatpush3.msra.mxu1 %v16695_v42 }
0x1e97   :  { %18628 = vmatmul.mubr.msk.f32.vlgmr.msra.gmra.mxu1 %vm89_vm0, %v20858_v53  ;;  %18659 = vmatprep.subr.mxu1 %v16726_v26 }
0x1e98   :  { %18630 = vmatprep.mubr.msk.f32.mxu1 %vm89_vm0, %v20872_v44  ;;  %18660 = vmatpush3.msra.mxu1 %v16726_v26 }
0x1e99   :  { %18661 = vmatprep.subr.mxu1 %v16725_v58 }
0x1e9a   :  { %18662 = vmatpush3.msra.mxu1 %v16725_v58 }
0x1e9b   :  { %18631 = vmatmul.mubr.msk.f32.gmra.mxu1 %vm89_vm0, %v20874_v52  ;;  %18663 = vmatprep.subr.mxu1 %v16724_v2 }
0x1e9c   :  { %18633 = vmatprep.mubr.msk.f32.mxu1 %vm89_vm0, %v20889_v8  ;;  %18664 = vmatpush3.msra.mxu1 %v16724_v2 }
0x1e9d   :  { %18665 = vmatprep.subr.mxu1 %v16723_v19 }
0x1e9e   :  { %18666 = vmatpush3.msra.mxu1 %v16723_v19 }
0x1e9f   :  { %18634 = vmatmul.mubr.msk.f32.gmra.mxu1 %vm89_vm0, %v20892_v0  ;;  %18689 = vmatprep.subr.mxu1 %v22260_v6 }
0x1ea0   :  { %18636 = vmatprep.mubr.msk.f32.mxu1 %vm89_vm0, %v20905_v45 }
0x1ea3   :  { %18637 = vmatmul.mubr.msk.f32.gmra.mxu1 %vm89_vm0, %v20907_v9 }
0x1ea4   :  { %18667 = vmatprep.mubr.msk.f32.mxu1 %vm89_vm0, %v20855_v54 }
0x1ea7   :  { %18668 = vmatmul.mubr.msk.f32.vlgmr.msra.gmra.mxu1 %vm89_vm0, %v20858_v53 }
0x1ea8   :  { %18670 = vmatprep.mubr.msk.f32.mxu1 %vm89_vm0, %v20872_v44 }
0x1eab   :  { %18671 = vmatmul.mubr.msk.f32.gmra.mxu1 %vm89_vm0, %v20874_v52 }
0x1eac   :  { %18673 = vmatprep.mubr.msk.f32.mxu1 %vm89_vm0, %v20889_v8 }
0x1eaf   :  { %18674 = vmatmul.mubr.msk.f32.gmra.mxu1 %vm89_vm0, %v20892_v0 }
0x1eb0   :  { %18676 = vmatprep.mubr.msk.f32.mxu1 %vm89_vm0, %v20905_v45 }
0x1eb3   :  { %18677 = vmatmul.mubr.msk.f32.gmra.mxu1 %vm89_vm0, %v20907_v9 }
0x1eb4   :  { %18691 = vmatprep.mubr.msk.f32.mxu1 %vm19213_vm1, %v22260_v6 }
0x1f3e   :  { %v12862_v29 = vpop.f32.mrf.mxu0 }
0x1f3f   :  { %18607 = vmatprep.mubr.msk.f32.mxu0 %vm620_vm2, %v12862_v29 }
0x1f40   :  { %v18569_v47 = vpop.f32.mrf.mxu0 }
0x1f42   :  { %v13008_v60 = vpop.f32.mrf.mxu0 }
0x1f43   :  { %v12935_v10 = vpop.f32.mrf.mxu1 }
0x1f44   :  { %18608 = vmatmul.mubr.msk.f32.vlgmr.msra.gmra.mxu0 %vm620_vm2, %v12935_v10  ;;  %v18579_v61 = vpop.f32.mrf.mxu0 }
0x1f45   :  { %v18574_v23 = vpop.f32.mrf.mxu1  ;;  %18610 = vmatprep.mubr.msk.f32.mxu0 %vm620_vm2, %v13008_v60  ;;  %18640 = vmatpush3.msra.mxu0 %v16712_v48 }
0x1f46   :  { %v13154_v34 = vpop.f32.mrf.mxu0  ;;  %18641 = vmatprep.subr.mxu0 %v16711_v18 }
0x1f47   :  { %v13081_v33 = vpop.f32.mrf.mxu1  ;;  %18642 = vmatpush3.msra.mxu0 %v16711_v18 }
0x1f48   :  { %18611 = vmatmul.mubr.msk.f32.gmra.mxu0 %vm620_vm2, %v13081_v33  ;;  %v18589_v15 = vpop.f32.mrf.mxu0  ;;  %18643 = vmatprep.subr.mxu0 %v16710_v37 }
0x1f49   :  { %v18584_v4 = vpop.f32.mrf.mxu1  ;;  %18613 = vmatprep.mubr.msk.f32.mxu0 %vm620_vm2, %v13154_v34  ;;  %18644 = vmatpush3.msra.mxu0 %v16710_v37 }
0x1f4a   :  { %v13300_v16 = vpop.f32.mrf.mxu0  ;;  %18645 = vmatprep.subr.mxu0 %v16709_v55 }
0x1f4b   :  { %v13227_v27 = vpop.f32.mrf.mxu1  ;;  %18646 = vmatpush3.msra.mxu0 %v16709_v55 }
0x1f4c   :  { %18614 = vmatmul.mubr.msk.f32.gmra.mxu0 %vm620_vm2, %v13227_v27  ;;  %v18599_v46 = vpop.f32.mrf.mxu0  ;;  %18679 = vmatprep.subr.mxu0 %v22260_v6 }
0x1f4d   :  { %v18594_v59 = vpop.f32.mrf.mxu1  ;;  %18616 = vmatprep.mubr.msk.f32.mxu0 %vm620_vm2, %v13300_v16 }
0x1f4f   :  { %v13373_v57 = vpop.f32.mrf.mxu1 }
0x1f50   :  { %18617 = vmatmul.mubr.msk.f32.gmra.mxu0 %vm620_vm2, %v13373_v57 }
0x1f51   :  { %v18604_v12 = vpop.f32.mrf.mxu1  ;;  %18647 = vmatprep.mubr.msk.f32.mxu0 %vm89_vm0, %v20855_v54 }
0x1f54   :  { %18648 = vmatmul.mubr.msk.f32.vlgmr.msra.gmra.mxu0 %vm89_vm0, %v20858_v53 }
0x1f55   :  { %18650 = vmatprep.mubr.msk.f32.mxu0 %vm89_vm0, %v20872_v44 }
0x1f57   :  { %v18629_v62 = vpop.f32.mrf.mxu1 }
0x1f58   :  { %18651 = vmatmul.mubr.msk.f32.gmra.mxu0 %vm89_vm0, %v20874_v52 }
0x1f59   :  { %v13595_v40 = vpop.f32.mrf.mxu1  ;;  %18653 = vmatprep.mubr.msk.f32.mxu0 %vm89_vm0, %v20889_v8 }
0x1f5b   :  { %v21699_v28 = vpop.f32.mrf.mxu1 }
0x1f5c   :  { %18654 = vmatmul.mubr.msk.f32.gmra.mxu0 %vm89_vm0, %v20892_v0 }
0x1f5d   :  { %v13605_v50 = vpop.f32.mrf.mxu1  ;;  %18656 = vmatprep.mubr.msk.f32.mxu0 %vm89_vm0, %v20905_v45 }
0x1f5f   :  { %v21705_v36 = vpop.f32.mrf.mxu1 }
0x1f60   :  { %18657 = vmatmul.mubr.msk.f32.gmra.mxu0 %vm89_vm0, %v20907_v9 }
0x1f61   :  { %v21709_v31 = vpop.f32.mrf.mxu1  ;;  %18681 = vmatprep.mubr.msk.f32.mxu0 %vm19213_vm1, %v22260_v6 }
0x1f63   :  { %v21713_v43 = vpop.f32.mrf.mxu1 }
0x1f65   :  { %v21715_v7 = vpop.f32.mrf.mxu1 }
0x1f67   :  { %v21717_v49 = vpop.f32.mrf.mxu1 }
0x1f69   :  { %v21719_v39 = vpop.f32.mrf.mxu1 }
0x1f6b   :  { %v18672_v30 = vpop.f32.mrf.mxu1 }
0x1f6c   :  { %v21727_v20 = vadd.f32 %v18672_v30, %v21724_v24 }
0x1f6d   :  { %v13841_v42 = vpop.f32.mrf.mxu1 }
0x1f6e   :  { %v21730_v26 = vadd.f32 %v21724_v24, %v13841_v42 }
0x1f6f   :  { %v18675_v58 = vpop.f32.mrf.mxu1 }
0x1f70   :  { %v21733_v2 = vadd.f32 %v18675_v58, %v21724_v24 }
0x1f71   :  { %v13851_v19 = vpop.f32.mrf.mxu1 }
0x1f72   :  { %v21736_v32 = vadd.f32 %v21724_v24, %v13851_v19 }
0x1f73   :  { %v18678_v48 = vpop.f32.mrf.mxu1 }
0x1f74   :  { %v21739_v29 = vadd.f32 %v18678_v48, %v21724_v24 }
0x2004   :  { %v18609_v47 = vpop.f32.mrf.mxu0 }
0x2005   :  { %v21742_v60 = vadd.f32 %v18609_v47, %v21468_v35 }
0x2006   :  { %v13469_v10 = vpop.f32.mrf.mxu0 }
0x2007   :  { %v21745_v18 = vadd.f32 %v13469_v10, %v21471_v22 }
0x2008   :  { %v18612_v61 = vpop.f32.mrf.mxu0 }
0x2009   :  { %v21748_v23 = vadd.f32 %v18612_v61, %v21474_v38 }
0x200a   :  { %v13479_v37 = vpop.f32.mrf.mxu0 }
0x200b   :  { %v21751_v34 = vadd.f32 %v13479_v37, %v21477_v63  ;;  %v16714_v63 = vld [vmem:[%s22256_s9 + $0x7] ss:$0 sm:$0xff] }
0x200c   :  { %v18615_v33 = vpop.f32.mrf.mxu0 }
0x200d   :  { %v21754_v55 = vadd.f32 %v18615_v33, %v21480_v13  ;;  %v13832_v33 = vadd.f32 %v21724_v24, %v21719_v39 }
0x200e   :  { %v13489_v15 = vpop.f32.mrf.mxu0 }
0x200f   :  { %v21757_v35 = vadd.f32 %v13489_v15, %v21483_v51  ;;  %v16700_v51 = vld [vmem:[%s22257_s3 + $0x7] ss:$0 sm:$0xff] }
0x2010   :  { %v18618_v4 = vpop.f32.mrf.mxu0  ;;  %v13601_v42 = vadd.f32 %v18629_v62, %v16700_v51  ;;  %v13606_v58 = vadd.f32 %v16700_v51, %v13605_v50  ;;  %v13611_v62 = vadd.f32 %v21699_v28, %v16700_v51  ;;  %v13616_v50 = vadd.f32 %v16700_v51, %v21709_v31 }
0x2011   :  { %v21760_v22 = vadd.f32 %v18618_v4, %v21486_v17  ;;  %v13596_v17 = vadd.f32 %v16700_v51, %v13595_v40  ;;  %v13621_v28 = vadd.f32 %v21705_v36, %v16700_v51  ;;  %v13626_v31 = vadd.f32 %v16700_v51, %v21715_v7  ;;  %v21822_v4 = vpop.f32.mrf.mxu1 }
0x2012   :  { %v13499_v16 = vpop.f32.mrf.mxu0  ;;  %v13631_v36 = vadd.f32 %v21713_v43, %v16700_v51  ;;  %v13837_v7 = vadd.f32 %v21717_v49, %v21724_v24 }
0x2013   :  { %v21763_v38 = vadd.f32 %v13499_v16, %v21488_v5 }
0x2014   :  { %v18649_v27 = vpop.f32.mrf.mxu0 }
0x2015   :  { %v13719_v5 = vadd.f32 %v18649_v27, %v16714_v63 }
0x2016   :  { %v13713_v46 = vpop.f32.mrf.mxu0 }
0x2017   :  { %v13714_v13 = vadd.f32 %v16714_v63, %v13713_v46 }
0x2018   :  { %v18652_v59 = vpop.f32.mrf.mxu0 }
0x2019   :  { %18680 = vmatpush3.xpose.msk.msra.mxu0 %vm620_vm2, %v13714_v13  ;;  %v13729_v40 = vadd.f32 %v18652_v59, %v16714_v63 }
0x201a   :  { %v13723_v57 = vpop.f32.mrf.mxu0  ;;  %18684 = vmatprep.subr.mxu0 %v22260_v6 }
0x201b   :  { %v13724_v12 = vadd.f32 %v16714_v63, %v13723_v57 }
0x201c   :  { %v18655_v30 = vpop.f32.mrf.mxu0  ;;  %18682 = vmatmul.mubr.msk.f32.vlgmr.msra.gmra.mxu0 %vm620_vm2, %v13596_v17 }
0x201d   :  { %18685 = vmatpush3.xpose.msk.msra.mxu0 %vm620_vm2, %v13719_v5  ;;  %18690 = vmatpush3.xpose.msk.msra.mxu1 %vm620_vm2, %v13724_v12  ;;  %v13739_v61 = vadd.f32 %v18655_v30, %v16714_v63 }
0x201e   :  { %v13733_v19 = vpop.f32.mrf.mxu0  ;;  %18686 = vmatprep.mubr.msk.f32.mxu0 %vm19213_vm1, %v22260_v6  ;;  %18694 = vmatprep.subr.mxu0 %v22260_v6 }
0x201f   :  { %v13734_v48 = vadd.f32 %v16714_v63, %v13733_v19  ;;  %18699 = vmatprep.subr.mxu1 %v22260_v6 }
0x2020   :  { %v18658_v47 = vpop.f32.mrf.mxu0  ;;  %18687 = vmatmul.mubr.msk.f32.vlgmr.msra.gmra.mxu0 %vm620_vm2, %v13601_v42  ;;  %18692 = vmatmul.mubr.msk.f32.vlgmr.msra.gmra.mxu1 %vm620_vm2, %v13606_v58 }
0x2021   :  { %18695 = vmatpush3.xpose.msk.msra.mxu0 %vm620_vm2, %v13729_v40  ;;  %18700 = vmatpush3.xpose.msk.msra.mxu1 %vm620_vm2, %v13734_v48  ;;  %v13749_v15 = vadd.f32 %v18658_v47, %v16714_v63 }
0x2022   :  { %v13743_v10 = vpop.f32.mrf.mxu0  ;;  %18696 = vmatprep.mubr.msk.f32.mxu0 %vm19213_vm1, %v22260_v6  ;;  %18701 = vmatprep.mubr.msk.f32.mxu1 %vm19213_vm1, %v22260_v6 }
0x2023   :  { %v13744_v37 = vadd.f32 %v16714_v63, %v13743_v10  ;;  %18704 = vmatprep.subr.mxu0 %v22260_v6  ;;  %18709 = vmatprep.subr.mxu1 %v22260_v6 }
0x2024   :  { %18697 = vmatmul.mubr.msk.f32.vlgmr.msra.gmra.mxu0 %vm620_vm2, %v13611_v62  ;;  %18702 = vmatmul.mubr.msk.f32.vlgmr.msra.gmra.mxu1 %vm620_vm2, %v13616_v50 }
0x2025   :  { %18705 = vmatpush3.xpose.msk.msra.mxu0 %vm620_vm2, %v13739_v61  ;;  %18710 = vmatpush3.xpose.msk.msra.mxu1 %vm620_vm2, %v13744_v37 }
0x2026   :  { %18706 = vmatprep.mubr.msk.f32.mxu0 %vm19213_vm1, %v22260_v6  ;;  %18711 = vmatprep.mubr.msk.f32.mxu1 %vm19213_vm1, %v22260_v6 }
0x2027   :  { %18714 = vmatprep.subr.mxu0 %v22260_v6  ;;  %18719 = vmatprep.subr.mxu1 %v22260_v6 }
0x2028   :  { %18707 = vmatmul.mubr.msk.f32.vlgmr.msra.gmra.mxu0 %vm620_vm2, %v13621_v28  ;;  %18712 = vmatmul.mubr.msk.f32.vlgmr.msra.gmra.mxu1 %vm620_vm2, %v13626_v31 }
0x2029   :  { %18715 = vmatpush3.xpose.msk.msra.mxu0 %vm620_vm2, %v13749_v15  ;;  %18720 = vmatpush3.msra.mxu1 %v13832_v33 }
0x202a   :  { %18716 = vmatprep.mubr.msk.f32.mxu0 %vm19213_vm1, %v22260_v6  ;;  %18724 = vmatprep.subr.mxu0 %v22260_v6 }
0x202b   :  { %18721 = vmatprep.mubr.msk.f32.mxu1 %vm19213_vm1, %v22260_v6  ;;  %18729 = vmatprep.subr.mxu1 %v22260_v6 }
0x202c   :  { %18717 = vmatmul.mubr.msk.f32.vlgmr.msra.gmra.mxu0 %vm620_vm2, %v13631_v36 }
0x202d   :  { %18725 = vmatpush3.msra.mxu0 %v13837_v7  ;;  %18726 = vmatprep.mubr.msk.f32.mxu0 %vm19213_vm1, %v22260_v6 }
0x202e   :  { %18734 = vmatprep.subr.mxu0 %v22260_v6 }
0x20dc   :  { %v13942_v43 = vpop.f32.mrf.mxu0 }
0x20dd   :  { %v14478_v39 = vmul.f32 0.35355338, %v13942_v43 }
0x20de   :  { %v18683_v16 = vpop.f32.mrf.mxu0 }
0x20df   :  { %v14486_v49 = vadd.f32 %v14478_v39, %v19639_v1 }
0x20e0   :  { %v14018_v27 = vpop.f32.mrf.mxu0  ;;  %v14094_v63 = vpop.f32.mrf.mxu1 }
0x20e1   :  { %v14479_v46 = vmul.f32 0.35355338, %v14018_v27  ;;  %v14480_v13 = vmul.f32 0.35355338, %v14094_v63  ;;  %v14494_v59 = vsel %vm620_vm2, %v14486_v49, -inf }
0x20e2   :  { %v18693_v51 = vpop.f32.mrf.mxu1  ;;  %14495 = vmax.xlane.f32.xlu0 %v14494_v59  ;;  %v18688_v17 = vpop.f32.mrf.mxu0 }
0x20e3   :  { %v14487_v57 = vadd.f32 %v14479_v46, %v19651_v11  ;;  %v14488_v5 = vadd.f32 %v14480_v13, %v19662_v25 }
0x20e4   :  { %v14170_v12 = vpop.f32.mrf.mxu0  ;;  %v14246_v30 = vpop.f32.mrf.mxu1 }
0x20e5   :  { %v14481_v42 = vmul.f32 0.35355338, %v14170_v12  ;;  %v14482_v58 = vmul.f32 0.35355338, %v14246_v30  ;;  %v14500_v19 = vsel %vm620_vm2, %v14488_v5, -inf  ;;  %v14497_v1 = vsel %vm620_vm2, %v14487_v57, -inf }
0x20e6   :  { %v18703_v40 = vpop.f32.mrf.mxu1  ;;  %14501 = vmax.xlane.f32.xlu0 %v14500_v19  ;;  %14498 = vmax.xlane.f32.xlu1 %v14497_v1  ;;  %v18698_v48 = vpop.f32.mrf.mxu0 }
0x20e7   :  { %v14489_v47 = vadd.f32 %v14481_v42, %v19673_v21  ;;  %v14490_v62 = vadd.f32 %v14482_v58, %v19669_v41 }
0x20e8   :  { %v14322_v50 = vpop.f32.mrf.mxu0  ;;  %v14398_v11 = vpop.f32.mrf.mxu1 }
0x20e9   :  { %v14483_v10 = vmul.f32 0.35355338, %v14322_v50  ;;  %v14484_v25 = vmul.f32 0.35355338, %v14398_v11  ;;  %v14506_v61 = vsel %vm620_vm2, %v14490_v62, -inf  ;;  %v14503_v37 = vsel %vm620_vm2, %v14489_v47, -inf }
0x20ea   :  { %v18713_v28 = vpop.f32.mrf.mxu1  ;;  %14507 = vmax.xlane.f32.xlu0 %v14506_v61  ;;  %14504 = vmax.xlane.f32.xlu1 %v14503_v37  ;;  %v18708_v31 = vpop.f32.mrf.mxu0 }
0x20eb   :  { %v14491_v33 = vadd.f32 %v14483_v10, %v19682_v3  ;;  %v14492_v15 = vadd.f32 %v14484_v25, %v19676_v56 }
0x20ec   :  { %v14474_v36 = vpop.f32.mrf.mxu0 }
0x20ed   :  { %v14485_v21 = vmul.f32 0.35355338, %v14474_v36  ;;  %v14512_v41 = vsel %vm620_vm2, %v14492_v15, -inf  ;;  %v14509_v7 = vsel %vm620_vm2, %v14491_v33, -inf }
0x20ee   :  { %14513 = vmax.xlane.f32.xlu0 %v14512_v41  ;;  %14510 = vmax.xlane.f32.xlu1 %v14509_v7  ;;  %v18718_v43 = vpop.f32.mrf.mxu0 }
0x20ef   :  { %v14493_v39 = vadd.f32 %v14485_v21, %v19689_v14 }
0x20f1   :  { %v14515_v16 = vsel %vm620_vm2, %v14493_v39, -inf }
0x20f2   :  { %14516 = vmax.xlane.f32.xlu1 %v14515_v16 }
0x216b   :  { %v14496_v27 = vpop.xlane.xlu0 %14495 }
0x216c   :  { %v14518_v63 = vsub.f32 %v14486_v49, %v14496_v27 }
0x216e   :  { %v14526_v46 = vmul.f32 1.442695, %v14518_v63 }
0x216f   :  { %v14502_v3 = vpop.xlane.xlu0 %14501  ;;  %v14499_v13 = vpop.xlane.xlu1 %14498 }
0x2170   :  { %19129 = vpow2.f32 %v14526_v46  ;;  %v14520_v56 = vsub.f32 %v14488_v5, %v14502_v3  ;;  %v14519_v59 = vsub.f32 %v14487_v57, %v14499_v13 }
0x2172   :  { %v14530_v51 = vmul.f32 1.442695, %v14520_v56  ;;  %v14528_v17 = vmul.f32 1.442695, %v14519_v59 }
0x2173   :  { %v14508_v12 = vpop.xlane.xlu0 %14507  ;;  %v14505_v30 = vpop.xlane.xlu1 %14504 }
0x2174   :  { %19131 = vpow2.f32 %v14530_v51  ;;  %v14522_v42 = vsub.f32 %v14490_v62, %v14508_v12  ;;  %v14521_v58 = vsub.f32 %v14489_v47, %v14505_v30 }
0x2175   :  { %19133 = vpow2.f32 %v14528_v17 }
0x2176   :  { %v14534_v14 = vmul.f32 1.442695, %v14522_v42  ;;  %v14532_v19 = vmul.f32 1.442695, %v14521_v58 }
0x2177   :  { %v14514_v1 = vpop.xlane.xlu0 %14513  ;;  %v14511_v40 = vpop.xlane.xlu1 %14510 }
0x2178   :  { %19135 = vpow2.f32 %v14534_v14  ;;  %v14524_v49 = vsub.f32 %v14492_v15, %v14514_v1  ;;  %v14523_v48 = vsub.f32 %v14491_v33, %v14511_v40 }
0x2179   :  { %19137 = vpow2.f32 %v14532_v19 }
0x217a   :  { %v14538_v50 = vmul.f32 1.442695, %v14524_v49  ;;  %v14536_v11 = vmul.f32 1.442695, %v14523_v48 }
0x217b   :  { %v14517_v5 = vpop.xlane.xlu1 %14516 }
0x217c   :  { %19139 = vpow2.f32 %v14538_v50  ;;  %v14525_v57 = vsub.f32 %v14493_v39, %v14517_v5  ;;  %v16761_v50 = vld [vmem:[%s22216_s10 + $0x38] sm:$0xff] }
0x217d   :  { %v19130_v10 = vpop.eup %19129  ;;  %19141 = vpow2.f32 %v14536_v11 }
0x217e   :  { %v14540_v25 = vmul.f32 1.442695, %v14525_v57  ;;  %v14542_v62 = vsel %vm620_vm2, %v19130_v10, 0.0 }
0x217f   :  { %14543 = vadd.xlane.f32.xlu0 %v14542_v62 }
0x2180   :  { %19143 = vpow2.f32 %v14540_v25 }
0x2181   :  { %v19132_v47 = vpop.eup %19131 }
0x2182   :  { %v19134_v61 = vpop.eup %19133  ;;  %v14548_v37 = vsel %vm620_vm2, %v19132_v47, 0.0 }
0x2183   :  { %14549 = vadd.xlane.f32.xlu0 %v14548_v37  ;;  %v14545_v28 = vsel %vm620_vm2, %v19134_v61, 0.0 }
0x2184   :  { %14546 = vadd.xlane.f32.xlu1 %v14545_v28 }
0x2185   :  { %v19136_v31 = vpop.eup %19135 }
0x2186   :  { %v19138_v33 = vpop.eup %19137  ;;  %v14554_v15 = vsel %vm620_vm2, %v19136_v31, 0.0 }
0x2187   :  { %14555 = vadd.xlane.f32.xlu0 %v14554_v15  ;;  %v14551_v36 = vsel %vm620_vm2, %v19138_v33, 0.0 }
0x2188   :  { %14552 = vadd.xlane.f32.xlu1 %v14551_v36 }
0x2189   :  { %v19140_v21 = vpop.eup %19139 }
0x218a   :  { %v19142_v41 = vpop.eup %19141  ;;  %v14560_v7 = vsel %vm620_vm2, %v19140_v21, 0.0 }
0x218b   :  { %14561 = vadd.xlane.f32.xlu0 %v14560_v7  ;;  %v14557_v43 = vsel %vm620_vm2, %v19142_v41, 0.0 }
0x218c   :  { %14558 = vadd.xlane.f32.xlu1 %v14557_v43 }
0x218d   :  { %v19144_v39 = vpop.eup %19143 }
0x218e   :  { %v14563_v16 = vsel %vm620_vm2, %v19144_v39, 0.0 }
0x2190   :  { %14564 = vadd.xlane.f32.xlu1 %v14563_v16 }
0x2208   :  { %v14544_v27 = vpop.xlane.xlu0 %14543 }
0x2209   :  { %19145 = vrcp.f32 %v14544_v27 }
0x220c   :  { %v14550_v63 = vpop.xlane.xlu0 %14549 }
0x220d   :  { %19147 = vrcp.f32 %v14550_v63  ;;  %v14547_v46 = vpop.xlane.xlu1 %14546 }
0x220e   :  { %19149 = vrcp.f32 %v14547_v46 }
0x2210   :  { %v14556_v3 = vpop.xlane.xlu0 %14555 }
0x2211   :  { %19151 = vrcp.f32 %v14556_v3  ;;  %v14553_v13 = vpop.xlane.xlu1 %14552 }
0x2212   :  { %19153 = vrcp.f32 %v14553_v13 }
0x2214   :  { %v14562_v56 = vpop.xlane.xlu0 %14561 }
0x2215   :  { %19155 = vrcp.f32 %v14562_v56  ;;  %v14559_v59 = vpop.xlane.xlu1 %14558 }
0x2216   :  { %v19146_v51 = vpop.eup %19145  ;;  %19157 = vrcp.f32 %v14559_v59 }
0x2217   :  { %v14567_v17 = vmul.f32 %v19146_v51, %v19130_v10 }
0x2219   :  { %v14565_v12 = vpop.xlane.xlu1 %14564  ;;  %18722 = vmatmul.mubr.msk.f32.vlgmr.msra.gmra.mxu1 %vm620_vm2, %v14567_v17 }
0x221a   :  { %v19148_v30 = vpop.eup %19147  ;;  %19159 = vrcp.f32 %v14565_v12  ;;  %18730 = vmatpush3.msra.mxu1 %v21730_v26  ;;  %18731 = vmatprep.mubr.msk.f32.mxu1 %vm19213_vm1, %v22260_v6  ;;  %v13862_v26 = vadd.f32 %v21724_v24, %v21822_v4 }
0x221b   :  { %v19150_v42 = vpop.eup %19149  ;;  %v14571_v58 = vmul.f32 %v19148_v30, %v19132_v47  ;;  %18739 = vmatprep.subr.mxu1 %v22260_v6 }
0x221c   :  { %v14569_v14 = vmul.f32 %v19150_v42, %v19134_v61 }
0x221d   :  { %18732 = vmatmul.mubr.msk.f32.vlgmr.msra.gmra.mxu1 %vm620_vm2, %v14571_v58 }
0x221e   :  { %v19152_v19 = vpop.eup %19151  ;;  %18727 = vmatmul.mubr.msk.f32.vlgmr.msra.gmra.mxu0 %vm620_vm2, %v14569_v14  ;;  %18740 = vmatpush3.msra.mxu1 %v21736_v32 }
0x221f   :  { %v19154_v1 = vpop.eup %19153  ;;  %v14575_v40 = vmul.f32 %v19152_v19, %v19136_v31  ;;  %18735 = vmatpush3.msra.mxu0 %v21727_v20  ;;  %18736 = vmatprep.mubr.msk.f32.mxu0 %vm19213_vm1, %v22260_v6 }
0x2220   :  { %v14573_v49 = vmul.f32 %v19154_v1, %v19138_v33  ;;  %18741 = vmatprep.mubr.msk.f32.mxu1 %vm19213_vm1, %v22260_v6  ;;  %18744 = vmatprep.subr.mxu0 %v22260_v6 }
0x2221   :  { %18749 = vmatprep.subr.mxu1 %v22260_v6  ;;  %18742 = vmatmul.mubr.msk.f32.vlgmr.msra.gmra.mxu1 %vm620_vm2, %v14575_v40 }
0x2222   :  { %v19156_v32 = vpop.eup %19155  ;;  %18737 = vmatmul.mubr.msk.f32.vlgmr.msra.gmra.mxu0 %vm620_vm2, %v14573_v49  ;;  %18750 = vmatpush3.msra.mxu1 %v13862_v26 }
0x2223   :  { %v19158_v20 = vpop.eup %19157  ;;  %v14579_v48 = vmul.f32 %v19156_v32, %v19140_v21  ;;  %18745 = vmatpush3.msra.mxu0 %v21733_v2  ;;  %18746 = vmatprep.mubr.msk.f32.mxu0 %vm19213_vm1, %v22260_v6 }
0x2224   :  { %v14577_v24 = vmul.f32 %v19158_v20, %v19142_v41  ;;  %18751 = vmatprep.mubr.msk.f32.mxu1 %vm19213_vm1, %v22260_v6  ;;  %18754 = vmatprep.subr.mxu0 %v22260_v6 }
0x2225   :  { %18752 = vmatmul.mubr.msk.f32.vlgmr.msra.gmra.mxu1 %vm620_vm2, %v14579_v48  ;;  %18759 = vmatprep.subr.mxu1 %v16761_v50 }
0x2226   :  { %18747 = vmatmul.mubr.msk.f32.vlgmr.msra.gmra.mxu0 %vm620_vm2, %v14577_v24  ;;  %18760 = vmatpush3.msra.mxu1 %v16761_v50 }
0x2227   :  { %v19160_v4 = vpop.eup %19159  ;;  %18755 = vmatpush3.msra.mxu0 %v21739_v29  ;;  %18756 = vmatprep.mubr.msk.f32.mxu0 %vm19213_vm1, %v22260_v6 }
0x2228   :  { %v14581_v2 = vmul.f32 %v19160_v4, %v19144_v39 }
0x222a   :  { %18757 = vmatmul.mubr.msk.f32.vlgmr.msra.gmra.mxu0 %vm620_vm2, %v14581_v2 }
0x22d9   :  { %v14651_v11 = vpop.f32.mrf.mxu1 }
0x22da   :  { %18761 = vmatprep.mubr.msk.f32.mxu1 %vm620_vm2, %v14651_v11 }
0x22db   :  { %v18723_v5 = vpop.f32.mrf.mxu1 }
0x22dd   :  { %v14797_v57 = vpop.f32.mrf.mxu1 }
0x22de   :  { %v14724_v10 = vpop.f32.mrf.mxu0 }
0x22df   :  { %18762 = vmatmul.mubr.msk.f32.vlgmr.msra.gmra.mxu1 %vm620_vm2, %v14724_v10  ;;  %v18733_v29 = vpop.f32.mrf.mxu1 }
0x22e0   :  { %v18728_v25 = vpop.f32.mrf.mxu0  ;;  %18764 = vmatprep.mubr.msk.f32.mxu1 %vm620_vm2, %v14797_v57 }
0x22e1   :  { %v14943_v62 = vpop.f32.mrf.mxu1 }
0x22e2   :  { %v14870_v47 = vpop.f32.mrf.mxu0 }
0x22e3   :  { %18765 = vmatmul.mubr.msk.f32.gmra.mxu1 %vm620_vm2, %v14870_v47  ;;  %v18743_v61 = vpop.f32.mrf.mxu1 }
0x22e4   :  { %v18738_v37 = vpop.f32.mrf.mxu0  ;;  %18767 = vmatprep.mubr.msk.f32.mxu1 %vm620_vm2, %v14943_v62 }
0x22e5   :  { %v15089_v28 = vpop.f32.mrf.mxu1 }
0x22e6   :  { %v15016_v31 = vpop.f32.mrf.mxu0 }
0x22e7   :  { %18768 = vmatmul.mubr.msk.f32.gmra.mxu1 %vm620_vm2, %v15016_v31  ;;  %v18753_v33 = vpop.f32.mrf.mxu1 }
0x22e8   :  { %v18748_v15 = vpop.f32.mrf.mxu0  ;;  %18770 = vmatprep.mubr.msk.f32.mxu1 %vm620_vm2, %v15089_v28 }
0x22ea   :  { %v15162_v36 = vpop.f32.mrf.mxu0 }
0x22eb   :  { %18771 = vmatmul.mubr.msk.f32.gmra.mxu1 %vm620_vm2, %v15162_v36 }
0x22ec   :  { %v18758_v21 = vpop.f32.mrf.mxu0 }
0x239f   :  { %v18763_v41 = vpop.f32.mrf.mxu1 }
0x23a0   :  { %v15298_v7 = vadd.f32 %v18763_v41, %v21742_v60 }
0x23a1   :  { %v15258_v43 = vpop.f32.mrf.mxu1 }
0x23a2   :  { %v15306_v39 = vadd.f32 %v15298_v7, %v20858_v53  ;;  %v15297_v16 = vadd.f32 %v15258_v43, %v21745_v18 }
0x23a3   :  { %v18766_v27 = vpop.f32.mrf.mxu1 }
0x23a4   :  { %v15305_v63 = vadd.f32 %v15297_v16, %v20855_v54  ;;  %v15300_v46 = vadd.f32 %v18766_v27, %v21748_v23  ;;  %v15320_v3 = vsel %vm89_vm0, %v15306_v39, 0.0 }
0x23a5   :  { %15321 = vadd.xlane.f32.xlu1 %v15320_v3  ;;  %v15268_v13 = vpop.f32.mrf.mxu1 }
0x23a6   :  { %v15308_v56 = vadd.f32 %v15300_v46, %v20874_v52  ;;  %v15299_v59 = vadd.f32 %v15268_v13, %v21751_v34  ;;  %v15317_v60 = vsel %vm89_vm0, %v15305_v63, 0.0  ;;  %v16777_v13 = vld [vmem:[%s22218_s14 + $0x38] sm:$0xff] }
0x23a7   :  { %15318 = vadd.xlane.f32.xlu0 %v15317_v60  ;;  %v18769_v51 = vpop.f32.mrf.mxu1  ;;  %18773 = vmatprep.subr.mxu0 %v16777_v13  ;;  %v16774_v60 = vld [vmem:[%s22218_s14 + $0x20] sm:$0xff] }
0x23a8   :  { %v15307_v53 = vadd.f32 %v15299_v59, %v20872_v44  ;;  %v15302_v18 = vadd.f32 %v18769_v51, %v21754_v55  ;;  %v15326_v54 = vsel %vm89_vm0, %v15308_v56, 0.0  ;;  %18774 = vmatpush3.msra.mxu0 %v16777_v13  ;;  %v16775_v59 = vld [vmem:[%s22218_s14 + $0x28] sm:$0xff]  ;;  %v16794_v13 = vld [vmem:[%s22221_s16 + $0x70] sm:$0xff] }
0x23a9   :  { %15327 = vadd.xlane.f32.xlu1 %v15326_v54  ;;  %v15278_v23 = vpop.f32.mrf.mxu1 }
0x23aa   :  { %v15310_v17 = vadd.f32 %v15302_v18, %v20892_v0  ;;  %v15301_v12 = vadd.f32 %v15278_v23, %v21757_v35  ;;  %v15323_v52 = vsel %vm89_vm0, %v15307_v53, 0.0 }
0x23ab   :  { %15324 = vadd.xlane.f32.xlu0 %v15323_v52  ;;  %v18772_v34 = vpop.f32.mrf.mxu1 }
0x23ac   :  { %v15309_v30 = vadd.f32 %v15301_v12, %v20889_v8  ;;  %v15304_v42 = vadd.f32 %v18772_v34, %v21760_v22  ;;  %v15332_v44 = vsel %vm89_vm0, %v15310_v17, 0.0 }
0x23ad   :  { %15333 = vadd.xlane.f32.xlu1 %v15332_v44  ;;  %v15288_v55 = vpop.f32.mrf.mxu1 }
0x23ae   :  { %v15312_v58 = vadd.f32 %v15304_v42, %v20907_v9  ;;  %v15303_v14 = vadd.f32 %v15288_v55, %v21763_v38  ;;  %v15329_v0 = vsel %vm89_vm0, %v15309_v30, 0.0 }
0x23af   :  { %15330 = vadd.xlane.f32.xlu0 %v15329_v0 }
0x23b0   :  { %v15311_v35 = vadd.f32 %v15303_v14, %v20905_v45  ;;  %v15338_v19 = vsel %vm89_vm0, %v15312_v58, 0.0 }
0x23b1   :  { %15339 = vadd.xlane.f32.xlu1 %v15338_v19 }
0x23b2   :  { %v15335_v8 = vsel %vm89_vm0, %v15311_v35, 0.0 }
0x23b3   :  { %15336 = vadd.xlane.f32.xlu0 %v15335_v8 }
0x242e   :  { %v15322_v22 = vpop.xlane.xlu1 %15321 }
0x242f   :  { %v15342_v1 = vmul.f32 0.03125, %v15322_v22 }
0x2430   :  { %v15319_v40 = vpop.xlane.xlu0 %15318 }
0x2431   :  { %v21914_v26 = vsub.f32 %v15306_v39, %v15342_v1  ;;  %v15341_v49 = vmul.f32 0.03125, %v15319_v40 }
0x2432   :  { %v15328_v9 = vpop.xlane.xlu1 %15327 }
0x2433   :  { %v21916_v32 = vsub.f32 %v15305_v63, %v15341_v49  ;;  %v15344_v38 = vmul.f32 0.03125, %v15328_v9  ;;  %v15358_v20 = vmul.f32 %v21914_v26, %v21914_v26 }
0x2434   :  { %v15325_v45 = vpop.xlane.xlu0 %15324 }
0x2435   :  { %v21920_v48 = vsub.f32 %v15308_v56, %v15344_v38  ;;  %v15343_v24 = vmul.f32 0.03125, %v15325_v45  ;;  %v15368_v4 = vsel %vm89_vm0, %v15358_v20, 0.0  ;;  %v15357_v2 = vmul.f32 %v21916_v32, %v21916_v32  ;;  %v16776_v56 = vld [vmem:[%s22218_s14 + $0x30] sm:$0xff]  ;;  %v16772_v20 = vld [vmem:[%s22219_s12 + $0x1] ss:$0 sm:$0xff] }
0x2436   :  { %v15334_v50 = vpop.xlane.xlu1 %15333  ;;  %15369 = vadd.xlane.f32.xlu1 %v15368_v4  ;;  %18775 = vmatprep.subr.mxu0 %v16776_v56 }
0x2437   :  { %v21925_v11 = vsub.f32 %v15307_v53, %v15343_v24  ;;  %v15346_v5 = vmul.f32 0.03125, %v15334_v50  ;;  %v15365_v57 = vsel %vm89_vm0, %v15357_v2, 0.0  ;;  %v15360_v10 = vmul.f32 %v21920_v48, %v21920_v48  ;;  %18776 = vmatpush3.msra.mxu0 %v16776_v56  ;;  %v16793_v56 = vld [vmem:[%s22221_s16 + $0x68] sm:$0xff] }
0x2438   :  { %v15331_v29 = vpop.xlane.xlu0 %15330  ;;  %15366 = vadd.xlane.f32.xlu0 %v15365_v57  ;;  %18777 = vmatprep.subr.mxu0 %v16775_v59  ;;  %v16773_v57 = vld [vmem:[%s22220_s13 + $0x1] ss:$0 sm:$0xff] }
0x2439   :  { %v21930_v25 = vsub.f32 %v15310_v17, %v15346_v5  ;;  %v15345_v62 = vmul.f32 0.03125, %v15331_v29  ;;  %v15374_v47 = vsel %vm89_vm0, %v15360_v10, 0.0  ;;  %v15359_v61 = vmul.f32 %v21925_v11, %v21925_v11  ;;  %18778 = vmatpush3.msra.mxu0 %v16775_v59  ;;  %v16792_v59 = vld [vmem:[%s22221_s16 + $0x60] sm:$0xff] }
0x243a   :  { %15375 = vadd.xlane.f32.xlu1 %v15374_v47  ;;  %v15340_v37 = vpop.xlane.xlu1 %15339  ;;  %18779 = vmatprep.subr.mxu0 %v16774_v60 }
0x243b   :  { %v21935_v28 = vsub.f32 %v15309_v30, %v15345_v62  ;;  %v15348_v31 = vmul.f32 0.03125, %v15340_v37  ;;  %v15371_v33 = vsel %vm89_vm0, %v15359_v61, 0.0  ;;  %v15362_v15 = vmul.f32 %v21930_v25, %v21930_v25  ;;  %18780 = vmatpush3.msra.mxu0 %v16774_v60  ;;  %v16791_v60 = vld [vmem:[%s22221_s16 + $0x58] sm:$0xff] }
0x243c   :  { %15372 = vadd.xlane.f32.xlu0 %v15371_v33  ;;  %v15337_v36 = vpop.xlane.xlu0 %15336  ;;  %18821 = vmatprep.subr.mxu0 %v22260_v6 }
0x243d   :  { %v21940_v21 = vsub.f32 %v15312_v58, %v15348_v31  ;;  %v15347_v41 = vmul.f32 0.03125, %v15337_v36  ;;  %v15380_v7 = vsel %vm89_vm0, %v15362_v15, 0.0  ;;  %v15361_v43 = vmul.f32 %v21935_v28, %v21935_v28 }
0x243e   :  { %15381 = vadd.xlane.f32.xlu1 %v15380_v7 }
0x243f   :  { %v21945_v39 = vsub.f32 %v15311_v35, %v15347_v41  ;;  %v15377_v16 = vsel %vm89_vm0, %v15361_v43, 0.0  ;;  %v15364_v27 = vmul.f32 %v21940_v21, %v21940_v21 }
0x2440   :  { %15378 = vadd.xlane.f32.xlu0 %v15377_v16 }
0x2441   :  { %v15386_v63 = vsel %vm89_vm0, %v15364_v27, 0.0  ;;  %v15363_v46 = vmul.f32 %v21945_v39, %v21945_v39 }
0x2442   :  { %15387 = vadd.xlane.f32.xlu1 %v15386_v63 }
0x2443   :  { %v15383_v3 = vsel %vm89_vm0, %v15363_v46, 0.0 }
0x2444   :  { %15384 = vadd.xlane.f32.xlu0 %v15383_v3 }
0x24bf   :  { %v15370_v51 = vpop.xlane.xlu1 %15369 }
0x24c0   :  { %v15390_v53 = vmul.f32 0.03125, %v15370_v51  ;;  %v16790_v51 = vld [vmem:[%s22221_s16 + $0x50] sm:$0xff] }
0x24c1   :  { %v15367_v18 = vpop.xlane.xlu0 %15366 }
0x24c2   :  { %v15398_v54 = vadd.f32 1e-12, %v15390_v53  ;;  %v15389_v23 = vmul.f32 0.03125, %v15367_v18  ;;  %v16789_v53 = vld [vmem:[%s22221_s16 + $0x48] sm:$0xff]  ;;  %v16788_v18 = vld [vmem:[%s22221_s16 + $0x40] sm:$0xff] }
0x24c3   :  { %v15376_v17 = vpop.xlane.xlu1 %15375 }
0x24c4   :  { %19161 = vrsqrt.f32 %v15398_v54  ;;  %v15397_v12 = vadd.f32 1e-12, %v15389_v23  ;;  %v15392_v52 = vmul.f32 0.03125, %v15376_v17  ;;  %v16779_v54 = vld [vmem:[%s22222_s15 + $0x1] ss:$0 sm:$0xff] }
0x24c5   :  { %v15373_v34 = vpop.xlane.xlu0 %15372 }
0x24c6   :  { %19163 = vrsqrt.f32 %v15397_v12  ;;  %v15400_v30 = vadd.f32 1e-12, %v15392_v52  ;;  %v15391_v42 = vmul.f32 0.03125, %v15373_v34 }
0x24c7   :  { %v15382_v44 = vpop.xlane.xlu1 %15381 }
0x24c8   :  { %19165 = vrsqrt.f32 %v15400_v30  ;;  %v15399_v55 = vadd.f32 1e-12, %v15391_v42  ;;  %v15394_v58 = vmul.f32 0.03125, %v15382_v44 }
0x24c9   :  { %v15379_v14 = vpop.xlane.xlu0 %15378 }
0x24ca   :  { %19167 = vrsqrt.f32 %v15399_v55  ;;  %v15402_v0 = vadd.f32 1e-12, %v15394_v58  ;;  %v15393_v35 = vmul.f32 0.03125, %v15379_v14 }
0x24cb   :  { %v15388_v19 = vpop.xlane.xlu1 %15387 }
0x24cc   :  { %19169 = vrsqrt.f32 %v15402_v0  ;;  %v15401_v8 = vadd.f32 1e-12, %v15393_v35  ;;  %v15396_v22 = vmul.f32 0.03125, %v15388_v19 }
0x24cd   :  { %v15385_v1 = vpop.xlane.xlu0 %15384 }
0x24ce   :  { %19171 = vrsqrt.f32 %v15401_v8  ;;  %v15404_v40 = vadd.f32 1e-12, %v15396_v22  ;;  %v15395_v49 = vmul.f32 0.03125, %v15385_v1 }
0x24d0   :  { %19173 = vrsqrt.f32 %v15404_v40  ;;  %v15403_v9 = vadd.f32 1e-12, %v15395_v49 }
0x24d1   :  { %v19162_v38 = vpop.eup %19161 }
0x24d2   :  { %v15414_v45 = vmul.f32 %v19162_v38, %v21914_v26  ;;  %19175 = vrsqrt.f32 %v15403_v9 }
0x24d3   :  { %v19164_v24 = vpop.eup %19163 }
0x24d4   :  { %v15413_v4 = vmul.f32 %v19164_v24, %v21916_v32  ;;  %v15428_v50 = vmul.f32 %v16772_v20, %v15414_v45 }
0x24d5   :  { %v19166_v2 = vpop.eup %19165 }
0x24d6   :  { %v15416_v5 = vmul.f32 %v19166_v2, %v21920_v48  ;;  %v15427_v10 = vmul.f32 %v16772_v20, %v15413_v4  ;;  %v21979_v26 = vadd.f32 %v16773_v57, %v15428_v50 }
0x24d7   :  { %v19168_v29 = vpop.eup %19167 }
0x24d8   :  { %v21976_v62 = vadd.f32 %v16773_v57, %v15427_v10  ;;  %v15415_v47 = vmul.f32 %v19168_v29, %v21925_v11  ;;  %v15430_v37 = vmul.f32 %v16772_v20, %v15416_v5 }
0x24d9   :  { %v19170_v61 = vpop.eup %19169 }
0x24da   :  { %v15418_v32 = vmul.f32 %v19170_v61, %v21930_v25  ;;  %18781 = vmatprep.mubr.msk.f32.mxu0 %vm89_vm0, %v21976_v62  ;;  %v15429_v48 = vmul.f32 %v16772_v20, %v15415_v47  ;;  %v21989_v11 = vadd.f32 %v16773_v57, %v15430_v37 }
0x24db   :  { %v19172_v31 = vpop.eup %19171  ;;  %18782 = vmatmul.mubr.msk.f32.vlgmr.msra.gmra.mxu0 %vm89_vm0, %v21979_v26 }
0x24dc   :  { %v21986_v33 = vadd.f32 %v16773_v57, %v15429_v48  ;;  %v15417_v15 = vmul.f32 %v19172_v31, %v21935_v28  ;;  %v15432_v41 = vmul.f32 %v16772_v20, %v15418_v32 }
0x24dd   :  { %v19174_v36 = vpop.eup %19173 }
0x24de   :  { %v15420_v7 = vmul.f32 %v19174_v36, %v21940_v21  ;;  %18784 = vmatprep.mubr.msk.f32.mxu0 %vm89_vm0, %v21986_v33  ;;  %v15431_v25 = vmul.f32 %v16772_v20, %v15417_v15  ;;  %v21999_v63 = vadd.f32 %v16773_v57, %v15432_v41 }
0x24df   :  { %v19176_v43 = vpop.eup %19175  ;;  %18785 = vmatmul.mubr.msk.f32.gmra.mxu0 %vm89_vm0, %v21989_v11 }
0x24e0   :  { %v21996_v16 = vadd.f32 %v16773_v57, %v15431_v25  ;;  %v15419_v27 = vmul.f32 %v19176_v43, %v21945_v39  ;;  %v15434_v28 = vmul.f32 %v16772_v20, %v15420_v7  ;;  %v16795_v39 = vld [vmem:[%s22221_s16 + $0x78] sm:$0xff] }
0x24e1   :  { %18793 = vmatprep.subr.mxu1 %v16795_v39 }
0x24e2   :  { %18787 = vmatprep.mubr.msk.f32.mxu0 %vm89_vm0, %v21996_v16  ;;  %v15433_v46 = vmul.f32 %v16772_v20, %v15419_v27  ;;  %v22007_v3 = vadd.f32 %v16773_v57, %v15434_v28  ;;  %18794 = vmatpush3.msra.mxu1 %v16795_v39 }
0x24e3   :  { %18788 = vmatmul.mubr.msk.f32.gmra.mxu0 %vm89_vm0, %v21999_v63  ;;  %18795 = vmatprep.subr.mxu1 %v16794_v13 }
0x24e4   :  { %v22005_v21 = vadd.f32 %v16773_v57, %v15433_v46  ;;  %18796 = vmatpush3.msra.mxu1 %v16794_v13 }
0x24e5   :  { %18797 = vmatprep.subr.mxu1 %v16793_v56 }
0x24e6   :  { %18790 = vmatprep.mubr.msk.f32.mxu0 %vm89_vm0, %v22005_v21  ;;  %18798 = vmatpush3.msra.mxu1 %v16793_v56 }
0x24e7   :  { %18791 = vmatmul.mubr.msk.f32.gmra.mxu0 %vm89_vm0, %v22007_v3  ;;  %18799 = vmatprep.subr.mxu1 %v16792_v59 }
0x24e8   :  { %18829 = vmatprep.mubr.msk.f32.mxu0 %vm19213_vm1, %v22260_v6  ;;  %18800 = vmatpush3.msra.mxu1 %v16792_v59 }
0x24e9   :  { %18801 = vmatprep.subr.mxu1 %v16791_v60 }
0x24ea   :  { %18802 = vmatpush3.msra.mxu1 %v16791_v60 }
0x24eb   :  { %18803 = vmatprep.subr.mxu1 %v16790_v51 }
0x24ec   :  { %18804 = vmatpush3.msra.mxu1 %v16790_v51 }
0x24ed   :  { %18805 = vmatprep.subr.mxu1 %v16789_v53 }
0x24ee   :  { %18806 = vmatpush3.msra.mxu1 %v16789_v53 }
0x24ef   :  { %18807 = vmatprep.subr.mxu1 %v16788_v18 }
0x24f0   :  { %18808 = vmatpush3.msra.mxu1 %v16788_v18 }
0x259b   :  { %v18783_v23 = vpop.f32.mrf.mxu0 }
0x259c   :  { %v22042_v17 = vadd.f32 %v18783_v23, %v16779_v54 }
0x259d   :  { %v15552_v12 = vpop.f32.mrf.mxu0 }
0x259e   :  { %v15592_v52 = vmul.f32 %v22042_v17, %v22042_v17  ;;  %v22046_v34 = vadd.f32 %v16779_v54, %v15552_v12 }
0x259f   :  { %v18786_v30 = vpop.f32.mrf.mxu0 }
0x25a0   :  { %v15600_v42 = vmul.f32 %v15592_v52, %v22042_v17  ;;  %v15591_v44 = vmul.f32 %v22046_v34, %v22046_v34  ;;  %v22051_v55 = vadd.f32 %v18786_v30, %v16779_v54 }
0x25a1   :  { %v15562_v58 = vpop.f32.mrf.mxu0 }
0x25a2   :  { %v15608_v14 = vmul.f32 0.044715, %v15600_v42  ;;  %v15599_v0 = vmul.f32 %v15591_v44, %v22046_v34  ;;  %v15594_v35 = vmul.f32 %v22051_v55, %v22051_v55  ;;  %v22056_v19 = vadd.f32 %v16779_v54, %v15562_v58 }
0x25a3   :  { %v18789_v8 = vpop.f32.mrf.mxu0 }
0x25a4   :  { %v15616_v22 = vadd.f32 %v15608_v14, %v22042_v17  ;;  %v15607_v1 = vmul.f32 0.044715, %v15599_v0  ;;  %v15602_v40 = vmul.f32 %v15594_v35, %v22051_v55  ;;  %v15593_v49 = vmul.f32 %v22056_v19, %v22056_v19 }
0x25a5   :  { %v22062_v9 = vadd.f32 %v18789_v8, %v16779_v54  ;;  %v15572_v38 = vpop.f32.mrf.mxu0 }
0x25a6   :  { %v15624_v20 = vmul.f32 0.7978846, %v15616_v22  ;;  %v15615_v45 = vadd.f32 %v15607_v1, %v22046_v34  ;;  %v15610_v24 = vmul.f32 0.044715, %v15602_v40  ;;  %v15601_v4 = vmul.f32 %v15593_v49, %v22056_v19 }
0x25a7   :  { %v15596_v2 = vmul.f32 %v22062_v9, %v22062_v9  ;;  %v22068_v50 = vadd.f32 %v16779_v54, %v15572_v38  ;;  %v18792_v5 = vpop.f32.mrf.mxu0 }
0x25a8   :  { %19177 = vtanh.f32 %v15624_v20  ;;  %v15623_v57 = vmul.f32 0.7978846, %v15615_v45  ;;  %v15618_v10 = vadd.f32 %v15610_v24, %v22051_v55  ;;  %v15609_v29 = vmul.f32 0.044715, %v15601_v4 }
0x25a9   :  { %v15604_v47 = vmul.f32 %v15596_v2, %v22062_v9  ;;  %v15595_v61 = vmul.f32 %v22068_v50, %v22068_v50  ;;  %v22074_v37 = vadd.f32 %v18792_v5, %v16779_v54  ;;  %v15582_v32 = vpop.f32.mrf.mxu0 }
0x25aa   :  { %19179 = vtanh.f32 %v15623_v57  ;;  %v15626_v48 = vmul.f32 0.7978846, %v15618_v10  ;;  %v15617_v31 = vadd.f32 %v15609_v29, %v22056_v19  ;;  %v15583_v15 = vadd.f32 %v16779_v54, %v15582_v32 }
0x25ab   :  { %v15612_v36 = vmul.f32 0.044715, %v15604_v47  ;;  %v15603_v41 = vmul.f32 %v15595_v61, %v22068_v50  ;;  %v15598_v7 = vmul.f32 %v22074_v37, %v22074_v37 }
0x25ac   :  { %19181 = vtanh.f32 %v15626_v48  ;;  %v15625_v25 = vmul.f32 0.7978846, %v15617_v31  ;;  %v15597_v43 = vmul.f32 %v15583_v15, %v15583_v15  ;;  %v16797_v31 = vld [vmem:[%s22223_s17 + $0x1] ss:$0 sm:$0xff] }
0x25ad   :  { %v15620_v27 = vadd.f32 %v15612_v36, %v22062_v9  ;;  %v15611_v28 = vmul.f32 0.044715, %v15603_v41  ;;  %v15606_v46 = vmul.f32 %v15598_v7, %v22074_v37 }
0x25ae   :  { %19183 = vtanh.f32 %v15625_v25  ;;  %v15605_v39 = vmul.f32 %v15597_v43, %v15583_v15 }
0x25af   :  { %v15628_v13 = vmul.f32 0.7978846, %v15620_v27  ;;  %v15619_v56 = vadd.f32 %v15611_v28, %v22068_v50  ;;  %v15614_v59 = vmul.f32 0.044715, %v15606_v46 }
0x25b0   :  { %v15613_v60 = vmul.f32 0.044715, %v15605_v39 }
0x25b1   :  { %19185 = vtanh.f32 %v15628_v13  ;;  %v15627_v51 = vmul.f32 0.7978846, %v15619_v56  ;;  %v15622_v53 = vadd.f32 %v15614_v59, %v22074_v37 }
0x25b2   :  { %v15621_v18 = vadd.f32 %v15613_v60, %v15583_v15 }
0x25b3   :  { %19187 = vtanh.f32 %v15627_v51  ;;  %v15630_v54 = vmul.f32 0.7978846, %v15622_v53 }
0x25b4   :  { %v15629_v23 = vmul.f32 0.7978846, %v15621_v18 }
0x25b5   :  { %v19178_v12 = vpop.eup %19177  ;;  %19189 = vtanh.f32 %v15630_v54 }
0x25b6   :  { %v15640_v52 = vadd.f32 1.0, %v19178_v12  ;;  %19191 = vtanh.f32 %v15629_v23 }
0x25b7   :  { %v19180_v30 = vpop.eup %19179 }
0x25b8   :  { %v15639_v42 = vadd.f32 1.0, %v19180_v30  ;;  %v15648_v58 = vmul.f32 0.5, %v15640_v52 }
0x25b9   :  { %v19182_v44 = vpop.eup %19181 }
0x25ba   :  { %v15642_v14 = vadd.f32 1.0, %v19182_v44  ;;  %v15647_v0 = vmul.f32 0.5, %v15639_v42  ;;  %v15656_v1 = vmul.f32 %v15648_v58, %v22042_v17 }
0x25bb   :  { %v19184_v35 = vpop.eup %19183 }
0x25bc   :  { %v15655_v8 = vmul.f32 %v15647_v0, %v22046_v34  ;;  %v15641_v22 = vadd.f32 1.0, %v19184_v35  ;;  %v15650_v40 = vmul.f32 0.5, %v15642_v14 }
0x25be   :  { %v19186_v49 = vpop.eup %19185  ;;  %18809 = vmatprep.mubr.msk.f32.mxu1 %vm7845_vm3, %v15655_v8  ;;  %v15649_v38 = vmul.f32 0.5, %v15641_v22  ;;  %v15658_v4 = vmul.f32 %v15650_v40, %v22051_v55 }
0x25bf   :  { %v15644_v20 = vadd.f32 1.0, %v19186_v49  ;;  %18810 = vmatmul.mubr.msk.f32.vlgmr.msra.gmra.mxu1 %vm7845_vm3, %v15656_v1 }
0x25c0   :  { %v19188_v45 = vpop.eup %19187  ;;  %v15657_v24 = vmul.f32 %v15649_v38, %v22056_v19 }
0x25c1   :  { %v15643_v2 = vadd.f32 1.0, %v19188_v45  ;;  %v15652_v57 = vmul.f32 0.5, %v15644_v20 }
0x25c2   :  { %v19190_v5 = vpop.eup %19189  ;;  %18812 = vmatprep.mubr.msk.f32.mxu1 %vm7845_vm3, %v15657_v24 }
0x25c3   :  { %v19192_v34 = vpop.eup %19191  ;;  %v15646_v17 = vadd.f32 1.0, %v19190_v5  ;;  %18813 = vmatmul.mubr.msk.f32.gmra.mxu1 %vm7845_vm3, %v15658_v4  ;;  %v15651_v10 = vmul.f32 0.5, %v15643_v2  ;;  %v15660_v61 = vmul.f32 %v15652_v57, %v22062_v9 }
0x25c4   :  { %v15645_v29 = vadd.f32 1.0, %v19192_v34 }
0x25c5   :  { %v15659_v47 = vmul.f32 %v15651_v10, %v22068_v50  ;;  %v15654_v32 = vmul.f32 0.5, %v15646_v17 }
0x25c6   :  { %v15653_v48 = vmul.f32 0.5, %v15645_v29 }
0x25c7   :  { %18815 = vmatprep.mubr.msk.f32.mxu1 %vm7845_vm3, %v15659_v47  ;;  %v15662_v19 = vmul.f32 %v15654_v32, %v22074_v37 }
0x25c8   :  { %18816 = vmatmul.mubr.msk.f32.gmra.mxu1 %vm7845_vm3, %v15660_v61  ;;  %v15661_v55 = vmul.f32 %v15653_v48, %v15583_v15 }
0x25ca   :  { %18818 = vmatprep.mubr.msk.f32.mxu1 %vm7845_vm3, %v15661_v55 }
0x25cc   :  { %18819 = vmatmul.mubr.msk.f32.gmra.mxu1 %vm7845_vm3, %v15662_v19 }
0x267f   :  { %v18811_v50 = vpop.f32.mrf.mxu1 }
0x2680   :  { %v15776_v36 = vadd.f32 %v18811_v50, %v16797_v31 }
0x2681   :  { %v15770_v9 = vpop.f32.mrf.mxu1 }
0x2682   :  { %v15810_v41 = vadd.f32 %v15776_v36, %v21979_v26  ;;  %v15771_v7 = vadd.f32 %v16797_v31, %v15770_v9 }
0x2683   :  { %v18814_v25 = vpop.f32.mrf.mxu1 }
0x2684   :  { %v15809_v43 = vadd.f32 %v15771_v7, %v21976_v62  ;;  %v15786_v15 = vadd.f32 %v18814_v25, %v16797_v31  ;;  %v15824_v37 = vsel %vm89_vm0, %v15810_v41, 0.0 }
0x2685   :  { %15825 = vadd.xlane.f32.xlu0 %v15824_v37  ;;  %v15780_v27 = vpop.f32.mrf.mxu1 }
0x2686   :  { %v15812_v28 = vadd.f32 %v15786_v15, %v21989_v11  ;;  %v15781_v46 = vadd.f32 %v16797_v31, %v15780_v27  ;;  %v15821_v56 = vsel %vm89_vm0, %v15809_v43, 0.0  ;;  %v15956_v27 = vld [vmem:[%s22226_s20 + $0x18] sm:$0xff] }
0x2687   :  { %18822 = vmatpush3.msra.mxu0 %v15956_v27 }
0x2688   :  { %v15811_v39 = vadd.f32 %v15781_v46, %v21986_v33  ;;  %v18817_v13 = vpop.f32.mrf.mxu1  ;;  %v15830_v59 = vsel %vm89_vm0, %v15812_v28, 0.0  ;;  %18823 = vmatprep.subr.mxu0 %v22260_v6  ;;  %v15954_v46 = vld [vmem:[%s22226_s20 + $0x8] sm:$0xff] }
0x2689   :  { %v15796_v26 = vadd.f32 %v18817_v13, %v16797_v31  ;;  %15822 = vadd.xlane.f32.xlu0 %v15821_v56  ;;  %15831 = vadd.xlane.f32.xlu1 %v15830_v59 }
0x268a   :  { %v15790_v60 = vpop.f32.mrf.mxu1  ;;  %v15827_v18 = vsel %vm89_vm0, %v15811_v39, 0.0 }
0x268b   :  { %v15791_v62 = vadd.f32 %v16797_v31, %v15790_v60  ;;  %v15814_v51 = vadd.f32 %v15796_v26, %v21999_v63 }
0x268c   :  { %v18820_v53 = vpop.f32.mrf.mxu1 }
0x268d   :  { %v15813_v11 = vadd.f32 %v15791_v62, %v21996_v16  ;;  %v15806_v54 = vadd.f32 %v18820_v53, %v16797_v31  ;;  %15828 = vadd.xlane.f32.xlu1 %v15827_v18  ;;  %v15836_v30 = vsel %vm89_vm0, %v15814_v51, 0.0 }
0x268e   :  { %v15800_v33 = vpop.f32.mrf.mxu1 }
0x268f   :  { %v15801_v23 = vadd.f32 %v16797_v31, %v15800_v33  ;;  %v15833_v12 = vsel %vm89_vm0, %v15813_v11, 0.0  ;;  %v15816_v52 = vadd.f32 %v15806_v54, %v22007_v3 }
0x2690   :  { %15834 = vadd.xlane.f32.xlu0 %v15833_v12 }
0x2691   :  { %v15815_v42 = vadd.f32 %v15801_v23, %v22005_v21  ;;  %15837 = vadd.xlane.f32.xlu1 %v15836_v30  ;;  %v15842_v44 = vsel %vm89_vm0, %v15816_v52, 0.0 }
0x2693   :  { %v15839_v63 = vsel %vm89_vm0, %v15815_v42, 0.0 }
0x2694   :  { %15840 = vadd.xlane.f32.xlu0 %v15839_v63 }
0x2695   :  { %15843 = vadd.xlane.f32.xlu1 %v15842_v44 }
0x270e   :  { %v15826_v16 = vpop.xlane.xlu0 %15825 }
0x270f   :  { %v15846_v58 = vmul.f32 0.03125, %v15826_v16 }
0x2711   :  { %v22118_v14 = vsub.f32 %v15810_v41, %v15846_v58 }
0x2712   :  { %v15832_v0 = vpop.xlane.xlu1 %15831  ;;  %v15823_v35 = vpop.xlane.xlu0 %15822 }
0x2713   :  { %v15848_v8 = vmul.f32 0.03125, %v15832_v0  ;;  %v15845_v3 = vmul.f32 0.03125, %v15823_v35  ;;  %v15862_v22 = vmul.f32 %v22118_v14, %v22118_v14 }
0x2715   :  { %v22122_v1 = vsub.f32 %v15812_v28, %v15848_v8  ;;  %v22124_v21 = vsub.f32 %v15809_v43, %v15845_v3  ;;  %v15872_v40 = vsel %vm89_vm0, %v15862_v22, 0.0  ;;  %v15955_v28 = vld [vmem:[%s22226_s20 + $0x10] sm:$0xff] }
0x2716   :  { %v15829_v49 = vpop.xlane.xlu1 %15828  ;;  %15873 = vadd.xlane.f32.xlu0 %v15872_v40  ;;  %18824 = vmatpush3.msra.mxu0 %v15955_v28  ;;  %v16808_v40 = vld [vmem:[%s22224_s18 + $0x1] ss:$0 sm:$0xff] }
0x2717   :  { %v15847_v38 = vmul.f32 0.03125, %v15829_v49  ;;  %v15864_v20 = vmul.f32 %v22122_v1, %v22122_v1  ;;  %v15861_v45 = vmul.f32 %v22124_v21, %v22124_v21  ;;  %18825 = vmatprep.subr.mxu0 %v22260_v6 }
0x2718   :  { %18826 = vmatpush3.msra.mxu0 %v15954_v46 }
0x2719   :  { %v22131_v24 = vsub.f32 %v15811_v39, %v15847_v38  ;;  %v15835_v4 = vpop.xlane.xlu0 %15834  ;;  %v15878_v2 = vsel %vm89_vm0, %v15864_v20, 0.0  ;;  %v15869_v5 = vsel %vm89_vm0, %v15861_v45, 0.0  ;;  %v15953_v39 = vld [vmem:[%s22226_s20] sm:$0xff]  ;;  %18827 = vmatprep.subr.mxu0 %v22260_v6 }
0x271a   :  { %v15849_v57 = vmul.f32 0.03125, %v15835_v4  ;;  %v15838_v34 = vpop.xlane.xlu1 %15837  ;;  %15879 = vadd.xlane.f32.xlu1 %v15878_v2  ;;  %15870 = vadd.xlane.f32.xlu0 %v15869_v5  ;;  %v16809_v2 = vld [vmem:[%s22225_s19 + $0x1] ss:$0 sm:$0xff] }
0x271b   :  { %v15850_v17 = vmul.f32 0.03125, %v15838_v34  ;;  %v15863_v10 = vmul.f32 %v22131_v24, %v22131_v24  ;;  %18828 = vmatpush3.msra.mxu0 %v15953_v39 }
0x271c   :  { %v22137_v29 = vsub.f32 %v15813_v11, %v15849_v57  ;;  %18832 = vmatprep.subr.mxu0 %v22260_v6 }
0x271d   :  { %v22139_v47 = vsub.f32 %v15814_v51, %v15850_v17  ;;  %v15841_v61 = vpop.xlane.xlu0 %15840  ;;  %v15875_v32 = vsel %vm89_vm0, %v15863_v10, 0.0 }
0x271e   :  { %v15851_v48 = vmul.f32 0.03125, %v15841_v61  ;;  %15876 = vadd.xlane.f32.xlu1 %v15875_v32  ;;  %v15844_v55 = vpop.xlane.xlu1 %15843  ;;  %v15865_v19 = vmul.f32 %v22137_v29, %v22137_v29 }
0x271f   :  { %v15852_v31 = vmul.f32 0.03125, %v15844_v55  ;;  %v15866_v50 = vmul.f32 %v22139_v47, %v22139_v47 }
0x2720   :  { %v22146_v36 = vsub.f32 %v15815_v42, %v15851_v48  ;;  %v15881_v9 = vsel %vm89_vm0, %v15865_v19, 0.0 }
0x2721   :  { %v22149_v41 = vsub.f32 %v15816_v52, %v15852_v31  ;;  %15882 = vadd.xlane.f32.xlu0 %v15881_v9  ;;  %v15884_v7 = vsel %vm89_vm0, %v15866_v50, 0.0 }
0x2722   :  { %15885 = vadd.xlane.f32.xlu1 %v15884_v7  ;;  %v15867_v25 = vmul.f32 %v22146_v36, %v22146_v36 }
0x2723   :  { %v15868_v43 = vmul.f32 %v22149_v41, %v22149_v41 }
0x2724   :  { %v15887_v15 = vsel %vm89_vm0, %v15867_v25, 0.0 }
0x2725   :  { %15888 = vadd.xlane.f32.xlu0 %v15887_v15  ;;  %v15890_v37 = vsel %vm89_vm0, %v15868_v43, 0.0 }
0x2726   :  { %15891 = vadd.xlane.f32.xlu1 %v15890_v37 }
0x279f   :  { %v15874_v13 = vpop.xlane.xlu0 %15873 }
0x27a0   :  { %v15894_v56 = vmul.f32 0.03125, %v15874_v13 }
0x27a2   :  { %v15902_v59 = vadd.f32 1e-12, %v15894_v56 }
0x27a3   :  { %v15880_v26 = vpop.xlane.xlu1 %15879  ;;  %v15871_v60 = vpop.xlane.xlu0 %15870 }
0x27a4   :  { %19193 = vrsqrt.f32 %v15902_v59  ;;  %v15896_v62 = vmul.f32 0.03125, %v15880_v26  ;;  %v15893_v51 = vmul.f32 0.03125, %v15871_v60 }
0x27a6   :  { %v15904_v53 = vadd.f32 1e-12, %v15896_v62  ;;  %v15901_v18 = vadd.f32 1e-12, %v15893_v51 }
0x27a7   :  { %v15877_v11 = vpop.xlane.xlu1 %15876 }
0x27a8   :  { %19195 = vrsqrt.f32 %v15904_v53  ;;  %v15895_v54 = vmul.f32 0.03125, %v15877_v11 }
0x27a9   :  { %19197 = vrsqrt.f32 %v15901_v18 }
0x27aa   :  { %v15903_v33 = vadd.f32 1e-12, %v15895_v54  ;;  %v15883_v23 = vpop.xlane.xlu0 %15882  ;;  %v29_v54 = vstv %s22227_s23 }
0x27ab   :  { %v15897_v12 = vmul.f32 0.03125, %v15883_v23  ;;  %v15886_v52 = vpop.xlane.xlu1 %15885  ;;  %30 = vst [vmem:[#allocation2] sm:$0x1] %v29_v54  ;;  %v16810_v23 = vld [vmem:[%s22228_s21] ss:$0 sm:$0xff] }
0x27ac   :  { %19199 = vrsqrt.f32 %v15903_v33  ;;  %v15898_v30 = vmul.f32 0.03125, %v15886_v52 }
0x27ad   :  { %v15905_v42 = vadd.f32 1e-12, %v15897_v12 }
0x27ae   :  { %v15906_v63 = vadd.f32 1e-12, %v15898_v30  ;;  %v15889_v44 = vpop.xlane.xlu0 %15888 }
0x27af   :  { %19201 = vrsqrt.f32 %v15905_v42  ;;  %v15899_v16 = vmul.f32 0.03125, %v15889_v44  ;;  %v15892_v58 = vpop.xlane.xlu1 %15891  ;;  %v22261_v44 = vld [vmem:[#allocation3_spill] sm:$0xff] }
0x27b0   :  { %19203 = vrsqrt.f32 %v15906_v63  ;;  %v15900_v0 = vmul.f32 0.03125, %v15892_v58 }
0x27b1   :  { %v19194_v35 = vpop.eup %19193  ;;  %v15907_v8 = vadd.f32 1e-12, %v15899_v16 }
0x27b2   :  { %v15908_v3 = vadd.f32 1e-12, %v15900_v0  ;;  %v15918_v22 = vmul.f32 %v19194_v35, %v22118_v14  ;;  %v16067_v33 = vld [vmem:[#allocation2] sm:$0x1] }
0x27b3   :  { %19205 = vrsqrt.f32 %v15907_v8 }
0x27b4   :  { %19207 = vrsqrt.f32 %v15908_v3  ;;  %v15932_v45 = vmul.f32 %v16808_v40, %v15918_v22 }
0x27b5   :  { %v19196_v49 = vpop.eup %19195 }
0x27b6   :  { %v19198_v38 = vpop.eup %19197  ;;  %v15920_v20 = vmul.f32 %v19196_v49, %v22122_v1  ;;  %v15946_v17 = vadd.f32 %v16809_v2, %v15932_v45 }
0x27b7   :  { %v15917_v4 = vmul.f32 %v19198_v38, %v22124_v21 }
0x27b8   :  { %v15934_v57 = vmul.f32 %v16808_v40, %v15920_v20  ;;  %v15972_v31 = vrot.slane %v15946_v17, 7 }
0x27b9   :  { %v19200_v5 = vpop.eup %19199  ;;  %v15931_v14 = vmul.f32 %v16808_v40, %v15917_v4 }
0x27ba   :  { %v15919_v34 = vmul.f32 %v19200_v5, %v22131_v24  ;;  %v15948_v48 = vadd.f32 %v16809_v2, %v15934_v57 }
0x27bb   :  { %v15945_v55 = vadd.f32 %v16809_v2, %v15931_v14 }
0x27bc   :  { %v19202_v10 = vpop.eup %19201  ;;  %v15933_v61 = vmul.f32 %v16808_v40, %v15919_v34  ;;  %v15978_v43 = vrot.slane %v15948_v48, 5 }
0x27bd   :  { %v19204_v32 = vpop.eup %19203  ;;  %v15921_v1 = vmul.f32 %v19202_v10, %v22137_v29  ;;  %v15974_v15 = vsel %vm15973_vm4, %v15972_v31, %v15945_v55 }
0x27be   :  { %v15947_v19 = vadd.f32 %v16809_v2, %v15933_v61  ;;  %v15922_v21 = vmul.f32 %v19204_v32, %v22139_v47 }
0x27bf   :  { %v15935_v50 = vmul.f32 %v16808_v40, %v15921_v1 }
0x27c0   :  { %v19206_v9 = vpop.eup %19205  ;;  %v15975_v7 = vrot.slane %v15947_v19, 6  ;;  %v15936_v25 = vmul.f32 %v16808_v40, %v15922_v21 }
0x27c1   :  { %v19208_v24 = vpop.eup %19207  ;;  %v15949_v37 = vadd.f32 %v16809_v2, %v15935_v50  ;;  %v15923_v27 = vmul.f32 %v19206_v9, %v22146_v36 }
0x27c2   :  { %v15950_v28 = vadd.f32 %v16809_v2, %v15936_v25  ;;  %v15924_v29 = vmul.f32 %v19208_v24, %v22149_v41  ;;  %v15977_v46 = vsel %vm15976_vm5, %v15975_v7, %v15974_v15  ;;  %v19214_v41 = vmov 0  }
0x27c3   :  { %v15981_v39 = vrot.slane %v15949_v37, 4  ;;  %v15937_v47 = vmul.f32 %v16808_v40, %v15923_v27  ;;  %v15980_v13 = vsel %vm15979_vm6, %v15978_v43, %v15977_v46  ;;  %18840 = vset.pattern.permute.xlu0 %v19214_v41 }
0x27c4   :  { %v15984_v56 = vrot.slane %v15950_v28, 3  ;;  %v15938_v59 = vmul.f32 %v16808_v40, %v15924_v29  ;;  %16070 = vperm.xlu0 %18840, %v16067_v33  }
0x27c5   :  { %v15951_v26 = vadd.f32 %v16809_v2, %v15937_v47  ;;  %v15983_v60 = vsel %vm15982_vm7, %v15981_v39, %v15980_v13 }
0x27c6   :  { %v15952_v62 = vadd.f32 %v16809_v2, %v15938_v59  ;;  %v15986_v51 = vsel %vm15985_vm8, %v15984_v56, %v15983_v60 }
0x27c7   :  { %v15987_v53 = vrot.slane %v15951_v26, 2 }
0x27c8   :  { %v15990_v18 = vrot.slane %v15952_v62, 1 }
0x27c9   :  { %v15989_v36 = vsel %vm15988_vm9, %v15987_v53, %v15986_v51 }
0x27ca   :  { %v15992_v11 = vsel %vm15991_vm10, %v15990_v18, %v15989_v36 }
0x27cb   :  { %18830 = vmatmul.mubr.msk.f32.vlgmr.msra.gmra.mxu0 %vm89_vm0, %v15992_v11 }
0x27cc   :  { %18834 = vmatprep.mubr.msk.f32.mxu0 %vm19213_vm1, %v22260_v6  ;;  %v16066_v6 = vld [vmem:[%s22229_s22] sm:$0x1] }
0x283f   :  { %v16071_v63 = vpop.permute.xlu0 %16070 }
0x2840   :  { %v16076_v16 = vrot.slane %v16071_v63, %v22261_v44 }
0x288b   :  { %v16061_v12 = vpop.f32.mrf.mxu0 }
0x288c   :  { %v16062_v52 = vadd.f32 %v16810_v23, %v16061_v12 }
0x288d   :  { %v18831_v30 = vpop.f32.mrf.mxu0 }
0x288e   :  { %19209 = vtanh.f32 %v16062_v52 }
0x289b   :  { %v19210_v42 = vpop.eup %19209 }
0x289c   :  { %18833 = vmatpush3.xpose.msk.msra.mxu0 %vm89_vm0, %v19210_v42 }
0x289f   :  { %18835 = vmatmul.mubr.msk.f32.vlgmr.msra.gmra.mxu0 %vm89_vm0, %v16066_v6 }
0x295f   :  { %v16149_v58 = vpop.f32.mrf.mxu0 }
0x2960   :  { %v16150_v0 = vadd.f32 %v16149_v58, %v16076_v16 }
0x2961   :  { %v18836_v35 = vpop.f32.mrf.mxu0 }
0x2962   :  { %16154 = vst.msk [vmem:[%s22230_s24] sm:$0x1] %vm16153_vm11, %v16150_v0 }

</bundles_post_ra>
